<compile_context>
chip_gen: v7x
topology: tpu7x:2x2x1
jax: 0.10.0
libtpu: 0.0.40
codegen_flags: <defaults>
</compile_context>

<pallas_src>
import math
from functools import partial

import jax
import jax.numpy as jnp
from jax.experimental import pallas as pl
from jax.experimental.pallas import tpu as pltpu

BN_EPS = 1e-5
_TN_MAX = 2048          # max lane tile for the im2col/matmul kernel
_FLAT_TN_PREF = 2048    # preferred lane tile for the fused flat-conv kernel (grows to halo)


def _round_up(x, m):
    return ((x + m - 1) // m) * m


def _detect_vmem_limit():
    """Scoped-VMEM limit for pallas_call: 3/4 of physical VMEM, capped at 96 MiB,
    with a conservative 32 MiB fallback (>= default scoped limit on every generation)."""
    try:
        cap = getattr(pltpu.get_tpu_info(), "vmem_capacity_bytes", None)
        if cap:
            return int(min(int(cap) * 3 // 4, 96 * 1024 * 1024))
    except Exception:
        pass
    return 32 * 1024 * 1024


_VMEM_LIMIT = _detect_vmem_limit()


# ----------------------------------------------------------------------------
# Pallas kernel 1: halo-tiled fused direct conv (stride 1) on the flattened padded volume
#   x0_ref: (Cin, TN) bf16   lane tile i of the padded flat volume
#   x1_ref: (Cin, TN) bf16   lane tile i+1 (halo; TN >= max tap offset)
#   w_ref : (Cout, taps*Cin) bf16  folded-BN weights, tap-major rows
#   b_ref : (Cout, 1) f32          folded-BN bias
#   o_ref : (Cout, TN)             lane-dense, single unmasked full-tile store
# ----------------------------------------------------------------------------
def _flat_conv_kernel(offsets, tn, apply_relu):
    def kernel(x0_ref, x1_ref, w_ref, b_ref, o_ref):
        xcat = jnp.concatenate([x0_ref[...], x1_ref[...]], axis=1)          # (Cin, 2*TN)
        # In-kernel im2col of this tile: one (taps*Cin, TN) bf16 patch matrix,
        # then ONE fused-K matmul instead of 27 per-tap dots + a f32 VMEM accumulator.
        patches = jnp.concatenate([xcat[:, off:off + tn] for off in offsets], axis=0)
        y = jnp.dot(w_ref[...], patches, preferred_element_type=jnp.float32)
        y = y + b_ref[...]
        if apply_relu:
            y = jnp.maximum(y, 0.0)
        o_ref[...] = y.astype(o_ref.dtype)
    return kernel


def _flat_tiles(length, max_off):
    """Lane tile (>= halo, multiple of 128) and an even tile count >= 2."""
    tn = max(128, _round_up(max_off, 128))                       # halo fits within one tile
    tn = max(tn, min(_FLAT_TN_PREF, _round_up(-(-length // 2), 128)))
    n = max(2, -(-length // tn))
    if n % 2:
        n += 1                                                   # even count -> v7x megacore balance
    return tn, n


def _flat_vmem_bytes(cin, cout, taps, tn, out_bytes):
    """Per-step VMEM footprint estimate, including double buffering and in-kernel patches."""
    per_lane = (2 * cin * 2 * 2          # two shifted input blocks, double-buffered, bf16
                + cout * out_bytes * 2    # output block, double-buffered
                + cin * 2 * 2             # xcat intermediate (Cin, 2*TN) bf16
                + taps * cin * 2          # patch matrix (taps*Cin, TN) bf16
                + cout * 4)               # f32 matmul result
    return tn * per_lane + 4 * taps * cin * cout * 2


def _conv3d_flat(x_cm, w_f, bias, padding, relu, out_dtype, tn, n_tiles):
    """Fused stride-1 conv, no HBM im2col.  x_cm: (Cin, B, D, H, W) channels-major."""
    cin, b, d, h, w_sp = x_cm.shape
    cout = w_f.shape[0]
    kd, kh, kw = w_f.shape[2:]
    pd, ph, pw = padding
    dp, hp, wp = d + 2 * pd, h + 2 * ph, w_sp + 2 * pw
    do, ho, wo = dp - kd + 1, hp - kh + 1, wp - kw + 1
    L = b * dp * hp * wp
    taps = kd * kh * kw
    offsets = tuple(dz * hp * wp + dy * wp + dx
                    for dz in range(kd) for dy in range(kh) for dx in range(kw))
    L_out = n_tiles * tn
    L_in = (n_tiles + 1) * tn        # one extra (zero) tile so the halo spec never runs OOB

    xp = jnp.pad(x_cm.astype(jnp.bfloat16),
                 ((0, 0), (0, 0), (pd, pd), (ph, ph), (pw, pw))).reshape(cin, L)
    xp = jnp.pad(xp, ((0, 0), (0, L_in - L)))
    w2 = w_f.transpose(0, 2, 3, 4, 1).reshape(cout, taps * cin).astype(jnp.bfloat16)
    bias2d = bias.reshape(cout, 1).astype(jnp.float32)

    out = pl.pallas_call(
        _flat_conv_kernel(offsets, tn, relu),
        out_shape=jax.ShapeDtypeStruct((cout, L_out), out_dtype),
        grid_spec=pltpu.PrefetchScalarGridSpec(
            num_scalar_prefetch=0,
            grid=(n_tiles,),
            in_specs=[
                pl.BlockSpec((cin, tn), lambda i: (0, i)),          # lane tile i
                pl.BlockSpec((cin, tn), lambda i: (0, i + 1)),      # lane tile i+1 (halo)
                pl.BlockSpec((cout, taps * cin), lambda i: (0, 0)),  # weights resident
                pl.BlockSpec((cout, 1), lambda i: (0, 0)),           # folded-BN bias
            ],
            out_specs=pl.BlockSpec((cout, tn), lambda i: (0, i)),
        ),
        compiler_params=pltpu.CompilerParams(
            dimension_semantics=("parallel",),
            vmem_limit_bytes=_VMEM_LIMIT),
    )(xp, xp, w2, bias2d)

    # Crop to valid output positions; wrap-contaminated / padded tail lanes all lie outside
    # the kept [:do,:ho,:wo] region.
    # TODO(synk): back-to-back stride-1 convs still crop->re-pad through HBM; keeping the
    #             padded-flat layout with in-kernel border masking would save two full
    #             HBM passes per conv pair.
    return out[:, :L].reshape(cout, b, dp, hp, wp)[:, :, :do, :ho, :wo]


# ----------------------------------------------------------------------------
# Pallas kernel 2: lane-dense matmul  out = act(W @ patches + bias)
# ----------------------------------------------------------------------------
def _matmul_kernel(apply_relu):
    def kernel(w_ref, p_ref, b_ref, o_ref):
        y = jnp.dot(w_ref[...], p_ref[...], preferred_element_type=jnp.float32)
        y = y + b_ref[...]
        if apply_relu:
            y = jnp.maximum(y, 0.0)
        o_ref[...] = y.astype(o_ref.dtype)
    return kernel


def _pick_lane_tile(m):
    """>=2 equal 128-multiple lane tiles (even count) so v7x can shard both TensorCores."""
    m_pad = _round_up(max(m, 1), 128)
    n = max(2, -(-m_pad // _TN_MAX))
    if n % 2:
        n += 1
    tn = _round_up(-(-m_pad // n), 128)
    return tn, tn * n


def _matmul_bias_act(w_t, patches, bias, relu, out_dtype):
    cout, k = w_t.shape
    m = patches.shape[1]
    tn, m_pad = _pick_lane_tile(m)
    if m_pad != m:
        patches = jnp.pad(patches, ((0, 0), (0, m_pad - m)))
    out = pl.pallas_call(
        _matmul_kernel(relu),
        out_shape=jax.ShapeDtypeStruct((cout, m_pad), out_dtype),
        grid_spec=pltpu.PrefetchScalarGridSpec(
            num_scalar_prefetch=0,
            grid=(m_pad // tn,),
            in_specs=[
                pl.BlockSpec((cout, k), lambda i: (0, 0)),   # weights resident
                pl.BlockSpec((k, tn), lambda i: (0, i)),     # lane-tiled patches
                pl.BlockSpec((cout, 1), lambda i: (0, 0)),   # folded-BN bias
            ],
            out_specs=pl.BlockSpec((cout, tn), lambda i: (0, i)),
        ),
        compiler_params=pltpu.CompilerParams(
            dimension_semantics=("parallel",),
            vmem_limit_bytes=_VMEM_LIMIT),
    )(w_t.astype(jnp.bfloat16), patches.astype(jnp.bfloat16),
      bias.reshape(cout, 1).astype(jnp.float32))
    return out[:, :m] if m_pad != m else out


def _conv3d_im2col(x_cm, w_f, bias, stride, padding, relu, out_dtype):
    """Conv via channel-major im2col (7x7x7 stem, stride-2 convs, 1x1x1 convs)."""
    cin, b, d, h, w_sp = x_cm.shape
    cout = w_f.shape[0]
    kd, kh, kw = w_f.shape[2:]
    sd, sh, sw = stride
    pd, ph, pw = padding
    xp = jnp.pad(x_cm.astype(jnp.bfloat16),
                 ((0, 0), (0, 0), (pd, pd), (ph, ph), (pw, pw)))
    dp, hp, wp = d + 2 * pd, h + 2 * ph, w_sp + 2 * pw
    do = (dp - kd) // sd + 1
    ho = (hp - kh) // sh + 1
    wo = (wp - kw) // sw + 1
    m = b * do * ho * wo
    if (kd, kh, kw) == (1, 1, 1):
        # 1x1x1: no patch expansion — just a (possibly strided) channel matmul.
        patches = xp[:, :, 0:sd * do:sd, 0:sh * ho:sh, 0:sw * wo:sw].reshape(cin, m)
    else:
        # TODO(synk): stem / stride-2 patches are still materialized wrapper-side
        #             (k^3 HBM blow-up); in-kernel strided patch DMA would remove that
        #             round trip (mainly a v5e bandwidth concern).
        cols = []
        for dz in range(kd):
            for dy in range(kh):
                for dx in range(kw):
                    cols.append(xp[:, :, dz:dz + sd * do:sd,
                                   dy:dy + sh * ho:sh, dx:dx + sw * wo:sw])
        patches = jnp.stack(cols, axis=1).reshape(cin * kd * kh * kw, m)
    w_t = w_f.reshape(cout, cin * kd * kh * kw)
    out = _matmul_bias_act(w_t, patches, bias, relu, out_dtype)
    return out.reshape(cout, b, do, ho, wo)


# ----------------------------------------------------------------------------
# Conv + folded BN + activation dispatcher
# ----------------------------------------------------------------------------
def _fold_bn(weight, bn):
    if bn is None:
        return weight, jnp.zeros((weight.shape[0],), jnp.float32)
    s = bn["gamma"] * jax.lax.rsqrt(bn["var"] + BN_EPS)
    b = bn["beta"] - bn["mean"] * s
    return weight * s[:, None, None, None, None], b


def conv3d_bn_act(x_cm, weight, bn, stride=1, padding=0, relu=False,
                  out_dtype=jnp.bfloat16):
    if isinstance(stride, int):
        stride = (stride,) * 3
    if isinstance(padding, int):
        padding = (padding,) * 3
    w_f, bias = _fold_bn(weight, bn)
    kd, kh, kw = weight.shape[2:]
    n_taps = kd * kh * kw
    cin, b, d, h, w_sp = x_cm.shape
    cout = weight.shape[0]
    if stride == (1, 1, 1) and 1 < n_taps <= 32:
        dp, hp, wp = d + 2 * padding[0], h + 2 * padding[1], w_sp + 2 * padding[2]
        L = b * dp * hp * wp
        max_off = (kd - 1) * hp * wp + (kh - 1) * wp + (kw - 1)
        tn, n_tiles = _flat_tiles(L, max_off)
        out_bytes = jnp.dtype(out_dtype).itemsize
        if _flat_vmem_bytes(cin, cout, n_taps, tn, out_bytes) <= int(0.6 * _VMEM_LIMIT):
            return _conv3d_flat(x_cm, w_f, bias, padding, relu, out_dtype, tn, n_tiles)
        # TODO(synk): manual-DMA halo pipeline for volumes whose halo-forced lane tile
        #             exceeds the VMEM budget, instead of falling back to im2col.
    return _conv3d_im2col(x_cm, w_f, bias, stride, padding, relu, out_dtype)


# ----------------------------------------------------------------------------
# Trilinear interpolation, align_corners=True (separable 1-D linear, XLA glue)
# ----------------------------------------------------------------------------
def _interp1d_align_corners(x, out_size, axis):
    in_size = x.shape[axis]
    if out_size == in_size:
        return x
    if in_size == 1:
        reps = [1] * x.ndim
        reps[axis] = out_size
        return jnp.tile(x, reps)
    if out_size == 1:
        pos = jnp.zeros((1,), jnp.float32)
    else:
        pos = jnp.arange(out_size, dtype=jnp.float32) * (in_size - 1) / (out_size - 1)
    lo = jnp.clip(jnp.floor(pos).astype(jnp.int32), 0, in_size - 1)
    hi = jnp.minimum(lo + 1, in_size - 1)
    w = pos - lo.astype(jnp.float32)
    xl = jnp.take(x, lo, axis=axis)
    xh = jnp.take(x, hi, axis=axis)
    shape = [1] * x.ndim
    shape[axis] = out_size
    w = w.reshape(shape)
    return xl * (1.0 - w) + xh * w


def trilinear_resize(x, size):
    # x is channels-major (C, B, D, H, W) -> spatial axes are 2, 3, 4
    for ax, s in zip((2, 3, 4), size):
        x = _interp1d_align_corners(x, s, ax)
    return x


# ----------------------------------------------------------------------------
# Parameters (deterministic kaiming_normal fan_out, eval-mode BN like torch init)
# ----------------------------------------------------------------------------
def _kaiming(key, shape):
    fan_out = shape[0] * math.prod(shape[2:])
    std = math.sqrt(2.0 / fan_out)
    return (std * jax.random.normal(key, shape)).astype(jnp.float32)


def _bn_params(c):
    return {"gamma": jnp.ones((c,), jnp.float32), "beta": jnp.zeros((c,), jnp.float32),
            "mean": jnp.zeros((c,), jnp.float32), "var": jnp.ones((c,), jnp.float32)}


def init_params(key, seg_classes=2, k=8):
    keys = iter(jax.random.split(key, 64))
    p = {"l0_w": _kaiming(next(keys), (k, seg_classes, 7, 7, 7)), "l0_bn": _bn_params(k)}

    def block(cin, cout, stride):
        blk = {
            "conv1_w": _kaiming(next(keys), (cout, cin, 3, 3, 3)), "bn1": _bn_params(cout),
            "conv2_w": _kaiming(next(keys), (cout, cout, 3, 3, 3)), "bn2": _bn_params(cout),
        }
        if stride != 1 or cin != cout:
            blk["down_w"] = _kaiming(next(keys), (cout, cin, 1, 1, 1))
            blk["down_bn"] = _bn_params(cout)
        return blk

    p["l1b0"] = block(k, k, 2)
    p["l1b1"] = block(k, k, 1)
    p["l2b0"] = block(k, 2 * k, 2)
    p["l2b1"] = block(2 * k, 2 * k, 1)

    def cbr(cin, cout):
        return {"w": _kaiming(next(keys), (cout, cin, 3, 3, 3)), "bn": _bn_params(cout)}

    p["c2_1"] = cbr(3 * k, k)     # Decoder(2k + k -> k)
    p["c2_2"] = cbr(k, k)
    p["c1_1"] = cbr(2 * k, k)     # Decoder(k + k -> k)
    p["c1_2"] = cbr(k, k)
    p["c0_w"] = _kaiming(next(keys), (seg_classes, k, 1, 1, 1))
    return p


# ----------------------------------------------------------------------------
# GlobalNet forward (channels-major internally, NCDHW at the boundary)
# ----------------------------------------------------------------------------
def _cbr(x, prm):
    return conv3d_bn_act(x, prm["w"], prm["bn"], stride=1, padding=1, relu=True,
                         out_dtype=jnp.bfloat16)


def _basic_block(x, prm, stride):
    out = conv3d_bn_act(x, prm["conv1_w"], prm["bn1"], stride=stride, padding=1,
                        relu=True, out_dtype=jnp.bfloat16)
    out = conv3d_bn_act(out, prm["conv2_w"], prm["bn2"], stride=1, padding=1,
                        relu=False, out_dtype=jnp.float32)
    if "down_w" in prm:
        identity = conv3d_bn_act(x, prm["down_w"], prm["down_bn"], stride=stride,
                                 padding=0, relu=False, out_dtype=jnp.float32)
    else:
        identity = x.astype(jnp.float32)
    # Residual add + ReLU in f32 (layouts already match; a single XLA elementwise pass),
    # then back to bf16 for the next conv.
    return jnp.maximum(out + identity, 0.0).astype(jnp.bfloat16)


def _decoder(x, e, p1, p2):
    up = trilinear_resize(x.astype(jnp.float32), e.shape[2:]).astype(jnp.bfloat16)
    cat = jnp.concatenate([e.astype(jnp.bfloat16), up], axis=0)   # torch.cat([e, interp(x)])
    return _cbr(_cbr(cat, p1), p2)


def one_hot_and_gate(labels, seg_classes):
    lab = labels[:, 0]                                                  # (B, D, H, W)
    xx = jax.nn.one_hot(lab, seg_classes, axis=0, dtype=jnp.float32)    # (C, B, D, H, W)
    gate = jnp.broadcast_to((lab == 0).astype(jnp.float32)[None], xx.shape)
    return xx, gate


def global_net_forward(params, labels, seg_classes=2):
    xx, gate = one_hot_and_gate(labels, seg_classes)
    x_size = xx.shape[2:]
    e0 = conv3d_bn_act(xx, params["l0_w"], params["l0_bn"], stride=2, padding=3,
                       relu=True, out_dtype=jnp.bfloat16)
    e1 = _basic_block(e0, params["l1b0"], 2)
    e1 = _basic_block(e1, params["l1b1"], 1)
    d2 = _basic_block(e1, params["l2b0"], 2)
    d2 = _basic_block(d2, params["l2b1"], 1)
    d1 = _decoder(d2, e1, params["c2_1"], params["c2_2"])
    d0 = _decoder(d1, e0, params["c1_1"], params["c1_2"])
    seg = conv3d_bn_act(d0, params["c0_w"], None, stride=1, padding=0, relu=False,
                        out_dtype=jnp.float32)
    seg = trilinear_resize(seg, x_size)
    y = (1.0 - gate) * xx + gate * seg
    return {"y": jnp.transpose(y, (1, 0, 2, 3, 4))}   # back to NCDHW


# ----------------------------------------------------------------------------
if __name__ == "__main__":
    seg_classes, k = 2, 8
    key = jax.random.PRNGKey(0)
    pkey, xkey = jax.random.split(key)
    params = init_params(pkey, seg_classes=seg_classes, k=k)
    # label volume, values in {0, ..., segClasses-1}
    labels = jax.random.randint(xkey, (2, 1, 16, 16, 16), 0, seg_classes, dtype=jnp.int32)

    fwd = jax.jit(partial(global_net_forward, seg_classes=seg_classes))
    out = fwd(params, labels)
    jax.block_until_ready(out)
    assert out["y"].shape == (2, seg_classes, 16, 16, 16)
    assert out["y"].dtype == jnp.float32
    print("KERNEL_OK")
</pallas_src>

<mosaic_0001>
module attributes {stable_mosaic.version = 11 : i64} {
  func.func @kernel(%arg0: i32, %arg1: memref<8x686xbf16, #tpu.memory_space<vmem>>, %arg2: memref<686x512xbf16, #tpu.memory_space<vmem>>, %arg3: memref<8x1xf32, #tpu.memory_space<vmem>>, %arg4: memref<8x512xbf16, #tpu.memory_space<vmem>>) attributes {dimension_semantics = [#tpu.dimension_semantics<parallel>], iteration_bounds = array<i64: 2>, scalar_prefetch = 0 : i64, scratch_operands = 0 : i64, tpu.core_type = #tpu.core_type<tc>, window_params = [{pipeline_mode = #tpu.pipeline_mode<synchronous>, transform_indices = @transform_0, window_bounds = array<i64: 8, 686>}, {transform_indices = @transform_1, window_bounds = array<i64: 686, 512>}, {pipeline_mode = #tpu.pipeline_mode<synchronous>, transform_indices = @transform_2, window_bounds = array<i64: 8, 1>}, {transform_indices = @transform_3, window_bounds = array<i64: 8, 512>}]} {
    %c0 = arith.constant 0 : index
    %c0_0 = arith.constant 0 : index
    %0 = vector.load %arg1[%c0, %c0_0] : memref<8x686xbf16, #tpu.memory_space<vmem>>, vector<8x686xbf16>
    %c0_1 = arith.constant 0 : index
    %c0_2 = arith.constant 0 : index
    %1 = vector.load %arg2[%c0_1, %c0_2] : memref<686x512xbf16, #tpu.memory_space<vmem>>, vector<686x512xbf16>
    %cst = arith.constant dense<0.000000e+00> : vector<8x512xf32>
    %2 = tpu.matmul %0, %1, %cst {dimension_numbers = #tpu.dot_dimension_numbers<[1], [0], [0], [1], [0, 0, 1, 1], [], []>} : vector<8x686xbf16>, vector<686x512xbf16>, vector<8x512xf32> -> vector<8x512xf32>
    %c0_3 = arith.constant 0 : index
    %c0_4 = arith.constant 0 : index
    %3 = vector.load %arg3[%c0_3, %c0_4] : memref<8x1xf32, #tpu.memory_space<vmem>>, vector<8x1xf32>
    %4 = vector.broadcast %3 : vector<8x1xf32> to vector<8x512xf32>
    %5 = arith.addf %2, %4 : vector<8x512xf32>
    %cst_5 = arith.constant 0.000000e+00 : f32
    %6 = vector.broadcast %cst_5 : f32 to vector<8x512xf32>
    %7 = arith.maximumf %5, %6 : vector<8x512xf32>
    %8 = arith.truncf %7 : vector<8x512xf32> to vector<8x512xbf16>
    %c0_6 = arith.constant 0 : index
    %c0_7 = arith.constant 0 : index
    %9 = vector.load %arg4[%c0_6, %c0_7] : memref<8x512xbf16, #tpu.memory_space<vmem>>, vector<8x512xbf16>
    tpu.vector_store %arg4[%c0_6, %c0_7], %8 {strides = array<i32>} : memref<8x512xbf16, #tpu.memory_space<vmem>>, vector<8x512xbf16>,
    return
  }
  func.func @transform_0(%arg0: i32) -> (i32, i32) {
    %c0_i32 = arith.constant 0 : i32
    %c0_i32_0 = arith.constant 0 : i32
    %c0_i32_1 = arith.constant 0 : i32
    return %c0_i32, %c0_i32_0 : i32, i32
  }
  func.func @transform_1(%arg0: i32) -> (i32, i32) {
    %c0_i32 = arith.constant 0 : i32
    %c0_i32_0 = arith.constant 0 : i32
    return %c0_i32, %arg0 : i32, i32
  }
  func.func @transform_2(%arg0: i32) -> (i32, i32) {
    %c0_i32 = arith.constant 0 : i32
    %c0_i32_0 = arith.constant 0 : i32
    %c0_i32_1 = arith.constant 0 : i32
    return %c0_i32, %c0_i32_0 : i32, i32
  }
  func.func @transform_3(%arg0: i32) -> (i32, i32) {
    %c0_i32 = arith.constant 0 : i32
    %c0_i32_0 = arith.constant 0 : i32
    return %c0_i32, %arg0 : i32, i32
  }
}

module attributes {stable_mosaic.version = 11 : i64} {
  func.func @kernel(%arg0: i32, %arg1: memref<8x216xbf16, #tpu.memory_space<vmem>>, %arg2: memref<216x128xbf16, #tpu.memory_space<vmem>>, %arg3: memref<8x1xf32, #tpu.memory_space<vmem>>, %arg4: memref<8x128xbf16, #tpu.memory_space<vmem>>) attributes {dimension_semantics = [#tpu.dimension_semantics<parallel>], iteration_bounds = array<i64: 2>, scalar_prefetch = 0 : i64, scratch_operands = 0 : i64, tpu.core_type = #tpu.core_type<tc>, window_params = [{pipeline_mode = #tpu.pipeline_mode<synchronous>, transform_indices = @transform_0, window_bounds = array<i64: 8, 216>}, {transform_indices = @transform_1, window_bounds = array<i64: 216, 128>}, {pipeline_mode = #tpu.pipeline_mode<synchronous>, transform_indices = @transform_2, window_bounds = array<i64: 8, 1>}, {transform_indices = @transform_3, window_bounds = array<i64: 8, 128>}]} {
    %c0 = arith.constant 0 : index
    %c0_0 = arith.constant 0 : index
    %0 = vector.load %arg1[%c0, %c0_0] : memref<8x216xbf16, #tpu.memory_space<vmem>>, vector<8x216xbf16>
    %c0_1 = arith.constant 0 : index
    %c0_2 = arith.constant 0 : index
    %1 = vector.load %arg2[%c0_1, %c0_2] : memref<216x128xbf16, #tpu.memory_space<vmem>>, vector<216x128xbf16>
    %cst = arith.constant dense<0.000000e+00> : vector<8x128xf32>
    %2 = tpu.matmul %0, %1, %cst {dimension_numbers = #tpu.dot_dimension_numbers<[1], [0], [0], [1], [0, 0, 1, 1], [], []>} : vector<8x216xbf16>, vector<216x128xbf16>, vector<8x128xf32> -> vector<8x128xf32>
    %c0_3 = arith.constant 0 : index
    %c0_4 = arith.constant 0 : index
    %3 = vector.load %arg3[%c0_3, %c0_4] : memref<8x1xf32, #tpu.memory_space<vmem>>, vector<8x1xf32>
    %4 = vector.broadcast %3 : vector<8x1xf32> to vector<8x128xf32>
    %5 = arith.addf %2, %4 : vector<8x128xf32>
    %cst_5 = arith.constant 0.000000e+00 : f32
    %6 = vector.broadcast %cst_5 : f32 to vector<8x128xf32>
    %7 = arith.maximumf %5, %6 : vector<8x128xf32>
    %8 = arith.truncf %7 : vector<8x128xf32> to vector<8x128xbf16>
    %c0_6 = arith.constant 0 : index
    %c0_7 = arith.constant 0 : index
    %9 = vector.load %arg4[%c0_6, %c0_7] : memref<8x128xbf16, #tpu.memory_space<vmem>>, vector<8x128xbf16>
    tpu.vector_store %arg4[%c0_6, %c0_7], %8 {strides = array<i32>} : memref<8x128xbf16, #tpu.memory_space<vmem>>, vector<8x128xbf16>,
    return
  }
  func.func @transform_0(%arg0: i32) -> (i32, i32) {
    %c0_i32 = arith.constant 0 : i32
    %c0_i32_0 = arith.constant 0 : i32
    %c0_i32_1 = arith.constant 0 : i32
    return %c0_i32, %c0_i32_0 : i32, i32
  }
  func.func @transform_1(%arg0: i32) -> (i32, i32) {
    %c0_i32 = arith.constant 0 : i32
    %c0_i32_0 = arith.constant 0 : i32
    return %c0_i32, %arg0 : i32, i32
  }
  func.func @transform_2(%arg0: i32) -> (i32, i32) {
    %c0_i32 = arith.constant 0 : i32
    %c0_i32_0 = arith.constant 0 : i32
    %c0_i32_1 = arith.constant 0 : i32
    return %c0_i32, %c0_i32_0 : i32, i32
  }
  func.func @transform_3(%arg0: i32) -> (i32, i32) {
    %c0_i32 = arith.constant 0 : i32
    %c0_i32_0 = arith.constant 0 : i32
    return %c0_i32, %arg0 : i32, i32
  }
}

module attributes {stable_mosaic.version = 11 : i64} {
  func.func @kernel(%arg0: i32, %arg1: memref<8x256xbf16, #tpu.memory_space<vmem>>, %arg2: memref<8x256xbf16, #tpu.memory_space<vmem>>, %arg3: memref<8x216xbf16, #tpu.memory_space<vmem>>, %arg4: memref<8x1xf32, #tpu.memory_space<vmem>>, %arg5: memref<8x256xf32, #tpu.memory_space<vmem>>) attributes {dimension_semantics = [#tpu.dimension_semantics<parallel>], iteration_bounds = array<i64: 2>, scalar_prefetch = 0 : i64, scratch_operands = 0 : i64, tpu.core_type = #tpu.core_type<tc>, window_params = [{transform_indices = @transform_0, window_bounds = array<i64: 8, 256>}, {transform_indices = @transform_1, window_bounds = array<i64: 8, 256>}, {pipeline_mode = #tpu.pipeline_mode<synchronous>, transform_indices = @transform_2, window_bounds = array<i64: 8, 216>}, {pipeline_mode = #tpu.pipeline_mode<synchronous>, transform_indices = @transform_3, window_bounds = array<i64: 8, 1>}, {transform_indices = @transform_4, window_bounds = array<i64: 8, 256>}]} {
    %c0 = arith.constant 0 : index
    %c0_0 = arith.constant 0 : index
    %0 = vector.load %arg1[%c0, %c0_0] : memref<8x256xbf16, #tpu.memory_space<vmem>>, vector<8x256xbf16>
    %c0_1 = arith.constant 0 : index
    %c0_2 = arith.constant 0 : index
    %1 = vector.load %arg2[%c0_1, %c0_2] : memref<8x256xbf16, #tpu.memory_space<vmem>>, vector<8x256xbf16>
    %2 = tpu.concatenate %0, %1 in 1 : vector<8x256xbf16>, vector<8x256xbf16> -> vector<8x512xbf16>
    %3 = vector.extract_strided_slice %2 {offsets = [0, 0], sizes = [8, 256], strides = [1, 1]} : vector<8x512xbf16> to vector<8x256xbf16>
    %4 = vector.extract_strided_slice %2 {offsets = [0, 1], sizes = [8, 256], strides = [1, 1]} : vector<8x512xbf16> to vector<8x256xbf16>
    %5 = vector.extract_strided_slice %2 {offsets = [0, 2], sizes = [8, 256], strides = [1, 1]} : vector<8x512xbf16> to vector<8x256xbf16>
    %6 = vector.extract_strided_slice %2 {offsets = [0, 6], sizes = [8, 256], strides = [1, 1]} : vector<8x512xbf16> to vector<8x256xbf16>
    %7 = vector.extract_strided_slice %2 {offsets = [0, 7], sizes = [8, 256], strides = [1, 1]} : vector<8x512xbf16> to vector<8x256xbf16>
    %8 = vector.extract_strided_slice %2 {offsets = [0, 8], sizes = [8, 256], strides = [1, 1]} : vector<8x512xbf16> to vector<8x256xbf16>
    %9 = vector.extract_strided_slice %2 {offsets = [0, 12], sizes = [8, 256], strides = [1, 1]} : vector<8x512xbf16> to vector<8x256xbf16>
    %10 = vector.extract_strided_slice %2 {offsets = [0, 13], sizes = [8, 256], strides = [1, 1]} : vector<8x512xbf16> to vector<8x256xbf16>
    %11 = vector.extract_strided_slice %2 {offsets = [0, 14], sizes = [8, 256], strides = [1, 1]} : vector<8x512xbf16> to vector<8x256xbf16>
    %12 = vector.extract_strided_slice %2 {offsets = [0, 36], sizes = [8, 256], strides = [1, 1]} : vector<8x512xbf16> to vector<8x256xbf16>
    %13 = vector.extract_strided_slice %2 {offsets = [0, 37], sizes = [8, 256], strides = [1, 1]} : vector<8x512xbf16> to vector<8x256xbf16>
    %14 = vector.extract_strided_slice %2 {offsets = [0, 38], sizes = [8, 256], strides = [1, 1]} : vector<8x512xbf16> to vector<8x256xbf16>
    %15 = vector.extract_strided_slice %2 {offsets = [0, 42], sizes = [8, 256], strides = [1, 1]} : vector<8x512xbf16> to vector<8x256xbf16>
    %16 = vector.extract_strided_slice %2 {offsets = [0, 43], sizes = [8, 256], strides = [1, 1]} : vector<8x512xbf16> to vector<8x256xbf16>
    %17 = vector.extract_strided_slice %2 {offsets = [0, 44], sizes = [8, 256], strides = [1, 1]} : vector<8x512xbf16> to vector<8x256xbf16>
    %18 = vector.extract_strided_slice %2 {offsets = [0, 48], sizes = [8, 256], strides = [1, 1]} : vector<8x512xbf16> to vector<8x256xbf16>
    %19 = vector.extract_strided_slice %2 {offsets = [0, 49], sizes = [8, 256], strides = [1, 1]} : vector<8x512xbf16> to vector<8x256xbf16>
    %20 = vector.extract_strided_slice %2 {offsets = [0, 50], sizes = [8, 256], strides = [1, 1]} : vector<8x512xbf16> to vector<8x256xbf16>
    %21 = vector.extract_strided_slice %2 {offsets = [0, 72], sizes = [8, 256], strides = [1, 1]} : vector<8x512xbf16> to vector<8x256xbf16>
    %22 = vector.extract_strided_slice %2 {offsets = [0, 73], sizes = [8, 256], strides = [1, 1]} : vector<8x512xbf16> to vector<8x256xbf16>
    %23 = vector.extract_strided_slice %2 {offsets = [0, 74], sizes = [8, 256], strides = [1, 1]} : vector<8x512xbf16> to vector<8x256xbf16>
    %24 = vector.extract_strided_slice %2 {offsets = [0, 78], sizes = [8, 256], strides = [1, 1]} : vector<8x512xbf16> to vector<8x256xbf16>
    %25 = vector.extract_strided_slice %2 {offsets = [0, 79], sizes = [8, 256], strides = [1, 1]} : vector<8x512xbf16> to vector<8x256xbf16>
    %26 = vector.extract_strided_slice %2 {offsets = [0, 80], sizes = [8, 256], strides = [1, 1]} : vector<8x512xbf16> to vector<8x256xbf16>
    %27 = vector.extract_strided_slice %2 {offsets = [0, 84], sizes = [8, 256], strides = [1, 1]} : vector<8x512xbf16> to vector<8x256xbf16>
    %28 = vector.extract_strided_slice %2 {offsets = [0, 85], sizes = [8, 256], strides = [1, 1]} : vector<8x512xbf16> to vector<8x256xbf16>
    %29 = vector.extract_strided_slice %2 {offsets = [0, 86], sizes = [8, 256], strides = [1, 1]} : vector<8x512xbf16> to vector<8x256xbf16>
    %30 = tpu.concatenate %3, %4, %5, %6, %7, %8, %9, %10, %11, %12, %13, %14, %15, %16, %17, %18 in 0 : vector<8x256xbf16>, vector<8x256xbf16>, vector<8x256xbf16>, vector<8x256xbf16>, vector<8x256xbf16>, vector<8x256xbf16>, vector<8x256xbf16>, vector<8x256xbf16>, vector<8x256xbf16>, vector<8x256xbf16>, vector<8x256xbf16>, vector<8x256xbf16>, vector<8x256xbf16>, vector<8x256xbf16>, vector<8x256xbf16>, vector<8x256xbf16> -> vector<128x256xbf16>
    %31 = tpu.concatenate %19, %20, %21, %22, %23, %24, %25, %26, %27, %28, %29 in 0 : vector<8x256xbf16>, vector<8x256xbf16>, vector<8x256xbf16>, vector<8x256xbf16>, vector<8x256xbf16>, vector<8x256xbf16>, vector<8x256xbf16>, vector<8x256xbf16>, vector<8x256xbf16>, vector<8x256xbf16>, vector<8x256xbf16> -> vector<88x256xbf16>
    %32 = tpu.concatenate %30, %31 in 0 : vector<128x256xbf16>, vector<88x256xbf16> -> vector<216x256xbf16>
    %c0_3 = arith.constant 0 : index
    %c0_4 = arith.constant 0 : index
    %33 = vector.load %arg3[%c0_3, %c0_4] : memref<8x216xbf16, #tpu.memory_space<vmem>>, vector<8x216xbf16>
    %cst = arith.constant dense<0.000000e+00> : vector<8x256xf32>
    %34 = tpu.matmul %33, %32, %cst {dimension_numbers = #tpu.dot_dimension_numbers<[1], [0], [0], [1], [0, 0, 1, 1], [], []>} : vector<8x216xbf16>, vector<216x256xbf16>, vector<8x256xf32> -> vector<8x256xf32>
    %c0_5 = arith.constant 0 : index
    %c0_6 = arith.constant 0 : index
    %35 = vector.load %arg4[%c0_5, %c0_6] : memref<8x1xf32, #tpu.memory_space<vmem>>, vector<8x1xf32>
    %36 = vector.broadcast %35 : vector<8x1xf32> to vector<8x256xf32>
    %37 = arith.addf %34, %36 : vector<8x256xf32>
    %c0_7 = arith.constant 0 : index
    %c0_8 = arith.constant 0 : index
    %38 = vector.load %arg5[%c0_7, %c0_8] : memref<8x256xf32, #tpu.memory_space<vmem>>, vector<8x256xf32>
    tpu.vector_store %arg5[%c0_7, %c0_8], %37 {strides = array<i32>} : memref<8x256xf32, #tpu.memory_space<vmem>>, vector<8x256xf32>,
    return
  }
  func.func @transform_0(%arg0: i32) -> (i32, i32) {
    %c0_i32 = arith.constant 0 : i32
    %c0_i32_0 = arith.constant 0 : i32
    return %c0_i32, %arg0 : i32, i32
  }
  func.func @transform_1(%arg0: i32) -> (i32, i32) {
    %c1_i32 = arith.constant 1 : i32
    %0 = arith.addi %arg0, %c1_i32 : i32
    %c0_i32 = arith.constant 0 : i32
    %c0_i32_0 = arith.constant 0 : i32
    return %c0_i32, %0 : i32, i32
  }
  func.func @transform_2(%arg0: i32) -> (i32, i32) {
    %c0_i32 = arith.constant 0 : i32
    %c0_i32_0 = arith.constant 0 : i32
    %c0_i32_1 = arith.constant 0 : i32
    return %c0_i32, %c0_i32_0 : i32, i32
  }
  func.func @transform_3(%arg0: i32) -> (i32, i32) {
    %c0_i32 = arith.constant 0 : i32
    %c0_i32_0 = arith.constant 0 : i32
    %c0_i32_1 = arith.constant 0 : i32
    return %c0_i32, %c0_i32_0 : i32, i32
  }
  func.func @transform_4(%arg0: i32) -> (i32, i32) {
    %c0_i32 = arith.constant 0 : i32
    %c0_i32_0 = arith.constant 0 : i32
    return %c0_i32, %arg0 : i32, i32
  }
}

module attributes {stable_mosaic.version = 11 : i64} {
  func.func @kernel(%arg0: i32, %arg1: memref<8x8xbf16, #tpu.memory_space<vmem>>, %arg2: memref<8x128xbf16, #tpu.memory_space<vmem>>, %arg3: memref<8x1xf32, #tpu.memory_space<vmem>>, %arg4: memref<8x128xf32, #tpu.memory_space<vmem>>) attributes {dimension_semantics = [#tpu.dimension_semantics<parallel>], iteration_bounds = array<i64: 2>, scalar_prefetch = 0 : i64, scratch_operands = 0 : i64, tpu.core_type = #tpu.core_type<tc>, window_params = [{pipeline_mode = #tpu.pipeline_mode<synchronous>, transform_indices = @transform_0, window_bounds = array<i64: 8, 8>}, {transform_indices = @transform_1, window_bounds = array<i64: 8, 128>}, {pipeline_mode = #tpu.pipeline_mode<synchronous>, transform_indices = @transform_2, window_bounds = array<i64: 8, 1>}, {transform_indices = @transform_3, window_bounds = array<i64: 8, 128>}]} {
    %c0 = arith.constant 0 : index
    %c0_0 = arith.constant 0 : index
    %0 = vector.load %arg1[%c0, %c0_0] : memref<8x8xbf16, #tpu.memory_space<vmem>>, vector<8x8xbf16>
    %c0_1 = arith.constant 0 : index
    %c0_2 = arith.constant 0 : index
    %1 = vector.load %arg2[%c0_1, %c0_2] : memref<8x128xbf16, #tpu.memory_space<vmem>>, vector<8x128xbf16>
    %cst = arith.constant dense<0.000000e+00> : vector<8x128xf32>
    %2 = tpu.matmul %0, %1, %cst {dimension_numbers = #tpu.dot_dimension_numbers<[1], [0], [0], [1], [0, 0, 1, 1], [], []>} : vector<8x8xbf16>, vector<8x128xbf16>, vector<8x128xf32> -> vector<8x128xf32>
    %c0_3 = arith.constant 0 : index
    %c0_4 = arith.constant 0 : index
    %3 = vector.load %arg3[%c0_3, %c0_4] : memref<8x1xf32, #tpu.memory_space<vmem>>, vector<8x1xf32>
    %4 = vector.broadcast %3 : vector<8x1xf32> to vector<8x128xf32>
    %5 = arith.addf %2, %4 : vector<8x128xf32>
    %c0_5 = arith.constant 0 : index
    %c0_6 = arith.constant 0 : index
    %6 = vector.load %arg4[%c0_5, %c0_6] : memref<8x128xf32, #tpu.memory_space<vmem>>, vector<8x128xf32>
    tpu.vector_store %arg4[%c0_5, %c0_6], %5 {strides = array<i32>} : memref<8x128xf32, #tpu.memory_space<vmem>>, vector<8x128xf32>,
    return
  }
  func.func @transform_0(%arg0: i32) -> (i32, i32) {
    %c0_i32 = arith.constant 0 : i32
    %c0_i32_0 = arith.constant 0 : i32
    %c0_i32_1 = arith.constant 0 : i32
    return %c0_i32, %c0_i32_0 : i32, i32
  }
  func.func @transform_1(%arg0: i32) -> (i32, i32) {
    %c0_i32 = arith.constant 0 : i32
    %c0_i32_0 = arith.constant 0 : i32
    return %c0_i32, %arg0 : i32, i32
  }
  func.func @transform_2(%arg0: i32) -> (i32, i32) {
    %c0_i32 = arith.constant 0 : i32
    %c0_i32_0 = arith.constant 0 : i32
    %c0_i32_1 = arith.constant 0 : i32
    return %c0_i32, %c0_i32_0 : i32, i32
  }
  func.func @transform_3(%arg0: i32) -> (i32, i32) {
    %c0_i32 = arith.constant 0 : i32
    %c0_i32_0 = arith.constant 0 : i32
    return %c0_i32, %arg0 : i32, i32
  }
}

module attributes {stable_mosaic.version = 11 : i64} {
  func.func @kernel(%arg0: i32, %arg1: memref<8x256xbf16, #tpu.memory_space<vmem>>, %arg2: memref<8x256xbf16, #tpu.memory_space<vmem>>, %arg3: memref<8x216xbf16, #tpu.memory_space<vmem>>, %arg4: memref<8x1xf32, #tpu.memory_space<vmem>>, %arg5: memref<8x256xbf16, #tpu.memory_space<vmem>>) attributes {dimension_semantics = [#tpu.dimension_semantics<parallel>], iteration_bounds = array<i64: 2>, scalar_prefetch = 0 : i64, scratch_operands = 0 : i64, tpu.core_type = #tpu.core_type<tc>, window_params = [{transform_indices = @transform_0, window_bounds = array<i64: 8, 256>}, {transform_indices = @transform_1, window_bounds = array<i64: 8, 256>}, {pipeline_mode = #tpu.pipeline_mode<synchronous>, transform_indices = @transform_2, window_bounds = array<i64: 8, 216>}, {pipeline_mode = #tpu.pipeline_mode<synchronous>, transform_indices = @transform_3, window_bounds = array<i64: 8, 1>}, {transform_indices = @transform_4, window_bounds = array<i64: 8, 256>}]} {
    %c0 = arith.constant 0 : index
    %c0_0 = arith.constant 0 : index
    %0 = vector.load %arg1[%c0, %c0_0] : memref<8x256xbf16, #tpu.memory_space<vmem>>, vector<8x256xbf16>
    %c0_1 = arith.constant 0 : index
    %c0_2 = arith.constant 0 : index
    %1 = vector.load %arg2[%c0_1, %c0_2] : memref<8x256xbf16, #tpu.memory_space<vmem>>, vector<8x256xbf16>
    %2 = tpu.concatenate %0, %1 in 1 : vector<8x256xbf16>, vector<8x256xbf16> -> vector<8x512xbf16>
    %3 = vector.extract_strided_slice %2 {offsets = [0, 0], sizes = [8, 256], strides = [1, 1]} : vector<8x512xbf16> to vector<8x256xbf16>
    %4 = vector.extract_strided_slice %2 {offsets = [0, 1], sizes = [8, 256], strides = [1, 1]} : vector<8x512xbf16> to vector<8x256xbf16>
    %5 = vector.extract_strided_slice %2 {offsets = [0, 2], sizes = [8, 256], strides = [1, 1]} : vector<8x512xbf16> to vector<8x256xbf16>
    %6 = vector.extract_strided_slice %2 {offsets = [0, 6], sizes = [8, 256], strides = [1, 1]} : vector<8x512xbf16> to vector<8x256xbf16>
    %7 = vector.extract_strided_slice %2 {offsets = [0, 7], sizes = [8, 256], strides = [1, 1]} : vector<8x512xbf16> to vector<8x256xbf16>
    %8 = vector.extract_strided_slice %2 {offsets = [0, 8], sizes = [8, 256], strides = [1, 1]} : vector<8x512xbf16> to vector<8x256xbf16>
    %9 = vector.extract_strided_slice %2 {offsets = [0, 12], sizes = [8, 256], strides = [1, 1]} : vector<8x512xbf16> to vector<8x256xbf16>
    %10 = vector.extract_strided_slice %2 {offsets = [0, 13], sizes = [8, 256], strides = [1, 1]} : vector<8x512xbf16> to vector<8x256xbf16>
    %11 = vector.extract_strided_slice %2 {offsets = [0, 14], sizes = [8, 256], strides = [1, 1]} : vector<8x512xbf16> to vector<8x256xbf16>
    %12 = vector.extract_strided_slice %2 {offsets = [0, 36], sizes = [8, 256], strides = [1, 1]} : vector<8x512xbf16> to vector<8x256xbf16>
    %13 = vector.extract_strided_slice %2 {offsets = [0, 37], sizes = [8, 256], strides = [1, 1]} : vector<8x512xbf16> to vector<8x256xbf16>
    %14 = vector.extract_strided_slice %2 {offsets = [0, 38], sizes = [8, 256], strides = [1, 1]} : vector<8x512xbf16> to vector<8x256xbf16>
    %15 = vector.extract_strided_slice %2 {offsets = [0, 42], sizes = [8, 256], strides = [1, 1]} : vector<8x512xbf16> to vector<8x256xbf16>
    %16 = vector.extract_strided_slice %2 {offsets = [0, 43], sizes = [8, 256], strides = [1, 1]} : vector<8x512xbf16> to vector<8x256xbf16>
    %17 = vector.extract_strided_slice %2 {offsets = [0, 44], sizes = [8, 256], strides = [1, 1]} : vector<8x512xbf16> to vector<8x256xbf16>
    %18 = vector.extract_strided_slice %2 {offsets = [0, 48], sizes = [8, 256], strides = [1, 1]} : vector<8x512xbf16> to vector<8x256xbf16>
    %19 = vector.extract_strided_slice %2 {offsets = [0, 49], sizes = [8, 256], strides = [1, 1]} : vector<8x512xbf16> to vector<8x256xbf16>
    %20 = vector.extract_strided_slice %2 {offsets = [0, 50], sizes = [8, 256], strides = [1, 1]} : vector<8x512xbf16> to vector<8x256xbf16>
    %21 = vector.extract_strided_slice %2 {offsets = [0, 72], sizes = [8, 256], strides = [1, 1]} : vector<8x512xbf16> to vector<8x256xbf16>
    %22 = vector.extract_strided_slice %2 {offsets = [0, 73], sizes = [8, 256], strides = [1, 1]} : vector<8x512xbf16> to vector<8x256xbf16>
    %23 = vector.extract_strided_slice %2 {offsets = [0, 74], sizes = [8, 256], strides = [1, 1]} : vector<8x512xbf16> to vector<8x256xbf16>
    %24 = vector.extract_strided_slice %2 {offsets = [0, 78], sizes = [8, 256], strides = [1, 1]} : vector<8x512xbf16> to vector<8x256xbf16>
    %25 = vector.extract_strided_slice %2 {offsets = [0, 79], sizes = [8, 256], strides = [1, 1]} : vector<8x512xbf16> to vector<8x256xbf16>
    %26 = vector.extract_strided_slice %2 {offsets = [0, 80], sizes = [8, 256], strides = [1, 1]} : vector<8x512xbf16> to vector<8x256xbf16>
    %27 = vector.extract_strided_slice %2 {offsets = [0, 84], sizes = [8, 256], strides = [1, 1]} : vector<8x512xbf16> to vector<8x256xbf16>
    %28 = vector.extract_strided_slice %2 {offsets = [0, 85], sizes = [8, 256], strides = [1, 1]} : vector<8x512xbf16> to vector<8x256xbf16>
    %29 = vector.extract_strided_slice %2 {offsets = [0, 86], sizes = [8, 256], strides = [1, 1]} : vector<8x512xbf16> to vector<8x256xbf16>
    %30 = tpu.concatenate %3, %4, %5, %6, %7, %8, %9, %10, %11, %12, %13, %14, %15, %16, %17, %18 in 0 : vector<8x256xbf16>, vector<8x256xbf16>, vector<8x256xbf16>, vector<8x256xbf16>, vector<8x256xbf16>, vector<8x256xbf16>, vector<8x256xbf16>, vector<8x256xbf16>, vector<8x256xbf16>, vector<8x256xbf16>, vector<8x256xbf16>, vector<8x256xbf16>, vector<8x256xbf16>, vector<8x256xbf16>, vector<8x256xbf16>, vector<8x256xbf16> -> vector<128x256xbf16>
    %31 = tpu.concatenate %19, %20, %21, %22, %23, %24, %25, %26, %27, %28, %29 in 0 : vector<8x256xbf16>, vector<8x256xbf16>, vector<8x256xbf16>, vector<8x256xbf16>, vector<8x256xbf16>, vector<8x256xbf16>, vector<8x256xbf16>, vector<8x256xbf16>, vector<8x256xbf16>, vector<8x256xbf16>, vector<8x256xbf16> -> vector<88x256xbf16>
    %32 = tpu.concatenate %30, %31 in 0 : vector<128x256xbf16>, vector<88x256xbf16> -> vector<216x256xbf16>
    %c0_3 = arith.constant 0 : index
    %c0_4 = arith.constant 0 : index
    %33 = vector.load %arg3[%c0_3, %c0_4] : memref<8x216xbf16, #tpu.memory_space<vmem>>, vector<8x216xbf16>
    %cst = arith.constant dense<0.000000e+00> : vector<8x256xf32>
    %34 = tpu.matmul %33, %32, %cst {dimension_numbers = #tpu.dot_dimension_numbers<[1], [0], [0], [1], [0, 0, 1, 1], [], []>} : vector<8x216xbf16>, vector<216x256xbf16>, vector<8x256xf32> -> vector<8x256xf32>
    %c0_5 = arith.constant 0 : index
    %c0_6 = arith.constant 0 : index
    %35 = vector.load %arg4[%c0_5, %c0_6] : memref<8x1xf32, #tpu.memory_space<vmem>>, vector<8x1xf32>
    %36 = vector.broadcast %35 : vector<8x1xf32> to vector<8x256xf32>
    %37 = arith.addf %34, %36 : vector<8x256xf32>
    %cst_7 = arith.constant 0.000000e+00 : f32
    %38 = vector.broadcast %cst_7 : f32 to vector<8x256xf32>
    %39 = arith.maximumf %37, %38 : vector<8x256xf32>
    %40 = arith.truncf %39 : vector<8x256xf32> to vector<8x256xbf16>
    %c0_8 = arith.constant 0 : index
    %c0_9 = arith.constant 0 : index
    %41 = vector.load %arg5[%c0_8, %c0_9] : memref<8x256xbf16, #tpu.memory_space<vmem>>, vector<8x256xbf16>
    tpu.vector_store %arg5[%c0_8, %c0_9], %40 {strides = array<i32>} : memref<8x256xbf16, #tpu.memory_space<vmem>>, vector<8x256xbf16>,
    return
  }
  func.func @transform_0(%arg0: i32) -> (i32, i32) {
    %c0_i32 = arith.constant 0 : i32
    %c0_i32_0 = arith.constant 0 : i32
    return %c0_i32, %arg0 : i32, i32
  }
  func.func @transform_1(%arg0: i32) -> (i32, i32) {
    %c1_i32 = arith.constant 1 : i32
    %0 = arith.addi %arg0, %c1_i32 : i32
    %c0_i32 = arith.constant 0 : i32
    %c0_i32_0 = arith.constant 0 : i32
    return %c0_i32, %0 : i32, i32
  }
  func.func @transform_2(%arg0: i32) -> (i32, i32) {
    %c0_i32 = arith.constant 0 : i32
    %c0_i32_0 = arith.constant 0 : i32
    %c0_i32_1 = arith.constant 0 : i32
    return %c0_i32, %c0_i32_0 : i32, i32
  }
  func.func @transform_3(%arg0: i32) -> (i32, i32) {
    %c0_i32 = arith.constant 0 : i32
    %c0_i32_0 = arith.constant 0 : i32
    %c0_i32_1 = arith.constant 0 : i32
    return %c0_i32, %c0_i32_0 : i32, i32
  }
  func.func @transform_4(%arg0: i32) -> (i32, i32) {
    %c0_i32 = arith.constant 0 : i32
    %c0_i32_0 = arith.constant 0 : i32
    return %c0_i32, %arg0 : i32, i32
  }
}

module attributes {stable_mosaic.version = 11 : i64} {
  func.func @kernel(%arg0: i32, %arg1: memref<16x216xbf16, #tpu.memory_space<vmem>>, %arg2: memref<216x128xbf16, #tpu.memory_space<vmem>>, %arg3: memref<16x1xf32, #tpu.memory_space<vmem>>, %arg4: memref<16x128xbf16, #tpu.memory_space<vmem>>) attributes {dimension_semantics = [#tpu.dimension_semantics<parallel>], iteration_bounds = array<i64: 2>, scalar_prefetch = 0 : i64, scratch_operands = 0 : i64, tpu.core_type = #tpu.core_type<tc>, window_params = [{pipeline_mode = #tpu.pipeline_mode<synchronous>, transform_indices = @transform_0, window_bounds = array<i64: 16, 216>}, {transform_indices = @transform_1, window_bounds = array<i64: 216, 128>}, {pipeline_mode = #tpu.pipeline_mode<synchronous>, transform_indices = @transform_2, window_bounds = array<i64: 16, 1>}, {transform_indices = @transform_3, window_bounds = array<i64: 16, 128>}]} {
    %c0 = arith.constant 0 : index
    %c0_0 = arith.constant 0 : index
    %0 = vector.load %arg1[%c0, %c0_0] : memref<16x216xbf16, #tpu.memory_space<vmem>>, vector<16x216xbf16>
    %c0_1 = arith.constant 0 : index
    %c0_2 = arith.constant 0 : index
    %1 = vector.load %arg2[%c0_1, %c0_2] : memref<216x128xbf16, #tpu.memory_space<vmem>>, vector<216x128xbf16>
    %cst = arith.constant dense<0.000000e+00> : vector<16x128xf32>
    %2 = tpu.matmul %0, %1, %cst {dimension_numbers = #tpu.dot_dimension_numbers<[1], [0], [0], [1], [0, 0, 1, 1], [], []>} : vector<16x216xbf16>, vector<216x128xbf16>, vector<16x128xf32> -> vector<16x128xf32>
    %c0_3 = arith.constant 0 : index
    %c0_4 = arith.constant 0 : index
    %3 = vector.load %arg3[%c0_3, %c0_4] : memref<16x1xf32, #tpu.memory_space<vmem>>, vector<16x1xf32>
    %4 = vector.broadcast %3 : vector<16x1xf32> to vector<16x128xf32>
    %5 = arith.addf %2, %4 : vector<16x128xf32>
    %cst_5 = arith.constant 0.000000e+00 : f32
    %6 = vector.broadcast %cst_5 : f32 to vector<16x128xf32>
    %7 = arith.maximumf %5, %6 : vector<16x128xf32>
    %8 = arith.truncf %7 : vector<16x128xf32> to vector<16x128xbf16>
    %c0_6 = arith.constant 0 : index
    %c0_7 = arith.constant 0 : index
    %9 = vector.load %arg4[%c0_6, %c0_7] : memref<16x128xbf16, #tpu.memory_space<vmem>>, vector<16x128xbf16>
    tpu.vector_store %arg4[%c0_6, %c0_7], %8 {strides = array<i32>} : memref<16x128xbf16, #tpu.memory_space<vmem>>, vector<16x128xbf16>,
    return
  }
  func.func @transform_0(%arg0: i32) -> (i32, i32) {
    %c0_i32 = arith.constant 0 : i32
    %c0_i32_0 = arith.constant 0 : i32
    %c0_i32_1 = arith.constant 0 : i32
    return %c0_i32, %c0_i32_0 : i32, i32
  }
  func.func @transform_1(%arg0: i32) -> (i32, i32) {
    %c0_i32 = arith.constant 0 : i32
    %c0_i32_0 = arith.constant 0 : i32
    return %c0_i32, %arg0 : i32, i32
  }
  func.func @transform_2(%arg0: i32) -> (i32, i32) {
    %c0_i32 = arith.constant 0 : i32
    %c0_i32_0 = arith.constant 0 : i32
    %c0_i32_1 = arith.constant 0 : i32
    return %c0_i32, %c0_i32_0 : i32, i32
  }
  func.func @transform_3(%arg0: i32) -> (i32, i32) {
    %c0_i32 = arith.constant 0 : i32
    %c0_i32_0 = arith.constant 0 : i32
    return %c0_i32, %arg0 : i32, i32
  }
}

module attributes {stable_mosaic.version = 11 : i64} {
  func.func @kernel(%arg0: i32, %arg1: memref<16x128xbf16, #tpu.memory_space<vmem>>, %arg2: memref<16x128xbf16, #tpu.memory_space<vmem>>, %arg3: memref<16x432xbf16, #tpu.memory_space<vmem>>, %arg4: memref<16x1xf32, #tpu.memory_space<vmem>>, %arg5: memref<16x128xf32, #tpu.memory_space<vmem>>) attributes {dimension_semantics = [#tpu.dimension_semantics<parallel>], iteration_bounds = array<i64: 2>, scalar_prefetch = 0 : i64, scratch_operands = 0 : i64, tpu.core_type = #tpu.core_type<tc>, window_params = [{transform_indices = @transform_0, window_bounds = array<i64: 16, 128>}, {transform_indices = @transform_1, window_bounds = array<i64: 16, 128>}, {pipeline_mode = #tpu.pipeline_mode<synchronous>, transform_indices = @transform_2, window_bounds = array<i64: 16, 432>}, {pipeline_mode = #tpu.pipeline_mode<synchronous>, transform_indices = @transform_3, window_bounds = array<i64: 16, 1>}, {transform_indices = @transform_4, window_bounds = array<i64: 16, 128>}]} {
    %c0 = arith.constant 0 : index
    %c0_0 = arith.constant 0 : index
    %0 = vector.load %arg1[%c0, %c0_0] : memref<16x128xbf16, #tpu.memory_space<vmem>>, vector<16x128xbf16>
    %c0_1 = arith.constant 0 : index
    %c0_2 = arith.constant 0 : index
    %1 = vector.load %arg2[%c0_1, %c0_2] : memref<16x128xbf16, #tpu.memory_space<vmem>>, vector<16x128xbf16>
    %2 = tpu.concatenate %0, %1 in 1 : vector<16x128xbf16>, vector<16x128xbf16> -> vector<16x256xbf16>
    %3 = vector.extract_strided_slice %2 {offsets = [0, 0], sizes = [16, 128], strides = [1, 1]} : vector<16x256xbf16> to vector<16x128xbf16>
    %4 = vector.extract_strided_slice %2 {offsets = [0, 1], sizes = [16, 128], strides = [1, 1]} : vector<16x256xbf16> to vector<16x128xbf16>
    %5 = vector.extract_strided_slice %2 {offsets = [0, 2], sizes = [16, 128], strides = [1, 1]} : vector<16x256xbf16> to vector<16x128xbf16>
    %6 = vector.extract_strided_slice %2 {offsets = [0, 4], sizes = [16, 128], strides = [1, 1]} : vector<16x256xbf16> to vector<16x128xbf16>
    %7 = vector.extract_strided_slice %2 {offsets = [0, 5], sizes = [16, 128], strides = [1, 1]} : vector<16x256xbf16> to vector<16x128xbf16>
    %8 = vector.extract_strided_slice %2 {offsets = [0, 6], sizes = [16, 128], strides = [1, 1]} : vector<16x256xbf16> to vector<16x128xbf16>
    %9 = vector.extract_strided_slice %2 {offsets = [0, 8], sizes = [16, 128], strides = [1, 1]} : vector<16x256xbf16> to vector<16x128xbf16>
    %10 = vector.extract_strided_slice %2 {offsets = [0, 9], sizes = [16, 128], strides = [1, 1]} : vector<16x256xbf16> to vector<16x128xbf16>
    %11 = vector.extract_strided_slice %2 {offsets = [0, 10], sizes = [16, 128], strides = [1, 1]} : vector<16x256xbf16> to vector<16x128xbf16>
    %12 = vector.extract_strided_slice %2 {offsets = [0, 16], sizes = [16, 128], strides = [1, 1]} : vector<16x256xbf16> to vector<16x128xbf16>
    %13 = vector.extract_strided_slice %2 {offsets = [0, 17], sizes = [16, 128], strides = [1, 1]} : vector<16x256xbf16> to vector<16x128xbf16>
    %14 = vector.extract_strided_slice %2 {offsets = [0, 18], sizes = [16, 128], strides = [1, 1]} : vector<16x256xbf16> to vector<16x128xbf16>
    %15 = vector.extract_strided_slice %2 {offsets = [0, 20], sizes = [16, 128], strides = [1, 1]} : vector<16x256xbf16> to vector<16x128xbf16>
    %16 = vector.extract_strided_slice %2 {offsets = [0, 21], sizes = [16, 128], strides = [1, 1]} : vector<16x256xbf16> to vector<16x128xbf16>
    %17 = vector.extract_strided_slice %2 {offsets = [0, 22], sizes = [16, 128], strides = [1, 1]} : vector<16x256xbf16> to vector<16x128xbf16>
    %18 = vector.extract_strided_slice %2 {offsets = [0, 24], sizes = [16, 128], strides = [1, 1]} : vector<16x256xbf16> to vector<16x128xbf16>
    %19 = vector.extract_strided_slice %2 {offsets = [0, 25], sizes = [16, 128], strides = [1, 1]} : vector<16x256xbf16> to vector<16x128xbf16>
    %20 = vector.extract_strided_slice %2 {offsets = [0, 26], sizes = [16, 128], strides = [1, 1]} : vector<16x256xbf16> to vector<16x128xbf16>
    %21 = vector.extract_strided_slice %2 {offsets = [0, 32], sizes = [16, 128], strides = [1, 1]} : vector<16x256xbf16> to vector<16x128xbf16>
    %22 = vector.extract_strided_slice %2 {offsets = [0, 33], sizes = [16, 128], strides = [1, 1]} : vector<16x256xbf16> to vector<16x128xbf16>
    %23 = vector.extract_strided_slice %2 {offsets = [0, 34], sizes = [16, 128], strides = [1, 1]} : vector<16x256xbf16> to vector<16x128xbf16>
    %24 = vector.extract_strided_slice %2 {offsets = [0, 36], sizes = [16, 128], strides = [1, 1]} : vector<16x256xbf16> to vector<16x128xbf16>
    %25 = vector.extract_strided_slice %2 {offsets = [0, 37], sizes = [16, 128], strides = [1, 1]} : vector<16x256xbf16> to vector<16x128xbf16>
    %26 = vector.extract_strided_slice %2 {offsets = [0, 38], sizes = [16, 128], strides = [1, 1]} : vector<16x256xbf16> to vector<16x128xbf16>
    %27 = vector.extract_strided_slice %2 {offsets = [0, 40], sizes = [16, 128], strides = [1, 1]} : vector<16x256xbf16> to vector<16x128xbf16>
    %28 = vector.extract_strided_slice %2 {offsets = [0, 41], sizes = [16, 128], strides = [1, 1]} : vector<16x256xbf16> to vector<16x128xbf16>
    %29 = vector.extract_strided_slice %2 {offsets = [0, 42], sizes = [16, 128], strides = [1, 1]} : vector<16x256xbf16> to vector<16x128xbf16>
    %30 = tpu.concatenate %3, %4, %5, %6, %7, %8, %9, %10, %11, %12, %13, %14, %15, %16, %17, %18 in 0 : vector<16x128xbf16>, vector<16x128xbf16>, vector<16x128xbf16>, vector<16x128xbf16>, vector<16x128xbf16>, vector<16x128xbf16>, vector<16x128xbf16>, vector<16x128xbf16>, vector<16x128xbf16>, vector<16x128xbf16>, vector<16x128xbf16>, vector<16x128xbf16>, vector<16x128xbf16>, vector<16x128xbf16>, vector<16x128xbf16>, vector<16x128xbf16> -> vector<256x128xbf16>
    %31 = tpu.concatenate %19, %20, %21, %22, %23, %24, %25, %26, %27, %28, %29 in 0 : vector<16x128xbf16>, vector<16x128xbf16>, vector<16x128xbf16>, vector<16x128xbf16>, vector<16x128xbf16>, vector<16x128xbf16>, vector<16x128xbf16>, vector<16x128xbf16>, vector<16x128xbf16>, vector<16x128xbf16>, vector<16x128xbf16> -> vector<176x128xbf16>
    %32 = tpu.concatenate %30, %31 in 0 : vector<256x128xbf16>, vector<176x128xbf16> -> vector<432x128xbf16>
    %c0_3 = arith.constant 0 : index
    %c0_4 = arith.constant 0 : index
    %33 = vector.load %arg3[%c0_3, %c0_4] : memref<16x432xbf16, #tpu.memory_space<vmem>>, vector<16x432xbf16>
    %cst = arith.constant dense<0.000000e+00> : vector<16x128xf32>
    %34 = tpu.matmul %33, %32, %cst {dimension_numbers = #tpu.dot_dimension_numbers<[1], [0], [0], [1], [0, 0, 1, 1], [], []>} : vector<16x432xbf16>, vector<432x128xbf16>, vector<16x128xf32> -> vector<16x128xf32>
    %c0_5 = arith.constant 0 : index
    %c0_6 = arith.constant 0 : index
    %35 = vector.load %arg4[%c0_5, %c0_6] : memref<16x1xf32, #tpu.memory_space<vmem>>, vector<16x1xf32>
    %36 = vector.broadcast %35 : vector<16x1xf32> to vector<16x128xf32>
    %37 = arith.addf %34, %36 : vector<16x128xf32>
    %c0_7 = arith.constant 0 : index
    %c0_8 = arith.constant 0 : index
    %38 = vector.load %arg5[%c0_7, %c0_8] : memref<16x128xf32, #tpu.memory_space<vmem>>, vector<16x128xf32>
    tpu.vector_store %arg5[%c0_7, %c0_8], %37 {strides = array<i32>} : memref<16x128xf32, #tpu.memory_space<vmem>>, vector<16x128xf32>,
    return
  }
  func.func @transform_0(%arg0: i32) -> (i32, i32) {
    %c0_i32 = arith.constant 0 : i32
    %c0_i32_0 = arith.constant 0 : i32
    return %c0_i32, %arg0 : i32, i32
  }
  func.func @transform_1(%arg0: i32) -> (i32, i32) {
    %c1_i32 = arith.constant 1 : i32
    %0 = arith.addi %arg0, %c1_i32 : i32
    %c0_i32 = arith.constant 0 : i32
    %c0_i32_0 = arith.constant 0 : i32
    return %c0_i32, %0 : i32, i32
  }
  func.func @transform_2(%arg0: i32) -> (i32, i32) {
    %c0_i32 = arith.constant 0 : i32
    %c0_i32_0 = arith.constant 0 : i32
    %c0_i32_1 = arith.constant 0 : i32
    return %c0_i32, %c0_i32_0 : i32, i32
  }
  func.func @transform_3(%arg0: i32) -> (i32, i32) {
    %c0_i32 = arith.constant 0 : i32
    %c0_i32_0 = arith.constant 0 : i32
    %c0_i32_1 = arith.constant 0 : i32
    return %c0_i32, %c0_i32_0 : i32, i32
  }
  func.func @transform_4(%arg0: i32) -> (i32, i32) {
    %c0_i32 = arith.constant 0 : i32
    %c0_i32_0 = arith.constant 0 : i32
    return %c0_i32, %arg0 : i32, i32
  }
}

module attributes {stable_mosaic.version = 11 : i64} {
  func.func @kernel(%arg0: i32, %arg1: memref<16x8xbf16, #tpu.memory_space<vmem>>, %arg2: memref<8x128xbf16, #tpu.memory_space<vmem>>, %arg3: memref<16x1xf32, #tpu.memory_space<vmem>>, %arg4: memref<16x128xf32, #tpu.memory_space<vmem>>) attributes {dimension_semantics = [#tpu.dimension_semantics<parallel>], iteration_bounds = array<i64: 2>, scalar_prefetch = 0 : i64, scratch_operands = 0 : i64, tpu.core_type = #tpu.core_type<tc>, window_params = [{pipeline_mode = #tpu.pipeline_mode<synchronous>, transform_indices = @transform_0, window_bounds = array<i64: 16, 8>}, {transform_indices = @transform_1, window_bounds = array<i64: 8, 128>}, {pipeline_mode = #tpu.pipeline_mode<synchronous>, transform_indices = @transform_2, window_bounds = array<i64: 16, 1>}, {transform_indices = @transform_3, window_bounds = array<i64: 16, 128>}]} {
    %c0 = arith.constant 0 : index
    %c0_0 = arith.constant 0 : index
    %0 = vector.load %arg1[%c0, %c0_0] : memref<16x8xbf16, #tpu.memory_space<vmem>>, vector<16x8xbf16>
    %c0_1 = arith.constant 0 : index
    %c0_2 = arith.constant 0 : index
    %1 = vector.load %arg2[%c0_1, %c0_2] : memref<8x128xbf16, #tpu.memory_space<vmem>>, vector<8x128xbf16>
    %cst = arith.constant dense<0.000000e+00> : vector<16x128xf32>
    %2 = tpu.matmul %0, %1, %cst {dimension_numbers = #tpu.dot_dimension_numbers<[1], [0], [0], [1], [0, 0, 1, 1], [], []>} : vector<16x8xbf16>, vector<8x128xbf16>, vector<16x128xf32> -> vector<16x128xf32>
    %c0_3 = arith.constant 0 : index
    %c0_4 = arith.constant 0 : index
    %3 = vector.load %arg3[%c0_3, %c0_4] : memref<16x1xf32, #tpu.memory_space<vmem>>, vector<16x1xf32>
    %4 = vector.broadcast %3 : vector<16x1xf32> to vector<16x128xf32>
    %5 = arith.addf %2, %4 : vector<16x128xf32>
    %c0_5 = arith.constant 0 : index
    %c0_6 = arith.constant 0 : index
    %6 = vector.load %arg4[%c0_5, %c0_6] : memref<16x128xf32, #tpu.memory_space<vmem>>, vector<16x128xf32>
    tpu.vector_store %arg4[%c0_5, %c0_6], %5 {strides = array<i32>} : memref<16x128xf32, #tpu.memory_space<vmem>>, vector<16x128xf32>,
    return
  }
  func.func @transform_0(%arg0: i32) -> (i32, i32) {
    %c0_i32 = arith.constant 0 : i32
    %c0_i32_0 = arith.constant 0 : i32
    %c0_i32_1 = arith.constant 0 : i32
    return %c0_i32, %c0_i32_0 : i32, i32
  }
  func.func @transform_1(%arg0: i32) -> (i32, i32) {
    %c0_i32 = arith.constant 0 : i32
    %c0_i32_0 = arith.constant 0 : i32
    return %c0_i32, %arg0 : i32, i32
  }
  func.func @transform_2(%arg0: i32) -> (i32, i32) {
    %c0_i32 = arith.constant 0 : i32
    %c0_i32_0 = arith.constant 0 : i32
    %c0_i32_1 = arith.constant 0 : i32
    return %c0_i32, %c0_i32_0 : i32, i32
  }
  func.func @transform_3(%arg0: i32) -> (i32, i32) {
    %c0_i32 = arith.constant 0 : i32
    %c0_i32_0 = arith.constant 0 : i32
    return %c0_i32, %arg0 : i32, i32
  }
}

module attributes {stable_mosaic.version = 11 : i64} {
  func.func @kernel(%arg0: i32, %arg1: memref<16x128xbf16, #tpu.memory_space<vmem>>, %arg2: memref<16x128xbf16, #tpu.memory_space<vmem>>, %arg3: memref<16x432xbf16, #tpu.memory_space<vmem>>, %arg4: memref<16x1xf32, #tpu.memory_space<vmem>>, %arg5: memref<16x128xbf16, #tpu.memory_space<vmem>>) attributes {dimension_semantics = [#tpu.dimension_semantics<parallel>], iteration_bounds = array<i64: 2>, scalar_prefetch = 0 : i64, scratch_operands = 0 : i64, tpu.core_type = #tpu.core_type<tc>, window_params = [{transform_indices = @transform_0, window_bounds = array<i64: 16, 128>}, {transform_indices = @transform_1, window_bounds = array<i64: 16, 128>}, {pipeline_mode = #tpu.pipeline_mode<synchronous>, transform_indices = @transform_2, window_bounds = array<i64: 16, 432>}, {pipeline_mode = #tpu.pipeline_mode<synchronous>, transform_indices = @transform_3, window_bounds = array<i64: 16, 1>}, {transform_indices = @transform_4, window_bounds = array<i64: 16, 128>}]} {
    %c0 = arith.constant 0 : index
    %c0_0 = arith.constant 0 : index
    %0 = vector.load %arg1[%c0, %c0_0] : memref<16x128xbf16, #tpu.memory_space<vmem>>, vector<16x128xbf16>
    %c0_1 = arith.constant 0 : index
    %c0_2 = arith.constant 0 : index
    %1 = vector.load %arg2[%c0_1, %c0_2] : memref<16x128xbf16, #tpu.memory_space<vmem>>, vector<16x128xbf16>
    %2 = tpu.concatenate %0, %1 in 1 : vector<16x128xbf16>, vector<16x128xbf16> -> vector<16x256xbf16>
    %3 = vector.extract_strided_slice %2 {offsets = [0, 0], sizes = [16, 128], strides = [1, 1]} : vector<16x256xbf16> to vector<16x128xbf16>
    %4 = vector.extract_strided_slice %2 {offsets = [0, 1], sizes = [16, 128], strides = [1, 1]} : vector<16x256xbf16> to vector<16x128xbf16>
    %5 = vector.extract_strided_slice %2 {offsets = [0, 2], sizes = [16, 128], strides = [1, 1]} : vector<16x256xbf16> to vector<16x128xbf16>
    %6 = vector.extract_strided_slice %2 {offsets = [0, 4], sizes = [16, 128], strides = [1, 1]} : vector<16x256xbf16> to vector<16x128xbf16>
    %7 = vector.extract_strided_slice %2 {offsets = [0, 5], sizes = [16, 128], strides = [1, 1]} : vector<16x256xbf16> to vector<16x128xbf16>
    %8 = vector.extract_strided_slice %2 {offsets = [0, 6], sizes = [16, 128], strides = [1, 1]} : vector<16x256xbf16> to vector<16x128xbf16>
    %9 = vector.extract_strided_slice %2 {offsets = [0, 8], sizes = [16, 128], strides = [1, 1]} : vector<16x256xbf16> to vector<16x128xbf16>
    %10 = vector.extract_strided_slice %2 {offsets = [0, 9], sizes = [16, 128], strides = [1, 1]} : vector<16x256xbf16> to vector<16x128xbf16>
    %11 = vector.extract_strided_slice %2 {offsets = [0, 10], sizes = [16, 128], strides = [1, 1]} : vector<16x256xbf16> to vector<16x128xbf16>
    %12 = vector.extract_strided_slice %2 {offsets = [0, 16], sizes = [16, 128], strides = [1, 1]} : vector<16x256xbf16> to vector<16x128xbf16>
    %13 = vector.extract_strided_slice %2 {offsets = [0, 17], sizes = [16, 128], strides = [1, 1]} : vector<16x256xbf16> to vector<16x128xbf16>
    %14 = vector.extract_strided_slice %2 {offsets = [0, 18], sizes = [16, 128], strides = [1, 1]} : vector<16x256xbf16> to vector<16x128xbf16>
    %15 = vector.extract_strided_slice %2 {offsets = [0, 20], sizes = [16, 128], strides = [1, 1]} : vector<16x256xbf16> to vector<16x128xbf16>
    %16 = vector.extract_strided_slice %2 {offsets = [0, 21], sizes = [16, 128], strides = [1, 1]} : vector<16x256xbf16> to vector<16x128xbf16>
    %17 = vector.extract_strided_slice %2 {offsets = [0, 22], sizes = [16, 128], strides = [1, 1]} : vector<16x256xbf16> to vector<16x128xbf16>
    %18 = vector.extract_strided_slice %2 {offsets = [0, 24], sizes = [16, 128], strides = [1, 1]} : vector<16x256xbf16> to vector<16x128xbf16>
    %19 = vector.extract_strided_slice %2 {offsets = [0, 25], sizes = [16, 128], strides = [1, 1]} : vector<16x256xbf16> to vector<16x128xbf16>
    %20 = vector.extract_strided_slice %2 {offsets = [0, 26], sizes = [16, 128], strides = [1, 1]} : vector<16x256xbf16> to vector<16x128xbf16>
    %21 = vector.extract_strided_slice %2 {offsets = [0, 32], sizes = [16, 128], strides = [1, 1]} : vector<16x256xbf16> to vector<16x128xbf16>
    %22 = vector.extract_strided_slice %2 {offsets = [0, 33], sizes = [16, 128], strides = [1, 1]} : vector<16x256xbf16> to vector<16x128xbf16>
    %23 = vector.extract_strided_slice %2 {offsets = [0, 34], sizes = [16, 128], strides = [1, 1]} : vector<16x256xbf16> to vector<16x128xbf16>
    %24 = vector.extract_strided_slice %2 {offsets = [0, 36], sizes = [16, 128], strides = [1, 1]} : vector<16x256xbf16> to vector<16x128xbf16>
    %25 = vector.extract_strided_slice %2 {offsets = [0, 37], sizes = [16, 128], strides = [1, 1]} : vector<16x256xbf16> to vector<16x128xbf16>
    %26 = vector.extract_strided_slice %2 {offsets = [0, 38], sizes = [16, 128], strides = [1, 1]} : vector<16x256xbf16> to vector<16x128xbf16>
    %27 = vector.extract_strided_slice %2 {offsets = [0, 40], sizes = [16, 128], strides = [1, 1]} : vector<16x256xbf16> to vector<16x128xbf16>
    %28 = vector.extract_strided_slice %2 {offsets = [0, 41], sizes = [16, 128], strides = [1, 1]} : vector<16x256xbf16> to vector<16x128xbf16>
    %29 = vector.extract_strided_slice %2 {offsets = [0, 42], sizes = [16, 128], strides = [1, 1]} : vector<16x256xbf16> to vector<16x128xbf16>
    %30 = tpu.concatenate %3, %4, %5, %6, %7, %8, %9, %10, %11, %12, %13, %14, %15, %16, %17, %18 in 0 : vector<16x128xbf16>, vector<16x128xbf16>, vector<16x128xbf16>, vector<16x128xbf16>, vector<16x128xbf16>, vector<16x128xbf16>, vector<16x128xbf16>, vector<16x128xbf16>, vector<16x128xbf16>, vector<16x128xbf16>, vector<16x128xbf16>, vector<16x128xbf16>, vector<16x128xbf16>, vector<16x128xbf16>, vector<16x128xbf16>, vector<16x128xbf16> -> vector<256x128xbf16>
    %31 = tpu.concatenate %19, %20, %21, %22, %23, %24, %25, %26, %27, %28, %29 in 0 : vector<16x128xbf16>, vector<16x128xbf16>, vector<16x128xbf16>, vector<16x128xbf16>, vector<16x128xbf16>, vector<16x128xbf16>, vector<16x128xbf16>, vector<16x128xbf16>, vector<16x128xbf16>, vector<16x128xbf16>, vector<16x128xbf16> -> vector<176x128xbf16>
    %32 = tpu.concatenate %30, %31 in 0 : vector<256x128xbf16>, vector<176x128xbf16> -> vector<432x128xbf16>
    %c0_3 = arith.constant 0 : index
    %c0_4 = arith.constant 0 : index
    %33 = vector.load %arg3[%c0_3, %c0_4] : memref<16x432xbf16, #tpu.memory_space<vmem>>, vector<16x432xbf16>
    %cst = arith.constant dense<0.000000e+00> : vector<16x128xf32>
    %34 = tpu.matmul %33, %32, %cst {dimension_numbers = #tpu.dot_dimension_numbers<[1], [0], [0], [1], [0, 0, 1, 1], [], []>} : vector<16x432xbf16>, vector<432x128xbf16>, vector<16x128xf32> -> vector<16x128xf32>
    %c0_5 = arith.constant 0 : index
    %c0_6 = arith.constant 0 : index
    %35 = vector.load %arg4[%c0_5, %c0_6] : memref<16x1xf32, #tpu.memory_space<vmem>>, vector<16x1xf32>
    %36 = vector.broadcast %35 : vector<16x1xf32> to vector<16x128xf32>
    %37 = arith.addf %34, %36 : vector<16x128xf32>
    %cst_7 = arith.constant 0.000000e+00 : f32
    %38 = vector.broadcast %cst_7 : f32 to vector<16x128xf32>
    %39 = arith.maximumf %37, %38 : vector<16x128xf32>
    %40 = arith.truncf %39 : vector<16x128xf32> to vector<16x128xbf16>
    %c0_8 = arith.constant 0 : index
    %c0_9 = arith.constant 0 : index
    %41 = vector.load %arg5[%c0_8, %c0_9] : memref<16x128xbf16, #tpu.memory_space<vmem>>, vector<16x128xbf16>
    tpu.vector_store %arg5[%c0_8, %c0_9], %40 {strides = array<i32>} : memref<16x128xbf16, #tpu.memory_space<vmem>>, vector<16x128xbf16>,
    return
  }
  func.func @transform_0(%arg0: i32) -> (i32, i32) {
    %c0_i32 = arith.constant 0 : i32
    %c0_i32_0 = arith.constant 0 : i32
    return %c0_i32, %arg0 : i32, i32
  }
  func.func @transform_1(%arg0: i32) -> (i32, i32) {
    %c1_i32 = arith.constant 1 : i32
    %0 = arith.addi %arg0, %c1_i32 : i32
    %c0_i32 = arith.constant 0 : i32
    %c0_i32_0 = arith.constant 0 : i32
    return %c0_i32, %0 : i32, i32
  }
  func.func @transform_2(%arg0: i32) -> (i32, i32) {
    %c0_i32 = arith.constant 0 : i32
    %c0_i32_0 = arith.constant 0 : i32
    %c0_i32_1 = arith.constant 0 : i32
    return %c0_i32, %c0_i32_0 : i32, i32
  }
  func.func @transform_3(%arg0: i32) -> (i32, i32) {
    %c0_i32 = arith.constant 0 : i32
    %c0_i32_0 = arith.constant 0 : i32
    %c0_i32_1 = arith.constant 0 : i32
    return %c0_i32, %c0_i32_0 : i32, i32
  }
  func.func @transform_4(%arg0: i32) -> (i32, i32) {
    %c0_i32 = arith.constant 0 : i32
    %c0_i32_0 = arith.constant 0 : i32
    return %c0_i32, %arg0 : i32, i32
  }
}

module attributes {stable_mosaic.version = 11 : i64} {
  func.func @kernel(%arg0: i32, %arg1: memref<24x256xbf16, #tpu.memory_space<vmem>>, %arg2: memref<24x256xbf16, #tpu.memory_space<vmem>>, %arg3: memref<8x648xbf16, #tpu.memory_space<vmem>>, %arg4: memref<8x1xf32, #tpu.memory_space<vmem>>, %arg5: memref<8x256xbf16, #tpu.memory_space<vmem>>) attributes {dimension_semantics = [#tpu.dimension_semantics<parallel>], iteration_bounds = array<i64: 2>, scalar_prefetch = 0 : i64, scratch_operands = 0 : i64, tpu.core_type = #tpu.core_type<tc>, window_params = [{transform_indices = @transform_0, window_bounds = array<i64: 24, 256>}, {transform_indices = @transform_1, window_bounds = array<i64: 24, 256>}, {pipeline_mode = #tpu.pipeline_mode<synchronous>, transform_indices = @transform_2, window_bounds = array<i64: 8, 648>}, {pipeline_mode = #tpu.pipeline_mode<synchronous>, transform_indices = @transform_3, window_bounds = array<i64: 8, 1>}, {transform_indices = @transform_4, window_bounds = array<i64: 8, 256>}]} {
    %c0 = arith.constant 0 : index
    %c0_0 = arith.constant 0 : index
    %0 = vector.load %arg1[%c0, %c0_0] : memref<24x256xbf16, #tpu.memory_space<vmem>>, vector<24x256xbf16>
    %c0_1 = arith.constant 0 : index
    %c0_2 = arith.constant 0 : index
    %1 = vector.load %arg2[%c0_1, %c0_2] : memref<24x256xbf16, #tpu.memory_space<vmem>>, vector<24x256xbf16>
    %2 = tpu.concatenate %0, %1 in 1 : vector<24x256xbf16>, vector<24x256xbf16> -> vector<24x512xbf16>
    %3 = vector.extract_strided_slice %2 {offsets = [0, 0], sizes = [24, 256], strides = [1, 1]} : vector<24x512xbf16> to vector<24x256xbf16>
    %4 = vector.extract_strided_slice %2 {offsets = [0, 1], sizes = [24, 256], strides = [1, 1]} : vector<24x512xbf16> to vector<24x256xbf16>
    %5 = vector.extract_strided_slice %2 {offsets = [0, 2], sizes = [24, 256], strides = [1, 1]} : vector<24x512xbf16> to vector<24x256xbf16>
    %6 = vector.extract_strided_slice %2 {offsets = [0, 6], sizes = [24, 256], strides = [1, 1]} : vector<24x512xbf16> to vector<24x256xbf16>
    %7 = vector.extract_strided_slice %2 {offsets = [0, 7], sizes = [24, 256], strides = [1, 1]} : vector<24x512xbf16> to vector<24x256xbf16>
    %8 = vector.extract_strided_slice %2 {offsets = [0, 8], sizes = [24, 256], strides = [1, 1]} : vector<24x512xbf16> to vector<24x256xbf16>
    %9 = vector.extract_strided_slice %2 {offsets = [0, 12], sizes = [24, 256], strides = [1, 1]} : vector<24x512xbf16> to vector<24x256xbf16>
    %10 = vector.extract_strided_slice %2 {offsets = [0, 13], sizes = [24, 256], strides = [1, 1]} : vector<24x512xbf16> to vector<24x256xbf16>
    %11 = vector.extract_strided_slice %2 {offsets = [0, 14], sizes = [24, 256], strides = [1, 1]} : vector<24x512xbf16> to vector<24x256xbf16>
    %12 = vector.extract_strided_slice %2 {offsets = [0, 36], sizes = [24, 256], strides = [1, 1]} : vector<24x512xbf16> to vector<24x256xbf16>
    %13 = vector.extract_strided_slice %2 {offsets = [0, 37], sizes = [24, 256], strides = [1, 1]} : vector<24x512xbf16> to vector<24x256xbf16>
    %14 = vector.extract_strided_slice %2 {offsets = [0, 38], sizes = [24, 256], strides = [1, 1]} : vector<24x512xbf16> to vector<24x256xbf16>
    %15 = vector.extract_strided_slice %2 {offsets = [0, 42], sizes = [24, 256], strides = [1, 1]} : vector<24x512xbf16> to vector<24x256xbf16>
    %16 = vector.extract_strided_slice %2 {offsets = [0, 43], sizes = [24, 256], strides = [1, 1]} : vector<24x512xbf16> to vector<24x256xbf16>
    %17 = vector.extract_strided_slice %2 {offsets = [0, 44], sizes = [24, 256], strides = [1, 1]} : vector<24x512xbf16> to vector<24x256xbf16>
    %18 = vector.extract_strided_slice %2 {offsets = [0, 48], sizes = [24, 256], strides = [1, 1]} : vector<24x512xbf16> to vector<24x256xbf16>
    %19 = vector.extract_strided_slice %2 {offsets = [0, 49], sizes = [24, 256], strides = [1, 1]} : vector<24x512xbf16> to vector<24x256xbf16>
    %20 = vector.extract_strided_slice %2 {offsets = [0, 50], sizes = [24, 256], strides = [1, 1]} : vector<24x512xbf16> to vector<24x256xbf16>
    %21 = vector.extract_strided_slice %2 {offsets = [0, 72], sizes = [24, 256], strides = [1, 1]} : vector<24x512xbf16> to vector<24x256xbf16>
    %22 = vector.extract_strided_slice %2 {offsets = [0, 73], sizes = [24, 256], strides = [1, 1]} : vector<24x512xbf16> to vector<24x256xbf16>
    %23 = vector.extract_strided_slice %2 {offsets = [0, 74], sizes = [24, 256], strides = [1, 1]} : vector<24x512xbf16> to vector<24x256xbf16>
    %24 = vector.extract_strided_slice %2 {offsets = [0, 78], sizes = [24, 256], strides = [1, 1]} : vector<24x512xbf16> to vector<24x256xbf16>
    %25 = vector.extract_strided_slice %2 {offsets = [0, 79], sizes = [24, 256], strides = [1, 1]} : vector<24x512xbf16> to vector<24x256xbf16>
    %26 = vector.extract_strided_slice %2 {offsets = [0, 80], sizes = [24, 256], strides = [1, 1]} : vector<24x512xbf16> to vector<24x256xbf16>
    %27 = vector.extract_strided_slice %2 {offsets = [0, 84], sizes = [24, 256], strides = [1, 1]} : vector<24x512xbf16> to vector<24x256xbf16>
    %28 = vector.extract_strided_slice %2 {offsets = [0, 85], sizes = [24, 256], strides = [1, 1]} : vector<24x512xbf16> to vector<24x256xbf16>
    %29 = vector.extract_strided_slice %2 {offsets = [0, 86], sizes = [24, 256], strides = [1, 1]} : vector<24x512xbf16> to vector<24x256xbf16>
    %30 = tpu.concatenate %3, %4, %5, %6, %7, %8, %9, %10, %11, %12, %13, %14, %15, %16, %17, %18 in 0 : vector<24x256xbf16>, vector<24x256xbf16>, vector<24x256xbf16>, vector<24x256xbf16>, vector<24x256xbf16>, vector<24x256xbf16>, vector<24x256xbf16>, vector<24x256xbf16>, vector<24x256xbf16>, vector<24x256xbf16>, vector<24x256xbf16>, vector<24x256xbf16>, vector<24x256xbf16>, vector<24x256xbf16>, vector<24x256xbf16>, vector<24x256xbf16> -> vector<384x256xbf16>
    %31 = tpu.concatenate %19, %20, %21, %22, %23, %24, %25, %26, %27, %28, %29 in 0 : vector<24x256xbf16>, vector<24x256xbf16>, vector<24x256xbf16>, vector<24x256xbf16>, vector<24x256xbf16>, vector<24x256xbf16>, vector<24x256xbf16>, vector<24x256xbf16>, vector<24x256xbf16>, vector<24x256xbf16>, vector<24x256xbf16> -> vector<264x256xbf16>
    %32 = tpu.concatenate %30, %31 in 0 : vector<384x256xbf16>, vector<264x256xbf16> -> vector<648x256xbf16>
    %c0_3 = arith.constant 0 : index
    %c0_4 = arith.constant 0 : index
    %33 = vector.load %arg3[%c0_3, %c0_4] : memref<8x648xbf16, #tpu.memory_space<vmem>>, vector<8x648xbf16>
    %cst = arith.constant dense<0.000000e+00> : vector<8x256xf32>
    %34 = tpu.matmul %33, %32, %cst {dimension_numbers = #tpu.dot_dimension_numbers<[1], [0], [0], [1], [0, 0, 1, 1], [], []>} : vector<8x648xbf16>, vector<648x256xbf16>, vector<8x256xf32> -> vector<8x256xf32>
    %c0_5 = arith.constant 0 : index
    %c0_6 = arith.constant 0 : index
    %35 = vector.load %arg4[%c0_5, %c0_6] : memref<8x1xf32, #tpu.memory_space<vmem>>, vector<8x1xf32>
    %36 = vector.broadcast %35 : vector<8x1xf32> to vector<8x256xf32>
    %37 = arith.addf %34, %36 : vector<8x256xf32>
    %cst_7 = arith.constant 0.000000e+00 : f32
    %38 = vector.broadcast %cst_7 : f32 to vector<8x256xf32>
    %39 = arith.maximumf %37, %38 : vector<8x256xf32>
    %40 = arith.truncf %39 : vector<8x256xf32> to vector<8x256xbf16>
    %c0_8 = arith.constant 0 : index
    %c0_9 = arith.constant 0 : index
    %41 = vector.load %arg5[%c0_8, %c0_9] : memref<8x256xbf16, #tpu.memory_space<vmem>>, vector<8x256xbf16>
    tpu.vector_store %arg5[%c0_8, %c0_9], %40 {strides = array<i32>} : memref<8x256xbf16, #tpu.memory_space<vmem>>, vector<8x256xbf16>,
    return
  }
  func.func @transform_0(%arg0: i32) -> (i32, i32) {
    %c0_i32 = arith.constant 0 : i32
    %c0_i32_0 = arith.constant 0 : i32
    return %c0_i32, %arg0 : i32, i32
  }
  func.func @transform_1(%arg0: i32) -> (i32, i32) {
    %c1_i32 = arith.constant 1 : i32
    %0 = arith.addi %arg0, %c1_i32 : i32
    %c0_i32 = arith.constant 0 : i32
    %c0_i32_0 = arith.constant 0 : i32
    return %c0_i32, %0 : i32, i32
  }
  func.func @transform_2(%arg0: i32) -> (i32, i32) {
    %c0_i32 = arith.constant 0 : i32
    %c0_i32_0 = arith.constant 0 : i32
    %c0_i32_1 = arith.constant 0 : i32
    return %c0_i32, %c0_i32_0 : i32, i32
  }
  func.func @transform_3(%arg0: i32) -> (i32, i32) {
    %c0_i32 = arith.constant 0 : i32
    %c0_i32_0 = arith.constant 0 : i32
    %c0_i32_1 = arith.constant 0 : i32
    return %c0_i32, %c0_i32_0 : i32, i32
  }
  func.func @transform_4(%arg0: i32) -> (i32, i32) {
    %c0_i32 = arith.constant 0 : i32
    %c0_i32_0 = arith.constant 0 : i32
    return %c0_i32, %arg0 : i32, i32
  }
}

module attributes {stable_mosaic.version = 11 : i64} {
  func.func @kernel(%arg0: i32, %arg1: memref<16x1024xbf16, #tpu.memory_space<vmem>>, %arg2: memref<16x1024xbf16, #tpu.memory_space<vmem>>, %arg3: memref<8x432xbf16, #tpu.memory_space<vmem>>, %arg4: memref<8x1xf32, #tpu.memory_space<vmem>>, %arg5: memref<8x1024xbf16, #tpu.memory_space<vmem>>) attributes {dimension_semantics = [#tpu.dimension_semantics<parallel>], iteration_bounds = array<i64: 2>, scalar_prefetch = 0 : i64, scratch_operands = 0 : i64, tpu.core_type = #tpu.core_type<tc>, window_params = [{transform_indices = @transform_0, window_bounds = array<i64: 16, 1024>}, {transform_indices = @transform_1, window_bounds = array<i64: 16, 1024>}, {pipeline_mode = #tpu.pipeline_mode<synchronous>, transform_indices = @transform_2, window_bounds = array<i64: 8, 432>}, {pipeline_mode = #tpu.pipeline_mode<synchronous>, transform_indices = @transform_3, window_bounds = array<i64: 8, 1>}, {transform_indices = @transform_4, window_bounds = array<i64: 8, 1024>}]} {
    %c0 = arith.constant 0 : index
    %c0_0 = arith.constant 0 : index
    %0 = vector.load %arg1[%c0, %c0_0] : memref<16x1024xbf16, #tpu.memory_space<vmem>>, vector<16x1024xbf16>
    %c0_1 = arith.constant 0 : index
    %c0_2 = arith.constant 0 : index
    %1 = vector.load %arg2[%c0_1, %c0_2] : memref<16x1024xbf16, #tpu.memory_space<vmem>>, vector<16x1024xbf16>
    %2 = tpu.concatenate %0, %1 in 1 : vector<16x1024xbf16>, vector<16x1024xbf16> -> vector<16x2048xbf16>
    %3 = vector.extract_strided_slice %2 {offsets = [0, 0], sizes = [16, 1024], strides = [1, 1]} : vector<16x2048xbf16> to vector<16x1024xbf16>
    %4 = vector.extract_strided_slice %2 {offsets = [0, 1], sizes = [16, 1024], strides = [1, 1]} : vector<16x2048xbf16> to vector<16x1024xbf16>
    %5 = vector.extract_strided_slice %2 {offsets = [0, 2], sizes = [16, 1024], strides = [1, 1]} : vector<16x2048xbf16> to vector<16x1024xbf16>
    %6 = vector.extract_strided_slice %2 {offsets = [0, 10], sizes = [16, 1024], strides = [1, 1]} : vector<16x2048xbf16> to vector<16x1024xbf16>
    %7 = vector.extract_strided_slice %2 {offsets = [0, 11], sizes = [16, 1024], strides = [1, 1]} : vector<16x2048xbf16> to vector<16x1024xbf16>
    %8 = vector.extract_strided_slice %2 {offsets = [0, 12], sizes = [16, 1024], strides = [1, 1]} : vector<16x2048xbf16> to vector<16x1024xbf16>
    %9 = vector.extract_strided_slice %2 {offsets = [0, 20], sizes = [16, 1024], strides = [1, 1]} : vector<16x2048xbf16> to vector<16x1024xbf16>
    %10 = vector.extract_strided_slice %2 {offsets = [0, 21], sizes = [16, 1024], strides = [1, 1]} : vector<16x2048xbf16> to vector<16x1024xbf16>
    %11 = vector.extract_strided_slice %2 {offsets = [0, 22], sizes = [16, 1024], strides = [1, 1]} : vector<16x2048xbf16> to vector<16x1024xbf16>
    %12 = vector.extract_strided_slice %2 {offsets = [0, 100], sizes = [16, 1024], strides = [1, 1]} : vector<16x2048xbf16> to vector<16x1024xbf16>
    %13 = vector.extract_strided_slice %2 {offsets = [0, 101], sizes = [16, 1024], strides = [1, 1]} : vector<16x2048xbf16> to vector<16x1024xbf16>
    %14 = vector.extract_strided_slice %2 {offsets = [0, 102], sizes = [16, 1024], strides = [1, 1]} : vector<16x2048xbf16> to vector<16x1024xbf16>
    %15 = vector.extract_strided_slice %2 {offsets = [0, 110], sizes = [16, 1024], strides = [1, 1]} : vector<16x2048xbf16> to vector<16x1024xbf16>
    %16 = vector.extract_strided_slice %2 {offsets = [0, 111], sizes = [16, 1024], strides = [1, 1]} : vector<16x2048xbf16> to vector<16x1024xbf16>
    %17 = vector.extract_strided_slice %2 {offsets = [0, 112], sizes = [16, 1024], strides = [1, 1]} : vector<16x2048xbf16> to vector<16x1024xbf16>
    %18 = vector.extract_strided_slice %2 {offsets = [0, 120], sizes = [16, 1024], strides = [1, 1]} : vector<16x2048xbf16> to vector<16x1024xbf16>
    %19 = vector.extract_strided_slice %2 {offsets = [0, 121], sizes = [16, 1024], strides = [1, 1]} : vector<16x2048xbf16> to vector<16x1024xbf16>
    %20 = vector.extract_strided_slice %2 {offsets = [0, 122], sizes = [16, 1024], strides = [1, 1]} : vector<16x2048xbf16> to vector<16x1024xbf16>
    %21 = vector.extract_strided_slice %2 {offsets = [0, 200], sizes = [16, 1024], strides = [1, 1]} : vector<16x2048xbf16> to vector<16x1024xbf16>
    %22 = vector.extract_strided_slice %2 {offsets = [0, 201], sizes = [16, 1024], strides = [1, 1]} : vector<16x2048xbf16> to vector<16x1024xbf16>
    %23 = vector.extract_strided_slice %2 {offsets = [0, 202], sizes = [16, 1024], strides = [1, 1]} : vector<16x2048xbf16> to vector<16x1024xbf16>
    %24 = vector.extract_strided_slice %2 {offsets = [0, 210], sizes = [16, 1024], strides = [1, 1]} : vector<16x2048xbf16> to vector<16x1024xbf16>
    %25 = vector.extract_strided_slice %2 {offsets = [0, 211], sizes = [16, 1024], strides = [1, 1]} : vector<16x2048xbf16> to vector<16x1024xbf16>
    %26 = vector.extract_strided_slice %2 {offsets = [0, 212], sizes = [16, 1024], strides = [1, 1]} : vector<16x2048xbf16> to vector<16x1024xbf16>
    %27 = vector.extract_strided_slice %2 {offsets = [0, 220], sizes = [16, 1024], strides = [1, 1]} : vector<16x2048xbf16> to vector<16x1024xbf16>
    %28 = vector.extract_strided_slice %2 {offsets = [0, 221], sizes = [16, 1024], strides = [1, 1]} : vector<16x2048xbf16> to vector<16x1024xbf16>
    %29 = vector.extract_strided_slice %2 {offsets = [0, 222], sizes = [16, 1024], strides = [1, 1]} : vector<16x2048xbf16> to vector<16x1024xbf16>
    %30 = tpu.concatenate %3, %4, %5, %6, %7, %8, %9, %10, %11, %12, %13, %14, %15, %16, %17, %18 in 0 : vector<16x1024xbf16>, vector<16x1024xbf16>, vector<16x1024xbf16>, vector<16x1024xbf16>, vector<16x1024xbf16>, vector<16x1024xbf16>, vector<16x1024xbf16>, vector<16x1024xbf16>, vector<16x1024xbf16>, vector<16x1024xbf16>, vector<16x1024xbf16>, vector<16x1024xbf16>, vector<16x1024xbf16>, vector<16x1024xbf16>, vector<16x1024xbf16>, vector<16x1024xbf16> -> vector<256x1024xbf16>
    %31 = tpu.concatenate %19, %20, %21, %22, %23, %24, %25, %26, %27, %28, %29 in 0 : vector<16x1024xbf16>, vector<16x1024xbf16>, vector<16x1024xbf16>, vector<16x1024xbf16>, vector<16x1024xbf16>, vector<16x1024xbf16>, vector<16x1024xbf16>, vector<16x1024xbf16>, vector<16x1024xbf16>, vector<16x1024xbf16>, vector<16x1024xbf16> -> vector<176x1024xbf16>
    %32 = tpu.concatenate %30, %31 in 0 : vector<256x1024xbf16>, vector<176x1024xbf16> -> vector<432x1024xbf16>
    %c0_3 = arith.constant 0 : index
    %c0_4 = arith.constant 0 : index
    %33 = vector.load %arg3[%c0_3, %c0_4] : memref<8x432xbf16, #tpu.memory_space<vmem>>, vector<8x432xbf16>
    %cst = arith.constant dense<0.000000e+00> : vector<8x1024xf32>
    %34 = tpu.matmul %33, %32, %cst {dimension_numbers = #tpu.dot_dimension_numbers<[1], [0], [0], [1], [0, 0, 1, 1], [], []>} : vector<8x432xbf16>, vector<432x1024xbf16>, vector<8x1024xf32> -> vector<8x1024xf32>
    %c0_5 = arith.constant 0 : index
    %c0_6 = arith.constant 0 : index
    %35 = vector.load %arg4[%c0_5, %c0_6] : memref<8x1xf32, #tpu.memory_space<vmem>>, vector<8x1xf32>
    %36 = vector.broadcast %35 : vector<8x1xf32> to vector<8x1024xf32>
    %37 = arith.addf %34, %36 : vector<8x1024xf32>
    %cst_7 = arith.constant 0.000000e+00 : f32
    %38 = vector.broadcast %cst_7 : f32 to vector<8x1024xf32>
    %39 = arith.maximumf %37, %38 : vector<8x1024xf32>
    %40 = arith.truncf %39 : vector<8x1024xf32> to vector<8x1024xbf16>
    %c0_8 = arith.constant 0 : index
    %c0_9 = arith.constant 0 : index
    %41 = vector.load %arg5[%c0_8, %c0_9] : memref<8x1024xbf16, #tpu.memory_space<vmem>>, vector<8x1024xbf16>
    tpu.vector_store %arg5[%c0_8, %c0_9], %40 {strides = array<i32>} : memref<8x1024xbf16, #tpu.memory_space<vmem>>, vector<8x1024xbf16>,
    return
  }
  func.func @transform_0(%arg0: i32) -> (i32, i32) {
    %c0_i32 = arith.constant 0 : i32
    %c0_i32_0 = arith.constant 0 : i32
    return %c0_i32, %arg0 : i32, i32
  }
  func.func @transform_1(%arg0: i32) -> (i32, i32) {
    %c1_i32 = arith.constant 1 : i32
    %0 = arith.addi %arg0, %c1_i32 : i32
    %c0_i32 = arith.constant 0 : i32
    %c0_i32_0 = arith.constant 0 : i32
    return %c0_i32, %0 : i32, i32
  }
  func.func @transform_2(%arg0: i32) -> (i32, i32) {
    %c0_i32 = arith.constant 0 : i32
    %c0_i32_0 = arith.constant 0 : i32
    %c0_i32_1 = arith.constant 0 : i32
    return %c0_i32, %c0_i32_0 : i32, i32
  }
  func.func @transform_3(%arg0: i32) -> (i32, i32) {
    %c0_i32 = arith.constant 0 : i32
    %c0_i32_0 = arith.constant 0 : i32
    %c0_i32_1 = arith.constant 0 : i32
    return %c0_i32, %c0_i32_0 : i32, i32
  }
  func.func @transform_4(%arg0: i32) -> (i32, i32) {
    %c0_i32 = arith.constant 0 : i32
    %c0_i32_0 = arith.constant 0 : i32
    return %c0_i32, %arg0 : i32, i32
  }
}

module attributes {stable_mosaic.version = 11 : i64} {
  func.func @kernel(%arg0: i32, %arg1: memref<8x1024xbf16, #tpu.memory_space<vmem>>, %arg2: memref<8x1024xbf16, #tpu.memory_space<vmem>>, %arg3: memref<8x216xbf16, #tpu.memory_space<vmem>>, %arg4: memref<8x1xf32, #tpu.memory_space<vmem>>, %arg5: memref<8x1024xbf16, #tpu.memory_space<vmem>>) attributes {dimension_semantics = [#tpu.dimension_semantics<parallel>], iteration_bounds = array<i64: 2>, scalar_prefetch = 0 : i64, scratch_operands = 0 : i64, tpu.core_type = #tpu.core_type<tc>, window_params = [{transform_indices = @transform_0, window_bounds = array<i64: 8, 1024>}, {transform_indices = @transform_1, window_bounds = array<i64: 8, 1024>}, {pipeline_mode = #tpu.pipeline_mode<synchronous>, transform_indices = @transform_2, window_bounds = array<i64: 8, 216>}, {pipeline_mode = #tpu.pipeline_mode<synchronous>, transform_indices = @transform_3, window_bounds = array<i64: 8, 1>}, {transform_indices = @transform_4, window_bounds = array<i64: 8, 1024>}]} {
    %c0 = arith.constant 0 : index
    %c0_0 = arith.constant 0 : index
    %0 = vector.load %arg1[%c0, %c0_0] : memref<8x1024xbf16, #tpu.memory_space<vmem>>, vector<8x1024xbf16>
    %c0_1 = arith.constant 0 : index
    %c0_2 = arith.constant 0 : index
    %1 = vector.load %arg2[%c0_1, %c0_2] : memref<8x1024xbf16, #tpu.memory_space<vmem>>, vector<8x1024xbf16>
    %2 = tpu.concatenate %0, %1 in 1 : vector<8x1024xbf16>, vector<8x1024xbf16> -> vector<8x2048xbf16>
    %3 = vector.extract_strided_slice %2 {offsets = [0, 0], sizes = [8, 1024], strides = [1, 1]} : vector<8x2048xbf16> to vector<8x1024xbf16>
    %4 = vector.extract_strided_slice %2 {offsets = [0, 1], sizes = [8, 1024], strides = [1, 1]} : vector<8x2048xbf16> to vector<8x1024xbf16>
    %5 = vector.extract_strided_slice %2 {offsets = [0, 2], sizes = [8, 1024], strides = [1, 1]} : vector<8x2048xbf16> to vector<8x1024xbf16>
    %6 = vector.extract_strided_slice %2 {offsets = [0, 10], sizes = [8, 1024], strides = [1, 1]} : vector<8x2048xbf16> to vector<8x1024xbf16>
    %7 = vector.extract_strided_slice %2 {offsets = [0, 11], sizes = [8, 1024], strides = [1, 1]} : vector<8x2048xbf16> to vector<8x1024xbf16>
    %8 = vector.extract_strided_slice %2 {offsets = [0, 12], sizes = [8, 1024], strides = [1, 1]} : vector<8x2048xbf16> to vector<8x1024xbf16>
    %9 = vector.extract_strided_slice %2 {offsets = [0, 20], sizes = [8, 1024], strides = [1, 1]} : vector<8x2048xbf16> to vector<8x1024xbf16>
    %10 = vector.extract_strided_slice %2 {offsets = [0, 21], sizes = [8, 1024], strides = [1, 1]} : vector<8x2048xbf16> to vector<8x1024xbf16>
    %11 = vector.extract_strided_slice %2 {offsets = [0, 22], sizes = [8, 1024], strides = [1, 1]} : vector<8x2048xbf16> to vector<8x1024xbf16>
    %12 = vector.extract_strided_slice %2 {offsets = [0, 100], sizes = [8, 1024], strides = [1, 1]} : vector<8x2048xbf16> to vector<8x1024xbf16>
    %13 = vector.extract_strided_slice %2 {offsets = [0, 101], sizes = [8, 1024], strides = [1, 1]} : vector<8x2048xbf16> to vector<8x1024xbf16>
    %14 = vector.extract_strided_slice %2 {offsets = [0, 102], sizes = [8, 1024], strides = [1, 1]} : vector<8x2048xbf16> to vector<8x1024xbf16>
    %15 = vector.extract_strided_slice %2 {offsets = [0, 110], sizes = [8, 1024], strides = [1, 1]} : vector<8x2048xbf16> to vector<8x1024xbf16>
    %16 = vector.extract_strided_slice %2 {offsets = [0, 111], sizes = [8, 1024], strides = [1, 1]} : vector<8x2048xbf16> to vector<8x1024xbf16>
    %17 = vector.extract_strided_slice %2 {offsets = [0, 112], sizes = [8, 1024], strides = [1, 1]} : vector<8x2048xbf16> to vector<8x1024xbf16>
    %18 = vector.extract_strided_slice %2 {offsets = [0, 120], sizes = [8, 1024], strides = [1, 1]} : vector<8x2048xbf16> to vector<8x1024xbf16>
    %19 = vector.extract_strided_slice %2 {offsets = [0, 121], sizes = [8, 1024], strides = [1, 1]} : vector<8x2048xbf16> to vector<8x1024xbf16>
    %20 = vector.extract_strided_slice %2 {offsets = [0, 122], sizes = [8, 1024], strides = [1, 1]} : vector<8x2048xbf16> to vector<8x1024xbf16>
    %21 = vector.extract_strided_slice %2 {offsets = [0, 200], sizes = [8, 1024], strides = [1, 1]} : vector<8x2048xbf16> to vector<8x1024xbf16>
    %22 = vector.extract_strided_slice %2 {offsets = [0, 201], sizes = [8, 1024], strides = [1, 1]} : vector<8x2048xbf16> to vector<8x1024xbf16>
    %23 = vector.extract_strided_slice %2 {offsets = [0, 202], sizes = [8, 1024], strides = [1, 1]} : vector<8x2048xbf16> to vector<8x1024xbf16>
    %24 = vector.extract_strided_slice %2 {offsets = [0, 210], sizes = [8, 1024], strides = [1, 1]} : vector<8x2048xbf16> to vector<8x1024xbf16>
    %25 = vector.extract_strided_slice %2 {offsets = [0, 211], sizes = [8, 1024], strides = [1, 1]} : vector<8x2048xbf16> to vector<8x1024xbf16>
    %26 = vector.extract_strided_slice %2 {offsets = [0, 212], sizes = [8, 1024], strides = [1, 1]} : vector<8x2048xbf16> to vector<8x1024xbf16>
    %27 = vector.extract_strided_slice %2 {offsets = [0, 220], sizes = [8, 1024], strides = [1, 1]} : vector<8x2048xbf16> to vector<8x1024xbf16>
    %28 = vector.extract_strided_slice %2 {offsets = [0, 221], sizes = [8, 1024], strides = [1, 1]} : vector<8x2048xbf16> to vector<8x1024xbf16>
    %29 = vector.extract_strided_slice %2 {offsets = [0, 222], sizes = [8, 1024], strides = [1, 1]} : vector<8x2048xbf16> to vector<8x1024xbf16>
    %30 = tpu.concatenate %3, %4, %5, %6, %7, %8, %9, %10, %11, %12, %13, %14, %15, %16, %17, %18 in 0 : vector<8x1024xbf16>, vector<8x1024xbf16>, vector<8x1024xbf16>, vector<8x1024xbf16>, vector<8x1024xbf16>, vector<8x1024xbf16>, vector<8x1024xbf16>, vector<8x1024xbf16>, vector<8x1024xbf16>, vector<8x1024xbf16>, vector<8x1024xbf16>, vector<8x1024xbf16>, vector<8x1024xbf16>, vector<8x1024xbf16>, vector<8x1024xbf16>, vector<8x1024xbf16> -> vector<128x1024xbf16>
    %31 = tpu.concatenate %19, %20, %21, %22, %23, %24, %25, %26, %27, %28, %29 in 0 : vector<8x1024xbf16>, vector<8x1024xbf16>, vector<8x1024xbf16>, vector<8x1024xbf16>, vector<8x1024xbf16>, vector<8x1024xbf16>, vector<8x1024xbf16>, vector<8x1024xbf16>, vector<8x1024xbf16>, vector<8x1024xbf16>, vector<8x1024xbf16> -> vector<88x1024xbf16>
    %32 = tpu.concatenate %30, %31 in 0 : vector<128x1024xbf16>, vector<88x1024xbf16> -> vector<216x1024xbf16>
    %c0_3 = arith.constant 0 : index
    %c0_4 = arith.constant 0 : index
    %33 = vector.load %arg3[%c0_3, %c0_4] : memref<8x216xbf16, #tpu.memory_space<vmem>>, vector<8x216xbf16>
    %cst = arith.constant dense<0.000000e+00> : vector<8x1024xf32>
    %34 = tpu.matmul %33, %32, %cst {dimension_numbers = #tpu.dot_dimension_numbers<[1], [0], [0], [1], [0, 0, 1, 1], [], []>} : vector<8x216xbf16>, vector<216x1024xbf16>, vector<8x1024xf32> -> vector<8x1024xf32>
    %c0_5 = arith.constant 0 : index
    %c0_6 = arith.constant 0 : index
    %35 = vector.load %arg4[%c0_5, %c0_6] : memref<8x1xf32, #tpu.memory_space<vmem>>, vector<8x1xf32>
    %36 = vector.broadcast %35 : vector<8x1xf32> to vector<8x1024xf32>
    %37 = arith.addf %34, %36 : vector<8x1024xf32>
    %cst_7 = arith.constant 0.000000e+00 : f32
    %38 = vector.broadcast %cst_7 : f32 to vector<8x1024xf32>
    %39 = arith.maximumf %37, %38 : vector<8x1024xf32>
    %40 = arith.truncf %39 : vector<8x1024xf32> to vector<8x1024xbf16>
    %c0_8 = arith.constant 0 : index
    %c0_9 = arith.constant 0 : index
    %41 = vector.load %arg5[%c0_8, %c0_9] : memref<8x1024xbf16, #tpu.memory_space<vmem>>, vector<8x1024xbf16>
    tpu.vector_store %arg5[%c0_8, %c0_9], %40 {strides = array<i32>} : memref<8x1024xbf16, #tpu.memory_space<vmem>>, vector<8x1024xbf16>,
    return
  }
  func.func @transform_0(%arg0: i32) -> (i32, i32) {
    %c0_i32 = arith.constant 0 : i32
    %c0_i32_0 = arith.constant 0 : i32
    return %c0_i32, %arg0 : i32, i32
  }
  func.func @transform_1(%arg0: i32) -> (i32, i32) {
    %c1_i32 = arith.constant 1 : i32
    %0 = arith.addi %arg0, %c1_i32 : i32
    %c0_i32 = arith.constant 0 : i32
    %c0_i32_0 = arith.constant 0 : i32
    return %c0_i32, %0 : i32, i32
  }
  func.func @transform_2(%arg0: i32) -> (i32, i32) {
    %c0_i32 = arith.constant 0 : i32
    %c0_i32_0 = arith.constant 0 : i32
    %c0_i32_1 = arith.constant 0 : i32
    return %c0_i32, %c0_i32_0 : i32, i32
  }
  func.func @transform_3(%arg0: i32) -> (i32, i32) {
    %c0_i32 = arith.constant 0 : i32
    %c0_i32_0 = arith.constant 0 : i32
    %c0_i32_1 = arith.constant 0 : i32
    return %c0_i32, %c0_i32_0 : i32, i32
  }
  func.func @transform_4(%arg0: i32) -> (i32, i32) {
    %c0_i32 = arith.constant 0 : i32
    %c0_i32_0 = arith.constant 0 : i32
    return %c0_i32, %arg0 : i32, i32
  }
}

module attributes {stable_mosaic.version = 11 : i64} {
  func.func @kernel(%arg0: i32, %arg1: memref<2x8xbf16, #tpu.memory_space<vmem>>, %arg2: memref<8x512xbf16, #tpu.memory_space<vmem>>, %arg3: memref<2x1xf32, #tpu.memory_space<vmem>>, %arg4: memref<2x512xf32, #tpu.memory_space<vmem>>) attributes {dimension_semantics = [#tpu.dimension_semantics<parallel>], iteration_bounds = array<i64: 2>, scalar_prefetch = 0 : i64, scratch_operands = 0 : i64, tpu.core_type = #tpu.core_type<tc>, window_params = [{pipeline_mode = #tpu.pipeline_mode<synchronous>, transform_indices = @transform_0, window_bounds = array<i64: 2, 8>}, {transform_indices = @transform_1, window_bounds = array<i64: 8, 512>}, {pipeline_mode = #tpu.pipeline_mode<synchronous>, transform_indices = @transform_2, window_bounds = array<i64: 2, 1>}, {transform_indices = @transform_3, window_bounds = array<i64: 2, 512>}]} {
    %c0 = arith.constant 0 : index
    %c0_0 = arith.constant 0 : index
    %0 = vector.load %arg1[%c0, %c0_0] : memref<2x8xbf16, #tpu.memory_space<vmem>>, vector<2x8xbf16>
    %c0_1 = arith.constant 0 : index
    %c0_2 = arith.constant 0 : index
    %1 = vector.load %arg2[%c0_1, %c0_2] : memref<8x512xbf16, #tpu.memory_space<vmem>>, vector<8x512xbf16>
    %cst = arith.constant dense<0.000000e+00> : vector<2x512xf32>
    %2 = tpu.matmul %0, %1, %cst {dimension_numbers = #tpu.dot_dimension_numbers<[1], [0], [0], [1], [0, 0, 1, 1], [], []>} : vector<2x8xbf16>, vector<8x512xbf16>, vector<2x512xf32> -> vector<2x512xf32>
    %c0_3 = arith.constant 0 : index
    %c0_4 = arith.constant 0 : index
    %3 = vector.load %arg3[%c0_3, %c0_4] : memref<2x1xf32, #tpu.memory_space<vmem>>, vector<2x1xf32>
    %4 = vector.broadcast %3 : vector<2x1xf32> to vector<2x512xf32>
    %5 = arith.addf %2, %4 : vector<2x512xf32>
    %c0_5 = arith.constant 0 : index
    %c0_6 = arith.constant 0 : index
    %6 = vector.load %arg4[%c0_5, %c0_6] : memref<2x512xf32, #tpu.memory_space<vmem>>, vector<2x512xf32>
    tpu.vector_store %arg4[%c0_5, %c0_6], %5 {strides = array<i32>} : memref<2x512xf32, #tpu.memory_space<vmem>>, vector<2x512xf32>,
    return
  }
  func.func @transform_0(%arg0: i32) -> (i32, i32) {
    %c0_i32 = arith.constant 0 : i32
    %c0_i32_0 = arith.constant 0 : i32
    %c0_i32_1 = arith.constant 0 : i32
    return %c0_i32, %c0_i32_0 : i32, i32
  }
  func.func @transform_1(%arg0: i32) -> (i32, i32) {
    %c0_i32 = arith.constant 0 : i32
    %c0_i32_0 = arith.constant 0 : i32
    return %c0_i32, %arg0 : i32, i32
  }
  func.func @transform_2(%arg0: i32) -> (i32, i32) {
    %c0_i32 = arith.constant 0 : i32
    %c0_i32_0 = arith.constant 0 : i32
    %c0_i32_1 = arith.constant 0 : i32
    return %c0_i32, %c0_i32_0 : i32, i32
  }
  func.func @transform_3(%arg0: i32) -> (i32, i32) {
    %c0_i32 = arith.constant 0 : i32
    %c0_i32_0 = arith.constant 0 : i32
    return %c0_i32, %arg0 : i32, i32
  }
}

</mosaic_0001>

<bundles_post_ra>
// kernel: global_net_forward.16
= control target key start
LH: loop header
LB: loop body
LE: loop exit
PB: predicated region body
PF: predicated region fallthrough
CT: control target
= control target key end

     0   :  { %s2495_s12 = smov 0   ;;  %s2497_s13 = smov 0   ;;  %s3099_s0 = inlined_call_operand.vmem [shape: bf16[8,686], index: 0, kind: input, shape index: {}]   ;;  %s3100_s1 = inlined_call_operand.vmem [shape: bf16[686,1024], index: 1, kind: input, shape index: {}]   ;;  %s3101_s2 = inlined_call_operand.vmem [shape: f32[8,1], index: 2, kind: input, shape index: {}]   ;;  %s3102_s3 = inlined_call_operand.vmem [shape: bf16[8,1024], index: 3, kind: output, shape index: {}]  }
   0x1   :  { %s2499_s14 = smov 0  }
   0x2 LB: > { %s1940_s15 = sadd.s32 4294967295, %s2472_s14   ;;  %s2512_s16 = sadd.s32 1, %s2472_s14   ;;  %s2472_s14 = sphi %s2499_s14, %s3105_s14   ;;  %s2468_s13 = sphi %s2497_s13, %s3104_s13   ;;  %s2464_s12 = sphi %s2495_s12, %s3103_s12  }
   0x3   : > { %s38_s17 = ssub.s32 %s2472_s14, %s2512_s16  ;;  %s41_s18 = sadd.s32 1, %s2468_s13 }
   0x4   : > { %p39_p0 = scmp.eq.s32.totalorder %s38_s17, 0  ;;  %p48_p1 = scmp.ne.s32.totalorder %s2468_s13, %s2464_s12 }
   0x5   : > { %p49_p2 = scmp.eq.s32.totalorder %s2472_s14, 0  ;;  %p1943_p4 = scmp.ge.s32.totalorder %s2472_s14, 2 }
   0x6   : > { %s2521_s19 = scalar_select %p39_p0, %s2468_s13, %s41_s18  }
   0x7   : > { %p50_p3 = por %p49_p2, %p48_p1  ;;  %127 = sbr.rel (%p1943_p4) target bundleno = 104 (0x68), region = 24 }
   0xe   : > { %130 = sbr.rel (!%p50_p3) target bundleno = 104 (0x68), region = 28  ;;  %s132_s20 = sand.u32 (%p50_p3), 1, %s2468_s13  }
   0xf   : > { %s2135_s21 = sshll.u32 (%p50_p3), %s2472_s14, 4  ;;  %s2158_s22 = smul.u32 (%p50_p3), 1376, %s132_s20 }
  0x10   : > { %s2529_s25 = scalar_lea.vmem (%p50_p3), %s3100_s1, %s2135_s21 }
  0x11   : > { %v150_v0 = vld [vmem:[%s2529_s25] sm:$0xff] (%p50_p3)  ;;  %v152_v1 = vld [vmem:[%s2529_s25 + $0x8] sm:$0xff] (%p50_p3)  ;;  %s2537_s26 = scalar_lea.vmem (%p50_p3), [#allocation2], %s2158_s22 }
  0x12   : > { %v154_v2 = vld [vmem:[%s2529_s25 + $0x20] sm:$0xff] (%p50_p3)  ;;  %v156_v3 = vld [vmem:[%s2529_s25 + $0x28] sm:$0xff] (%p50_p3)  ;;  %151 = vst [vmem:[%s2537_s26] sm:$0xff] (%p50_p3), %v150_v0  ;;  %153 = vst [vmem:[%s2537_s26 + $0x8] sm:$0xff] (%p50_p3), %v152_v1 }
  0x13   : > { %v158_v4 = vld [vmem:[%s2529_s25 + $0x40] sm:$0xff] (%p50_p3)  ;;  %v160_v5 = vld [vmem:[%s2529_s25 + $0x48] sm:$0xff] (%p50_p3)  ;;  %155 = vst [vmem:[%s2537_s26 + $0x10] sm:$0xff] (%p50_p3), %v154_v2  ;;  %157 = vst [vmem:[%s2537_s26 + $0x18] sm:$0xff] (%p50_p3), %v156_v3 }
  0x14   : > { %159 = vst [vmem:[%s2537_s26 + $0x20] sm:$0xff] (%p50_p3), %v158_v4  ;;  %161 = vst [vmem:[%s2537_s26 + $0x28] sm:$0xff] (%p50_p3), %v160_v5  ;;  %v162_v6 = vld [vmem:[%s2529_s25 + $0x60] sm:$0xff] (%p50_p3)  ;;  %v164_v7 = vld [vmem:[%s2529_s25 + $0x68] sm:$0xff] (%p50_p3) }
  0x15   : > { %v166_v8 = vld [vmem:[%s2529_s25 + $0x80] sm:$0xff]  ;;  %163 = vst [vmem:[%s2537_s26 + $0x30] sm:$0xff] %v162_v6  ;;  %165 = vst [vmem:[%s2537_s26 + $0x38] sm:$0xff] %v164_v7  ;;  %v168_v9 = vld [vmem:[%s2529_s25 + $0x88] sm:$0xff] }
  0x16   : > { %167 = vst [vmem:[%s2537_s26 + $0x40] sm:$0xff] %v166_v8  ;;  %v170_v10 = vld [vmem:[%s2529_s25 + $0xa0] sm:$0xff]  ;;  %v172_v11 = vld [vmem:[%s2529_s25 + $0xa8] sm:$0xff]  ;;  %169 = vst [vmem:[%s2537_s26 + $0x48] sm:$0xff] %v168_v9 }
  0x17   : > { %171 = vst [vmem:[%s2537_s26 + $0x50] sm:$0xff] %v170_v10  ;;  %173 = vst [vmem:[%s2537_s26 + $0x58] sm:$0xff] %v172_v11  ;;  %v174_v12 = vld [vmem:[%s2529_s25 + $0xc0] sm:$0xff]  ;;  %v176_v13 = vld [vmem:[%s2529_s25 + $0xc8] sm:$0xff] }
  0x18   : > { %v178_v14 = vld [vmem:[%s2529_s25 + $0xe0] sm:$0xff]  ;;  %175 = vst [vmem:[%s2537_s26 + $0x60] sm:$0xff] %v174_v12  ;;  %177 = vst [vmem:[%s2537_s26 + $0x68] sm:$0xff] %v176_v13  ;;  %v180_v15 = vld [vmem:[%s2529_s25 + $0xe8] sm:$0xff] }
  0x19   : > { %179 = vst [vmem:[%s2537_s26 + $0x70] sm:$0xff] %v178_v14  ;;  %v182_v16 = vld [vmem:[%s2529_s25 + $0x100] sm:$0xff]  ;;  %v184_v17 = vld [vmem:[%s2529_s25 + $0x108] sm:$0xff]  ;;  %181 = vst [vmem:[%s2537_s26 + $0x78] sm:$0xff] %v180_v15 }
  0x1a   : > { %183 = vst [vmem:[%s2537_s26 + $0x80] sm:$0xff] %v182_v16  ;;  %185 = vst [vmem:[%s2537_s26 + $0x88] sm:$0xff] %v184_v17  ;;  %v186_v18 = vld [vmem:[%s2529_s25 + $0x120] sm:$0xff]  ;;  %v188_v19 = vld [vmem:[%s2529_s25 + $0x128] sm:$0xff] }
  0x1b   : > { %v190_v20 = vld [vmem:[%s2529_s25 + $0x140] sm:$0xff]  ;;  %187 = vst [vmem:[%s2537_s26 + $0x90] sm:$0xff] %v186_v18  ;;  %189 = vst [vmem:[%s2537_s26 + $0x98] sm:$0xff] %v188_v19  ;;  %v192_v21 = vld [vmem:[%s2529_s25 + $0x148] sm:$0xff] }
  0x1c   : > { %191 = vst [vmem:[%s2537_s26 + $0xa0] sm:$0xff] %v190_v20  ;;  %v194_v22 = vld [vmem:[%s2529_s25 + $0x160] sm:$0xff]  ;;  %v196_v23 = vld [vmem:[%s2529_s25 + $0x168] sm:$0xff]  ;;  %193 = vst [vmem:[%s2537_s26 + $0xa8] sm:$0xff] %v192_v21 }
  0x1d   : > { %195 = vst [vmem:[%s2537_s26 + $0xb0] sm:$0xff] %v194_v22  ;;  %197 = vst [vmem:[%s2537_s26 + $0xb8] sm:$0xff] %v196_v23  ;;  %v198_v24 = vld [vmem:[%s2529_s25 + $0x180] sm:$0xff]  ;;  %v200_v25 = vld [vmem:[%s2529_s25 + $0x188] sm:$0xff] }
  0x1e   : > { %v202_v26 = vld [vmem:[%s2529_s25 + $0x1a0] sm:$0xff]  ;;  %199 = vst [vmem:[%s2537_s26 + $0xc0] sm:$0xff] %v198_v24  ;;  %201 = vst [vmem:[%s2537_s26 + $0xc8] sm:$0xff] %v200_v25  ;;  %v204_v27 = vld [vmem:[%s2529_s25 + $0x1a8] sm:$0xff] }
  0x1f   : > { %203 = vst [vmem:[%s2537_s26 + $0xd0] sm:$0xff] %v202_v26  ;;  %v206_v28 = vld [vmem:[%s2529_s25 + $0x1c0] sm:$0xff]  ;;  %v208_v29 = vld [vmem:[%s2529_s25 + $0x1c8] sm:$0xff]  ;;  %205 = vst [vmem:[%s2537_s26 + $0xd8] sm:$0xff] %v204_v27 }
  0x20   : > { %207 = vst [vmem:[%s2537_s26 + $0xe0] sm:$0xff] %v206_v28  ;;  %209 = vst [vmem:[%s2537_s26 + $0xe8] sm:$0xff] %v208_v29  ;;  %v210_v30 = vld [vmem:[%s2529_s25 + $0x1e0] sm:$0xff]  ;;  %v212_v31 = vld [vmem:[%s2529_s25 + $0x1e8] sm:$0xff] }
  0x21   : > { %v214_v32 = vld [vmem:[%s2529_s25 + $0x200] sm:$0xff]  ;;  %211 = vst [vmem:[%s2537_s26 + $0xf0] sm:$0xff] %v210_v30  ;;  %213 = vst [vmem:[%s2537_s26 + $0xf8] sm:$0xff] %v212_v31  ;;  %v216_v33 = vld [vmem:[%s2529_s25 + $0x208] sm:$0xff] }
  0x22   : > { %215 = vst [vmem:[%s2537_s26 + $0x100] sm:$0xff] %v214_v32  ;;  %v218_v34 = vld [vmem:[%s2529_s25 + $0x220] sm:$0xff]  ;;  %v220_v35 = vld [vmem:[%s2529_s25 + $0x228] sm:$0xff]  ;;  %217 = vst [vmem:[%s2537_s26 + $0x108] sm:$0xff] %v216_v33 }
  0x23   : > { %219 = vst [vmem:[%s2537_s26 + $0x110] sm:$0xff] %v218_v34  ;;  %221 = vst [vmem:[%s2537_s26 + $0x118] sm:$0xff] %v220_v35  ;;  %v222_v36 = vld [vmem:[%s2529_s25 + $0x240] sm:$0xff]  ;;  %v224_v37 = vld [vmem:[%s2529_s25 + $0x248] sm:$0xff] }
  0x24   : > { %v226_v38 = vld [vmem:[%s2529_s25 + $0x260] sm:$0xff]  ;;  %223 = vst [vmem:[%s2537_s26 + $0x120] sm:$0xff] %v222_v36  ;;  %225 = vst [vmem:[%s2537_s26 + $0x128] sm:$0xff] %v224_v37  ;;  %v228_v39 = vld [vmem:[%s2529_s25 + $0x268] sm:$0xff] }
  0x25   : > { %227 = vst [vmem:[%s2537_s26 + $0x130] sm:$0xff] %v226_v38  ;;  %v230_v40 = vld [vmem:[%s2529_s25 + $0x280] sm:$0xff]  ;;  %v232_v41 = vld [vmem:[%s2529_s25 + $0x288] sm:$0xff]  ;;  %229 = vst [vmem:[%s2537_s26 + $0x138] sm:$0xff] %v228_v39 }
  0x26   : > { %231 = vst [vmem:[%s2537_s26 + $0x140] sm:$0xff] %v230_v40  ;;  %233 = vst [vmem:[%s2537_s26 + $0x148] sm:$0xff] %v232_v41  ;;  %v234_v42 = vld [vmem:[%s2529_s25 + $0x2a0] sm:$0xff]  ;;  %v236_v43 = vld [vmem:[%s2529_s25 + $0x2a8] sm:$0xff] }
  0x27   : > { %v238_v44 = vld [vmem:[%s2529_s25 + $0x2c0] sm:$0xff]  ;;  %235 = vst [vmem:[%s2537_s26 + $0x150] sm:$0xff] %v234_v42  ;;  %237 = vst [vmem:[%s2537_s26 + $0x158] sm:$0xff] %v236_v43  ;;  %v240_v45 = vld [vmem:[%s2529_s25 + $0x2c8] sm:$0xff] }
  0x28   : > { %239 = vst [vmem:[%s2537_s26 + $0x160] sm:$0xff] %v238_v44  ;;  %v242_v46 = vld [vmem:[%s2529_s25 + $0x2e0] sm:$0xff]  ;;  %v244_v47 = vld [vmem:[%s2529_s25 + $0x2e8] sm:$0xff]  ;;  %241 = vst [vmem:[%s2537_s26 + $0x168] sm:$0xff] %v240_v45 }
  0x29   : > { %243 = vst [vmem:[%s2537_s26 + $0x170] sm:$0xff] %v242_v46  ;;  %245 = vst [vmem:[%s2537_s26 + $0x178] sm:$0xff] %v244_v47  ;;  %v246_v48 = vld [vmem:[%s2529_s25 + $0x300] sm:$0xff]  ;;  %v248_v49 = vld [vmem:[%s2529_s25 + $0x308] sm:$0xff] }
  0x2a   : > { %v250_v50 = vld [vmem:[%s2529_s25 + $0x320] sm:$0xff]  ;;  %247 = vst [vmem:[%s2537_s26 + $0x180] sm:$0xff] %v246_v48  ;;  %249 = vst [vmem:[%s2537_s26 + $0x188] sm:$0xff] %v248_v49  ;;  %v252_v51 = vld [vmem:[%s2529_s25 + $0x328] sm:$0xff] }
  0x2b   : > { %251 = vst [vmem:[%s2537_s26 + $0x190] sm:$0xff] %v250_v50  ;;  %v254_v52 = vld [vmem:[%s2529_s25 + $0x340] sm:$0xff]  ;;  %v256_v53 = vld [vmem:[%s2529_s25 + $0x348] sm:$0xff]  ;;  %253 = vst [vmem:[%s2537_s26 + $0x198] sm:$0xff] %v252_v51 }
  0x2c   : > { %255 = vst [vmem:[%s2537_s26 + $0x1a0] sm:$0xff] %v254_v52  ;;  %257 = vst [vmem:[%s2537_s26 + $0x1a8] sm:$0xff] %v256_v53  ;;  %v258_v54 = vld [vmem:[%s2529_s25 + $0x360] sm:$0xff]  ;;  %v260_v55 = vld [vmem:[%s2529_s25 + $0x368] sm:$0xff] }
  0x2d   : > { %v262_v56 = vld [vmem:[%s2529_s25 + $0x380] sm:$0xff]  ;;  %259 = vst [vmem:[%s2537_s26 + $0x1b0] sm:$0xff] %v258_v54  ;;  %261 = vst [vmem:[%s2537_s26 + $0x1b8] sm:$0xff] %v260_v55  ;;  %v264_v57 = vld [vmem:[%s2529_s25 + $0x388] sm:$0xff] }
  0x2e   : > { %263 = vst [vmem:[%s2537_s26 + $0x1c0] sm:$0xff] %v262_v56  ;;  %v266_v58 = vld [vmem:[%s2529_s25 + $0x3a0] sm:$0xff]  ;;  %v268_v59 = vld [vmem:[%s2529_s25 + $0x3a8] sm:$0xff]  ;;  %265 = vst [vmem:[%s2537_s26 + $0x1c8] sm:$0xff] %v264_v57 }
  0x2f   : > { %267 = vst [vmem:[%s2537_s26 + $0x1d0] sm:$0xff] %v266_v58  ;;  %269 = vst [vmem:[%s2537_s26 + $0x1d8] sm:$0xff] %v268_v59  ;;  %v270_v60 = vld [vmem:[%s2529_s25 + $0x3c0] sm:$0xff]  ;;  %v272_v61 = vld [vmem:[%s2529_s25 + $0x3c8] sm:$0xff] }
  0x30   : > { %v274_v62 = vld [vmem:[%s2529_s25 + $0x3e0] sm:$0xff]  ;;  %271 = vst [vmem:[%s2537_s26 + $0x1e0] sm:$0xff] %v270_v60  ;;  %273 = vst [vmem:[%s2537_s26 + $0x1e8] sm:$0xff] %v272_v61  ;;  %v276_v63 = vld [vmem:[%s2529_s25 + $0x3e8] sm:$0xff] }
  0x31   : > { %275 = vst [vmem:[%s2537_s26 + $0x1f0] sm:$0xff] %v274_v62  ;;  %v278_v0 = vld [vmem:[%s2529_s25 + $0x400] sm:$0xff]  ;;  %v280_v1 = vld [vmem:[%s2529_s25 + $0x408] sm:$0xff]  ;;  %277 = vst [vmem:[%s2537_s26 + $0x1f8] sm:$0xff] %v276_v63 }
  0x32   : > { %279 = vst [vmem:[%s2537_s26 + $0x200] sm:$0xff] %v278_v0  ;;  %281 = vst [vmem:[%s2537_s26 + $0x208] sm:$0xff] %v280_v1  ;;  %v282_v2 = vld [vmem:[%s2529_s25 + $0x420] sm:$0xff]  ;;  %v284_v3 = vld [vmem:[%s2529_s25 + $0x428] sm:$0xff] }
  0x33   : > { %v286_v4 = vld [vmem:[%s2529_s25 + $0x440] sm:$0xff]  ;;  %283 = vst [vmem:[%s2537_s26 + $0x210] sm:$0xff] %v282_v2  ;;  %285 = vst [vmem:[%s2537_s26 + $0x218] sm:$0xff] %v284_v3  ;;  %v288_v5 = vld [vmem:[%s2529_s25 + $0x448] sm:$0xff] }
  0x34   : > { %287 = vst [vmem:[%s2537_s26 + $0x220] sm:$0xff] %v286_v4  ;;  %v290_v6 = vld [vmem:[%s2529_s25 + $0x460] sm:$0xff]  ;;  %v292_v7 = vld [vmem:[%s2529_s25 + $0x468] sm:$0xff]  ;;  %289 = vst [vmem:[%s2537_s26 + $0x228] sm:$0xff] %v288_v5 }
  0x35   : > { %291 = vst [vmem:[%s2537_s26 + $0x230] sm:$0xff] %v290_v6  ;;  %293 = vst [vmem:[%s2537_s26 + $0x238] sm:$0xff] %v292_v7  ;;  %v294_v8 = vld [vmem:[%s2529_s25 + $0x480] sm:$0xff]  ;;  %v296_v9 = vld [vmem:[%s2529_s25 + $0x488] sm:$0xff] }
  0x36   : > { %v298_v10 = vld [vmem:[%s2529_s25 + $0x4a0] sm:$0xff]  ;;  %295 = vst [vmem:[%s2537_s26 + $0x240] sm:$0xff] %v294_v8  ;;  %297 = vst [vmem:[%s2537_s26 + $0x248] sm:$0xff] %v296_v9  ;;  %v300_v11 = vld [vmem:[%s2529_s25 + $0x4a8] sm:$0xff] }
  0x37   : > { %299 = vst [vmem:[%s2537_s26 + $0x250] sm:$0xff] %v298_v10  ;;  %v302_v12 = vld [vmem:[%s2529_s25 + $0x4c0] sm:$0xff]  ;;  %v304_v13 = vld [vmem:[%s2529_s25 + $0x4c8] sm:$0xff]  ;;  %301 = vst [vmem:[%s2537_s26 + $0x258] sm:$0xff] %v300_v11 }
  0x38   : > { %303 = vst [vmem:[%s2537_s26 + $0x260] sm:$0xff] %v302_v12  ;;  %305 = vst [vmem:[%s2537_s26 + $0x268] sm:$0xff] %v304_v13  ;;  %v306_v14 = vld [vmem:[%s2529_s25 + $0x4e0] sm:$0xff]  ;;  %v308_v15 = vld [vmem:[%s2529_s25 + $0x4e8] sm:$0xff] }
  0x39   : > { %v310_v16 = vld [vmem:[%s2529_s25 + $0x500] sm:$0xff]  ;;  %307 = vst [vmem:[%s2537_s26 + $0x270] sm:$0xff] %v306_v14  ;;  %309 = vst [vmem:[%s2537_s26 + $0x278] sm:$0xff] %v308_v15  ;;  %v312_v17 = vld [vmem:[%s2529_s25 + $0x508] sm:$0xff] }
  0x3a   : > { %311 = vst [vmem:[%s2537_s26 + $0x280] sm:$0xff] %v310_v16  ;;  %v314_v18 = vld [vmem:[%s2529_s25 + $0x520] sm:$0xff]  ;;  %v316_v19 = vld [vmem:[%s2529_s25 + $0x528] sm:$0xff]  ;;  %313 = vst [vmem:[%s2537_s26 + $0x288] sm:$0xff] %v312_v17 }
  0x3b   : > { %315 = vst [vmem:[%s2537_s26 + $0x290] sm:$0xff] %v314_v18  ;;  %317 = vst [vmem:[%s2537_s26 + $0x298] sm:$0xff] %v316_v19  ;;  %v318_v20 = vld [vmem:[%s2529_s25 + $0x540] sm:$0xff]  ;;  %v320_v21 = vld [vmem:[%s2529_s25 + $0x548] sm:$0xff] }
  0x3c   : > { %v322_v22 = vld [vmem:[%s2529_s25 + $0x560] sm:$0xff]  ;;  %319 = vst [vmem:[%s2537_s26 + $0x2a0] sm:$0xff] %v318_v20  ;;  %321 = vst [vmem:[%s2537_s26 + $0x2a8] sm:$0xff] %v320_v21  ;;  %v324_v23 = vld [vmem:[%s2529_s25 + $0x568] sm:$0xff] }
  0x3d   : > { %323 = vst [vmem:[%s2537_s26 + $0x2b0] sm:$0xff] %v322_v22  ;;  %v326_v24 = vld [vmem:[%s2529_s25 + $0x580] sm:$0xff]  ;;  %v328_v25 = vld [vmem:[%s2529_s25 + $0x588] sm:$0xff]  ;;  %325 = vst [vmem:[%s2537_s26 + $0x2b8] sm:$0xff] %v324_v23 }
  0x3e   : > { %327 = vst [vmem:[%s2537_s26 + $0x2c0] sm:$0xff] %v326_v24  ;;  %329 = vst [vmem:[%s2537_s26 + $0x2c8] sm:$0xff] %v328_v25  ;;  %v330_v26 = vld [vmem:[%s2529_s25 + $0x5a0] sm:$0xff]  ;;  %v332_v27 = vld [vmem:[%s2529_s25 + $0x5a8] sm:$0xff] }
  0x3f   : > { %v334_v28 = vld [vmem:[%s2529_s25 + $0x5c0] sm:$0xff]  ;;  %331 = vst [vmem:[%s2537_s26 + $0x2d0] sm:$0xff] %v330_v26  ;;  %333 = vst [vmem:[%s2537_s26 + $0x2d8] sm:$0xff] %v332_v27  ;;  %v336_v29 = vld [vmem:[%s2529_s25 + $0x5c8] sm:$0xff] }
  0x40   : > { %335 = vst [vmem:[%s2537_s26 + $0x2e0] sm:$0xff] %v334_v28  ;;  %v338_v30 = vld [vmem:[%s2529_s25 + $0x5e0] sm:$0xff]  ;;  %v340_v31 = vld [vmem:[%s2529_s25 + $0x5e8] sm:$0xff]  ;;  %337 = vst [vmem:[%s2537_s26 + $0x2e8] sm:$0xff] %v336_v29 }
  0x41   : > { %339 = vst [vmem:[%s2537_s26 + $0x2f0] sm:$0xff] %v338_v30  ;;  %341 = vst [vmem:[%s2537_s26 + $0x2f8] sm:$0xff] %v340_v31  ;;  %v342_v32 = vld [vmem:[%s2529_s25 + $0x600] sm:$0xff]  ;;  %v344_v33 = vld [vmem:[%s2529_s25 + $0x608] sm:$0xff] }
  0x42   : > { %v346_v34 = vld [vmem:[%s2529_s25 + $0x620] sm:$0xff]  ;;  %343 = vst [vmem:[%s2537_s26 + $0x300] sm:$0xff] %v342_v32  ;;  %345 = vst [vmem:[%s2537_s26 + $0x308] sm:$0xff] %v344_v33  ;;  %v348_v35 = vld [vmem:[%s2529_s25 + $0x628] sm:$0xff] }
  0x43   : > { %347 = vst [vmem:[%s2537_s26 + $0x310] sm:$0xff] %v346_v34  ;;  %v350_v36 = vld [vmem:[%s2529_s25 + $0x640] sm:$0xff]  ;;  %v352_v37 = vld [vmem:[%s2529_s25 + $0x648] sm:$0xff]  ;;  %349 = vst [vmem:[%s2537_s26 + $0x318] sm:$0xff] %v348_v35 }
  0x44   : > { %351 = vst [vmem:[%s2537_s26 + $0x320] sm:$0xff] %v350_v36  ;;  %353 = vst [vmem:[%s2537_s26 + $0x328] sm:$0xff] %v352_v37  ;;  %v354_v38 = vld [vmem:[%s2529_s25 + $0x660] sm:$0xff]  ;;  %v356_v39 = vld [vmem:[%s2529_s25 + $0x668] sm:$0xff] }
  0x45   : > { %v358_v40 = vld [vmem:[%s2529_s25 + $0x680] sm:$0xff]  ;;  %355 = vst [vmem:[%s2537_s26 + $0x330] sm:$0xff] %v354_v38  ;;  %357 = vst [vmem:[%s2537_s26 + $0x338] sm:$0xff] %v356_v39  ;;  %v360_v41 = vld [vmem:[%s2529_s25 + $0x688] sm:$0xff] }
  0x46   : > { %359 = vst [vmem:[%s2537_s26 + $0x340] sm:$0xff] %v358_v40  ;;  %v362_v42 = vld [vmem:[%s2529_s25 + $0x6a0] sm:$0xff]  ;;  %v364_v43 = vld [vmem:[%s2529_s25 + $0x6a8] sm:$0xff]  ;;  %361 = vst [vmem:[%s2537_s26 + $0x348] sm:$0xff] %v360_v41 }
  0x47   : > { %363 = vst [vmem:[%s2537_s26 + $0x350] sm:$0xff] %v362_v42  ;;  %365 = vst [vmem:[%s2537_s26 + $0x358] sm:$0xff] %v364_v43  ;;  %v366_v44 = vld [vmem:[%s2529_s25 + $0x6c0] sm:$0xff]  ;;  %v368_v45 = vld [vmem:[%s2529_s25 + $0x6c8] sm:$0xff] }
  0x48   : > { %v370_v46 = vld [vmem:[%s2529_s25 + $0x6e0] sm:$0xff]  ;;  %367 = vst [vmem:[%s2537_s26 + $0x360] sm:$0xff] %v366_v44  ;;  %369 = vst [vmem:[%s2537_s26 + $0x368] sm:$0xff] %v368_v45  ;;  %v372_v47 = vld [vmem:[%s2529_s25 + $0x6e8] sm:$0xff] }
  0x49   : > { %371 = vst [vmem:[%s2537_s26 + $0x370] sm:$0xff] %v370_v46  ;;  %v374_v48 = vld [vmem:[%s2529_s25 + $0x700] sm:$0xff]  ;;  %v376_v49 = vld [vmem:[%s2529_s25 + $0x708] sm:$0xff]  ;;  %373 = vst [vmem:[%s2537_s26 + $0x378] sm:$0xff] %v372_v47 }
  0x4a   : > { %375 = vst [vmem:[%s2537_s26 + $0x380] sm:$0xff] %v374_v48  ;;  %377 = vst [vmem:[%s2537_s26 + $0x388] sm:$0xff] %v376_v49  ;;  %v378_v50 = vld [vmem:[%s2529_s25 + $0x720] sm:$0xff]  ;;  %v380_v51 = vld [vmem:[%s2529_s25 + $0x728] sm:$0xff] }
  0x4b   : > { %v382_v52 = vld [vmem:[%s2529_s25 + $0x740] sm:$0xff]  ;;  %379 = vst [vmem:[%s2537_s26 + $0x390] sm:$0xff] %v378_v50  ;;  %381 = vst [vmem:[%s2537_s26 + $0x398] sm:$0xff] %v380_v51  ;;  %v384_v53 = vld [vmem:[%s2529_s25 + $0x748] sm:$0xff] }
  0x4c   : > { %383 = vst [vmem:[%s2537_s26 + $0x3a0] sm:$0xff] %v382_v52  ;;  %v386_v54 = vld [vmem:[%s2529_s25 + $0x760] sm:$0xff]  ;;  %v388_v55 = vld [vmem:[%s2529_s25 + $0x768] sm:$0xff]  ;;  %385 = vst [vmem:[%s2537_s26 + $0x3a8] sm:$0xff] %v384_v53 }
  0x4d   : > { %387 = vst [vmem:[%s2537_s26 + $0x3b0] sm:$0xff] %v386_v54  ;;  %389 = vst [vmem:[%s2537_s26 + $0x3b8] sm:$0xff] %v388_v55  ;;  %v390_v56 = vld [vmem:[%s2529_s25 + $0x780] sm:$0xff]  ;;  %v392_v57 = vld [vmem:[%s2529_s25 + $0x788] sm:$0xff] }
  0x4e   : > { %v394_v58 = vld [vmem:[%s2529_s25 + $0x7a0] sm:$0xff]  ;;  %391 = vst [vmem:[%s2537_s26 + $0x3c0] sm:$0xff] %v390_v56  ;;  %393 = vst [vmem:[%s2537_s26 + $0x3c8] sm:$0xff] %v392_v57  ;;  %v396_v59 = vld [vmem:[%s2529_s25 + $0x7a8] sm:$0xff] }
  0x4f   : > { %395 = vst [vmem:[%s2537_s26 + $0x3d0] sm:$0xff] %v394_v58  ;;  %v398_v60 = vld [vmem:[%s2529_s25 + $0x7c0] sm:$0xff]  ;;  %v400_v61 = vld [vmem:[%s2529_s25 + $0x7c8] sm:$0xff]  ;;  %397 = vst [vmem:[%s2537_s26 + $0x3d8] sm:$0xff] %v396_v59 }
  0x50   : > { %399 = vst [vmem:[%s2537_s26 + $0x3e0] sm:$0xff] %v398_v60  ;;  %401 = vst [vmem:[%s2537_s26 + $0x3e8] sm:$0xff] %v400_v61  ;;  %v402_v62 = vld [vmem:[%s2529_s25 + $0x7e0] sm:$0xff]  ;;  %v404_v63 = vld [vmem:[%s2529_s25 + $0x7e8] sm:$0xff] }
  0x51   : > { %v406_v0 = vld [vmem:[%s2529_s25 + $0x800] sm:$0xff]  ;;  %403 = vst [vmem:[%s2537_s26 + $0x3f0] sm:$0xff] %v402_v62  ;;  %405 = vst [vmem:[%s2537_s26 + $0x3f8] sm:$0xff] %v404_v63  ;;  %v408_v1 = vld [vmem:[%s2529_s25 + $0x808] sm:$0xff] }
  0x52   : > { %407 = vst [vmem:[%s2537_s26 + $0x400] sm:$0xff] %v406_v0  ;;  %v410_v2 = vld [vmem:[%s2529_s25 + $0x820] sm:$0xff]  ;;  %v412_v3 = vld [vmem:[%s2529_s25 + $0x828] sm:$0xff]  ;;  %409 = vst [vmem:[%s2537_s26 + $0x408] sm:$0xff] %v408_v1 }
  0x53   : > { %411 = vst [vmem:[%s2537_s26 + $0x410] sm:$0xff] %v410_v2  ;;  %413 = vst [vmem:[%s2537_s26 + $0x418] sm:$0xff] %v412_v3  ;;  %v414_v4 = vld [vmem:[%s2529_s25 + $0x840] sm:$0xff]  ;;  %v416_v5 = vld [vmem:[%s2529_s25 + $0x848] sm:$0xff] }
  0x54   : > { %v418_v6 = vld [vmem:[%s2529_s25 + $0x860] sm:$0xff]  ;;  %415 = vst [vmem:[%s2537_s26 + $0x420] sm:$0xff] %v414_v4  ;;  %417 = vst [vmem:[%s2537_s26 + $0x428] sm:$0xff] %v416_v5  ;;  %v420_v7 = vld [vmem:[%s2529_s25 + $0x868] sm:$0xff] }
  0x55   : > { %419 = vst [vmem:[%s2537_s26 + $0x430] sm:$0xff] %v418_v6  ;;  %v422_v8 = vld [vmem:[%s2529_s25 + $0x880] sm:$0xff]  ;;  %v424_v9 = vld [vmem:[%s2529_s25 + $0x888] sm:$0xff]  ;;  %421 = vst [vmem:[%s2537_s26 + $0x438] sm:$0xff] %v420_v7 }
  0x56   : > { %423 = vst [vmem:[%s2537_s26 + $0x440] sm:$0xff] %v422_v8  ;;  %425 = vst [vmem:[%s2537_s26 + $0x448] sm:$0xff] %v424_v9  ;;  %v426_v10 = vld [vmem:[%s2529_s25 + $0x8a0] sm:$0xff]  ;;  %v428_v11 = vld [vmem:[%s2529_s25 + $0x8a8] sm:$0xff] }
  0x57   : > { %v430_v12 = vld [vmem:[%s2529_s25 + $0x8c0] sm:$0xff]  ;;  %427 = vst [vmem:[%s2537_s26 + $0x450] sm:$0xff] %v426_v10  ;;  %429 = vst [vmem:[%s2537_s26 + $0x458] sm:$0xff] %v428_v11  ;;  %v432_v13 = vld [vmem:[%s2529_s25 + $0x8c8] sm:$0xff] }
  0x58   : > { %431 = vst [vmem:[%s2537_s26 + $0x460] sm:$0xff] %v430_v12  ;;  %v434_v14 = vld [vmem:[%s2529_s25 + $0x8e0] sm:$0xff]  ;;  %v436_v15 = vld [vmem:[%s2529_s25 + $0x8e8] sm:$0xff]  ;;  %433 = vst [vmem:[%s2537_s26 + $0x468] sm:$0xff] %v432_v13 }
  0x59   : > { %435 = vst [vmem:[%s2537_s26 + $0x470] sm:$0xff] %v434_v14  ;;  %437 = vst [vmem:[%s2537_s26 + $0x478] sm:$0xff] %v436_v15  ;;  %v438_v16 = vld [vmem:[%s2529_s25 + $0x900] sm:$0xff]  ;;  %v440_v17 = vld [vmem:[%s2529_s25 + $0x908] sm:$0xff] }
  0x5a   : > { %v442_v18 = vld [vmem:[%s2529_s25 + $0x920] sm:$0xff]  ;;  %439 = vst [vmem:[%s2537_s26 + $0x480] sm:$0xff] %v438_v16  ;;  %441 = vst [vmem:[%s2537_s26 + $0x488] sm:$0xff] %v440_v17  ;;  %v444_v19 = vld [vmem:[%s2529_s25 + $0x928] sm:$0xff] }
  0x5b   : > { %443 = vst [vmem:[%s2537_s26 + $0x490] sm:$0xff] %v442_v18  ;;  %v446_v20 = vld [vmem:[%s2529_s25 + $0x940] sm:$0xff]  ;;  %v448_v21 = vld [vmem:[%s2529_s25 + $0x948] sm:$0xff]  ;;  %445 = vst [vmem:[%s2537_s26 + $0x498] sm:$0xff] %v444_v19 }
  0x5c   : > { %447 = vst [vmem:[%s2537_s26 + $0x4a0] sm:$0xff] %v446_v20  ;;  %449 = vst [vmem:[%s2537_s26 + $0x4a8] sm:$0xff] %v448_v21  ;;  %v450_v22 = vld [vmem:[%s2529_s25 + $0x960] sm:$0xff]  ;;  %v452_v23 = vld [vmem:[%s2529_s25 + $0x968] sm:$0xff] }
  0x5d   : > { %v454_v24 = vld [vmem:[%s2529_s25 + $0x980] sm:$0xff]  ;;  %451 = vst [vmem:[%s2537_s26 + $0x4b0] sm:$0xff] %v450_v22  ;;  %453 = vst [vmem:[%s2537_s26 + $0x4b8] sm:$0xff] %v452_v23  ;;  %v456_v25 = vld [vmem:[%s2529_s25 + $0x988] sm:$0xff] }
  0x5e   : > { %455 = vst [vmem:[%s2537_s26 + $0x4c0] sm:$0xff] %v454_v24  ;;  %v458_v26 = vld [vmem:[%s2529_s25 + $0x9a0] sm:$0xff]  ;;  %v460_v27 = vld [vmem:[%s2529_s25 + $0x9a8] sm:$0xff]  ;;  %457 = vst [vmem:[%s2537_s26 + $0x4c8] sm:$0xff] %v456_v25 }
  0x5f   : > { %459 = vst [vmem:[%s2537_s26 + $0x4d0] sm:$0xff] %v458_v26  ;;  %461 = vst [vmem:[%s2537_s26 + $0x4d8] sm:$0xff] %v460_v27  ;;  %v462_v28 = vld [vmem:[%s2529_s25 + $0x9c0] sm:$0xff]  ;;  %v464_v29 = vld [vmem:[%s2529_s25 + $0x9c8] sm:$0xff] }
  0x60   : > { %v466_v30 = vld [vmem:[%s2529_s25 + $0x9e0] sm:$0xff]  ;;  %463 = vst [vmem:[%s2537_s26 + $0x4e0] sm:$0xff] %v462_v28  ;;  %465 = vst [vmem:[%s2537_s26 + $0x4e8] sm:$0xff] %v464_v29  ;;  %v468_v31 = vld [vmem:[%s2529_s25 + $0x9e8] sm:$0xff] }
  0x61   : > { %467 = vst [vmem:[%s2537_s26 + $0x4f0] sm:$0xff] %v466_v30  ;;  %v470_v32 = vld [vmem:[%s2529_s25 + $0xa00] sm:$0xff]  ;;  %v472_v33 = vld [vmem:[%s2529_s25 + $0xa08] sm:$0xff]  ;;  %469 = vst [vmem:[%s2537_s26 + $0x4f8] sm:$0xff] %v468_v31 }
  0x62   : > { %471 = vst [vmem:[%s2537_s26 + $0x500] sm:$0xff] %v470_v32  ;;  %473 = vst [vmem:[%s2537_s26 + $0x508] sm:$0xff] %v472_v33  ;;  %v474_v34 = vld [vmem:[%s2529_s25 + $0xa20] sm:$0xff]  ;;  %v476_v35 = vld [vmem:[%s2529_s25 + $0xa28] sm:$0xff] }
  0x63   : > { %v478_v36 = vld [vmem:[%s2529_s25 + $0xa40] sm:$0xff]  ;;  %475 = vst [vmem:[%s2537_s26 + $0x510] sm:$0xff] %v474_v34  ;;  %477 = vst [vmem:[%s2537_s26 + $0x518] sm:$0xff] %v476_v35  ;;  %v480_v37 = vld [vmem:[%s2529_s25 + $0xa48] sm:$0xff] }
  0x64   : > { %479 = vst [vmem:[%s2537_s26 + $0x520] sm:$0xff] %v478_v36  ;;  %v482_v38 = vld [vmem:[%s2529_s25 + $0xa60] sm:$0xff]  ;;  %v484_v39 = vld [vmem:[%s2529_s25 + $0xa68] sm:$0xff]  ;;  %481 = vst [vmem:[%s2537_s26 + $0x528] sm:$0xff] %v480_v37 }
  0x65   : > { %483 = vst [vmem:[%s2537_s26 + $0x530] sm:$0xff] %v482_v38  ;;  %485 = vst [vmem:[%s2537_s26 + $0x538] sm:$0xff] %v484_v39  ;;  %v486_v40 = vld [vmem:[%s2529_s25 + $0xa80] sm:$0xff]  ;;  %v488_v41 = vld [vmem:[%s2529_s25 + $0xa88] sm:$0xff] }
  0x66   : > { %v490_v42 = vld [vmem:[%s2529_s25 + $0xaa0] sm:$0xff]  ;;  %487 = vst [vmem:[%s2537_s26 + $0x540] sm:$0xff] %v486_v40  ;;  %489 = vst [vmem:[%s2537_s26 + $0x548] sm:$0xff] %v488_v41  ;;  %v492_v43 = vld [vmem:[%s2529_s25 + $0xaa8] sm:$0xff] }
  0x67   : > { %491 = vst [vmem:[%s2537_s26 + $0x550] sm:$0xff] %v490_v42  ;;  %493 = vst [vmem:[%s2537_s26 + $0x558] sm:$0xff] %v492_v43 }
  0x68 PF: > { %p1946_p5 = scmp.ge.s32.totalorder %s2472_s14, 1  ;;  %p498_p6 = scmp.lt.s32.totalorder %s2472_s14, 3 }
  0x6a   : > { %p499_p7 = pnand %p1946_p5, %p498_p6 }
  0x6b   : > { %s505_s27 = sand.u32 (!%p499_p7), 1, %s2464_s12   ;;  %v2883_v44 = vld [vmem:[%s3099_s0] sm:$0xff] (!%p499_p7)  ;;  %v2474_v36 = vmov (!%p499_p7), 0   ;;  %vm1593_vm0 = vcmask (!%p499_p7), 375808   ;;  %vm1597_vm1 = vcmask (!%p499_p7), 1046528   ;;  %s1947_s11 = sshll.u32 (!%p499_p7), %s1940_s15, 2 }
  0x6c   : > { %502 = sbr.rel (%p499_p7) target bundleno = 505 (0x1f9), region = 51  ;;  %v1950_v45 = vcombine.high (!%p499_p7), %v2883_v44, %v2883_v44  ;;  %2185 = vset.pattern.permute.xlu0 (!%p499_p7), %v2474_v36  ;;  %p530_p8 = scmp.lt.s32.totalorder (!%p499_p7), %s1947_s11, 7 }
  0x6d   : > { %s2159_s30 = smul.u32 (!%p499_p7), 1376, %s505_s27 }
  0x6e   : > { %1642 = vmatprep.mubr.bf16.mxu0 (!%p499_p7), %v1950_v45  ;;  %1765 = vmatprep.mubr.bf16.mxu1 (!%p499_p7), %v1950_v45 }
  0x6f   : > { %s2887_s4 = scalar_lea.vmem (!%p499_p7), [#allocation2], %s2159_s30 }
  0x70   : > { %v2186_v46 = vld [vmem:[%s2887_s4 + $0x4] ss:$16 sps:$4 sm:$0xff] (!%p499_p7)   ;;  %v2188_v47 = vld [vmem:[%s2887_s4 + $0xc] ss:$16 sps:$4 sm:$0xff] (!%p499_p7)   ;;  %v2190_v48 = vld [vmem:[%s2887_s4] ss:$16 sps:$4 sm:$0xff] (!%p499_p7)  }
  0x71   : > { %1610 = vmatprep.subr.bf16.mxu0 (!%p499_p7), %v2186_v46  ;;  %v2191_v49 = vld [vmem:[%s2887_s4 + $0x8] ss:$16 sps:$4 sm:$0xff] (!%p499_p7)   ;;  %1733 = vmatprep.subr.bf16.mxu1 (!%p499_p7), %v2188_v47  ;;  %v2192_v50 = vld [vmem:[%s2887_s4 + $0x24] ss:$16 sps:$4 sm:$0xff] (!%p499_p7)   ;;  %v2194_v51 = vld [vmem:[%s2887_s4 + $0x2c] ss:$16 sps:$4 sm:$0xff] (!%p499_p7)  }
  0x72   : > { %1611 = vmatpush1.bf16.msra.mxu0 (!%p499_p7), %v2190_v48  ;;  %1734 = vmatpush1.bf16.msra.mxu1 (!%p499_p7), %v2191_v49  ;;  %v2196_v52 = vld [vmem:[%s2887_s4 + $0x20] ss:$16 sps:$4 sm:$0xff] (!%p499_p7)   ;;  %v2197_v53 = vld [vmem:[%s2887_s4 + $0x28] ss:$16 sps:$4 sm:$0xff] (!%p499_p7)   ;;  %v2198_v54 = vld [vmem:[%s2887_s4 + $0x44] ss:$16 sps:$4 sm:$0xff] (!%p499_p7)  }
  0x73   : > { %1612 = vmatprep.subr.bf16.mxu0 %v2192_v50  ;;  %1735 = vmatprep.subr.bf16.mxu1 %v2194_v51  ;;  %v2200_v55 = vld [vmem:[%s2887_s4 + $0x4c] ss:$16 sps:$4 sm:$0xff]   ;;  %v2202_v56 = vld [vmem:[%s2887_s4 + $0x40] ss:$16 sps:$4 sm:$0xff]   ;;  %v2203_v57 = vld [vmem:[%s2887_s4 + $0x48] ss:$16 sps:$4 sm:$0xff]   ;;  %v1949_v50 = vcombine.low %v2883_v44, %v2883_v44 }
  0x74   : > { %v2204_v58 = vld [vmem:[%s2887_s4 + $0x64] ss:$16 sps:$4 sm:$0xff]   ;;  %v2206_v59 = vld [vmem:[%s2887_s4 + $0x6c] ss:$16 sps:$4 sm:$0xff]   ;;  %v2208_v60 = vld [vmem:[%s2887_s4 + $0x60] ss:$16 sps:$4 sm:$0xff]  }
  0x75   : > { %v2209_v61 = vld [vmem:[%s2887_s4 + $0x68] ss:$16 sps:$4 sm:$0xff]   ;;  %v2210_v62 = vld [vmem:[%s2887_s4 + $0x84] ss:$16 sps:$4 sm:$0xff]   ;;  %v2212_v63 = vld [vmem:[%s2887_s4 + $0x8c] ss:$16 sps:$4 sm:$0xff]  }
  0x76   : > { %1613 = vmatpush1.bf16.msra.mxu0 %v2196_v52  ;;  %1736 = vmatpush1.bf16.msra.mxu1 %v2197_v53  ;;  %v2214_v0 = vld [vmem:[%s2887_s4 + $0x80] ss:$16 sps:$4 sm:$0xff]   ;;  %v2215_v1 = vld [vmem:[%s2887_s4 + $0x88] ss:$16 sps:$4 sm:$0xff]   ;;  %v2216_v2 = vld [vmem:[%s2887_s4 + $0xa4] ss:$16 sps:$4 sm:$0xff]  }
  0x77   : > { %1614 = vmatprep.subr.bf16.mxu0 %v2198_v54  ;;  %1737 = vmatprep.subr.bf16.mxu1 %v2200_v55  ;;  %v2218_v3 = vld [vmem:[%s2887_s4 + $0xac] ss:$16 sps:$4 sm:$0xff]   ;;  %v2220_v4 = vld [vmem:[%s2887_s4 + $0xa0] ss:$16 sps:$4 sm:$0xff]   ;;  %v2221_v5 = vld [vmem:[%s2887_s4 + $0xa8] ss:$16 sps:$4 sm:$0xff]  }
  0x78   : > { %v2222_v6 = vld [vmem:[%s2887_s4 + $0xc4] ss:$16 sps:$4 sm:$0xff]   ;;  %v2224_v7 = vld [vmem:[%s2887_s4 + $0xcc] ss:$16 sps:$4 sm:$0xff]   ;;  %v2226_v8 = vld [vmem:[%s2887_s4 + $0xc0] ss:$16 sps:$4 sm:$0xff]  }
  0x79   : > { %v2227_v9 = vld [vmem:[%s2887_s4 + $0xc8] ss:$16 sps:$4 sm:$0xff]   ;;  %v2228_v10 = vld [vmem:[%s2887_s4 + $0xe4] ss:$16 sps:$4 sm:$0xff]   ;;  %v2230_v11 = vld [vmem:[%s2887_s4 + $0xec] ss:$16 sps:$4 sm:$0xff]  }
  0x7a   : > { %1615 = vmatpush1.bf16.msra.mxu0 %v2202_v56  ;;  %1738 = vmatpush1.bf16.msra.mxu1 %v2203_v57  ;;  %v2232_v12 = vld [vmem:[%s2887_s4 + $0xe0] ss:$16 sps:$4 sm:$0xff]   ;;  %v2233_v13 = vld [vmem:[%s2887_s4 + $0xe8] ss:$16 sps:$4 sm:$0xff]   ;;  %v2234_v14 = vld [vmem:[%s2887_s4 + $0x104] ss:$16 sps:$4 sm:$0xff]  }
  0x7b   : > { %1616 = vmatprep.subr.bf16.mxu0 %v2204_v58  ;;  %1739 = vmatprep.subr.bf16.mxu1 %v2206_v59  ;;  %v2236_v15 = vld [vmem:[%s2887_s4 + $0x10c] ss:$16 sps:$4 sm:$0xff]   ;;  %v2238_v16 = vld [vmem:[%s2887_s4 + $0x100] ss:$16 sps:$4 sm:$0xff]   ;;  %v2239_v17 = vld [vmem:[%s2887_s4 + $0x108] ss:$16 sps:$4 sm:$0xff]  }
  0x7c   : > { %v2240_v18 = vld [vmem:[%s2887_s4 + $0x124] ss:$16 sps:$4 sm:$0xff]   ;;  %v2242_v19 = vld [vmem:[%s2887_s4 + $0x12c] ss:$16 sps:$4 sm:$0xff]   ;;  %v2244_v20 = vld [vmem:[%s2887_s4 + $0x120] ss:$16 sps:$4 sm:$0xff]  }
  0x7d   : > { %v2245_v21 = vld [vmem:[%s2887_s4 + $0x128] ss:$16 sps:$4 sm:$0xff]   ;;  %v2246_v22 = vld [vmem:[%s2887_s4 + $0x144] ss:$16 sps:$4 sm:$0xff]   ;;  %v2248_v23 = vld [vmem:[%s2887_s4 + $0x14c] ss:$16 sps:$4 sm:$0xff]  }
  0x7e   : > { %1617 = vmatpush1.bf16.msra.mxu0 %v2208_v60  ;;  %1740 = vmatpush1.bf16.msra.mxu1 %v2209_v61  ;;  %v2250_v24 = vld [vmem:[%s2887_s4 + $0x140] ss:$16 sps:$4 sm:$0xff]   ;;  %v2251_v25 = vld [vmem:[%s2887_s4 + $0x148] ss:$16 sps:$4 sm:$0xff]   ;;  %v2252_v26 = vld [vmem:[%s2887_s4 + $0x164] ss:$16 sps:$4 sm:$0xff]  }
  0x7f   : > { %1618 = vmatprep.subr.bf16.mxu0 %v2210_v62  ;;  %1741 = vmatprep.subr.bf16.mxu1 %v2212_v63  ;;  %v2254_v27 = vld [vmem:[%s2887_s4 + $0x16c] ss:$16 sps:$4 sm:$0xff]   ;;  %v2256_v28 = vld [vmem:[%s2887_s4 + $0x160] ss:$16 sps:$4 sm:$0xff]   ;;  %v2257_v29 = vld [vmem:[%s2887_s4 + $0x168] ss:$16 sps:$4 sm:$0xff]  }
  0x80   : > { %v2258_v30 = vld [vmem:[%s2887_s4 + $0x184] ss:$16 sps:$4 sm:$0xff]   ;;  %v2260_v31 = vld [vmem:[%s2887_s4 + $0x18c] ss:$16 sps:$4 sm:$0xff]   ;;  %v2262_v32 = vld [vmem:[%s2887_s4 + $0x180] ss:$16 sps:$4 sm:$0xff]  }
  0x81   : > { %v2263_v33 = vld [vmem:[%s2887_s4 + $0x188] ss:$16 sps:$4 sm:$0xff]   ;;  %v2264_v34 = vld [vmem:[%s2887_s4 + $0x1a4] ss:$16 sps:$4 sm:$0xff]   ;;  %v2266_v35 = vld [vmem:[%s2887_s4 + $0x1ac] ss:$16 sps:$4 sm:$0xff]  }
  0x82   : > { %1619 = vmatpush1.bf16.msra.mxu0 %v2214_v0  ;;  %1742 = vmatpush1.bf16.msra.mxu1 %v2215_v1  ;;  %v2268_v37 = vld [vmem:[%s2887_s4 + $0x1a0] ss:$16 sps:$4 sm:$0xff]   ;;  %v2269_v38 = vld [vmem:[%s2887_s4 + $0x1a8] ss:$16 sps:$4 sm:$0xff]   ;;  %v2270_v39 = vld [vmem:[%s2887_s4 + $0x1c4] ss:$16 sps:$4 sm:$0xff]  }
  0x83   : > { %1620 = vmatprep.subr.bf16.mxu0 %v2216_v2  ;;  %1743 = vmatprep.subr.bf16.mxu1 %v2218_v3  ;;  %v2272_v40 = vld [vmem:[%s2887_s4 + $0x1cc] ss:$16 sps:$4 sm:$0xff]   ;;  %v2274_v41 = vld [vmem:[%s2887_s4 + $0x1c0] ss:$16 sps:$4 sm:$0xff]   ;;  %v2275_v42 = vld [vmem:[%s2887_s4 + $0x1c8] ss:$16 sps:$4 sm:$0xff]  }
  0x84   : > { %v2276_v43 = vld [vmem:[%s2887_s4 + $0x1e4] ss:$16 sps:$4 sm:$0xff]   ;;  %v2278_v45 = vld [vmem:[%s2887_s4 + $0x1ec] ss:$16 sps:$4 sm:$0xff]   ;;  %v2280_v46 = vld [vmem:[%s2887_s4 + $0x1e0] ss:$16 sps:$4 sm:$0xff]  }
  0x85   : > { %v2281_v47 = vld [vmem:[%s2887_s4 + $0x1e8] ss:$16 sps:$4 sm:$0xff]   ;;  %v2286_v48 = vld [vmem:[%s2887_s4 + $0x204] ss:$16 sps:$4 sm:$0xff]   ;;  %v2289_v49 = vld [vmem:[%s2887_s4 + $0x20c] ss:$16 sps:$4 sm:$0xff]  }
  0x86   : > { %1621 = vmatpush1.bf16.msra.mxu0 %v2220_v4  ;;  %1744 = vmatpush1.bf16.msra.mxu1 %v2221_v5  ;;  %v2284_v51 = vld [vmem:[%s2887_s4 + $0x200] ss:$16 sps:$4 sm:$0xff]   ;;  %v2287_v52 = vld [vmem:[%s2887_s4 + $0x208] ss:$16 sps:$4 sm:$0xff]   ;;  %v2292_v53 = vld [vmem:[%s2887_s4 + $0x224] ss:$16 sps:$4 sm:$0xff]  }
  0x87   : > { %1622 = vmatprep.subr.bf16.mxu0 %v2222_v6  ;;  %1745 = vmatprep.subr.bf16.mxu1 %v2224_v7  ;;  %v2295_v54 = vld [vmem:[%s2887_s4 + $0x22c] ss:$16 sps:$4 sm:$0xff]   ;;  %v2290_v55 = vld [vmem:[%s2887_s4 + $0x220] ss:$16 sps:$4 sm:$0xff]   ;;  %v2293_v56 = vld [vmem:[%s2887_s4 + $0x228] ss:$16 sps:$4 sm:$0xff]  }
  0x88   : > { %v2298_v44 = vld [vmem:[%s2887_s4 + $0x244] ss:$16 sps:$4 sm:$0xff]   ;;  %v2301_v57 = vld [vmem:[%s2887_s4 + $0x24c] ss:$16 sps:$4 sm:$0xff]   ;;  %v2296_v58 = vld [vmem:[%s2887_s4 + $0x240] ss:$16 sps:$4 sm:$0xff]  }
  0x89   : > { %v2299_v59 = vld [vmem:[%s2887_s4 + $0x248] ss:$16 sps:$4 sm:$0xff]   ;;  %v2304_v60 = vld [vmem:[%s2887_s4 + $0x264] ss:$16 sps:$4 sm:$0xff]   ;;  %v2307_v61 = vld [vmem:[%s2887_s4 + $0x26c] ss:$16 sps:$4 sm:$0xff]  }
  0x8a   : > { %1623 = vmatpush1.bf16.msra.mxu0 %v2226_v8  ;;  %1746 = vmatpush1.bf16.msra.mxu1 %v2227_v9  ;;  %v2302_v62 = vld [vmem:[%s2887_s4 + $0x260] ss:$16 sps:$4 sm:$0xff]   ;;  %v2305_v63 = vld [vmem:[%s2887_s4 + $0x268] ss:$16 sps:$4 sm:$0xff]   ;;  %v2310_v0 = vld [vmem:[%s2887_s4 + $0x284] ss:$16 sps:$4 sm:$0xff]  }
  0x8b   : > { %1624 = vmatprep.subr.bf16.mxu0 %v2228_v10  ;;  %1747 = vmatprep.subr.bf16.mxu1 %v2230_v11  ;;  %v2313_v1 = vld [vmem:[%s2887_s4 + $0x28c] ss:$16 sps:$4 sm:$0xff]   ;;  %v2308_v2 = vld [vmem:[%s2887_s4 + $0x280] ss:$16 sps:$4 sm:$0xff]   ;;  %v2311_v3 = vld [vmem:[%s2887_s4 + $0x288] ss:$16 sps:$4 sm:$0xff]  }
  0x8c   : > { %v2316_v4 = vld [vmem:[%s2887_s4 + $0x2a4] ss:$16 sps:$4 sm:$0xff]   ;;  %v2319_v5 = vld [vmem:[%s2887_s4 + $0x2ac] ss:$16 sps:$4 sm:$0xff]   ;;  %v2314_v6 = vld [vmem:[%s2887_s4 + $0x2a0] ss:$16 sps:$4 sm:$0xff]  }
  0x8d   : > { %v2317_v7 = vld [vmem:[%s2887_s4 + $0x2a8] ss:$16 sps:$4 sm:$0xff]   ;;  %v2322_v8 = vld [vmem:[%s2887_s4 + $0x2c4] ss:$16 sps:$4 sm:$0xff]   ;;  %v2325_v9 = vld [vmem:[%s2887_s4 + $0x2cc] ss:$16 sps:$4 sm:$0xff]  }
  0x8e   : > { %1625 = vmatpush1.bf16.msra.mxu0 %v2232_v12  ;;  %1748 = vmatpush1.bf16.msra.mxu1 %v2233_v13  ;;  %v2984_v10 = vld [vmem:[%s3099_s0 + $0x8] sm:$0xff]  ;;  %v2320_v12 = vld [vmem:[%s2887_s4 + $0x2c0] ss:$16 sps:$4 sm:$0xff]   ;;  %s3107_s11 = smov (!%p530_p8, %s1947_s11), 7 }
  0x8f   : > { %1626 = vmatprep.subr.bf16.mxu0 %v2234_v14  ;;  %1749 = vmatprep.subr.bf16.mxu1 %v2236_v15  ;;  %v1952_v11 = vcombine.high %v2984_v10, %v2984_v10  ;;  %v2323_v13 = vld [vmem:[%s2887_s4 + $0x2c8] ss:$16 sps:$4 sm:$0xff]   ;;  %v2328_v14 = vld [vmem:[%s2887_s4 + $0x2e4] ss:$16 sps:$4 sm:$0xff]   ;;  %v2331_v15 = vld [vmem:[%s2887_s4 + $0x2ec] ss:$16 sps:$4 sm:$0xff]  }
  0x90   : > { %v2356_v36 = vld [vmem:[%s2887_s4 + $0x380] ss:$16 sps:$4 sm:$0xff]   ;;  %s1948_s12 = sshll.u32 %s3107_s11, 2 }
  0x91   : > { %s533_s17 = scalar_lea.vmem %s3102_s3, %s1948_s12 }
  0x92   : > { %1627 = vmatpush1.bf16.msra.mxu0 %v2238_v16  ;;  %1750 = vmatpush1.bf16.msra.mxu1 %v2239_v17  ;;  %v2326_v16 = vld [vmem:[%s2887_s4 + $0x2e0] ss:$16 sps:$4 sm:$0xff]   ;;  %v2329_v17 = vld [vmem:[%s2887_s4 + $0x2e8] ss:$16 sps:$4 sm:$0xff]  }
  0x93   : > { %1628 = vmatprep.subr.bf16.mxu0 %v2240_v18  ;;  %1751 = vmatprep.subr.bf16.mxu1 %v2242_v19  ;;  %v2334_v18 = vld [vmem:[%s2887_s4 + $0x304] ss:$16 sps:$4 sm:$0xff]   ;;  %v2337_v19 = vld [vmem:[%s2887_s4 + $0x30c] ss:$16 sps:$4 sm:$0xff]  }
  0x96   : > { %1629 = vmatpush1.bf16.msra.mxu0 %v2244_v20  ;;  %1752 = vmatpush1.bf16.msra.mxu1 %v2245_v21  ;;  %v2332_v20 = vld [vmem:[%s2887_s4 + $0x300] ss:$16 sps:$4 sm:$0xff]   ;;  %v2335_v21 = vld [vmem:[%s2887_s4 + $0x308] ss:$16 sps:$4 sm:$0xff]  }
  0x97   : > { %1630 = vmatprep.subr.bf16.mxu0 %v2246_v22  ;;  %1753 = vmatprep.subr.bf16.mxu1 %v2248_v23  ;;  %v2340_v22 = vld [vmem:[%s2887_s4 + $0x324] ss:$16 sps:$4 sm:$0xff]   ;;  %v2343_v23 = vld [vmem:[%s2887_s4 + $0x32c] ss:$16 sps:$4 sm:$0xff]  }
  0x9a   : > { %1631 = vmatpush1.bf16.msra.mxu0 %v2250_v24  ;;  %1754 = vmatpush1.bf16.msra.mxu1 %v2251_v25  ;;  %v2338_v24 = vld [vmem:[%s2887_s4 + $0x320] ss:$16 sps:$4 sm:$0xff]   ;;  %v2341_v25 = vld [vmem:[%s2887_s4 + $0x328] ss:$16 sps:$4 sm:$0xff]  }
  0x9b   : > { %1632 = vmatprep.subr.bf16.mxu0 %v2252_v26  ;;  %1755 = vmatprep.subr.bf16.mxu1 %v2254_v27  ;;  %v2346_v26 = vld [vmem:[%s2887_s4 + $0x344] ss:$16 sps:$4 sm:$0xff]   ;;  %v2349_v27 = vld [vmem:[%s2887_s4 + $0x34c] ss:$16 sps:$4 sm:$0xff]  }
  0x9e   : > { %1633 = vmatpush1.bf16.msra.mxu0 %v2256_v28  ;;  %1756 = vmatpush1.bf16.msra.mxu1 %v2257_v29  ;;  %v2344_v28 = vld [vmem:[%s2887_s4 + $0x340] ss:$16 sps:$4 sm:$0xff]   ;;  %v2347_v29 = vld [vmem:[%s2887_s4 + $0x348] ss:$16 sps:$4 sm:$0xff]  }
  0x9f   : > { %1634 = vmatprep.subr.bf16.mxu0 %v2258_v30  ;;  %1757 = vmatprep.subr.bf16.mxu1 %v2260_v31  ;;  %v2352_v30 = vld [vmem:[%s2887_s4 + $0x364] ss:$16 sps:$4 sm:$0xff]   ;;  %v2355_v31 = vld [vmem:[%s2887_s4 + $0x36c] ss:$16 sps:$4 sm:$0xff]  }
  0xa2   : > { %1635 = vmatpush1.bf16.msra.mxu0 %v2262_v32  ;;  %1758 = vmatpush1.bf16.msra.mxu1 %v2263_v33  ;;  %v2350_v32 = vld [vmem:[%s2887_s4 + $0x360] ss:$16 sps:$4 sm:$0xff]   ;;  %v2353_v33 = vld [vmem:[%s2887_s4 + $0x368] ss:$16 sps:$4 sm:$0xff]  }
  0xa3   : > { %1636 = vmatprep.subr.bf16.mxu0 %v2264_v34  ;;  %1759 = vmatprep.subr.bf16.mxu1 %v2266_v35  ;;  %v2358_v34 = vld [vmem:[%s2887_s4 + $0x384] ss:$16 sps:$4 sm:$0xff]   ;;  %v2361_v35 = vld [vmem:[%s2887_s4 + $0x38c] ss:$16 sps:$4 sm:$0xff]  }
  0xa6   : > { %1637 = vmatpush1.bf16.msra.mxu0 %v2268_v37  ;;  %1760 = vmatpush1.bf16.msra.mxu1 %v2269_v38  ;;  %v2359_v37 = vld [vmem:[%s2887_s4 + $0x388] ss:$16 sps:$4 sm:$0xff]   ;;  %v2364_v38 = vld [vmem:[%s2887_s4 + $0x3a4] ss:$16 sps:$4 sm:$0xff]  }
  0xa7   : > { %1638 = vmatprep.subr.bf16.mxu0 %v2270_v39  ;;  %1761 = vmatprep.subr.bf16.mxu1 %v2272_v40  ;;  %v2367_v39 = vld [vmem:[%s2887_s4 + $0x3ac] ss:$16 sps:$4 sm:$0xff]   ;;  %v711_v40 = vld [vmem:[%s3101_s2] sm:$0xff] }
  0xa8   : > { %714 = vperm.xlu0 %2185, %v711_v40  }
  0xaa   : > { %1639 = vmatpush1.bf16.msra.mxu0 %v2274_v41  ;;  %1762 = vmatpush1.bf16.msra.mxu1 %v2275_v42  ;;  %v2362_v41 = vld [vmem:[%s2887_s4 + $0x3a0] ss:$16 sps:$4 sm:$0xff]   ;;  %v2365_v42 = vld [vmem:[%s2887_s4 + $0x3a8] ss:$16 sps:$4 sm:$0xff]  }
  0xab   : > { %1640 = vmatprep.subr.bf16.mxu0 %v2276_v43  ;;  %1763 = vmatprep.subr.bf16.mxu1 %v2278_v45  ;;  %v2370_v43 = vld [vmem:[%s2887_s4 + $0x3c4] ss:$16 sps:$4 sm:$0xff]   ;;  %v2373_v45 = vld [vmem:[%s2887_s4 + $0x3cc] ss:$16 sps:$4 sm:$0xff]  }
  0xae   : > { %1641 = vmatpush1.bf16.msra.mxu0 %v2280_v46  ;;  %1764 = vmatpush1.bf16.msra.mxu1 %v2281_v47  ;;  %v2368_v46 = vld [vmem:[%s2887_s4 + $0x3c0] ss:$16 sps:$4 sm:$0xff]   ;;  %v2371_v47 = vld [vmem:[%s2887_s4 + $0x3c8] ss:$16 sps:$4 sm:$0xff]  }
  0xaf   : > { %1651 = vmatprep.subr.bf16.mxu0 %v2286_v48  ;;  %1774 = vmatprep.subr.bf16.mxu1 %v2289_v49  ;;  %v2376_v48 = vld [vmem:[%s2887_s4 + $0x3e4] ss:$16 sps:$4 sm:$0xff]   ;;  %v2379_v49 = vld [vmem:[%s2887_s4 + $0x3ec] ss:$16 sps:$4 sm:$0xff]  }
  0xb1   : > { %1643 = vmatmul.mubr.bf16.vlgmr.msra.gmra.mrb[0].mxu0 %v1949_v50  ;;  %1766 = vmatmul.mubr.bf16.vlgmr.msra.gmra.mrb[0].mxu1 %v1949_v50  ;;  %v2374_v50 = vld [vmem:[%s2887_s4 + $0x3e0] ss:$16 sps:$4 sm:$0xff]  }
  0xb2   : > { %1652 = vmatpush1.bf16.msra.mxu0 %v2284_v51  ;;  %1775 = vmatpush1.bf16.msra.mxu1 %v2287_v52  ;;  %v2377_v51 = vld [vmem:[%s2887_s4 + $0x3e8] ss:$16 sps:$4 sm:$0xff]   ;;  %v2384_v52 = vld [vmem:[%s2887_s4 + $0x404] ss:$16 sps:$4 sm:$0xff]  }
  0xb3   : > { %1653 = vmatprep.subr.bf16.mxu0 %v2292_v53  ;;  %1776 = vmatprep.subr.bf16.mxu1 %v2295_v54  ;;  %v2387_v53 = vld [vmem:[%s2887_s4 + $0x40c] ss:$16 sps:$4 sm:$0xff]   ;;  %v1951_v54 = vcombine.low %v2984_v10, %v2984_v10  ;;  %v2414_v10 = vld [vmem:[%s2887_s4 + $0x4a4] ss:$16 sps:$4 sm:$0xff]  }
  0xb4   : > { %1683 = vmatprep.mubr.bf16.mxu0 %v1952_v11  ;;  %1806 = vmatprep.mubr.bf16.mxu1 %v1952_v11  ;;  %v2417_v11 = vld [vmem:[%s2887_s4 + $0x4ac] ss:$16 sps:$4 sm:$0xff]  }
  0xb6   : > { %1654 = vmatpush1.bf16.msra.mxu0 %v2290_v55  ;;  %1777 = vmatpush1.bf16.msra.mxu1 %v2293_v56  ;;  %v3036_v55 = vld [vmem:[%s3099_s0 + $0x10] sm:$0xff] }
  0xb7   : > { %1655 = vmatprep.subr.bf16.mxu0 %v2298_v44  ;;  %1778 = vmatprep.subr.bf16.mxu1 %v2301_v57  ;;  %v2382_v56 = vld [vmem:[%s2887_s4 + $0x400] ss:$16 sps:$4 sm:$0xff]   ;;  %v2385_v44 = vld [vmem:[%s2887_s4 + $0x408] ss:$16 sps:$4 sm:$0xff]   ;;  %v2390_v57 = vld [vmem:[%s2887_s4 + $0x424] ss:$16 sps:$4 sm:$0xff]  }
  0xba   : > { %1656 = vmatpush1.bf16.msra.mxu0 %v2296_v58  ;;  %1779 = vmatpush1.bf16.msra.mxu1 %v2299_v59  ;;  %v2393_v58 = vld [vmem:[%s2887_s4 + $0x42c] ss:$16 sps:$4 sm:$0xff]   ;;  %v1954_v59 = vcombine.high %v3036_v55, %v3036_v55 }
  0xbb   : > { %1657 = vmatprep.subr.bf16.mxu0 %v2304_v60  ;;  %1780 = vmatprep.subr.bf16.mxu1 %v2307_v61  ;;  %v2388_v60 = vld [vmem:[%s2887_s4 + $0x420] ss:$16 sps:$4 sm:$0xff]   ;;  %v2391_v61 = vld [vmem:[%s2887_s4 + $0x428] ss:$16 sps:$4 sm:$0xff]  }
  0xbe   : > { %1658 = vmatpush1.bf16.msra.mxu0 %v2302_v62  ;;  %1781 = vmatpush1.bf16.msra.mxu1 %v2305_v63  ;;  %v2396_v62 = vld [vmem:[%s2887_s4 + $0x444] ss:$16 sps:$4 sm:$0xff]   ;;  %v2399_v63 = vld [vmem:[%s2887_s4 + $0x44c] ss:$16 sps:$4 sm:$0xff]  }
  0xbf   : > { %1659 = vmatprep.subr.bf16.mxu0 %v2310_v0  ;;  %1782 = vmatprep.subr.bf16.mxu1 %v2313_v1  ;;  %v2394_v0 = vld [vmem:[%s2887_s4 + $0x440] ss:$16 sps:$4 sm:$0xff]   ;;  %v2397_v1 = vld [vmem:[%s2887_s4 + $0x448] ss:$16 sps:$4 sm:$0xff]  }
  0xc2   : > { %1660 = vmatpush1.bf16.msra.mxu0 %v2308_v2  ;;  %1783 = vmatpush1.bf16.msra.mxu1 %v2311_v3  ;;  %v2402_v2 = vld [vmem:[%s2887_s4 + $0x464] ss:$16 sps:$4 sm:$0xff]   ;;  %v2405_v3 = vld [vmem:[%s2887_s4 + $0x46c] ss:$16 sps:$4 sm:$0xff]  }
  0xc3   : > { %1661 = vmatprep.subr.bf16.mxu0 %v2316_v4  ;;  %1784 = vmatprep.subr.bf16.mxu1 %v2319_v5  ;;  %v2400_v4 = vld [vmem:[%s2887_s4 + $0x460] ss:$16 sps:$4 sm:$0xff]   ;;  %v2403_v5 = vld [vmem:[%s2887_s4 + $0x468] ss:$16 sps:$4 sm:$0xff]  }
  0xc6   : > { %1662 = vmatpush1.bf16.msra.mxu0 %v2314_v6  ;;  %1785 = vmatpush1.bf16.msra.mxu1 %v2317_v7  ;;  %v2408_v6 = vld [vmem:[%s2887_s4 + $0x484] ss:$16 sps:$4 sm:$0xff]   ;;  %v2411_v7 = vld [vmem:[%s2887_s4 + $0x48c] ss:$16 sps:$4 sm:$0xff]  }
  0xc7   : > { %1663 = vmatprep.subr.bf16.mxu0 %v2322_v8  ;;  %1786 = vmatprep.subr.bf16.mxu1 %v2325_v9  ;;  %v2406_v8 = vld [vmem:[%s2887_s4 + $0x480] ss:$16 sps:$4 sm:$0xff]   ;;  %v2409_v9 = vld [vmem:[%s2887_s4 + $0x488] ss:$16 sps:$4 sm:$0xff]  }
  0xca   : > { %1664 = vmatpush1.bf16.msra.mxu0 %v2320_v12  ;;  %1787 = vmatpush1.bf16.msra.mxu1 %v2323_v13  ;;  %v2412_v12 = vld [vmem:[%s2887_s4 + $0x4a0] ss:$16 sps:$4 sm:$0xff]   ;;  %v2415_v13 = vld [vmem:[%s2887_s4 + $0x4a8] ss:$16 sps:$4 sm:$0xff]  }
  0xcb   : > { %1665 = vmatprep.subr.bf16.mxu0 %v2328_v14  ;;  %1788 = vmatprep.subr.bf16.mxu1 %v2331_v15  ;;  %v2420_v14 = vld [vmem:[%s2887_s4 + $0x4c4] ss:$16 sps:$4 sm:$0xff]   ;;  %v2423_v15 = vld [vmem:[%s2887_s4 + $0x4cc] ss:$16 sps:$4 sm:$0xff]  }
  0xce   : > { %1666 = vmatpush1.bf16.msra.mxu0 %v2326_v16  ;;  %1789 = vmatpush1.bf16.msra.mxu1 %v2329_v17  ;;  %v2418_v16 = vld [vmem:[%s2887_s4 + $0x4c0] ss:$16 sps:$4 sm:$0xff]   ;;  %v2421_v17 = vld [vmem:[%s2887_s4 + $0x4c8] ss:$16 sps:$4 sm:$0xff]  }
  0xcf   : > { %1667 = vmatprep.subr.bf16.mxu0 %v2334_v18  ;;  %1790 = vmatprep.subr.bf16.mxu1 %v2337_v19  ;;  %v2426_v18 = vld [vmem:[%s2887_s4 + $0x4e4] ss:$16 sps:$4 sm:$0xff]   ;;  %v2429_v19 = vld [vmem:[%s2887_s4 + $0x4ec] ss:$16 sps:$4 sm:$0xff]  }
  0xd2   : > { %1668 = vmatpush1.bf16.msra.mxu0 %v2332_v20  ;;  %1791 = vmatpush1.bf16.msra.mxu1 %v2335_v21  ;;  %v2424_v20 = vld [vmem:[%s2887_s4 + $0x4e0] ss:$16 sps:$4 sm:$0xff]   ;;  %v2427_v21 = vld [vmem:[%s2887_s4 + $0x4e8] ss:$16 sps:$4 sm:$0xff]  }
  0xd3   : > { %1669 = vmatprep.subr.bf16.mxu0 %v2340_v22  ;;  %1792 = vmatprep.subr.bf16.mxu1 %v2343_v23  ;;  %v2432_v22 = vld [vmem:[%s2887_s4 + $0x504] ss:$16 sps:$4 sm:$0xff]   ;;  %v2435_v23 = vld [vmem:[%s2887_s4 + $0x50c] ss:$16 sps:$4 sm:$0xff]  }
  0xd6   : > { %1670 = vmatpush1.bf16.msra.mxu0 %v2338_v24  ;;  %1793 = vmatpush1.bf16.msra.mxu1 %v2341_v25  ;;  %v2430_v24 = vld [vmem:[%s2887_s4 + $0x500] ss:$16 sps:$4 sm:$0xff]   ;;  %v2433_v25 = vld [vmem:[%s2887_s4 + $0x508] ss:$16 sps:$4 sm:$0xff]  }
  0xd7   : > { %1671 = vmatprep.subr.bf16.mxu0 %v2346_v26  ;;  %1794 = vmatprep.subr.bf16.mxu1 %v2349_v27  ;;  %v2438_v26 = vld [vmem:[%s2887_s4 + $0x524] ss:$16 sps:$4 sm:$0xff]   ;;  %v2441_v27 = vld [vmem:[%s2887_s4 + $0x52c] ss:$16 sps:$4 sm:$0xff]  }
  0xda   : > { %1672 = vmatpush1.bf16.msra.mxu0 %v2344_v28  ;;  %1795 = vmatpush1.bf16.msra.mxu1 %v2347_v29  ;;  %v2436_v28 = vld [vmem:[%s2887_s4 + $0x520] ss:$16 sps:$4 sm:$0xff]   ;;  %v2439_v29 = vld [vmem:[%s2887_s4 + $0x528] ss:$16 sps:$4 sm:$0xff]  }
  0xdb   : > { %1673 = vmatprep.subr.bf16.mxu0 %v2352_v30  ;;  %1796 = vmatprep.subr.bf16.mxu1 %v2355_v31  ;;  %v2442_v30 = vld [vmem:[%s2887_s4 + $0x544] ss:$16 sps:$4 sm:$0x7f]   ;;  %v2444_v31 = vld [vmem:[%s2887_s4 + $0x54c] ss:$16 sps:$4 sm:$0x7f]  }
  0xde   : > { %1674 = vmatpush1.bf16.msra.mxu0 %v2350_v32  ;;  %1797 = vmatpush1.bf16.msra.mxu1 %v2353_v33  ;;  %v2446_v32 = vld [vmem:[%s2887_s4 + $0x540] ss:$16 sps:$4 sm:$0x7f]   ;;  %v2447_v33 = vld [vmem:[%s2887_s4 + $0x548] ss:$16 sps:$4 sm:$0x7f]  }
  0xdf   : > { %1675 = vmatprep.subr.bf16.mxu0 %v2358_v34  ;;  %1798 = vmatprep.subr.bf16.mxu1 %v2361_v35  ;;  %v1599_v34 = vsel %vm1597_vm1, %v2446_v32, 0  ;;  %v1605_v35 = vsel %vm1597_vm1, %v2447_v33, 0 }
  0xe2   : > { %1676 = vmatpush1.bf16.msra.mxu0 %v2356_v36  ;;  %1799 = vmatpush1.bf16.msra.mxu1 %v2359_v37  ;;  %v1953_v36 = vcombine.low %v3036_v55, %v3036_v55 }
  0xe3   : > { %1677 = vmatprep.subr.bf16.mxu0 %v2364_v38  ;;  %1800 = vmatprep.subr.bf16.mxu1 %v2367_v39 }
  0xe6   : > { %1678 = vmatpush1.bf16.msra.mxu0 %v2362_v41  ;;  %1801 = vmatpush1.bf16.msra.mxu1 %v2365_v42 }
  0xe7   : > { %1679 = vmatprep.subr.bf16.mxu0 %v2370_v43  ;;  %1802 = vmatprep.subr.bf16.mxu1 %v2373_v45 }
  0xea   : > { %1680 = vmatpush1.bf16.msra.mxu0 %v2368_v46  ;;  %1803 = vmatpush1.bf16.msra.mxu1 %v2371_v47 }
  0xeb   : > { %1681 = vmatprep.subr.bf16.mxu0 %v2376_v48  ;;  %1804 = vmatprep.subr.bf16.mxu1 %v2379_v49 }
  0xee   : > { %1682 = vmatpush1.bf16.msra.mxu0 %v2374_v50  ;;  %1805 = vmatpush1.bf16.msra.mxu1 %v2377_v51 }
  0xef   : > { %1692 = vmatprep.subr.bf16.mxu0 %v2384_v52  ;;  %1815 = vmatprep.subr.bf16.mxu1 %v2387_v53 }
  0xf1   : > { %1684 = vmatmul.mubr.bf16.vlgmr.msra.gmra.mrb[0].mxu0 %v1951_v54  ;;  %1807 = vmatmul.mubr.bf16.vlgmr.msra.gmra.mrb[0].mxu1 %v1951_v54 }
  0xf2   : > { %1693 = vmatpush1.bf16.msra.mxu0 %v2382_v56  ;;  %1816 = vmatpush1.bf16.msra.mxu1 %v2385_v44 }
  0xf3   : > { %1694 = vmatprep.subr.bf16.mxu0 %v2390_v57  ;;  %1817 = vmatprep.subr.bf16.mxu1 %v2393_v58 }
  0xf4   : > { %2128 = vmatprep.mubr.msk.bf16.mxu0 %vm1593_vm0, %v1954_v59  ;;  %2130 = vmatprep.mubr.msk.bf16.mxu1 %vm1593_vm0, %v1954_v59 }
  0xf6   : > { %1695 = vmatpush1.bf16.msra.mxu0 %v2388_v60  ;;  %1818 = vmatpush1.bf16.msra.mxu1 %v2391_v61 }
  0xf7   : > { %1696 = vmatprep.subr.bf16.mxu0 %v2396_v62  ;;  %1819 = vmatprep.subr.bf16.mxu1 %v2399_v63 }
  0xfa   : > { %1697 = vmatpush1.bf16.msra.mxu0 %v2394_v0  ;;  %1820 = vmatpush1.bf16.msra.mxu1 %v2397_v1 }
  0xfb   : > { %1698 = vmatprep.subr.bf16.mxu0 %v2402_v2  ;;  %1821 = vmatprep.subr.bf16.mxu1 %v2405_v3 }
  0xfe   : > { %1699 = vmatpush1.bf16.msra.mxu0 %v2400_v4  ;;  %1822 = vmatpush1.bf16.msra.mxu1 %v2403_v5 }
  0xff   : > { %1700 = vmatprep.subr.bf16.mxu0 %v2408_v6  ;;  %1823 = vmatprep.subr.bf16.mxu1 %v2411_v7 }
 0x102   : > { %1701 = vmatpush1.bf16.msra.mxu0 %v2406_v8  ;;  %1824 = vmatpush1.bf16.msra.mxu1 %v2409_v9 }
 0x103   : > { %1702 = vmatprep.subr.bf16.mxu0 %v2414_v10  ;;  %1825 = vmatprep.subr.bf16.mxu1 %v2417_v11 }
 0x106   : > { %1703 = vmatpush1.bf16.msra.mxu0 %v2412_v12  ;;  %1826 = vmatpush1.bf16.msra.mxu1 %v2415_v13 }
 0x107   : > { %1704 = vmatprep.subr.bf16.mxu0 %v2420_v14  ;;  %1827 = vmatprep.subr.bf16.mxu1 %v2423_v15 }
 0x10a   : > { %1705 = vmatpush1.bf16.msra.mxu0 %v2418_v16  ;;  %1828 = vmatpush1.bf16.msra.mxu1 %v2421_v17 }
 0x10b   : > { %1706 = vmatprep.subr.bf16.mxu0 %v2426_v18  ;;  %1829 = vmatprep.subr.bf16.mxu1 %v2429_v19 }
 0x10e   : > { %1707 = vmatpush1.bf16.msra.mxu0 %v2424_v20  ;;  %1830 = vmatpush1.bf16.msra.mxu1 %v2427_v21 }
 0x10f   : > { %1708 = vmatprep.subr.bf16.mxu0 %v2432_v22  ;;  %1831 = vmatprep.subr.bf16.mxu1 %v2435_v23 }
 0x112   : > { %1709 = vmatpush1.bf16.msra.mxu0 %v2430_v24  ;;  %1832 = vmatpush1.bf16.msra.mxu1 %v2433_v25 }
 0x113   : > { %1710 = vmatprep.subr.bf16.mxu0 %v2438_v26  ;;  %1833 = vmatprep.subr.bf16.mxu1 %v2441_v27 }
 0x116   : > { %1711 = vmatpush1.bf16.msra.mxu0 %v2436_v28  ;;  %1834 = vmatpush1.bf16.msra.mxu1 %v2439_v29 }
 0x117   : > { %2127 = vmatprep.subr.msk.bf16.mxu0 %vm1597_vm1, %v2442_v30  ;;  %2129 = vmatprep.subr.msk.bf16.mxu1 %vm1597_vm1, %v2444_v31 }
 0x11a   : > { %1713 = vmatpush1.bf16.msra.mxu0 %v1599_v34  ;;  %1836 = vmatpush1.bf16.msra.mxu1 %v1605_v35 }
 0x11d   : > { %1725 = vmatmul.mubr.bf16.vlgmr.msra.gmra.mrb[0].mxu0 %v1953_v36  ;;  %1848 = vmatmul.mubr.bf16.vlgmr.msra.gmra.mrb[0].mxu1 %v1953_v36 }
 0x127   : > { %v715_v37 = vpop.permute.xlu0 %714 }
 0x1f0   : > { %v1726_v38 = vpop.f32.mrb[0].mxu0  ;;  %v1849_v39 = vpop.f32.mrb[0].mxu1 }
 0x1f1   : > { %v2138_v40 = vadd.f32 %v1726_v38, %v715_v37  ;;  %v2140_v41 = vadd.f32 %v1849_v39, %v715_v37  ;;  %v1728_v42 = vpop.f32.mrb[1].mxu0  ;;  %v1851_v43 = vpop.f32.mrb[1].mxu1 }
 0x1f2   : > { %v2139_v45 = vadd.f32 %v1728_v42, %v715_v37  ;;  %v2141_v46 = vadd.f32 %v1851_v43, %v715_v37  ;;  %v1730_v47 = vpop.f32.mrb[2].mxu0  ;;  %v1853_v48 = vpop.f32.mrb[2].mxu1 }
 0x1f3   : > { %v1856_v49 = vmax.f32 %v2138_v40, 0.0  ;;  %v1858_v50 = vmax.f32 %v2140_v41, 0.0  ;;  %v1731_v51 = vpop.f32.mrb[3].mxu0  ;;  %v1854_v52 = vpop.f32.mrb[3].mxu1 }
 0x1f4   : > { %v1857_v53 = vmax.f32 %v2139_v45, 0.0  ;;  %v1859_v54 = vmax.f32 %v2141_v46, 0.0 }
 0x1f6   : > { %v2136_v55 = vpack.c.bf16 %v1857_v53, %v1856_v49  ;;  %v2137_v56 = vpack.c.bf16 %v1859_v54, %v1858_v50 }
 0x1f8   : > { %1876 = vst [vmem:[%s533_s17] sm:$0xff] %v2136_v55  ;;  %1877 = vst [vmem:[%s533_s17 + $0x8] sm:$0xff] %v2137_v56 }
 0x1f9 PF: > { %p10_p9 = scmp.ge.s32.totalorder %s2512_s16, 4   ;;  %s3103_s12 = smov %s2468_s13 }
 0x1fa   : > { %s3104_s13 = smov %s2521_s19  ;;  %s3105_s14 = smov %s2512_s16 }
 0x1fb   :  { %12 = sbr.rel (!%p10_p9) target bundleno = 2 (0x2), region = 90 }

// kernel: global_net_forward.17
= control target key start
LH: loop header
LB: loop body
LE: loop exit
PB: predicated region body
PF: predicated region fallthrough
CT: control target
= control target key end

     0   :  { %s661_s12 = smov 0   ;;  %s663_s13 = smov 0   ;;  %s795_s0 = inlined_call_operand.vmem [shape: bf16[8,216], index: 0, kind: input, shape index: {}]   ;;  %s796_s1 = inlined_call_operand.vmem [shape: bf16[216,256], index: 1, kind: input, shape index: {}]   ;;  %s797_s2 = inlined_call_operand.vmem [shape: f32[8,1], index: 2, kind: input, shape index: {}]   ;;  %s798_s3 = inlined_call_operand.vmem [shape: bf16[8,256], index: 3, kind: output, shape index: {}]  }
   0x1   :  { %s665_s14 = smov 0  }
   0x2 LB: > { %s546_s15 = sadd.s32 4294967295, %s638_s14   ;;  %s678_s16 = sadd.s32 1, %s638_s14   ;;  %s638_s14 = sphi %s665_s14, %s801_s14   ;;  %s634_s13 = sphi %s663_s13, %s800_s13   ;;  %s630_s12 = sphi %s661_s12, %s799_s12  }
   0x3   : > { %s38_s17 = ssub.s32 %s638_s14, %s678_s16  ;;  %s41_s18 = sadd.s32 1, %s634_s13 }
   0x4   : > { %p39_p0 = scmp.eq.s32.totalorder %s38_s17, 0  ;;  %p48_p1 = scmp.ne.s32.totalorder %s634_s13, %s630_s12 }
   0x5   : > { %p49_p2 = scmp.eq.s32.totalorder %s638_s14, 0  ;;  %p549_p4 = scmp.ge.s32.totalorder %s638_s14, 2 }
   0x6   : > { %s687_s19 = scalar_select %p39_p0, %s634_s13, %s41_s18  }
   0x7   : > { %p50_p3 = por %p49_p2, %p48_p1  ;;  %127 = sbr.rel (%p549_p4) target bundleno = 36 (0x24), region = 24 }
   0xe   : > { %130 = sbr.rel (!%p50_p3) target bundleno = 36 (0x24), region = 28  ;;  %s132_s20 = sand.u32 (%p50_p3), 1, %s634_s13  }
   0xf   : > { %s550_s21 = sshll.u32 (%p50_p3), %s638_s14, 2  ;;  %s572_s22 = smul.u32 (%p50_p3), 108, %s132_s20 }
  0x10   : > { %s695_s25 = scalar_lea.vmem (%p50_p3), %s796_s1, %s550_s21 }
  0x11   : > { %v152_v0 = vld [vmem:[%s695_s25] sm:$0xf] (%p50_p3)  ;;  %v154_v1 = vld [vmem:[%s695_s25 + $0x8] sm:$0xf] (%p50_p3)  ;;  %v156_v2 = vld [vmem:[%s695_s25 + $0x10] sm:$0xf] (%p50_p3) }
  0x12   : > { %v158_v3 = vld [vmem:[%s695_s25 + $0x18] sm:$0xf] (%p50_p3)  ;;  %v160_v4 = vld [vmem:[%s695_s25 + $0x20] sm:$0xf] (%p50_p3)  ;;  %s702_s26 = scalar_lea.vmem (%p50_p3), [#allocation2], %s572_s22 }
  0x13   : > { %153 = vst [vmem:[%s702_s26] sm:$0xf] (%p50_p3), %v152_v0  ;;  %155 = vst [vmem:[%s702_s26 + $0x4] sm:$0xf] (%p50_p3), %v154_v1  ;;  %v162_v5 = vld [vmem:[%s695_s25 + $0x28] sm:$0xf] (%p50_p3) }
  0x14   : > { %157 = vst [vmem:[%s702_s26 + $0x8] sm:$0xf] (%p50_p3), %v156_v2  ;;  %159 = vst [vmem:[%s702_s26 + $0xc] sm:$0xf] (%p50_p3), %v158_v3  ;;  %v164_v6 = vld [vmem:[%s695_s25 + $0x30] sm:$0xf] (%p50_p3) }
  0x15   : > { %161 = vst [vmem:[%s702_s26 + $0x10] sm:$0xf] %v160_v4  ;;  %v166_v7 = vld [vmem:[%s695_s25 + $0x38] sm:$0xf]  ;;  %163 = vst [vmem:[%s702_s26 + $0x14] sm:$0xf] %v162_v5 }
  0x16   : > { %165 = vst [vmem:[%s702_s26 + $0x18] sm:$0xf] %v164_v6  ;;  %167 = vst [vmem:[%s702_s26 + $0x1c] sm:$0xf] %v166_v7  ;;  %v168_v8 = vld [vmem:[%s695_s25 + $0x40] sm:$0xf] }
  0x17   : > { %v170_v9 = vld [vmem:[%s695_s25 + $0x48] sm:$0xf]  ;;  %v172_v10 = vld [vmem:[%s695_s25 + $0x50] sm:$0xf]  ;;  %169 = vst [vmem:[%s702_s26 + $0x20] sm:$0xf] %v168_v8 }
  0x18   : > { %171 = vst [vmem:[%s702_s26 + $0x24] sm:$0xf] %v170_v9  ;;  %173 = vst [vmem:[%s702_s26 + $0x28] sm:$0xf] %v172_v10  ;;  %v174_v11 = vld [vmem:[%s695_s25 + $0x58] sm:$0xf] }
  0x19   : > { %v176_v12 = vld [vmem:[%s695_s25 + $0x60] sm:$0xf]  ;;  %v178_v13 = vld [vmem:[%s695_s25 + $0x68] sm:$0xf]  ;;  %175 = vst [vmem:[%s702_s26 + $0x2c] sm:$0xf] %v174_v11 }
  0x1a   : > { %177 = vst [vmem:[%s702_s26 + $0x30] sm:$0xf] %v176_v12  ;;  %179 = vst [vmem:[%s702_s26 + $0x34] sm:$0xf] %v178_v13  ;;  %v180_v14 = vld [vmem:[%s695_s25 + $0x70] sm:$0xf] }
  0x1b   : > { %v182_v15 = vld [vmem:[%s695_s25 + $0x78] sm:$0xf]  ;;  %v184_v16 = vld [vmem:[%s695_s25 + $0x80] sm:$0xf]  ;;  %181 = vst [vmem:[%s702_s26 + $0x38] sm:$0xf] %v180_v14 }
  0x1c   : > { %183 = vst [vmem:[%s702_s26 + $0x3c] sm:$0xf] %v182_v15  ;;  %185 = vst [vmem:[%s702_s26 + $0x40] sm:$0xf] %v184_v16  ;;  %v186_v17 = vld [vmem:[%s695_s25 + $0x88] sm:$0xf] }
  0x1d   : > { %v188_v18 = vld [vmem:[%s695_s25 + $0x90] sm:$0xf]  ;;  %v190_v19 = vld [vmem:[%s695_s25 + $0x98] sm:$0xf]  ;;  %187 = vst [vmem:[%s702_s26 + $0x44] sm:$0xf] %v186_v17 }
  0x1e   : > { %189 = vst [vmem:[%s702_s26 + $0x48] sm:$0xf] %v188_v18  ;;  %191 = vst [vmem:[%s702_s26 + $0x4c] sm:$0xf] %v190_v19  ;;  %v192_v20 = vld [vmem:[%s695_s25 + $0xa0] sm:$0xf] }
  0x1f   : > { %v194_v21 = vld [vmem:[%s695_s25 + $0xa8] sm:$0xf]  ;;  %v196_v22 = vld [vmem:[%s695_s25 + $0xb0] sm:$0xf]  ;;  %193 = vst [vmem:[%s702_s26 + $0x50] sm:$0xf] %v192_v20 }
  0x20   : > { %195 = vst [vmem:[%s702_s26 + $0x54] sm:$0xf] %v194_v21  ;;  %197 = vst [vmem:[%s702_s26 + $0x58] sm:$0xf] %v196_v22  ;;  %v198_v23 = vld [vmem:[%s695_s25 + $0xb8] sm:$0xf] }
  0x21   : > { %v200_v24 = vld [vmem:[%s695_s25 + $0xc0] sm:$0xf]  ;;  %v202_v25 = vld [vmem:[%s695_s25 + $0xc8] sm:$0xf]  ;;  %199 = vst [vmem:[%s702_s26 + $0x5c] sm:$0xf] %v198_v23 }
  0x22   : > { %201 = vst [vmem:[%s702_s26 + $0x60] sm:$0xf] %v200_v24  ;;  %203 = vst [vmem:[%s702_s26 + $0x64] sm:$0xf] %v202_v25  ;;  %v204_v26 = vld [vmem:[%s695_s25 + $0xd0] sm:$0xf] }
  0x23   : > { %205 = vst [vmem:[%s702_s26 + $0x68] sm:$0xf] %v204_v26 }
  0x24 PF: > { %p551_p5 = scmp.ge.s32.totalorder %s638_s14, 1  ;;  %p281_p6 = scmp.lt.s32.totalorder %s638_s14, 3 }
  0x26   : > { %p282_p7 = pnand %p551_p5, %p281_p6 }
  0x27   : > { %s288_s27 = sand.u32 (!%p282_p7), 1, %s630_s12   ;;  %v315_v27 = vld [vmem:[%s795_s0] sm:$0xff] (!%p282_p7)  ;;  %vm436_vm0 = vcmask (!%p282_p7), 719872   ;;  %v640_v29 = vmov (!%p282_p7), 0   ;;  %vm440_vm1 = vcmask (!%p282_p7), 1043456   ;;  %p310_p8 = scmp.lt.s32.totalorder (!%p282_p7), %s546_s15, 1 }
  0x28   : > { %285 = sbr.rel (%p282_p7) target bundleno = 319 (0x13f), region = 69  ;;  %v343_v28 = vld [vmem:[%s797_s2] sm:$0xff] (!%p282_p7)  ;;  %444 = vmatprep.subr.bf16.mxu0 (!%p282_p7), %v640_v29  ;;  %v554_v30 = vcombine.high (!%p282_p7), %v315_v27, %v315_v27  ;;  %599 = vset.pattern.permute.xlu0 (!%p282_p7), %v640_v29  ;;  %v553_v46 = vcombine.low (!%p282_p7), %v315_v27, %v315_v27 }
  0x29   : > { %s573_s5 = smul.u32 (!%p282_p7), 108, %s288_s27  ;;  %346 = vperm.xlu0 (!%p282_p7), %599, %v343_v28  }
  0x2a   : > { %569 = vmatprep.mubr.msk.bf16.mxu0 (!%p282_p7), %vm436_vm0, %v554_v30 }
  0x2b   : > { %s762_s6 = scalar_lea.vmem (!%p282_p7), [#allocation2], %s573_s5 }
  0x2c   : > { %v600_v31 = vld [vmem:[%s762_s6] sm:$0xff] (!%p282_p7)   ;;  %v601_v32 = vld [vmem:[%s762_s6 + $0x8] sm:$0xff] (!%p282_p7)   ;;  %v602_v33 = vld [vmem:[%s762_s6 + $0x10] sm:$0xff] (!%p282_p7)  }
  0x2d   : > { %445 = vmatpush1.bf16.msra.mxu0 (!%p282_p7), %v600_v31  ;;  %v603_v34 = vld [vmem:[%s762_s6 + $0x18] sm:$0xff] (!%p282_p7)   ;;  %v604_v35 = vld [vmem:[%s762_s6 + $0x20] sm:$0xff] (!%p282_p7)   ;;  %v605_v36 = vld [vmem:[%s762_s6 + $0x28] sm:$0xff] (!%p282_p7)  }
  0x2e   : > { %446 = vmatprep.subr.bf16.mxu0 (!%p282_p7), %v640_v29  ;;  %v606_v37 = vld [vmem:[%s762_s6 + $0x30] sm:$0xff] (!%p282_p7)   ;;  %v607_v38 = vld [vmem:[%s762_s6 + $0x38] sm:$0xff] (!%p282_p7)   ;;  %v608_v39 = vld [vmem:[%s762_s6 + $0x40] sm:$0xff] (!%p282_p7)  }
  0x2f   : > { %v609_v40 = vld [vmem:[%s762_s6 + $0x48] sm:$0xff]   ;;  %v610_v41 = vld [vmem:[%s762_s6 + $0x50] sm:$0xff]   ;;  %v611_v42 = vld [vmem:[%s762_s6 + $0x58] sm:$0xff]   ;;  %s803_s15 = smov (!%p310_p8, %s546_s15), 1 }
  0x30   : > { %v612_v43 = vld [vmem:[%s762_s6 + $0x60] sm:$0xff]   ;;  %v613_v44 = vld [vmem:[%s762_s6 + $0x68] ss:$0 sps:$4 sm:$0xff]   ;;  %s552_s7 = sshll.u32 %s803_s15, 2 }
  0x31   : > { %447 = vmatpush1.bf16.msra.mxu0 %v601_v32  ;;  %v442_v45 = vsel %vm440_vm1, %v613_v44, 0  ;;  %s313_s10 = scalar_lea.vmem %s798_s3, %s552_s7 }
  0x32   : > { %448 = vmatprep.subr.bf16.mxu0 %v640_v29 }
  0x35   : > { %449 = vmatpush1.bf16.msra.mxu0 %v602_v33 }
  0x36   : > { %450 = vmatprep.subr.bf16.mxu0 %v640_v29 }
  0x39   : > { %451 = vmatpush1.bf16.msra.mxu0 %v603_v34 }
  0x3a   : > { %452 = vmatprep.subr.bf16.mxu0 %v640_v29 }
  0x3d   : > { %453 = vmatpush1.bf16.msra.mxu0 %v604_v35 }
  0x3e   : > { %454 = vmatprep.subr.bf16.mxu0 %v640_v29 }
  0x41   : > { %455 = vmatpush1.bf16.msra.mxu0 %v605_v36 }
  0x42   : > { %456 = vmatprep.subr.bf16.mxu0 %v640_v29 }
  0x45   : > { %457 = vmatpush1.bf16.msra.mxu0 %v606_v37 }
  0x46   : > { %458 = vmatprep.subr.bf16.mxu0 %v640_v29 }
  0x49   : > { %459 = vmatpush1.bf16.msra.mxu0 %v607_v38 }
  0x4a   : > { %460 = vmatprep.subr.bf16.mxu0 %v640_v29 }
  0x4d   : > { %461 = vmatpush1.bf16.msra.mxu0 %v608_v39 }
  0x4e   : > { %462 = vmatprep.subr.bf16.mxu0 %v640_v29 }
  0x51   : > { %463 = vmatpush1.bf16.msra.mxu0 %v609_v40 }
  0x52   : > { %464 = vmatprep.subr.bf16.mxu0 %v640_v29 }
  0x55   : > { %465 = vmatpush1.bf16.msra.mxu0 %v610_v41 }
  0x56   : > { %466 = vmatprep.subr.bf16.mxu0 %v640_v29 }
  0x59   : > { %467 = vmatpush1.bf16.msra.mxu0 %v611_v42 }
  0x5a   : > { %468 = vmatprep.subr.bf16.mxu0 %v640_v29 }
  0x5d   : > { %469 = vmatpush1.bf16.msra.mxu0 %v612_v43 }
  0x5e   : > { %470 = vmatprep.subr.bf16.mxu0 %v640_v29 }
  0x61   : > { %471 = vmatpush1.bf16.msra.mxu0 %v442_v45 }
  0x64   : > { %477 = vmatmul.mubr.bf16.vlgmr.msra.gmra.mrb[0].mxu0 %v553_v46 }
  0xa8   : > { %v347_v47 = vpop.permute.xlu0 %346 }
 0x137   : > { %v478_v48 = vpop.f32.mrb[0].mxu0 }
 0x138   : > { %v479_v49 = vadd.f32 %v478_v48, %v347_v47  ;;  %v480_v50 = vpop.f32.mrb[1].mxu0 }
 0x139   : > { %v481_v51 = vpop.f32.mrb[2].mxu0 }
 0x13a   : > { %v484_v52 = vmax.f32 %v479_v49, 0.0  ;;  %v482_v53 = vpop.f32.mrb[3].mxu0 }
 0x13c   : > { %v485_v54 = vpack.c.bf16 %v484_v52, %v484_v52 }
 0x13e   : > { %486 = vst [vmem:[%s313_s10] sm:$0xf] %v485_v54 }
 0x13f PF: > { %p10_p9 = scmp.ge.s32.totalorder %s678_s16, 4   ;;  %s799_s12 = smov %s634_s13 }
 0x140   : > { %s800_s13 = smov %s687_s19  ;;  %s801_s14 = smov %s678_s16 }
 0x141   :  { %12 = sbr.rel (!%p10_p9) target bundleno = 2 (0x2), region = 108 }

// kernel: global_net_forward.18
= control target key start
LH: loop header
LB: loop body
LE: loop exit
PB: predicated region body
PF: predicated region fallthrough
CT: control target
= control target key end

     0   :  { %s869_s15 = smov 0   ;;  %s1060_s0 = inlined_call_operand.vmem [shape: bf16[8,768], index: 0, kind: input, shape index: {}, may-alias: {0,1}]   ;;  %s1061_s1 = inlined_call_operand.vmem [shape: bf16[8,768], index: 1, kind: input, shape index: {}, may-alias: {0,1}]   ;;  %s1062_s2 = inlined_call_operand.vmem [shape: bf16[8,216], index: 2, kind: input, shape index: {}]   ;;  %s1063_s3 = inlined_call_operand.vmem [shape: f32[8,1], index: 3, kind: input, shape index: {}]   ;;  %s1064_s4 = inlined_call_operand.vmem [shape: f32[8,512], index: 4, kind: output, shape index: {}]  }
   0x1 LB: > { %s752_s16 = sadd.s32 4294967295, %s818_s15   ;;  %p756_p0 = scmp.ge.s32.totalorder %s818_s15, 1  ;;  %s818_s15 = sphi %s869_s15, %s14_s15  }
   0x2   : > { %p178_p1 = scmp.lt.s32.totalorder %s818_s15, 3 }
   0x4   : > { %p179_p2 = pnand %p756_p0, %p178_p1 }
   0x5   : > { %s877_s17 = sshll.u32 (!%p179_p2), %s752_s16, 1  ;;  %s820_s28 = smov (!%p179_p2), 127   ;;  %vm250_vm0 = vcmask (!%p179_p2), 1039360   ;;  %vm379_vm1 = vcmask (!%p179_p2), 1043456   ;;  %vm459_vm2 = vcmask (!%p179_p2), 850944   ;;  %vm450_vm3 = vcmask (!%p179_p2), 859136  }
   0x6   : > { %182 = sbr.rel (%p179_p2) target bundleno = 532 (0x214), region = 36  ;;  %p211_p3 = scmp.lt.s32.totalorder (!%p179_p2), %s877_s17, 5  ;;  %vm477_vm4 = vcmask (!%p179_p2), 809984   ;;  %vm468_vm5 = vcmask (!%p179_p2), 842752   ;;  %vm486_vm6 = vcmask (!%p179_p2), 801792   ;;  %vm495_vm7 = vcmask (!%p179_p2), 793600  }
   0x7   : > { %s773_s18 = sadd.s32 (!%p179_p2), 2, %s877_s17  ;;  %s821_s29 = smov (!%p179_p2), 105   ;;  %vm322_vm8 = vcmask (!%p179_p2), 752640   ;;  %vm504_vm9 = vcmask (!%p179_p2), 760832   ;;  %v996_v60 = vld [vmem:[%s1062_s2] sm:$0xff] (!%p179_p2)  ;;  %vm631_vm10 = vcmask (!%p179_p2), 719872  }
   0x8   : > { %p218_p4 = scmp.lt.s32.totalorder (!%p179_p2), %s773_s18, 5  ;;  %s822_s30 = smov (!%p179_p2), 104   ;;  %v767_v61 = vcombine.high (!%p179_p2), %v996_v60, %v996_v60  ;;  %vm331_vm11 = vcmask (!%p179_p2), 744448   ;;  %vm259_vm12 = vcmask (!%p179_p2), 1031168   ;;  %vm268_vm13 = vcmask (!%p179_p2), 998400  }
   0x9   : > { %s823_s5 = smov (!%p179_p2), 103   ;;  %s824_s6 = smov (!%p179_p2), 99   ;;  %vm277_vm14 = vcmask (!%p179_p2), 990208   ;;  %vm286_vm15 = vcmask (!%p179_p2), 982016  }
   0xa   : > { %s825_s7 = smov (!%p179_p2), 98   ;;  %s826_s8 = smov (!%p179_p2), 97   ;;  %769 = vmatprep.mubr.msk.bf16.mxu0 (!%p179_p2), %vm631_vm10, %v767_v61 }
   0xb   : > { %s827_s9 = smov (!%p179_p2), 92   ;;  %s828_s10 = smov (!%p179_p2), 93  }
   0xc   : > { %s829_s11 = smov (!%p179_p2), 91   ;;  %s830_s12 = smov (!%p179_p2), 126  }
   0xd   : > { %s212_s19 = scalar_select %p211_p3, %s877_s17, 5 }
   0xe   : > { %s1066_s18 = smov (!%p218_p4, %s773_s18), 5  ;;  %s831_s13 = smov 122  }
   0xf   : > { %s758_s20 = sshll.u32 %s212_s19, 2  ;;  %s760_s24 = sshll.u32 %s1066_s18, 2 }
  0x10   : > { %s214_s23 = scalar_lea.vmem %s1060_s0, %s758_s20  ;;  %s221_s27 = scalar_lea.vmem %s1061_s1, %s760_s24 }
  0x11   : > { %v231_v0 = vld [vmem:[%s214_s23] sm:$0xff]  ;;  %s832_s14 = smov 121   ;;  %s833_s16 = smov 120  }
  0x12   : > { %v888_v1 = vcombine.high %v231_v0, %v231_v0  ;;  %v890_v2 = vcombine.low %v231_v0, %v231_v0  ;;  %v894_v3 = vld [vmem:[%s221_s27] ss:$0 sps:$4 sm:$0xff]   ;;  %s834_s18 = smov 116   ;;  %s835_s19 = smov 115  }
  0x13   : > { %s836_s20 = smov 114   ;;  %s837_s21 = smov 90  }
  0x14   : > { %246 = vrot.lane.b32.xlu0 %v888_v1, %s820_s28  ;;  %244 = vrot.lane.b32.xlu1 %v890_v2, %s820_s28  ;;  %s838_s22 = smov 86   ;;  %s839_s23 = smov 85  }
  0x15   : > { %s840_s24 = smov 84   ;;  %s841_s25 = smov 80  }
  0x16   : > { %s842_s26 = smov 79   ;;  %p225_p5 = scmp.lt.s32.totalorder %s877_s17, 3 }
  0x18   : > { %248 = vrot.lane.b32.xlu0 %v894_v3, %s820_s28  ;;  %446 = vrot.lane.b32.xlu1 %v888_v1, %s821_s29  ;;  %s1068_s17 = smov (!%p225_p5, %s877_s17), 3 }
  0x1c   : > { %448 = vrot.lane.b32.xlu0 %v894_v3, %s821_s29  ;;  %455 = vrot.lane.b32.xlu1 %v888_v1, %s822_s30 }
  0x20   : > { %457 = vrot.lane.b32.xlu0 %v894_v3, %s822_s30  ;;  %444 = vrot.lane.b32.xlu1 %v890_v2, %s821_s29 }
  0x24   : > { %453 = vrot.lane.b32.xlu0 %v890_v2, %s822_s30  ;;  %464 = vrot.lane.b32.xlu1 %v888_v1, %s823_s5 }
  0x28   : > { %466 = vrot.lane.b32.xlu0 %v894_v3, %s823_s5  ;;  %473 = vrot.lane.b32.xlu1 %v888_v1, %s824_s6 }
  0x2c   : > { %475 = vrot.lane.b32.xlu0 %v894_v3, %s824_s6  ;;  %462 = vrot.lane.b32.xlu1 %v890_v2, %s823_s5  ;;  %s762_s5 = sshll.u32 %s1068_s17, 3 }
  0x30   : > { %471 = vrot.lane.b32.xlu0 %v890_v2, %s824_s6  ;;  %482 = vrot.lane.b32.xlu1 %v888_v1, %s825_s7 }
  0x34   : > { %484 = vrot.lane.b32.xlu0 %v894_v3, %s825_s7  ;;  %491 = vrot.lane.b32.xlu1 %v888_v1, %s826_s8 }
  0x38   : > { %493 = vrot.lane.b32.xlu0 %v894_v3, %s826_s8  ;;  %480 = vrot.lane.b32.xlu1 %v890_v2, %s825_s7 }
  0x3c   : > { %489 = vrot.lane.b32.xlu0 %v890_v2, %s826_s8  ;;  %318 = vrot.lane.b32.xlu1 %v888_v1, %s827_s9  ;;  %s228_s8 = scalar_lea.vmem %s1064_s4, %s762_s5 }
  0x40   : > { %320 = vrot.lane.b32.xlu0 %v894_v3, %s827_s9  ;;  %500 = vrot.lane.b32.xlu1 %v888_v1, %s828_s10 }
  0x44   : > { %502 = vrot.lane.b32.xlu0 %v894_v3, %s828_s10  ;;  %316 = vrot.lane.b32.xlu1 %v890_v2, %s827_s9 }
  0x48   : > { %498 = vrot.lane.b32.xlu0 %v890_v2, %s828_s10  ;;  %325 = vrot.lane.b32.xlu1 %v890_v2, %s829_s11 }
  0x4c   : > { %327 = vrot.lane.b32.xlu0 %v888_v1, %s829_s11  ;;  %329 = vrot.lane.b32.xlu1 %v894_v3, %s829_s11 }
  0x50   : > { %255 = vrot.lane.b32.xlu0 %v888_v1, %s830_s12  ;;  %257 = vrot.lane.b32.xlu1 %v894_v3, %s830_s12 }
  0x54   : > { %264 = vrot.lane.b32.xlu0 %v888_v1, %s831_s13  ;;  %266 = vrot.lane.b32.xlu1 %v894_v3, %s831_s13 }
  0x58   : > { %253 = vrot.lane.b32.xlu0 %v890_v2, %s830_s12  ;;  %262 = vrot.lane.b32.xlu1 %v890_v2, %s831_s13 }
  0x5c   : > { %273 = vrot.lane.b32.xlu0 %v888_v1, %s832_s14  ;;  %275 = vrot.lane.b32.xlu1 %v894_v3, %s832_s14 }
  0x60   : > { %282 = vrot.lane.b32.xlu0 %v888_v1, %s833_s16  ;;  %284 = vrot.lane.b32.xlu1 %v894_v3, %s833_s16 }
  0x64   : > { %271 = vrot.lane.b32.xlu0 %v890_v2, %s832_s14  ;;  %280 = vrot.lane.b32.xlu1 %v890_v2, %s833_s16 }
  0x68   : > { %291 = vrot.lane.b32.xlu0 %v888_v1, %s834_s18  ;;  %293 = vrot.lane.b32.xlu1 %v894_v3, %s834_s18 }
  0x6c   : > { %300 = vrot.lane.b32.xlu0 %v888_v1, %s835_s19  ;;  %302 = vrot.lane.b32.xlu1 %v894_v3, %s835_s19 }
  0x70   : > { %289 = vrot.lane.b32.xlu0 %v890_v2, %s834_s18  ;;  %298 = vrot.lane.b32.xlu1 %v890_v2, %s835_s19 }
  0x74   : > { %309 = vrot.lane.b32.xlu0 %v888_v1, %s836_s20  ;;  %311 = vrot.lane.b32.xlu1 %v894_v3, %s836_s20 }
  0x78   : > { %307 = vrot.lane.b32.xlu0 %v890_v2, %s836_s20  ;;  %336 = vrot.lane.b32.xlu1 %v888_v1, %s837_s21 }
  0x7c   : > { %338 = vrot.lane.b32.xlu0 %v894_v3, %s837_s21  ;;  %334 = vrot.lane.b32.xlu1 %v890_v2, %s837_s21 }
  0x80   : > { %345 = vrot.lane.b32.xlu0 %v888_v1, %s838_s22  ;;  %347 = vrot.lane.b32.xlu1 %v894_v3, %s838_s22 }
  0x84   : > { %354 = vrot.lane.b32.xlu0 %v888_v1, %s839_s23  ;;  %356 = vrot.lane.b32.xlu1 %v894_v3, %s839_s23 }
  0x86   : > { %v247_v4 = vpop.permute.xlu0 %246  ;;  %v245_v5 = vpop.permute.xlu1 %244 }
  0x87   : > { %v251_v6 = vsel %vm250_vm0, %v245_v5, %v247_v4  ;;  %v843_v5 = vmov 0  }
  0x88   : > { %343 = vrot.lane.b32.xlu0 %v890_v2, %s838_s22  ;;  %352 = vrot.lane.b32.xlu1 %v890_v2, %s839_s23  ;;  %v382_v11 = vsel %vm379_vm1, %v890_v2, %v251_v6 }
  0x89   : > { %806 = vset.pattern.permute.xlu0 %v843_v5 }
  0x8a   : > { %v249_v7 = vpop.permute.xlu0 %248  ;;  %v447_v8 = vpop.permute.xlu1 %446 }
  0x8b   : > { %v252_v9 = vsel %vm250_vm0, %v247_v4, %v249_v7  ;;  %v509_v18 = vsel %vm379_vm1, %v894_v3, %v249_v7  ;;  %vm295_vm0 = vcmask 949248  }
  0x8c   : > { %363 = vrot.lane.b32.xlu0 %v888_v1, %s840_s24  ;;  %365 = vrot.lane.b32.xlu1 %v894_v3, %s840_s24  ;;  %v386_v10 = vsel %vm379_vm1, %v888_v1, %v252_v9 }
  0x8d   : > { %641 = vmatprep.subr.bf16.mxu0 %v386_v10 }
  0x8e   : > { %v449_v12 = vpop.permute.xlu0 %448  ;;  %642 = vmatpush1.bf16.msra.mxu0 %v382_v11  ;;  %v456_v13 = vpop.permute.xlu1 %455 }
  0x8f   : > { %v452_v20 = vsel %vm450_vm3, %v447_v8, %v449_v12 }
  0x90   : > { %372 = vrot.lane.b32.xlu0 %v888_v1, %s841_s25  ;;  %374 = vrot.lane.b32.xlu1 %v894_v3, %s841_s25 }
  0x92   : > { %v458_v14 = vpop.permute.xlu0 %457  ;;  %v445_v15 = vpop.permute.xlu1 %444 }
  0x93   : > { %v461_v19 = vsel %vm459_vm2, %v456_v13, %v458_v14  ;;  %v451_v25 = vsel %vm450_vm3, %v445_v15, %v447_v8  ;;  %v518_v28 = vsel %vm379_vm1, %v449_v12, %v458_v14  ;;  %vm313_vm3 = vcmask 932864  }
  0x94   : > { %361 = vrot.lane.b32.xlu0 %v890_v2, %s840_s24  ;;  %370 = vrot.lane.b32.xlu1 %v890_v2, %s841_s25  ;;  %v515_v23 = vsel %vm379_vm1, %v452_v20, %v461_v19 }
  0x96   : > { %v454_v16 = vpop.permute.xlu0 %453  ;;  %v465_v17 = vpop.permute.xlu1 %464 }
  0x97   : > { %v460_v24 = vsel %vm459_vm2, %v454_v16, %v456_v13  ;;  %vm304_vm2 = vcmask 941056  }
  0x98   : > { %561 = vrot.lane.b32.xlu0 %v386_v10, %s842_s26  ;;  %563 = vrot.lane.b32.xlu1 %v509_v18, %s842_s26  ;;  %v512_v29 = vsel %vm379_vm1, %v451_v25, %v460_v24  ;;  %v619_v10 = vld [vmem:[%s1063_s3] sm:$0xff] }
  0x9a   : > { %v467_v21 = vpop.permute.xlu0 %466  ;;  %v474_v22 = vpop.permute.xlu1 %473 }
  0x9b   : > { %v470_v31 = vsel %vm468_vm5, %v465_v17, %v467_v21 }
  0x9c   : > { %559 = vrot.lane.b32.xlu0 %v382_v11, %s842_s26  ;;  %567 = vrot.lane.b32.xlu1 %v515_v23, %s842_s26 }
  0x9e   : > { %v476_v26 = vpop.permute.xlu0 %475  ;;  %v463_v27 = vpop.permute.xlu1 %462 }
  0x9f   : > { %v479_v30 = vsel %vm477_vm4, %v474_v22, %v476_v26  ;;  %v527_v34 = vsel %vm379_vm1, %v467_v21, %v476_v26  ;;  %v469_v37 = vsel %vm468_vm5, %v463_v27, %v465_v17  ;;  %vm349_vm5 = vcmask 703488  }
  0xa0   : > { %569 = vrot.lane.b32.xlu0 %v518_v28, %s842_s26  ;;  %565 = vrot.lane.b32.xlu1 %v512_v29, %s842_s26  ;;  %v524_v35 = vsel %vm379_vm1, %v470_v31, %v479_v30 }
  0xa2   : > { %v472_v32 = vpop.permute.xlu0 %471  ;;  %v483_v33 = vpop.permute.xlu1 %482 }
  0xa3   : > { %v478_v36 = vsel %vm477_vm4, %v472_v32, %v474_v22  ;;  %vm340_vm4 = vcmask 736256  }
  0xa4   : > { %575 = vrot.lane.b32.xlu1 %v527_v34, %s842_s26  ;;  %573 = vrot.lane.b32.xlu0 %v524_v35, %s842_s26  ;;  %v521_v40 = vsel %vm379_vm1, %v469_v37, %v478_v36 }
  0xa6   : > { %v485_v38 = vpop.permute.xlu0 %484  ;;  %v492_v39 = vpop.permute.xlu1 %491 }
  0xa7   : > { %v488_v43 = vsel %vm486_vm6, %v483_v33, %v485_v38 }
  0xa8   : > { %571 = vrot.lane.b32.xlu0 %v521_v40, %s842_s26 }
  0xaa   : > { %v494_v41 = vpop.permute.xlu0 %493  ;;  %v481_v42 = vpop.permute.xlu1 %480 }
  0xab   : > { %v497_v44 = vsel %vm495_vm7, %v492_v39, %v494_v41  ;;  %v536_v45 = vsel %vm379_vm1, %v485_v38, %v494_v41  ;;  %v487_v49 = vsel %vm486_vm6, %v481_v42, %v483_v33  ;;  %vm358_vm6 = vcmask 695296  }
  0xac   : > { %581 = vrot.lane.b32.xlu0 %v536_v45, %s842_s26  ;;  %v533_v46 = vsel %vm379_vm1, %v488_v43, %v497_v44 }
  0xad   : > { %579 = vrot.lane.b32.xlu1 %v533_v46, %s842_s26 }
  0xae   : > { %v490_v47 = vpop.permute.xlu0 %489  ;;  %v319_v48 = vpop.permute.xlu1 %318 }
  0xaf   : > { %v496_v50 = vsel %vm495_vm7, %v490_v47, %v492_v39  ;;  %vm367_vm7 = vcmask 687104  }
  0xb0   : > { %v530_v51 = vsel %vm379_vm1, %v487_v49, %v496_v50 }
  0xb1   : > { %577 = vrot.lane.b32.xlu1 %v530_v51, %s842_s26 }
  0xb2   : > { %v321_v52 = vpop.permute.xlu0 %320  ;;  %v501_v53 = vpop.permute.xlu1 %500 }
  0xb3   : > { %v987_v56 = vsel %vm322_vm8, %v319_v48, %v321_v52 }
  0xb6   : > { %v503_v54 = vpop.permute.xlu0 %502  ;;  %v317_v55 = vpop.permute.xlu1 %316 }
  0xb7   : > { %v506_v57 = vsel %vm504_vm9, %v501_v53, %v503_v54  ;;  %v543_v58 = vsel %vm379_vm1, %v503_v54, %v321_v52  ;;  %v1001_v0 = vsel %vm322_vm8, %v317_v55, %v319_v48  ;;  %vm376_vm8 = vcmask 654336  }
  0xb8   : > { %587 = vrot.lane.b32.xlu1 %v543_v58, %s842_s26  ;;  %v540_v59 = vsel %vm379_vm1, %v506_v57, %v987_v56 }
  0xb9   : > { %585 = vrot.lane.b32.xlu0 %v540_v59, %s842_s26 }
  0xba   : > { %v499_v62 = vpop.permute.xlu0 %498  ;;  %v326_v63 = vpop.permute.xlu1 %325 }
  0xbb   : > { %v505_v1 = vsel %vm504_vm9, %v499_v62, %v501_v53  ;;  %vm595_vm9 = vcmask 646144  }
  0xbc   : > { %v538_v2 = vsel %vm379_vm1, %v505_v1, %v1001_v0 }
  0xbd   : > { %583 = vrot.lane.b32.xlu0 %v538_v2, %s842_s26 }
  0xbe   : > { %v328_v3 = vpop.permute.xlu0 %327  ;;  %v330_v4 = vpop.permute.xlu1 %329 }
  0xbf   : > { %v1006_v6 = vsel %vm331_vm11, %v326_v63, %v328_v3  ;;  %v1008_v7 = vsel %vm331_vm11, %v328_v3, %v330_v4 }
  0xc0   : > { %589 = vrot.lane.b32.xlu1 %v1006_v6, %s842_s26 }
  0xc1   : > { %591 = vrot.lane.b32.xlu0 %v1008_v7, %s842_s26 }
  0xc2   : > { %v256_v8 = vpop.permute.xlu0 %255  ;;  %v258_v9 = vpop.permute.xlu1 %257 }
  0xc3   : > { %v261_v11 = vsel %vm259_vm12, %v256_v8, %v258_v9 }
  0xc4   : > { %593 = vrot.lane.b32.xlu1 %v330_v4, %s842_s26 }
  0xc5   : > { %622 = vperm.xlu0 %806, %v619_v10  }
  0xc6   : > { %v265_v12 = vpop.permute.xlu0 %264  ;;  %v267_v13 = vpop.permute.xlu1 %266 }
  0xc7   : > { %v270_v14 = vsel %vm268_vm13, %v265_v12, %v267_v13 }
  0xc8   : > { %v394_v15 = vsel %vm379_vm1, %v261_v11, %v270_v14 }
  0xc9   : > { %643 = vmatprep.subr.bf16.mxu0 %v394_v15 }
  0xca   : > { %v254_v16 = vpop.permute.xlu0 %253  ;;  %v263_v17 = vpop.permute.xlu1 %262 }
  0xcb   : > { %v260_v18 = vsel %vm259_vm12, %v254_v16, %v256_v8  ;;  %v269_v19 = vsel %vm268_vm13, %v263_v17, %v265_v12 }
  0xcc   : > { %v390_v20 = vsel %vm379_vm1, %v260_v18, %v269_v19 }
  0xcd   : > { %644 = vmatpush1.bf16.msra.mxu0 %v390_v20 }
  0xce   : > { %v274_v21 = vpop.permute.xlu0 %273  ;;  %v276_v22 = vpop.permute.xlu1 %275 }
  0xcf   : > { %v279_v23 = vsel %vm277_vm14, %v274_v21, %v276_v22 }
  0xd2   : > { %v283_v24 = vpop.permute.xlu0 %282  ;;  %v285_v25 = vpop.permute.xlu1 %284 }
  0xd3   : > { %v288_v26 = vsel %vm286_vm15, %v283_v24, %v285_v25 }
  0xd4   : > { %v402_v27 = vsel %vm379_vm1, %v279_v23, %v288_v26 }
  0xd5   : > { %645 = vmatprep.subr.bf16.mxu0 %v402_v27 }
  0xd6   : > { %v272_v28 = vpop.permute.xlu0 %271  ;;  %v281_v29 = vpop.permute.xlu1 %280 }
  0xd7   : > { %v278_v30 = vsel %vm277_vm14, %v272_v28, %v274_v21  ;;  %v287_v31 = vsel %vm286_vm15, %v281_v29, %v283_v24 }
  0xd8   : > { %v398_v32 = vsel %vm379_vm1, %v278_v30, %v287_v31 }
  0xd9   : > { %646 = vmatpush1.bf16.msra.mxu0 %v398_v32 }
  0xda   : > { %v292_v33 = vpop.permute.xlu0 %291  ;;  %v294_v34 = vpop.permute.xlu1 %293 }
  0xdb   : > { %v297_v35 = vsel %vm295_vm0, %v292_v33, %v294_v34 }
  0xde   : > { %v301_v36 = vpop.permute.xlu0 %300  ;;  %v303_v37 = vpop.permute.xlu1 %302 }
  0xdf   : > { %v306_v38 = vsel %vm304_vm2, %v301_v36, %v303_v37 }
  0xe0   : > { %v410_v39 = vsel %vm379_vm1, %v297_v35, %v306_v38 }
  0xe1   : > { %647 = vmatprep.subr.bf16.mxu0 %v410_v39 }
  0xe2   : > { %v290_v40 = vpop.permute.xlu0 %289  ;;  %v299_v41 = vpop.permute.xlu1 %298 }
  0xe3   : > { %v296_v42 = vsel %vm295_vm0, %v290_v40, %v292_v33  ;;  %v305_v43 = vsel %vm304_vm2, %v299_v41, %v301_v36 }
  0xe4   : > { %v406_v44 = vsel %vm379_vm1, %v296_v42, %v305_v43 }
  0xe5   : > { %648 = vmatpush1.bf16.msra.mxu0 %v406_v44 }
  0xe6   : > { %v310_v45 = vpop.permute.xlu0 %309  ;;  %v312_v46 = vpop.permute.xlu1 %311 }
  0xe7   : > { %v315_v47 = vsel %vm313_vm3, %v310_v45, %v312_v46 }
  0xe8   : > { %v418_v48 = vsel %vm379_vm1, %v315_v47, %v987_v56 }
  0xe9   : > { %649 = vmatprep.subr.bf16.mxu0 %v418_v48 }
  0xea   : > { %v308_v49 = vpop.permute.xlu0 %307  ;;  %v337_v50 = vpop.permute.xlu1 %336 }
  0xeb   : > { %v314_v51 = vsel %vm313_vm3, %v308_v49, %v310_v45 }
  0xec   : > { %v414_v52 = vsel %vm379_vm1, %v314_v51, %v1001_v0  ;;  %v766_v51 = vcombine.low %v996_v60, %v996_v60 }
  0xed   : > { %650 = vmatpush1.bf16.msra.mxu0 %v414_v52 }
  0xee   : > { %v339_v53 = vpop.permute.xlu0 %338  ;;  %v335_v54 = vpop.permute.xlu1 %334 }
  0xef   : > { %v342_v55 = vsel %vm340_vm4, %v337_v50, %v339_v53  ;;  %v341_v57 = vsel %vm340_vm4, %v335_v54, %v337_v50 }
  0xf0   : > { %v426_v58 = vsel %vm379_vm1, %v1008_v7, %v342_v55  ;;  %v422_v59 = vsel %vm379_vm1, %v1006_v6, %v341_v57 }
  0xf1   : > { %651 = vmatprep.subr.bf16.mxu0 %v426_v58 }
  0xf2   : > { %v346_v56 = vpop.permute.xlu0 %345  ;;  %652 = vmatpush1.bf16.msra.mxu0 %v422_v59  ;;  %v348_v61 = vpop.permute.xlu1 %347 }
  0xf3   : > { %v351_v62 = vsel %vm349_vm5, %v346_v56, %v348_v61 }
  0xf6   : > { %v355_v63 = vpop.permute.xlu0 %354  ;;  %v357_v0 = vpop.permute.xlu1 %356 }
  0xf7   : > { %v360_v1 = vsel %vm358_vm6, %v355_v63, %v357_v0 }
  0xf8   : > { %v434_v2 = vsel %vm379_vm1, %v351_v62, %v360_v1 }
  0xf9   : > { %653 = vmatprep.subr.bf16.mxu0 %v434_v2 }
  0xfa   : > { %v344_v3 = vpop.permute.xlu0 %343  ;;  %v353_v4 = vpop.permute.xlu1 %352 }
  0xfb   : > { %v350_v5 = vsel %vm349_vm5, %v344_v3, %v346_v56  ;;  %v359_v7 = vsel %vm358_vm6, %v353_v4, %v355_v63 }
  0xfc   : > { %v430_v8 = vsel %vm379_vm1, %v350_v5, %v359_v7 }
  0xfd   : > { %654 = vmatpush1.bf16.msra.mxu0 %v430_v8 }
  0xfe   : > { %v364_v6 = vpop.permute.xlu0 %363  ;;  %v366_v9 = vpop.permute.xlu1 %365 }
  0xff   : > { %v369_v10 = vsel %vm367_vm7, %v364_v6, %v366_v9 }
 0x102   : > { %v373_v11 = vpop.permute.xlu0 %372  ;;  %v375_v12 = vpop.permute.xlu1 %374 }
 0x103   : > { %v378_v13 = vsel %vm376_vm8, %v373_v11, %v375_v12 }
 0x104   : > { %v442_v14 = vsel %vm379_vm1, %v369_v10, %v378_v13 }
 0x105   : > { %655 = vmatprep.subr.bf16.mxu0 %v442_v14 }
 0x106   : > { %v362_v15 = vpop.permute.xlu0 %361  ;;  %v371_v16 = vpop.permute.xlu1 %370 }
 0x107   : > { %v368_v17 = vsel %vm367_vm7, %v362_v15, %v364_v6  ;;  %v377_v18 = vsel %vm376_vm8, %v371_v16, %v373_v11 }
 0x108   : > { %v438_v19 = vsel %vm379_vm1, %v368_v17, %v377_v18 }
 0x109   : > { %656 = vmatpush1.bf16.msra.mxu0 %v438_v19 }
 0x10a   : > { %v562_v20 = vpop.permute.xlu0 %561  ;;  %v564_v21 = vpop.permute.xlu1 %563 }
 0x10b   : > { %v597_v22 = vsel %vm595_vm9, %v562_v20, %v564_v21 }
 0x10c   : > { %657 = vmatprep.subr.bf16.mxu0 %v597_v22 }
 0x10e   : > { %v560_v23 = vpop.permute.xlu0 %559  ;;  %v568_v24 = vpop.permute.xlu1 %567 }
 0x10f   : > { %v596_v25 = vsel %vm595_vm9, %v560_v23, %v562_v20 }
 0x110   : > { %658 = vmatpush1.bf16.msra.mxu0 %v596_v25 }
 0x112   : > { %v570_v26 = vpop.permute.xlu0 %569  ;;  %v566_v27 = vpop.permute.xlu1 %565 }
 0x113   : > { %v599_v28 = vsel %vm595_vm9, %v568_v24, %v570_v26  ;;  %v598_v29 = vsel %vm595_vm9, %v566_v27, %v568_v24 }
 0x114   : > { %659 = vmatprep.subr.bf16.mxu0 %v599_v28 }
 0x115   : > { %660 = vmatpush1.bf16.msra.mxu0 %v598_v29 }
 0x116   : > { %v574_v30 = vpop.permute.xlu0 %573  ;;  %v576_v31 = vpop.permute.xlu1 %575 }
 0x117   : > { %v601_v32 = vsel %vm595_vm9, %v574_v30, %v576_v31 }
 0x118   : > { %661 = vmatprep.subr.bf16.mxu0 %v601_v32 }
 0x11a   : > { %v572_v33 = vpop.permute.xlu0 %571 }
 0x11b   : > { %v600_v34 = vsel %vm595_vm9, %v572_v33, %v574_v30 }
 0x11c   : > { %662 = vmatpush1.bf16.msra.mxu0 %v600_v34 }
 0x11e   : > { %v582_v35 = vpop.permute.xlu0 %581 }
 0x11f   : > { %v580_v36 = vpop.permute.xlu1 %579 }
 0x120   : > { %v603_v37 = vsel %vm595_vm9, %v580_v36, %v582_v35 }
 0x121   : > { %663 = vmatprep.subr.bf16.mxu0 %v603_v37 }
 0x123   : > { %v578_v38 = vpop.permute.xlu1 %577 }
 0x124   : > { %v602_v39 = vsel %vm595_vm9, %v578_v38, %v580_v36 }
 0x125   : > { %664 = vmatpush1.bf16.msra.mxu0 %v602_v39 }
 0x12a   : > { %v588_v40 = vpop.permute.xlu1 %587 }
 0x12b   : > { %v586_v41 = vpop.permute.xlu0 %585 }
 0x12c   : > { %v605_v42 = vsel %vm595_vm9, %v586_v41, %v588_v40 }
 0x12d   : > { %665 = vmatprep.subr.bf16.mxu0 %v605_v42 }
 0x12f   : > { %v584_v43 = vpop.permute.xlu0 %583 }
 0x130   : > { %v604_v44 = vsel %vm595_vm9, %v584_v43, %v586_v41 }
 0x131   : > { %666 = vmatpush1.bf16.msra.mxu0 %v604_v44 }
 0x132   : > { %v590_v45 = vpop.permute.xlu1 %589 }
 0x133   : > { %v592_v46 = vpop.permute.xlu0 %591 }
 0x134   : > { %v606_v47 = vsel %vm595_vm9, %v590_v45, %v592_v46 }
 0x135   : > { %v636_v50 = vsel %vm379_vm1, %v606_v47, 0 }
 0x136   : > { %v594_v48 = vpop.permute.xlu1 %593 }
 0x137   : > { %v607_v49 = vsel %vm595_vm9, %v592_v46, %v594_v48 }
 0x138   : > { %768 = vmatprep.subr.msk.bf16.mxu0 %vm379_vm1, %v607_v49 }
 0x139   : > { %668 = vmatpush1.bf16.msra.mxu0 %v636_v50 }
 0x13c   : > { %674 = vmatmul.mubr.bf16.vlgmr.msra.gmra.mrb[0].mxu0 %v766_v51 }
 0x144   : > { %v623_v52 = vpop.permute.xlu0 %622 }
 0x20f   : > { %v675_v53 = vpop.f32.mrb[0].mxu0 }
 0x210   : > { %v676_v54 = vadd.f32 %v675_v53, %v623_v52  ;;  %v677_v55 = vpop.f32.mrb[1].mxu0 }
 0x211   : > { %v678_v57 = vadd.f32 %v677_v55, %v623_v52  ;;  %v679_v58 = vpop.f32.mrb[2].mxu0 }
 0x212   : > { %682 = vst [vmem:[%s228_s8] sm:$0xff] %v676_v54  ;;  %v680_v59 = vpop.f32.mrb[3].mxu0 }
 0x213   : > { %683 = vst [vmem:[%s228_s8 + $0x8] sm:$0xff] %v678_v57 }
 0x214 PF: > { %s14_s15 = sadd.s32 1, %s818_s15  }
 0x215   : > { %p11_p6 = scmp.ge.s32.totalorder %s14_s15, 4  }
 0x217   :  { %13 = sbr.rel (!%p11_p6) target bundleno = 1 (0x1), region = 69 }

// kernel: global_net_forward.19
= control target key start
LH: loop header
LB: loop body
LE: loop exit
PB: predicated region body
PF: predicated region fallthrough
CT: control target
= control target key end

     0   :  { %s338_s12 = smov 0   ;;  %s361_s0 = inlined_call_operand.vmem [shape: bf16[8,8], index: 0, kind: input, shape index: {}]   ;;  %s362_s1 = inlined_call_operand.vmem [shape: bf16[8,256], index: 1, kind: input, shape index: {}]   ;;  %s363_s2 = inlined_call_operand.vmem [shape: f32[8,1], index: 2, kind: input, shape index: {}]   ;;  %s364_s3 = inlined_call_operand.vmem [shape: f32[8,256], index: 3, kind: output, shape index: {}]  }
   0x1 LB: > { %s277_s13 = sadd.s32 4294967295, %s313_s12   ;;  %p281_p0 = scmp.ge.s32.totalorder %s313_s12, 1  ;;  %s313_s12 = sphi %s338_s12, %s13_s12  }
   0x2   : > { %p136_p1 = scmp.lt.s32.totalorder %s313_s12, 3 }
   0x4   : > { %p137_p2 = pnand %p281_p0, %p136_p1 }
   0x5   : > { %p158_p3 = scmp.lt.s32.totalorder (!%p137_p2), %s277_s13, 1  ;;  %v315_v0 = vmov (!%p137_p2), 0.0   ;;  %vm316_vm0 = vmmov (!%p137_p2), 0   ;;  %v169_v1 = vld [vmem:[%s363_s2] sm:$0xff] (!%p137_p2)  ;;  %v317_v2 = vmov (!%p137_p2), 0   ;;  %vm179_vm1 = vcmask (!%p137_p2), 1043456  }
   0x6   : > { %140 = sbr.rel (%p137_p2) target bundleno = 236 (0xec), region = 32  ;;  %289 = vmatprep.subr.bf16.mxu0 (!%p137_p2), %v315_v0  ;;  %291 = vmatprep.mubr.msk.bf16.mxu0 (!%p137_p2), %vm316_vm0, %v315_v0  ;;  %v167_v5 = vld [vmem:[%s361_s0] sm:$0xf] (!%p137_p2)  ;;  %vm175_vm2 = vcmask (!%p137_p2), 64512  }
   0x7   : > { %306 = vset.pattern.permute.xlu0 (!%p137_p2), %v317_v2 }
   0x8   : > { %172 = vperm.xlu0 (!%p137_p2), %306, %v169_v1  }
   0xd   : > { %s366_s13 = smov (!%p158_p3, %s277_s13), 1 }
   0xe   : > { %s282_s16 = sshll.u32 %s366_s13, 2  ;;  %s283_s22 = sshll.u32 %s366_s13, 3 }
   0xf   : > { %s161_s19 = scalar_lea.vmem %s362_s1, %s282_s16  ;;  %s165_s25 = scalar_lea.vmem %s364_s3, %s283_s22 }
  0x10   : > { %v168_v3 = vld [vmem:[%s161_s19] sm:$0xf] }
  0x11   : > { %v181_v4 = vsel %vm179_vm1, %v168_v3, 0 }
  0x12   : > { %290 = vmatpush3.bf16.msra.mxu0 %v181_v4 }
  0x15   : > { %292 = vmatmul.mubr.msk.bf16.vlgmr.msra.gmra.mrb[0].mxu0 %vm175_vm2, %v167_v5 }
  0x87   : > { %v173_v6 = vpop.permute.xlu0 %172 }
  0xe8   : > { %v217_v7 = vpop.f32.mrb[0].mxu0 }
  0xe9   : > { %v218_v8 = vadd.f32 %v217_v7, %v173_v6  ;;  %v293_v9 = vpop.f32.mrb[1].mxu0 }
  0xea   : > { %v220_v10 = vpop.f32.mrb[2].mxu0 }
  0xeb   : > { %223 = vst [vmem:[%s165_s25] sm:$0xff] %v218_v8  ;;  %v294_v11 = vpop.f32.mrb[3].mxu0 }
  0xec PF: > { %s13_s12 = sadd.s32 1, %s313_s12  }
  0xed   : > { %p10_p4 = scmp.ge.s32.totalorder %s13_s12, 4  }
  0xef   :  { %12 = sbr.rel (!%p10_p4) target bundleno = 1 (0x1), region = 62 }

// kernel: global_net_forward.20
= control target key start
LH: loop header
LB: loop body
LE: loop exit
PB: predicated region body
PF: predicated region fallthrough
CT: control target
= control target key end

     0   :  { %s880_s15 = smov 0   ;;  %s1071_s0 = inlined_call_operand.vmem [shape: bf16[8,768], index: 0, kind: input, shape index: {}, may-alias: {0,1}]   ;;  %s1072_s1 = inlined_call_operand.vmem [shape: bf16[8,768], index: 1, kind: input, shape index: {}, may-alias: {0,1}]   ;;  %s1073_s2 = inlined_call_operand.vmem [shape: bf16[8,216], index: 2, kind: input, shape index: {}]   ;;  %s1074_s3 = inlined_call_operand.vmem [shape: f32[8,1], index: 3, kind: input, shape index: {}]   ;;  %s1075_s4 = inlined_call_operand.vmem [shape: bf16[8,512], index: 4, kind: output, shape index: {}]  }
   0x1 LB: > { %s761_s16 = sadd.s32 4294967295, %s829_s15   ;;  %p765_p0 = scmp.ge.s32.totalorder %s829_s15, 1  ;;  %s829_s15 = sphi %s880_s15, %s14_s15  }
   0x2   : > { %p178_p1 = scmp.lt.s32.totalorder %s829_s15, 3 }
   0x4   : > { %p179_p2 = pnand %p765_p0, %p178_p1 }
   0x5   : > { %s888_s17 = sshll.u32 (!%p179_p2), %s761_s16, 1  ;;  %s831_s28 = smov (!%p179_p2), 127   ;;  %vm250_vm0 = vcmask (!%p179_p2), 1039360   ;;  %vm379_vm1 = vcmask (!%p179_p2), 1043456   ;;  %vm459_vm2 = vcmask (!%p179_p2), 850944   ;;  %vm450_vm3 = vcmask (!%p179_p2), 859136  }
   0x6   : > { %182 = sbr.rel (%p179_p2) target bundleno = 536 (0x218), region = 36  ;;  %p211_p3 = scmp.lt.s32.totalorder (!%p179_p2), %s888_s17, 5  ;;  %vm477_vm4 = vcmask (!%p179_p2), 809984   ;;  %vm468_vm5 = vcmask (!%p179_p2), 842752   ;;  %vm486_vm6 = vcmask (!%p179_p2), 801792   ;;  %vm495_vm7 = vcmask (!%p179_p2), 793600  }
   0x7   : > { %s783_s18 = sadd.s32 (!%p179_p2), 2, %s888_s17  ;;  %s832_s29 = smov (!%p179_p2), 105   ;;  %vm322_vm8 = vcmask (!%p179_p2), 752640   ;;  %vm504_vm9 = vcmask (!%p179_p2), 760832   ;;  %v1007_v60 = vld [vmem:[%s1073_s2] sm:$0xff] (!%p179_p2)  ;;  %vm631_vm10 = vcmask (!%p179_p2), 719872  }
   0x8   : > { %p218_p4 = scmp.lt.s32.totalorder (!%p179_p2), %s783_s18, 5  ;;  %s833_s30 = smov (!%p179_p2), 104   ;;  %v776_v61 = vcombine.high (!%p179_p2), %v1007_v60, %v1007_v60  ;;  %vm331_vm11 = vcmask (!%p179_p2), 744448   ;;  %vm259_vm12 = vcmask (!%p179_p2), 1031168   ;;  %vm268_vm13 = vcmask (!%p179_p2), 998400  }
   0x9   : > { %s834_s5 = smov (!%p179_p2), 103   ;;  %s835_s6 = smov (!%p179_p2), 99   ;;  %vm277_vm14 = vcmask (!%p179_p2), 990208   ;;  %vm286_vm15 = vcmask (!%p179_p2), 982016  }
   0xa   : > { %s836_s7 = smov (!%p179_p2), 98   ;;  %s837_s8 = smov (!%p179_p2), 97   ;;  %778 = vmatprep.mubr.msk.bf16.mxu0 (!%p179_p2), %vm631_vm10, %v776_v61 }
   0xb   : > { %s838_s9 = smov (!%p179_p2), 92   ;;  %s839_s10 = smov (!%p179_p2), 93  }
   0xc   : > { %s840_s11 = smov (!%p179_p2), 91   ;;  %s841_s12 = smov (!%p179_p2), 126  }
   0xd   : > { %s212_s19 = scalar_select %p211_p3, %s888_s17, 5 }
   0xe   : > { %s1077_s18 = smov (!%p218_p4, %s783_s18), 5  ;;  %s842_s13 = smov 122  }
   0xf   : > { %s767_s20 = sshll.u32 %s212_s19, 2  ;;  %s769_s24 = sshll.u32 %s1077_s18, 2 }
  0x10   : > { %s214_s23 = scalar_lea.vmem %s1071_s0, %s767_s20  ;;  %s221_s27 = scalar_lea.vmem %s1072_s1, %s769_s24 }
  0x11   : > { %v231_v0 = vld [vmem:[%s214_s23] sm:$0xff]  ;;  %s843_s14 = smov 121   ;;  %s844_s16 = smov 120  }
  0x12   : > { %v899_v1 = vcombine.high %v231_v0, %v231_v0  ;;  %v901_v2 = vcombine.low %v231_v0, %v231_v0  ;;  %v905_v3 = vld [vmem:[%s221_s27] ss:$0 sps:$4 sm:$0xff]   ;;  %s845_s18 = smov 116   ;;  %s846_s19 = smov 115  }
  0x13   : > { %s847_s20 = smov 114   ;;  %s848_s21 = smov 90  }
  0x14   : > { %246 = vrot.lane.b32.xlu0 %v899_v1, %s831_s28  ;;  %244 = vrot.lane.b32.xlu1 %v901_v2, %s831_s28  ;;  %s849_s22 = smov 86   ;;  %s850_s23 = smov 85  }
  0x15   : > { %s851_s24 = smov 84   ;;  %s852_s25 = smov 80  }
  0x16   : > { %s853_s26 = smov 79   ;;  %p225_p5 = scmp.lt.s32.totalorder %s888_s17, 3 }
  0x18   : > { %248 = vrot.lane.b32.xlu0 %v905_v3, %s831_s28  ;;  %446 = vrot.lane.b32.xlu1 %v899_v1, %s832_s29  ;;  %s1079_s17 = smov (!%p225_p5, %s888_s17), 3 }
  0x1c   : > { %448 = vrot.lane.b32.xlu0 %v905_v3, %s832_s29  ;;  %455 = vrot.lane.b32.xlu1 %v899_v1, %s833_s30 }
  0x20   : > { %457 = vrot.lane.b32.xlu0 %v905_v3, %s833_s30  ;;  %444 = vrot.lane.b32.xlu1 %v901_v2, %s832_s29 }
  0x24   : > { %453 = vrot.lane.b32.xlu0 %v901_v2, %s833_s30  ;;  %464 = vrot.lane.b32.xlu1 %v899_v1, %s834_s5 }
  0x28   : > { %466 = vrot.lane.b32.xlu0 %v905_v3, %s834_s5  ;;  %473 = vrot.lane.b32.xlu1 %v899_v1, %s835_s6 }
  0x2c   : > { %475 = vrot.lane.b32.xlu0 %v905_v3, %s835_s6  ;;  %462 = vrot.lane.b32.xlu1 %v901_v2, %s834_s5  ;;  %s771_s5 = sshll.u32 %s1079_s17, 2 }
  0x30   : > { %471 = vrot.lane.b32.xlu0 %v901_v2, %s835_s6  ;;  %482 = vrot.lane.b32.xlu1 %v899_v1, %s836_s7 }
  0x34   : > { %484 = vrot.lane.b32.xlu0 %v905_v3, %s836_s7  ;;  %491 = vrot.lane.b32.xlu1 %v899_v1, %s837_s8 }
  0x38   : > { %493 = vrot.lane.b32.xlu0 %v905_v3, %s837_s8  ;;  %480 = vrot.lane.b32.xlu1 %v901_v2, %s836_s7 }
  0x3c   : > { %489 = vrot.lane.b32.xlu0 %v901_v2, %s837_s8  ;;  %318 = vrot.lane.b32.xlu1 %v899_v1, %s838_s9  ;;  %s228_s8 = scalar_lea.vmem %s1075_s4, %s771_s5 }
  0x40   : > { %320 = vrot.lane.b32.xlu0 %v905_v3, %s838_s9  ;;  %500 = vrot.lane.b32.xlu1 %v899_v1, %s839_s10 }
  0x44   : > { %502 = vrot.lane.b32.xlu0 %v905_v3, %s839_s10  ;;  %316 = vrot.lane.b32.xlu1 %v901_v2, %s838_s9 }
  0x48   : > { %498 = vrot.lane.b32.xlu0 %v901_v2, %s839_s10  ;;  %325 = vrot.lane.b32.xlu1 %v901_v2, %s840_s11 }
  0x4c   : > { %327 = vrot.lane.b32.xlu0 %v899_v1, %s840_s11  ;;  %329 = vrot.lane.b32.xlu1 %v905_v3, %s840_s11 }
  0x50   : > { %255 = vrot.lane.b32.xlu0 %v899_v1, %s841_s12  ;;  %257 = vrot.lane.b32.xlu1 %v905_v3, %s841_s12 }
  0x54   : > { %264 = vrot.lane.b32.xlu0 %v899_v1, %s842_s13  ;;  %266 = vrot.lane.b32.xlu1 %v905_v3, %s842_s13 }
  0x58   : > { %253 = vrot.lane.b32.xlu0 %v901_v2, %s841_s12  ;;  %262 = vrot.lane.b32.xlu1 %v901_v2, %s842_s13 }
  0x5c   : > { %273 = vrot.lane.b32.xlu0 %v899_v1, %s843_s14  ;;  %275 = vrot.lane.b32.xlu1 %v905_v3, %s843_s14 }
  0x60   : > { %282 = vrot.lane.b32.xlu0 %v899_v1, %s844_s16  ;;  %284 = vrot.lane.b32.xlu1 %v905_v3, %s844_s16 }
  0x64   : > { %271 = vrot.lane.b32.xlu0 %v901_v2, %s843_s14  ;;  %280 = vrot.lane.b32.xlu1 %v901_v2, %s844_s16 }
  0x68   : > { %291 = vrot.lane.b32.xlu0 %v899_v1, %s845_s18  ;;  %293 = vrot.lane.b32.xlu1 %v905_v3, %s845_s18 }
  0x6c   : > { %300 = vrot.lane.b32.xlu0 %v899_v1, %s846_s19  ;;  %302 = vrot.lane.b32.xlu1 %v905_v3, %s846_s19 }
  0x70   : > { %289 = vrot.lane.b32.xlu0 %v901_v2, %s845_s18  ;;  %298 = vrot.lane.b32.xlu1 %v901_v2, %s846_s19 }
  0x74   : > { %309 = vrot.lane.b32.xlu0 %v899_v1, %s847_s20  ;;  %311 = vrot.lane.b32.xlu1 %v905_v3, %s847_s20 }
  0x78   : > { %307 = vrot.lane.b32.xlu0 %v901_v2, %s847_s20  ;;  %336 = vrot.lane.b32.xlu1 %v899_v1, %s848_s21 }
  0x7c   : > { %338 = vrot.lane.b32.xlu0 %v905_v3, %s848_s21  ;;  %334 = vrot.lane.b32.xlu1 %v901_v2, %s848_s21 }
  0x80   : > { %345 = vrot.lane.b32.xlu0 %v899_v1, %s849_s22  ;;  %347 = vrot.lane.b32.xlu1 %v905_v3, %s849_s22 }
  0x84   : > { %354 = vrot.lane.b32.xlu0 %v899_v1, %s850_s23  ;;  %356 = vrot.lane.b32.xlu1 %v905_v3, %s850_s23 }
  0x86   : > { %v247_v4 = vpop.permute.xlu0 %246  ;;  %v245_v5 = vpop.permute.xlu1 %244 }
  0x87   : > { %v251_v6 = vsel %vm250_vm0, %v245_v5, %v247_v4  ;;  %v854_v5 = vmov 0  }
  0x88   : > { %343 = vrot.lane.b32.xlu0 %v901_v2, %s849_s22  ;;  %352 = vrot.lane.b32.xlu1 %v901_v2, %s850_s23  ;;  %v382_v11 = vsel %vm379_vm1, %v901_v2, %v251_v6 }
  0x89   : > { %817 = vset.pattern.permute.xlu0 %v854_v5 }
  0x8a   : > { %v249_v7 = vpop.permute.xlu0 %248  ;;  %v447_v8 = vpop.permute.xlu1 %446 }
  0x8b   : > { %v252_v9 = vsel %vm250_vm0, %v247_v4, %v249_v7  ;;  %v509_v18 = vsel %vm379_vm1, %v905_v3, %v249_v7  ;;  %vm295_vm0 = vcmask 949248  }
  0x8c   : > { %363 = vrot.lane.b32.xlu0 %v899_v1, %s851_s24  ;;  %365 = vrot.lane.b32.xlu1 %v905_v3, %s851_s24  ;;  %v386_v10 = vsel %vm379_vm1, %v899_v1, %v252_v9 }
  0x8d   : > { %641 = vmatprep.subr.bf16.mxu0 %v386_v10 }
  0x8e   : > { %v449_v12 = vpop.permute.xlu0 %448  ;;  %642 = vmatpush1.bf16.msra.mxu0 %v382_v11  ;;  %v456_v13 = vpop.permute.xlu1 %455 }
  0x8f   : > { %v452_v20 = vsel %vm450_vm3, %v447_v8, %v449_v12 }
  0x90   : > { %372 = vrot.lane.b32.xlu0 %v899_v1, %s852_s25  ;;  %374 = vrot.lane.b32.xlu1 %v905_v3, %s852_s25 }
  0x92   : > { %v458_v14 = vpop.permute.xlu0 %457  ;;  %v445_v15 = vpop.permute.xlu1 %444 }
  0x93   : > { %v461_v19 = vsel %vm459_vm2, %v456_v13, %v458_v14  ;;  %v451_v25 = vsel %vm450_vm3, %v445_v15, %v447_v8  ;;  %v518_v28 = vsel %vm379_vm1, %v449_v12, %v458_v14  ;;  %vm313_vm3 = vcmask 932864  }
  0x94   : > { %361 = vrot.lane.b32.xlu0 %v901_v2, %s851_s24  ;;  %370 = vrot.lane.b32.xlu1 %v901_v2, %s852_s25  ;;  %v515_v23 = vsel %vm379_vm1, %v452_v20, %v461_v19 }
  0x96   : > { %v454_v16 = vpop.permute.xlu0 %453  ;;  %v465_v17 = vpop.permute.xlu1 %464 }
  0x97   : > { %v460_v24 = vsel %vm459_vm2, %v454_v16, %v456_v13  ;;  %vm304_vm2 = vcmask 941056  }
  0x98   : > { %561 = vrot.lane.b32.xlu0 %v386_v10, %s853_s26  ;;  %563 = vrot.lane.b32.xlu1 %v509_v18, %s853_s26  ;;  %v512_v29 = vsel %vm379_vm1, %v451_v25, %v460_v24  ;;  %v619_v10 = vld [vmem:[%s1074_s3] sm:$0xff] }
  0x9a   : > { %v467_v21 = vpop.permute.xlu0 %466  ;;  %v474_v22 = vpop.permute.xlu1 %473 }
  0x9b   : > { %v470_v31 = vsel %vm468_vm5, %v465_v17, %v467_v21 }
  0x9c   : > { %559 = vrot.lane.b32.xlu0 %v382_v11, %s853_s26  ;;  %567 = vrot.lane.b32.xlu1 %v515_v23, %s853_s26 }
  0x9e   : > { %v476_v26 = vpop.permute.xlu0 %475  ;;  %v463_v27 = vpop.permute.xlu1 %462 }
  0x9f   : > { %v479_v30 = vsel %vm477_vm4, %v474_v22, %v476_v26  ;;  %v527_v34 = vsel %vm379_vm1, %v467_v21, %v476_v26  ;;  %v469_v37 = vsel %vm468_vm5, %v463_v27, %v465_v17  ;;  %vm349_vm5 = vcmask 703488  }
  0xa0   : > { %569 = vrot.lane.b32.xlu0 %v518_v28, %s853_s26  ;;  %565 = vrot.lane.b32.xlu1 %v512_v29, %s853_s26  ;;  %v524_v35 = vsel %vm379_vm1, %v470_v31, %v479_v30 }
  0xa2   : > { %v472_v32 = vpop.permute.xlu0 %471  ;;  %v483_v33 = vpop.permute.xlu1 %482 }
  0xa3   : > { %v478_v36 = vsel %vm477_vm4, %v472_v32, %v474_v22  ;;  %vm340_vm4 = vcmask 736256  }
  0xa4   : > { %575 = vrot.lane.b32.xlu1 %v527_v34, %s853_s26  ;;  %573 = vrot.lane.b32.xlu0 %v524_v35, %s853_s26  ;;  %v521_v40 = vsel %vm379_vm1, %v469_v37, %v478_v36 }
  0xa6   : > { %v485_v38 = vpop.permute.xlu0 %484  ;;  %v492_v39 = vpop.permute.xlu1 %491 }
  0xa7   : > { %v488_v43 = vsel %vm486_vm6, %v483_v33, %v485_v38 }
  0xa8   : > { %571 = vrot.lane.b32.xlu0 %v521_v40, %s853_s26 }
  0xaa   : > { %v494_v41 = vpop.permute.xlu0 %493  ;;  %v481_v42 = vpop.permute.xlu1 %480 }
  0xab   : > { %v497_v44 = vsel %vm495_vm7, %v492_v39, %v494_v41  ;;  %v536_v45 = vsel %vm379_vm1, %v485_v38, %v494_v41  ;;  %v487_v49 = vsel %vm486_vm6, %v481_v42, %v483_v33  ;;  %vm358_vm6 = vcmask 695296  }
  0xac   : > { %581 = vrot.lane.b32.xlu0 %v536_v45, %s853_s26  ;;  %v533_v46 = vsel %vm379_vm1, %v488_v43, %v497_v44 }
  0xad   : > { %579 = vrot.lane.b32.xlu1 %v533_v46, %s853_s26 }
  0xae   : > { %v490_v47 = vpop.permute.xlu0 %489  ;;  %v319_v48 = vpop.permute.xlu1 %318 }
  0xaf   : > { %v496_v50 = vsel %vm495_vm7, %v490_v47, %v492_v39  ;;  %vm367_vm7 = vcmask 687104  }
  0xb0   : > { %v530_v51 = vsel %vm379_vm1, %v487_v49, %v496_v50 }
  0xb1   : > { %577 = vrot.lane.b32.xlu1 %v530_v51, %s853_s26 }
  0xb2   : > { %v321_v52 = vpop.permute.xlu0 %320  ;;  %v501_v53 = vpop.permute.xlu1 %500 }
  0xb3   : > { %v998_v56 = vsel %vm322_vm8, %v319_v48, %v321_v52 }
  0xb6   : > { %v503_v54 = vpop.permute.xlu0 %502  ;;  %v317_v55 = vpop.permute.xlu1 %316 }
  0xb7   : > { %v506_v57 = vsel %vm504_vm9, %v501_v53, %v503_v54  ;;  %v543_v58 = vsel %vm379_vm1, %v503_v54, %v321_v52  ;;  %v1012_v0 = vsel %vm322_vm8, %v317_v55, %v319_v48  ;;  %vm376_vm8 = vcmask 654336  }
  0xb8   : > { %587 = vrot.lane.b32.xlu1 %v543_v58, %s853_s26  ;;  %v540_v59 = vsel %vm379_vm1, %v506_v57, %v998_v56 }
  0xb9   : > { %585 = vrot.lane.b32.xlu0 %v540_v59, %s853_s26 }
  0xba   : > { %v499_v62 = vpop.permute.xlu0 %498  ;;  %v326_v63 = vpop.permute.xlu1 %325 }
  0xbb   : > { %v505_v1 = vsel %vm504_vm9, %v499_v62, %v501_v53  ;;  %vm595_vm9 = vcmask 646144  }
  0xbc   : > { %v538_v2 = vsel %vm379_vm1, %v505_v1, %v1012_v0 }
  0xbd   : > { %583 = vrot.lane.b32.xlu0 %v538_v2, %s853_s26 }
  0xbe   : > { %v328_v3 = vpop.permute.xlu0 %327  ;;  %v330_v4 = vpop.permute.xlu1 %329 }
  0xbf   : > { %v1017_v6 = vsel %vm331_vm11, %v326_v63, %v328_v3  ;;  %v1019_v7 = vsel %vm331_vm11, %v328_v3, %v330_v4 }
  0xc0   : > { %589 = vrot.lane.b32.xlu1 %v1017_v6, %s853_s26 }
  0xc1   : > { %591 = vrot.lane.b32.xlu0 %v1019_v7, %s853_s26 }
  0xc2   : > { %v256_v8 = vpop.permute.xlu0 %255  ;;  %v258_v9 = vpop.permute.xlu1 %257 }
  0xc3   : > { %v261_v11 = vsel %vm259_vm12, %v256_v8, %v258_v9 }
  0xc4   : > { %593 = vrot.lane.b32.xlu1 %v330_v4, %s853_s26 }
  0xc5   : > { %622 = vperm.xlu0 %817, %v619_v10  }
  0xc6   : > { %v265_v12 = vpop.permute.xlu0 %264  ;;  %v267_v13 = vpop.permute.xlu1 %266 }
  0xc7   : > { %v270_v14 = vsel %vm268_vm13, %v265_v12, %v267_v13 }
  0xc8   : > { %v394_v15 = vsel %vm379_vm1, %v261_v11, %v270_v14 }
  0xc9   : > { %643 = vmatprep.subr.bf16.mxu0 %v394_v15 }
  0xca   : > { %v254_v16 = vpop.permute.xlu0 %253  ;;  %v263_v17 = vpop.permute.xlu1 %262 }
  0xcb   : > { %v260_v18 = vsel %vm259_vm12, %v254_v16, %v256_v8  ;;  %v269_v19 = vsel %vm268_vm13, %v263_v17, %v265_v12 }
  0xcc   : > { %v390_v20 = vsel %vm379_vm1, %v260_v18, %v269_v19 }
  0xcd   : > { %644 = vmatpush1.bf16.msra.mxu0 %v390_v20 }
  0xce   : > { %v274_v21 = vpop.permute.xlu0 %273  ;;  %v276_v22 = vpop.permute.xlu1 %275 }
  0xcf   : > { %v279_v23 = vsel %vm277_vm14, %v274_v21, %v276_v22 }
  0xd2   : > { %v283_v24 = vpop.permute.xlu0 %282  ;;  %v285_v25 = vpop.permute.xlu1 %284 }
  0xd3   : > { %v288_v26 = vsel %vm286_vm15, %v283_v24, %v285_v25 }
  0xd4   : > { %v402_v27 = vsel %vm379_vm1, %v279_v23, %v288_v26 }
  0xd5   : > { %645 = vmatprep.subr.bf16.mxu0 %v402_v27 }
  0xd6   : > { %v272_v28 = vpop.permute.xlu0 %271  ;;  %v281_v29 = vpop.permute.xlu1 %280 }
  0xd7   : > { %v278_v30 = vsel %vm277_vm14, %v272_v28, %v274_v21  ;;  %v287_v31 = vsel %vm286_vm15, %v281_v29, %v283_v24 }
  0xd8   : > { %v398_v32 = vsel %vm379_vm1, %v278_v30, %v287_v31 }
  0xd9   : > { %646 = vmatpush1.bf16.msra.mxu0 %v398_v32 }
  0xda   : > { %v292_v33 = vpop.permute.xlu0 %291  ;;  %v294_v34 = vpop.permute.xlu1 %293 }
  0xdb   : > { %v297_v35 = vsel %vm295_vm0, %v292_v33, %v294_v34 }
  0xde   : > { %v301_v36 = vpop.permute.xlu0 %300  ;;  %v303_v37 = vpop.permute.xlu1 %302 }
  0xdf   : > { %v306_v38 = vsel %vm304_vm2, %v301_v36, %v303_v37 }
  0xe0   : > { %v410_v39 = vsel %vm379_vm1, %v297_v35, %v306_v38 }
  0xe1   : > { %647 = vmatprep.subr.bf16.mxu0 %v410_v39 }
  0xe2   : > { %v290_v40 = vpop.permute.xlu0 %289  ;;  %v299_v41 = vpop.permute.xlu1 %298 }
  0xe3   : > { %v296_v42 = vsel %vm295_vm0, %v290_v40, %v292_v33  ;;  %v305_v43 = vsel %vm304_vm2, %v299_v41, %v301_v36 }
  0xe4   : > { %v406_v44 = vsel %vm379_vm1, %v296_v42, %v305_v43 }
  0xe5   : > { %648 = vmatpush1.bf16.msra.mxu0 %v406_v44 }
  0xe6   : > { %v310_v45 = vpop.permute.xlu0 %309  ;;  %v312_v46 = vpop.permute.xlu1 %311 }
  0xe7   : > { %v315_v47 = vsel %vm313_vm3, %v310_v45, %v312_v46 }
  0xe8   : > { %v418_v48 = vsel %vm379_vm1, %v315_v47, %v998_v56 }
  0xe9   : > { %649 = vmatprep.subr.bf16.mxu0 %v418_v48 }
  0xea   : > { %v308_v49 = vpop.permute.xlu0 %307  ;;  %v337_v50 = vpop.permute.xlu1 %336 }
  0xeb   : > { %v314_v51 = vsel %vm313_vm3, %v308_v49, %v310_v45 }
  0xec   : > { %v414_v52 = vsel %vm379_vm1, %v314_v51, %v1012_v0  ;;  %v775_v51 = vcombine.low %v1007_v60, %v1007_v60 }
  0xed   : > { %650 = vmatpush1.bf16.msra.mxu0 %v414_v52 }
  0xee   : > { %v339_v53 = vpop.permute.xlu0 %338  ;;  %v335_v54 = vpop.permute.xlu1 %334 }
  0xef   : > { %v342_v55 = vsel %vm340_vm4, %v337_v50, %v339_v53  ;;  %v341_v57 = vsel %vm340_vm4, %v335_v54, %v337_v50 }
  0xf0   : > { %v426_v58 = vsel %vm379_vm1, %v1019_v7, %v342_v55  ;;  %v422_v59 = vsel %vm379_vm1, %v1017_v6, %v341_v57 }
  0xf1   : > { %651 = vmatprep.subr.bf16.mxu0 %v426_v58 }
  0xf2   : > { %v346_v56 = vpop.permute.xlu0 %345  ;;  %652 = vmatpush1.bf16.msra.mxu0 %v422_v59  ;;  %v348_v61 = vpop.permute.xlu1 %347 }
  0xf3   : > { %v351_v62 = vsel %vm349_vm5, %v346_v56, %v348_v61 }
  0xf6   : > { %v355_v63 = vpop.permute.xlu0 %354  ;;  %v357_v0 = vpop.permute.xlu1 %356 }
  0xf7   : > { %v360_v1 = vsel %vm358_vm6, %v355_v63, %v357_v0 }
  0xf8   : > { %v434_v2 = vsel %vm379_vm1, %v351_v62, %v360_v1 }
  0xf9   : > { %653 = vmatprep.subr.bf16.mxu0 %v434_v2 }
  0xfa   : > { %v344_v3 = vpop.permute.xlu0 %343  ;;  %v353_v4 = vpop.permute.xlu1 %352 }
  0xfb   : > { %v350_v5 = vsel %vm349_vm5, %v344_v3, %v346_v56  ;;  %v359_v7 = vsel %vm358_vm6, %v353_v4, %v355_v63 }
  0xfc   : > { %v430_v8 = vsel %vm379_vm1, %v350_v5, %v359_v7 }
  0xfd   : > { %654 = vmatpush1.bf16.msra.mxu0 %v430_v8 }
  0xfe   : > { %v364_v6 = vpop.permute.xlu0 %363  ;;  %v366_v9 = vpop.permute.xlu1 %365 }
  0xff   : > { %v369_v10 = vsel %vm367_vm7, %v364_v6, %v366_v9 }
 0x102   : > { %v373_v11 = vpop.permute.xlu0 %372  ;;  %v375_v12 = vpop.permute.xlu1 %374 }
 0x103   : > { %v378_v13 = vsel %vm376_vm8, %v373_v11, %v375_v12 }
 0x104   : > { %v442_v14 = vsel %vm379_vm1, %v369_v10, %v378_v13 }
 0x105   : > { %655 = vmatprep.subr.bf16.mxu0 %v442_v14 }
 0x106   : > { %v362_v15 = vpop.permute.xlu0 %361  ;;  %v371_v16 = vpop.permute.xlu1 %370 }
 0x107   : > { %v368_v17 = vsel %vm367_vm7, %v362_v15, %v364_v6  ;;  %v377_v18 = vsel %vm376_vm8, %v371_v16, %v373_v11 }
 0x108   : > { %v438_v19 = vsel %vm379_vm1, %v368_v17, %v377_v18 }
 0x109   : > { %656 = vmatpush1.bf16.msra.mxu0 %v438_v19 }
 0x10a   : > { %v562_v20 = vpop.permute.xlu0 %561  ;;  %v564_v21 = vpop.permute.xlu1 %563 }
 0x10b   : > { %v597_v22 = vsel %vm595_vm9, %v562_v20, %v564_v21 }
 0x10c   : > { %657 = vmatprep.subr.bf16.mxu0 %v597_v22 }
 0x10e   : > { %v560_v23 = vpop.permute.xlu0 %559  ;;  %v568_v24 = vpop.permute.xlu1 %567 }
 0x10f   : > { %v596_v25 = vsel %vm595_vm9, %v560_v23, %v562_v20 }
 0x110   : > { %658 = vmatpush1.bf16.msra.mxu0 %v596_v25 }
 0x112   : > { %v570_v26 = vpop.permute.xlu0 %569  ;;  %v566_v27 = vpop.permute.xlu1 %565 }
 0x113   : > { %v599_v28 = vsel %vm595_vm9, %v568_v24, %v570_v26  ;;  %v598_v29 = vsel %vm595_vm9, %v566_v27, %v568_v24 }
 0x114   : > { %659 = vmatprep.subr.bf16.mxu0 %v599_v28 }
 0x115   : > { %660 = vmatpush1.bf16.msra.mxu0 %v598_v29 }
 0x116   : > { %v574_v30 = vpop.permute.xlu0 %573  ;;  %v576_v31 = vpop.permute.xlu1 %575 }
 0x117   : > { %v601_v32 = vsel %vm595_vm9, %v574_v30, %v576_v31 }
 0x118   : > { %661 = vmatprep.subr.bf16.mxu0 %v601_v32 }
 0x11a   : > { %v572_v33 = vpop.permute.xlu0 %571 }
 0x11b   : > { %v600_v34 = vsel %vm595_vm9, %v572_v33, %v574_v30 }
 0x11c   : > { %662 = vmatpush1.bf16.msra.mxu0 %v600_v34 }
 0x11e   : > { %v582_v35 = vpop.permute.xlu0 %581 }
 0x11f   : > { %v580_v36 = vpop.permute.xlu1 %579 }
 0x120   : > { %v603_v37 = vsel %vm595_vm9, %v580_v36, %v582_v35 }
 0x121   : > { %663 = vmatprep.subr.bf16.mxu0 %v603_v37 }
 0x123   : > { %v578_v38 = vpop.permute.xlu1 %577 }
 0x124   : > { %v602_v39 = vsel %vm595_vm9, %v578_v38, %v580_v36 }
 0x125   : > { %664 = vmatpush1.bf16.msra.mxu0 %v602_v39 }
 0x12a   : > { %v588_v40 = vpop.permute.xlu1 %587 }
 0x12b   : > { %v586_v41 = vpop.permute.xlu0 %585 }
 0x12c   : > { %v605_v42 = vsel %vm595_vm9, %v586_v41, %v588_v40 }
 0x12d   : > { %665 = vmatprep.subr.bf16.mxu0 %v605_v42 }
 0x12f   : > { %v584_v43 = vpop.permute.xlu0 %583 }
 0x130   : > { %v604_v44 = vsel %vm595_vm9, %v584_v43, %v586_v41 }
 0x131   : > { %666 = vmatpush1.bf16.msra.mxu0 %v604_v44 }
 0x132   : > { %v590_v45 = vpop.permute.xlu1 %589 }
 0x133   : > { %v592_v46 = vpop.permute.xlu0 %591 }
 0x134   : > { %v606_v47 = vsel %vm595_vm9, %v590_v45, %v592_v46 }
 0x135   : > { %v636_v50 = vsel %vm379_vm1, %v606_v47, 0 }
 0x136   : > { %v594_v48 = vpop.permute.xlu1 %593 }
 0x137   : > { %v607_v49 = vsel %vm595_vm9, %v592_v46, %v594_v48 }
 0x138   : > { %777 = vmatprep.subr.msk.bf16.mxu0 %vm379_vm1, %v607_v49 }
 0x139   : > { %668 = vmatpush1.bf16.msra.mxu0 %v636_v50 }
 0x13c   : > { %674 = vmatmul.mubr.bf16.vlgmr.msra.gmra.mrb[0].mxu0 %v775_v51 }
 0x144   : > { %v623_v52 = vpop.permute.xlu0 %622 }
 0x20f   : > { %v675_v53 = vpop.f32.mrb[0].mxu0 }
 0x210   : > { %v676_v54 = vadd.f32 %v675_v53, %v623_v52  ;;  %v677_v55 = vpop.f32.mrb[1].mxu0 }
 0x211   : > { %v678_v57 = vadd.f32 %v677_v55, %v623_v52  ;;  %v679_v58 = vpop.f32.mrb[2].mxu0 }
 0x212   : > { %v682_v59 = vmax.f32 %v676_v54, 0.0  ;;  %v680_v56 = vpop.f32.mrb[3].mxu0 }
 0x213   : > { %v683_v61 = vmax.f32 %v678_v57, 0.0 }
 0x215   : > { %v784_v62 = vpack.c.bf16 %v683_v61, %v682_v59 }
 0x217   : > { %692 = vst [vmem:[%s228_s8] sm:$0xff] %v784_v62 }
 0x218 PF: > { %s14_s15 = sadd.s32 1, %s829_s15  }
 0x219   : > { %p11_p6 = scmp.ge.s32.totalorder %s14_s15, 4  }
 0x21b   :  { %13 = sbr.rel (!%p11_p6) target bundleno = 1 (0x1), region = 69 }

// kernel: global_net_forward.22
= control target key start
LH: loop header
LB: loop body
LE: loop exit
PB: predicated region body
PF: predicated region fallthrough
CT: control target
= control target key end

     0   :  { %s738_s12 = smov 0   ;;  %s740_s13 = smov 0   ;;  %s888_s0 = inlined_call_operand.vmem [shape: bf16[16,216], index: 0, kind: input, shape index: {}]   ;;  %s889_s1 = inlined_call_operand.vmem [shape: bf16[216,256], index: 1, kind: input, shape index: {}]   ;;  %s890_s2 = inlined_call_operand.vmem [shape: f32[16,1], index: 2, kind: input, shape index: {}]   ;;  %s891_s3 = inlined_call_operand.vmem [shape: bf16[16,256], index: 3, kind: output, shape index: {}]  }
   0x1   :  { %s742_s14 = smov 0  }
   0x2 LB: > { %s611_s15 = sadd.s32 4294967295, %s715_s14   ;;  %s755_s16 = sadd.s32 1, %s715_s14   ;;  %s715_s14 = sphi %s742_s14, %s895_s14   ;;  %s711_s13 = sphi %s740_s13, %s894_s13   ;;  %s707_s12 = sphi %s738_s12, %s893_s12  }
   0x3   : > { %s38_s17 = ssub.s32 %s715_s14, %s755_s16  ;;  %s41_s18 = sadd.s32 1, %s711_s13 }
   0x4   : > { %p39_p0 = scmp.eq.s32.totalorder %s38_s17, 0  ;;  %p48_p1 = scmp.ne.s32.totalorder %s711_s13, %s707_s12 }
   0x5   : > { %p49_p2 = scmp.eq.s32.totalorder %s715_s14, 0  ;;  %p99_p3 = scmp.eq.s32.totalorder %s611_s15, 1 }
   0x6   : > { %s766_s19 = scalar_select %p39_p0, %s711_s13, %s41_s18  }
   0x7   : > { %p50_p4 = por %p49_p2, %p48_p1  ;;  %p768_p5 = por %p99_p3, %p48_p1 }
   0x8   : > { %p614_p6 = scmp.ge.s32.totalorder %s715_s14, 2 }
   0xa   : > { %127 = sbr.rel (%p614_p6) target bundleno = 39 (0x27), region = 24 }
  0x11   : > { %130 = sbr.rel (!%p50_p4) target bundleno = 39 (0x27), region = 28  ;;  %s132_s21 = sand.u32 (%p50_p4), 1, %s711_s13  }
  0x12   : > { %s615_s22 = sshll.u32 (%p50_p4), %s715_s14, 2  ;;  %s648_s23 = smul.u32 (%p50_p4), 108, %s132_s21 }
  0x13   : > { %s778_s26 = scalar_lea.vmem (%p50_p4), %s889_s1, %s615_s22 }
  0x14   : > { %v152_v0 = vld [vmem:[%s778_s26] sm:$0xf] (%p50_p4)  ;;  %v154_v1 = vld [vmem:[%s778_s26 + $0x8] sm:$0xf] (%p50_p4)  ;;  %v156_v2 = vld [vmem:[%s778_s26 + $0x10] sm:$0xf] (%p50_p4) }
  0x15   : > { %v158_v3 = vld [vmem:[%s778_s26 + $0x18] sm:$0xf] (%p50_p4)  ;;  %v160_v4 = vld [vmem:[%s778_s26 + $0x20] sm:$0xf] (%p50_p4)  ;;  %s785_s27 = scalar_lea.vmem (%p50_p4), [#allocation2], %s648_s23 }
  0x16   : > { %153 = vst [vmem:[%s785_s27] sm:$0xf] (%p50_p4), %v152_v0  ;;  %155 = vst [vmem:[%s785_s27 + $0x4] sm:$0xf] (%p50_p4), %v154_v1  ;;  %v162_v5 = vld [vmem:[%s778_s26 + $0x28] sm:$0xf] (%p50_p4) }
  0x17   : > { %157 = vst [vmem:[%s785_s27 + $0x8] sm:$0xf] (%p50_p4), %v156_v2  ;;  %159 = vst [vmem:[%s785_s27 + $0xc] sm:$0xf] (%p50_p4), %v158_v3  ;;  %v164_v6 = vld [vmem:[%s778_s26 + $0x30] sm:$0xf] (%p50_p4) }
  0x18   : > { %161 = vst [vmem:[%s785_s27 + $0x10] sm:$0xf] %v160_v4  ;;  %v166_v7 = vld [vmem:[%s778_s26 + $0x38] sm:$0xf]  ;;  %163 = vst [vmem:[%s785_s27 + $0x14] sm:$0xf] %v162_v5 }
  0x19   : > { %165 = vst [vmem:[%s785_s27 + $0x18] sm:$0xf] %v164_v6  ;;  %167 = vst [vmem:[%s785_s27 + $0x1c] sm:$0xf] %v166_v7  ;;  %v168_v8 = vld [vmem:[%s778_s26 + $0x40] sm:$0xf] }
  0x1a   : > { %v170_v9 = vld [vmem:[%s778_s26 + $0x48] sm:$0xf]  ;;  %v172_v10 = vld [vmem:[%s778_s26 + $0x50] sm:$0xf]  ;;  %169 = vst [vmem:[%s785_s27 + $0x20] sm:$0xf] %v168_v8 }
  0x1b   : > { %171 = vst [vmem:[%s785_s27 + $0x24] sm:$0xf] %v170_v9  ;;  %173 = vst [vmem:[%s785_s27 + $0x28] sm:$0xf] %v172_v10  ;;  %v174_v11 = vld [vmem:[%s778_s26 + $0x58] sm:$0xf] }
  0x1c   : > { %v176_v12 = vld [vmem:[%s778_s26 + $0x60] sm:$0xf]  ;;  %v178_v13 = vld [vmem:[%s778_s26 + $0x68] sm:$0xf]  ;;  %175 = vst [vmem:[%s785_s27 + $0x2c] sm:$0xf] %v174_v11 }
  0x1d   : > { %177 = vst [vmem:[%s785_s27 + $0x30] sm:$0xf] %v176_v12  ;;  %179 = vst [vmem:[%s785_s27 + $0x34] sm:$0xf] %v178_v13  ;;  %v180_v14 = vld [vmem:[%s778_s26 + $0x70] sm:$0xf] }
  0x1e   : > { %v182_v15 = vld [vmem:[%s778_s26 + $0x78] sm:$0xf]  ;;  %v184_v16 = vld [vmem:[%s778_s26 + $0x80] sm:$0xf]  ;;  %181 = vst [vmem:[%s785_s27 + $0x38] sm:$0xf] %v180_v14 }
  0x1f   : > { %183 = vst [vmem:[%s785_s27 + $0x3c] sm:$0xf] %v182_v15  ;;  %185 = vst [vmem:[%s785_s27 + $0x40] sm:$0xf] %v184_v16  ;;  %v186_v17 = vld [vmem:[%s778_s26 + $0x88] sm:$0xf] }
  0x20   : > { %v188_v18 = vld [vmem:[%s778_s26 + $0x90] sm:$0xf]  ;;  %v190_v19 = vld [vmem:[%s778_s26 + $0x98] sm:$0xf]  ;;  %187 = vst [vmem:[%s785_s27 + $0x44] sm:$0xf] %v186_v17 }
  0x21   : > { %189 = vst [vmem:[%s785_s27 + $0x48] sm:$0xf] %v188_v18  ;;  %191 = vst [vmem:[%s785_s27 + $0x4c] sm:$0xf] %v190_v19  ;;  %v192_v20 = vld [vmem:[%s778_s26 + $0xa0] sm:$0xf] }
  0x22   : > { %v194_v21 = vld [vmem:[%s778_s26 + $0xa8] sm:$0xf]  ;;  %v196_v22 = vld [vmem:[%s778_s26 + $0xb0] sm:$0xf]  ;;  %193 = vst [vmem:[%s785_s27 + $0x50] sm:$0xf] %v192_v20 }
  0x23   : > { %195 = vst [vmem:[%s785_s27 + $0x54] sm:$0xf] %v194_v21  ;;  %197 = vst [vmem:[%s785_s27 + $0x58] sm:$0xf] %v196_v22  ;;  %v198_v23 = vld [vmem:[%s778_s26 + $0xb8] sm:$0xf] }
  0x24   : > { %v200_v24 = vld [vmem:[%s778_s26 + $0xc0] sm:$0xf]  ;;  %v202_v25 = vld [vmem:[%s778_s26 + $0xc8] sm:$0xf]  ;;  %199 = vst [vmem:[%s785_s27 + $0x5c] sm:$0xf] %v198_v23 }
  0x25   : > { %201 = vst [vmem:[%s785_s27 + $0x60] sm:$0xf] %v200_v24  ;;  %203 = vst [vmem:[%s785_s27 + $0x64] sm:$0xf] %v202_v25  ;;  %v204_v26 = vld [vmem:[%s778_s26 + $0xd0] sm:$0xf] }
  0x26   : > { %205 = vst [vmem:[%s785_s27 + $0x68] sm:$0xf] %v204_v26 }
  0x27 PF: > { %p616_p7 = scmp.ge.s32.totalorder %s715_s14, 1  ;;  %p281_p8 = scmp.lt.s32.totalorder %s715_s14, 3 }
  0x29   : > { %p282_p9 = pnand %p616_p7, %p281_p8 }
  0x2a   : > { %s288_s28 = sand.u32 (!%p282_p9), 1, %s707_s12   ;;  %vm442_vm0 = vcmask (!%p282_p9), 719872   ;;  %v717_v27 = vmov (!%p282_p9), 0   ;;  %v692_v28 = vld [vmem:[%s888_s0 + $0x4] ss:$8 sps:$4 sm:$0xff] (!%p282_p9)   ;;  %vm446_vm1 = vcmask (!%p282_p9), 1043456  }
  0x2b   : > { %285 = sbr.rel (%p282_p9) target bundleno = 332 (0x14c), region = 69  ;;  %450 = vmatprep.subr.bf16.mxu0 (!%p282_p9), %v717_v27  ;;  %675 = vset.pattern.permute.xlu0 (!%p282_p9), %v717_v27  ;;  %v340_v29 = vld [vmem:[%s890_s2] sm:$0xff] (!%p282_p9)  ;;  %v341_v30 = vld [vmem:[%s890_s2 + $0x8] sm:$0xff] (!%p282_p9)  ;;  %s617_s17 = sshll.u32 (!%p282_p9), %s288_s28, 3 }
  0x2c   : > { %s649_s29 = smul.u32 (!%p282_p9), 108, %s288_s28  ;;  %344 = vperm.xlu0 (!%p282_p9), %675, %v340_v29   ;;  %634 = vmatprep.mubr.msk.bf16.mxu0 (!%p282_p9), %vm442_vm0, %v692_v28  ;;  %v690_v46 = vld [vmem:[%s888_s0] ss:$8 sps:$4 sm:$0xff] (!%p282_p9)   ;;  %s309_s18 = scalar_lea.vmem (!%p282_p9), [#allocation3], %s617_s17 }
  0x2e   : > { %s850_s9 = scalar_lea.vmem (!%p282_p9), [#allocation2], %s649_s29 }
  0x2f   : > { %v676_v31 = vld [vmem:[%s850_s9] sm:$0xff] (!%p282_p9)   ;;  %v677_v32 = vld [vmem:[%s850_s9 + $0x8] sm:$0xff] (!%p282_p9)   ;;  %v678_v33 = vld [vmem:[%s850_s9 + $0x10] sm:$0xff] (!%p282_p9)  }
  0x30   : > { %451 = vmatpush1.bf16.msra.mxu0 (!%p282_p9), %v676_v31  ;;  %349 = vperm.xlu0 (!%p282_p9), %675, %v341_v30   ;;  %v679_v34 = vld [vmem:[%s850_s9 + $0x18] sm:$0xff] (!%p282_p9)   ;;  %v680_v35 = vld [vmem:[%s850_s9 + $0x20] sm:$0xff] (!%p282_p9)   ;;  %v681_v36 = vld [vmem:[%s850_s9 + $0x28] sm:$0xff] (!%p282_p9)  }
  0x31   : > { %452 = vmatprep.subr.bf16.mxu0 (!%p282_p9), %v717_v27  ;;  %v682_v37 = vld [vmem:[%s850_s9 + $0x30] sm:$0xff] (!%p282_p9)   ;;  %v683_v38 = vld [vmem:[%s850_s9 + $0x38] sm:$0xff] (!%p282_p9)   ;;  %v684_v39 = vld [vmem:[%s850_s9 + $0x40] sm:$0xff] (!%p282_p9)  }
  0x32   : > { %v685_v40 = vld [vmem:[%s850_s9 + $0x48] sm:$0xff]   ;;  %v686_v41 = vld [vmem:[%s850_s9 + $0x50] sm:$0xff]   ;;  %v687_v42 = vld [vmem:[%s850_s9 + $0x58] sm:$0xff]   ;;  %s638_s21 = sshll.u32 (%p768_p5), %s611_s15, 2 }
  0x33   : > { %v688_v43 = vld [vmem:[%s850_s9 + $0x60] sm:$0xff]   ;;  %v689_v44 = vld [vmem:[%s850_s9 + $0x68] ss:$0 sps:$4 sm:$0xff]   ;;  %s511_s12 = scalar_lea.vmem (%p768_p5), %s891_s3, %s638_s21 }
  0x34   : > { %453 = vmatpush1.bf16.msra.mxu0 %v677_v32  ;;  %v448_v45 = vsel %vm446_vm1, %v689_v44, 0 }
  0x35   : > { %454 = vmatprep.subr.bf16.mxu0 %v717_v27 }
  0x38   : > { %455 = vmatpush1.bf16.msra.mxu0 %v678_v33 }
  0x39   : > { %456 = vmatprep.subr.bf16.mxu0 %v717_v27 }
  0x3c   : > { %457 = vmatpush1.bf16.msra.mxu0 %v679_v34 }
  0x3d   : > { %458 = vmatprep.subr.bf16.mxu0 %v717_v27 }
  0x40   : > { %459 = vmatpush1.bf16.msra.mxu0 %v680_v35 }
  0x41   : > { %460 = vmatprep.subr.bf16.mxu0 %v717_v27 }
  0x44   : > { %461 = vmatpush1.bf16.msra.mxu0 %v681_v36 }
  0x45   : > { %462 = vmatprep.subr.bf16.mxu0 %v717_v27 }
  0x48   : > { %463 = vmatpush1.bf16.msra.mxu0 %v682_v37 }
  0x49   : > { %464 = vmatprep.subr.bf16.mxu0 %v717_v27 }
  0x4c   : > { %465 = vmatpush1.bf16.msra.mxu0 %v683_v38 }
  0x4d   : > { %466 = vmatprep.subr.bf16.mxu0 %v717_v27 }
  0x50   : > { %467 = vmatpush1.bf16.msra.mxu0 %v684_v39 }
  0x51   : > { %468 = vmatprep.subr.bf16.mxu0 %v717_v27 }
  0x54   : > { %469 = vmatpush1.bf16.msra.mxu0 %v685_v40 }
  0x55   : > { %470 = vmatprep.subr.bf16.mxu0 %v717_v27 }
  0x58   : > { %471 = vmatpush1.bf16.msra.mxu0 %v686_v41 }
  0x59   : > { %472 = vmatprep.subr.bf16.mxu0 %v717_v27 }
  0x5c   : > { %473 = vmatpush1.bf16.msra.mxu0 %v687_v42 }
  0x5d   : > { %474 = vmatprep.subr.bf16.mxu0 %v717_v27 }
  0x60   : > { %475 = vmatpush1.bf16.msra.mxu0 %v688_v43 }
  0x61   : > { %476 = vmatprep.subr.bf16.mxu0 %v717_v27 }
  0x64   : > { %477 = vmatpush1.bf16.msra.mxu0 %v448_v45 }
  0x67   : > { %483 = vmatmul.mubr.bf16.vlgmr.msra.gmra.mrb[0].mxu0 %v690_v46 }
  0xab   : > { %v345_v47 = vpop.permute.xlu0 %344 }
  0xaf   : > { %v350_v51 = vpop.permute.xlu0 %349 }
 0x13a   : > { %v484_v48 = vpop.f32.mrb[0].mxu0 }
 0x13b   : > { %v485_v49 = vadd.f32 %v484_v48, %v345_v47  ;;  %v486_v50 = vpop.f32.mrb[1].mxu0 }
 0x13c   : > { %v487_v52 = vpop.f32.mrb[2].mxu0 }
 0x13d   : > { %v488_v53 = vadd.f32 %v487_v52, %v350_v51  ;;  %v489_v54 = vpop.f32.mrb[3].mxu0  ;;  %v491_v55 = vmax.f32 %v485_v49, 0.0  ;;  %509 = sbr.rel (!%p768_p5) target bundleno = 332 (0x14c), region = 77 }
 0x13f   : > { %v492_v56 = vmax.f32 %v488_v53, 0.0 }
 0x141   : > { %v646_v57 = vpack.c.bf16 %v492_v56, %v491_v55 }
 0x143   : > { %647 = vst [vmem:[%s309_s18] sm:$0xff] %v646_v57  }
 0x14a   : > { %v527_v58 = vld [vmem:[%s309_s18] sm:$0xf]  ;;  %v529_v59 = vld [vmem:[%s309_s18 + $0x4] sm:$0xf] }
 0x14b   : > { %528 = vst [vmem:[%s511_s12] sm:$0xf] %v527_v58  ;;  %530 = vst [vmem:[%s511_s12 + $0x8] sm:$0xf] %v529_v59 }
 0x14c PF: > { %p10_p10 = scmp.ge.s32.totalorder %s755_s16, 4   ;;  %s893_s12 = smov %s711_s13 }
 0x14d   : > { %s894_s13 = smov %s766_s19  ;;  %s895_s14 = smov %s755_s16 }
 0x14e   :  { %12 = sbr.rel (!%p10_p10) target bundleno = 2 (0x2), region = 149 }

// kernel: global_net_forward.23
= control target key start
LH: loop header
LB: loop body
LE: loop exit
PB: predicated region body
PF: predicated region fallthrough
CT: control target
= control target key end

     0   :  { %s973_s15 = smov 0   ;;  %s975_s16 = smov 0   ;;  %s1173_s0 = inlined_call_operand.vmem [shape: bf16[16,384], index: 0, kind: input, shape index: {}, may-alias: {0,1}]   ;;  %s1174_s1 = inlined_call_operand.vmem [shape: bf16[16,384], index: 1, kind: input, shape index: {}, may-alias: {0,1}]   ;;  %s1175_s2 = inlined_call_operand.vmem [shape: bf16[16,432], index: 2, kind: input, shape index: {}]   ;;  %s1176_s3 = inlined_call_operand.vmem [shape: f32[16,1], index: 3, kind: input, shape index: {}]   ;;  %s1177_s4 = inlined_call_operand.vmem [shape: f32[16,256], index: 4, kind: output, shape index: {}]  }
   0x1   :  { %s977_s17 = smov 0   ;;  %s979_s18 = smov 0  }
   0x2   :  { %s981_s19 = smov 0  }
   0x3 LB: > { %s767_s20 = sadd.s32 4294967295, %s924_s19   ;;  %s1000_s21 = sadd.s32 1, %s924_s19   ;;  %s924_s19 = sphi %s981_s19, %s1184_s19   ;;  %s920_s18 = sphi %s979_s18, %s1183_s18   ;;  %s916_s17 = sphi %s977_s17, %s1182_s17   ;;  %s912_s16 = sphi %s975_s16, %s1181_s16   ;;  %s908_s15 = sphi %s973_s15, %s1180_s15  }
   0x4   : > { %s18_s22 = ssub.s32 %s924_s19, %s1000_s21  ;;  %s21_s23 = sadd.s32 1, %s920_s18 }
   0x5   : > { %p19_p0 = scmp.eq.s32.totalorder %s18_s22, 0  ;;  %p28_p1 = scmp.ne.s32.totalorder %s920_s18, %s916_s17 }
   0x6   : > { %p29_p2 = scmp.eq.s32.totalorder %s924_s19, 0  ;;  %s45_s24 = sadd.s32 1, %s1000_s21 }
   0x7   : > { %s1010_s25 = scalar_select %p19_p0, %s920_s18, %s21_s23  }
   0x8   : > { %p30_p3 = por %p29_p2, %p28_p1  ;;  %s46_s26 = ssub.s32 %s1000_s21, %s45_s24 }
   0x9   : > { %p47_p4 = scmp.eq.s32.totalorder %s46_s26, 0  ;;  %s49_s27 = sadd.s32 1, %s912_s16 }
   0xa   : > { %p56_p5 = scmp.ne.s32.totalorder %s912_s16, %s908_s15  ;;  %p128_p6 = scmp.eq.s32.totalorder %s767_s20, 1 }
   0xb   : > { %s1019_s28 = scalar_select %p47_p4, %s912_s16, %s49_s27  }
   0xc   : > { %p1021_p7 = por %p56_p5, %p29_p2  ;;  %p1025_p8 = por %p128_p6, %p28_p1 }
   0xd   : > { %p770_p9 = scmp.ge.s32.totalorder %s924_s19, 2 }
   0xf   : > { %156 = sbr.rel (%p770_p9) target bundleno = 36 (0x24), region = 24 }
  0x16   : > { %159 = sbr.rel (!%p30_p3) target bundleno = 29 (0x1d), region = 28  ;;  %s161_s5 = sand.u32 (%p30_p3), 1, %s920_s18  }
  0x17   : > { %s772_s6 = sshll.u32 (%p30_p3), %s924_s19, 2  ;;  %s771_s7 = sshll.u32 (%p30_p3), %s161_s5, 3 }
  0x18   : > { %s165_s10 = scalar_lea.vmem (%p30_p3), %s1173_s0, %s772_s6  ;;  %s163_s11 = scalar_lea.vmem (%p30_p3), [#allocation2], %s771_s7 }
  0x19   : > { %v181_v0 = vld [vmem:[%s165_s10] sm:$0xf] (%p30_p3)  ;;  %v183_v1 = vld [vmem:[%s165_s10 + $0xc] sm:$0xf] (%p30_p3) }
  0x1a   : > { %182 = vst [vmem:[%s163_s11] sm:$0xf] (%p30_p3), %v181_v0  ;;  %184 = vst [vmem:[%s163_s11 + $0x4] sm:$0xf] (%p30_p3), %v183_v1 }
  0x1d PF: > { %211 = sbr.rel (!%p1021_p7) target bundleno = 36 (0x24), region = 69  ;;  %s213_s12 = sand.u32 (%p1021_p7), 1, %s912_s16  }
  0x1e   : > { %s774_s13 = sshll.u32 (%p1021_p7), %s924_s19, 2  ;;  %s773_s14 = sshll.u32 (%p1021_p7), %s213_s12, 3 }
  0x1f   : > { %s711_s24 = scalar_lea.vmem (%p1021_p7), %s1174_s1, %s774_s13  ;;  %s215_s26 = scalar_lea.vmem (%p1021_p7), [#allocation3], %s773_s14 }
  0x20   : > { %v775_v2 = vld [vmem:[%s711_s24 + $0x4] sm:$0xf] (%p1021_p7)  ;;  %v776_v3 = vld [vmem:[%s711_s24 + $0x10] sm:$0xf] (%p1021_p7) }
  0x21   : > { %235 = vst [vmem:[%s215_s26] sm:$0xf] (%p1021_p7), %v775_v2  ;;  %237 = vst [vmem:[%s215_s26 + $0x4] sm:$0xf] (%p1021_p7), %v776_v3 }
  0x24 PF: > { %p777_p10 = scmp.ge.s32.totalorder %s924_s19, 1  ;;  %p263_p11 = scmp.lt.s32.totalorder %s924_s19, 3 }
  0x26   : > { %p264_p12 = pnand %p777_p10, %p263_p11 }
  0x27   : > { %s270_s27 = sand.u32 (!%p264_p12), 1, %s916_s17   ;;  %s277_s5 = sand.u32 (!%p264_p12), 1, %s908_s15   ;;  %v942_v6 = vmov (!%p264_p12), 0   ;;  %vm326_vm0 = vcmask (!%p264_p12), 1039360   ;;  %vm431_vm1 = vcmask (!%p264_p12), 990208   ;;  %vm361_vm2 = vcmask (!%p264_p12), 982016  }
  0x28   : > { %267 = sbr.rel (%p264_p12) target bundleno = 543 (0x21f), region = 110  ;;  %s778_s29 = sshll.u32 (!%p264_p12), %s270_s27, 3  ;;  %604 = vmatprep.subr.bf16.mxu1 (!%p264_p12), %v942_v6  ;;  %877 = vset.pattern.permute.xlu1 (!%p264_p12), %v942_v6  ;;  %vm368_vm3 = vcmask (!%p264_p12), 973824   ;;  %vm437_vm4 = vcmask (!%p264_p12), 957440   ;;  %vm443_vm5 = vcmask (!%p264_p12), 949248   ;;  %vm449_vm6 = vcmask (!%p264_p12), 941056  }
  0x29   : > { %s272_s6 = scalar_lea.vmem (!%p264_p12), [#allocation2], %s778_s29  ;;  %s779_s7 = sshll.u32 (!%p264_p12), %s277_s5, 3  ;;  %876 = vset.pattern.permute.xlu0 (!%p264_p12), %v942_v6  ;;  %v882_v24 = vld [vmem:[%s1175_s2 + $0x4] ss:$16 sps:$4 sm:$0xff] (!%p264_p12)   ;;  %vm455_vm7 = vcmask (!%p264_p12), 924672   ;;  %vm559_vm8 = vcmask (!%p264_p12), 392192  }
  0x2a   : > { %v1048_v4 = vld [vmem:[%s272_s6] sm:$0xff] (!%p264_p12)   ;;  %s926_s8 = smov (!%p264_p12), 121   ;;  %s927_s9 = smov (!%p264_p12), 127   ;;  %595 = vmatprep.mubr.bf16.mxu0 (!%p264_p12), %v882_v24  ;;  %vm382_vm9 = vcmask (!%p264_p12), 916480   ;;  %vm389_vm10 = vcmask (!%p264_p12), 908288   ;;  %vm501_vm11 = vcmask (!%p264_p12), 842752  }
  0x2b   : > { %427 = vrot.lane.b32.xlu1 (!%p264_p12), %v1048_v4, %s926_s8  ;;  %322 = vrot.lane.b32.xlu0 (!%p264_p12), %v1048_v4, %s927_s9  ;;  %s279_s10 = scalar_lea.vmem (!%p264_p12), [#allocation3], %s779_s7  ;;  %s928_s11 = smov (!%p264_p12), 120   ;;  %v885_v31 = vld [vmem:[%s1175_s2 + $0xc] ss:$16 sps:$4 sm:$0xff] (!%p264_p12)   ;;  %vm375_vm12 = vcmask (!%p264_p12), 965632   ;;  %v528_v43 = vld [vmem:[%s1176_s3] sm:$0xff] (!%p264_p12) }
  0x2c   : > { %v879_v5 = vld [vmem:[%s279_s10] sm:$0xff] (!%p264_p12)   ;;  %s929_s12 = smov (!%p264_p12), 119   ;;  %s930_s15 = smov (!%p264_p12), 117   ;;  %787 = vmatprep.mubr.msk.bf16.mxu1 (!%p264_p12), %vm559_vm8, %v885_v31  ;;  %v529_v42 = vld [vmem:[%s1176_s3 + $0x8] sm:$0xff] (!%p264_p12)  ;;  %vm333_vm13 = vcmask (!%p264_p12), 1031168   ;;  %vm396_vm14 = vcmask (!%p264_p12), 900096  }
  0x2d   : > { %s931_s13 = smov (!%p264_p12), 116   ;;  %s932_s14 = smov (!%p264_p12), 115   ;;  %vm340_vm15 = vcmask (!%p264_p12), 1014784  }
  0x2e   : > { %s933_s22 = smov (!%p264_p12), 113   ;;  %s934_s23 = smov (!%p264_p12), 112  }
  0x2f   : > { %429 = vrot.lane.b32.xlu1 %v879_v5, %s926_s8  ;;  %324 = vrot.lane.b32.xlu0 %v879_v5, %s927_s9  ;;  %s935_s24 = smov 111   ;;  %s936_s26 = smov 103  }
  0x30   : > { %s937_s29 = smov 118   ;;  %s938_s5 = smov 126  }
  0x31   : > { %s939_s6 = smov 110   ;;  %s940_s7 = smov 124  }
  0x32   : > { %s941_s8 = smov 108   ;;  %s943_s9 = smov 123  }
  0x33   : > { %359 = vrot.lane.b32.xlu1 %v879_v5, %s928_s11  ;;  %357 = vrot.lane.b32.xlu0 %v1048_v4, %s928_s11  ;;  %s944_s10 = smov 107   ;;  %s945_s11 = smov 122  }
  0x37   : > { %366 = vrot.lane.b32.xlu1 %v879_v5, %s929_s12  ;;  %364 = vrot.lane.b32.xlu0 %v1048_v4, %s929_s12  ;;  %s946_s12 = smov 106  }
  0x3b   : > { %435 = vrot.lane.b32.xlu1 %v879_v5, %s930_s15  ;;  %433 = vrot.lane.b32.xlu0 %v1048_v4, %s930_s15  ;;  %s947_s15 = smov 104  }
  0x3f   : > { %441 = vrot.lane.b32.xlu1 %v879_v5, %s931_s13  ;;  %439 = vrot.lane.b32.xlu0 %v1048_v4, %s931_s13 }
  0x43   : > { %447 = vrot.lane.b32.xlu1 %v879_v5, %s932_s14  ;;  %445 = vrot.lane.b32.xlu0 %v1048_v4, %s932_s14 }
  0x47   : > { %453 = vrot.lane.b32.xlu1 %v879_v5, %s933_s22  ;;  %451 = vrot.lane.b32.xlu0 %v1048_v4, %s933_s22 }
  0x4b   : > { %380 = vrot.lane.b32.xlu1 %v879_v5, %s934_s23  ;;  %378 = vrot.lane.b32.xlu0 %v1048_v4, %s934_s23 }
  0x4f   : > { %387 = vrot.lane.b32.xlu1 %v879_v5, %s935_s24  ;;  %385 = vrot.lane.b32.xlu0 %v1048_v4, %s935_s24 }
  0x53   : > { %459 = vrot.lane.b32.xlu1 %v879_v5, %s936_s26  ;;  %457 = vrot.lane.b32.xlu0 %v1048_v4, %s936_s26 }
  0x57   : > { %373 = vrot.lane.b32.xlu1 %v879_v5, %s937_s29  ;;  %371 = vrot.lane.b32.xlu0 %v1048_v4, %s937_s29 }
  0x5b   : > { %331 = vrot.lane.b32.xlu1 %v879_v5, %s938_s5  ;;  %329 = vrot.lane.b32.xlu0 %v1048_v4, %s938_s5 }
  0x5f   : > { %394 = vrot.lane.b32.xlu1 %v879_v5, %s939_s6  ;;  %392 = vrot.lane.b32.xlu0 %v1048_v4, %s939_s6 }
  0x63   : > { %338 = vrot.lane.b32.xlu1 %v879_v5, %s940_s7  ;;  %336 = vrot.lane.b32.xlu0 %v1048_v4, %s940_s7 }
  0x67   : > { %401 = vrot.lane.b32.xlu1 %v879_v5, %s941_s8  ;;  %399 = vrot.lane.b32.xlu0 %v1048_v4, %s941_s8 }
  0x6b   : > { %345 = vrot.lane.b32.xlu1 %v879_v5, %s943_s9  ;;  %343 = vrot.lane.b32.xlu0 %v1048_v4, %s943_s9 }
  0x6f   : > { %408 = vrot.lane.b32.xlu1 %v879_v5, %s944_s10  ;;  %406 = vrot.lane.b32.xlu0 %v1048_v4, %s944_s10  ;;  %s780_s10 = sshll.u32 %s270_s27, 4 }
  0x73   : > { %352 = vrot.lane.b32.xlu1 %v879_v5, %s945_s11  ;;  %350 = vrot.lane.b32.xlu0 %v1048_v4, %s945_s11  ;;  %s304_s11 = scalar_lea.vmem [#allocation4], %s780_s10 }
  0x77   : > { %415 = vrot.lane.b32.xlu1 %v879_v5, %s946_s12  ;;  %413 = vrot.lane.b32.xlu0 %v1048_v4, %s946_s12  ;;  %s789_s12 = sshll.u32 (%p1025_p8), %s767_s20, 3 }
  0x7b   : > { %422 = vrot.lane.b32.xlu1 %v879_v5, %s947_s15  ;;  %420 = vrot.lane.b32.xlu0 %v1048_v4, %s947_s15  ;;  %s655_s15 = scalar_lea.vmem (%p1025_p8), %s1177_s4, %s789_s12 }
  0x9d   : > { %v428_v7 = vpop.permute.xlu1 %427  ;;  %v323_v8 = vpop.permute.xlu0 %322 }
  0xa1   : > { %v430_v9 = vpop.permute.xlu1 %429  ;;  %v325_v10 = vpop.permute.xlu0 %324 }
  0xa2   : > { %463 = vrot.lane.b32.xlu1 %v325_v10, %s936_s26  ;;  %v1077_v11 = vsel %vm326_vm0, %v323_v8, %v325_v10  ;;  %v432_v14 = vsel %vm431_vm1, %v428_v7, %v430_v9  ;;  %vm403_vm0 = vcmask 883712   ;;  %vm347_vm1 = vcmask 1006592  }
  0xa3   : > { %461 = vrot.lane.b32.xlu0 %v1077_v11, %s936_s26 }
  0xa5   : > { %v360_v12 = vpop.permute.xlu1 %359  ;;  %v358_v13 = vpop.permute.xlu0 %357 }
  0xa6   : > { %467 = vrot.lane.b32.xlu1 %v430_v9, %s936_s26  ;;  %v1083_v15 = vsel %vm361_vm2, %v358_v13, %v360_v12  ;;  %vm410_vm2 = vcmask 875520  }
  0xa7   : > { %465 = vrot.lane.b32.xlu0 %v432_v14, %s936_s26 }
  0xa9   : > { %v367_v16 = vpop.permute.xlu1 %366  ;;  %v365_v17 = vpop.permute.xlu0 %364 }
  0xaa   : > { %471 = vrot.lane.b32.xlu1 %v360_v12, %s936_s26  ;;  %v1088_v18 = vsel %vm368_vm3, %v365_v17, %v367_v16  ;;  %vm354_vm3 = vcmask 998400  }
  0xab   : > { %469 = vrot.lane.b32.xlu0 %v1083_v15, %s936_s26 }
  0xad   : > { %v436_v19 = vpop.permute.xlu1 %435  ;;  %v434_v20 = vpop.permute.xlu0 %433 }
  0xae   : > { %475 = vrot.lane.b32.xlu1 %v367_v16, %s936_s26  ;;  %v438_v21 = vsel %vm437_vm4, %v434_v20, %v436_v19  ;;  %vm417_vm4 = vcmask 867328  }
  0xaf   : > { %473 = vrot.lane.b32.xlu0 %v1088_v18, %s936_s26 }
  0xb1   : > { %v442_v22 = vpop.permute.xlu1 %441  ;;  %v440_v23 = vpop.permute.xlu0 %439 }
  0xb2   : > { %479 = vrot.lane.b32.xlu1 %v436_v19, %s936_s26  ;;  %v444_v25 = vsel %vm443_vm5, %v440_v23, %v442_v22  ;;  %vm424_vm5 = vcmask 850944  }
  0xb3   : > { %477 = vrot.lane.b32.xlu0 %v438_v21, %s936_s26 }
  0xb5   : > { %v448_v26 = vpop.permute.xlu1 %447  ;;  %v446_v27 = vpop.permute.xlu0 %445 }
  0xb6   : > { %483 = vrot.lane.b32.xlu1 %v442_v22, %s936_s26  ;;  %v450_v28 = vsel %vm449_vm6, %v446_v27, %v448_v26 }
  0xb7   : > { %481 = vrot.lane.b32.xlu0 %v444_v25, %s936_s26 }
  0xb9   : > { %v454_v29 = vpop.permute.xlu1 %453  ;;  %v452_v30 = vpop.permute.xlu0 %451 }
  0xba   : > { %487 = vrot.lane.b32.xlu1 %v448_v26, %s936_s26  ;;  %v456_v32 = vsel %vm455_vm7, %v452_v30, %v454_v29 }
  0xbb   : > { %485 = vrot.lane.b32.xlu0 %v450_v28, %s936_s26 }
  0xbd   : > { %v381_v33 = vpop.permute.xlu1 %380  ;;  %v379_v34 = vpop.permute.xlu0 %378 }
  0xbe   : > { %491 = vrot.lane.b32.xlu1 %v454_v29, %s936_s26  ;;  %v383_v35 = vsel %vm382_vm9, %v379_v34, %v381_v33 }
  0xbf   : > { %489 = vrot.lane.b32.xlu0 %v456_v32, %s936_s26 }
  0xc1   : > { %v388_v36 = vpop.permute.xlu1 %387  ;;  %v386_v37 = vpop.permute.xlu0 %385 }
  0xc2   : > { %495 = vrot.lane.b32.xlu1 %v381_v33, %s936_s26  ;;  %v390_v38 = vsel %vm389_vm10, %v386_v37, %v388_v36 }
  0xc3   : > { %493 = vrot.lane.b32.xlu0 %v383_v35, %s936_s26 }
  0xc5   : > { %v460_v39 = vpop.permute.xlu1 %459  ;;  %v458_v40 = vpop.permute.xlu0 %457 }
  0xc6   : > { %499 = vrot.lane.b32.xlu1 %v388_v36, %s936_s26  ;;  %v502_v41 = vsel %vm501_vm11, %v458_v40, %v460_v39 }
  0xc7   : > { %497 = vrot.lane.b32.xlu0 %v390_v38, %s936_s26  ;;  %605 = vmatpush1.bf16.msra.mxu1 %v502_v41 }
  0xc8   : > { %606 = vmatprep.subr.bf16.mxu1 %v942_v6 }
  0xc9   : > { %v374_v44 = vpop.permute.xlu1 %373  ;;  %v372_v45 = vpop.permute.xlu0 %371 }
  0xca   : > { %v376_v46 = vsel %vm375_vm12, %v372_v45, %v374_v44  ;;  %537 = vperm.xlu1 %877, %v529_v42   ;;  %v883_v42 = vld [vmem:[%s1175_s2 + $0x8] ss:$16 sps:$4 sm:$0xff]  }
  0xcb   : > { %792 = vmatprep.subr.bf16.mxu0 %v376_v46  ;;  %532 = vperm.xlu0 %876, %v528_v43  }
  0xcc   : > { %793 = vmatpush3.bf16.msra.mxu0 %v1048_v4 }
  0xcd   : > { %v332_v47 = vpop.permute.xlu1 %331  ;;  %794 = vmatprep.subr.bf16.mxu0 %v383_v35  ;;  %v330_v48 = vpop.permute.xlu0 %329 }
  0xce   : > { %v334_v51 = vsel %vm333_vm13, %v330_v48, %v332_v47 }
  0xd0   : > { %795 = vmatpush3.bf16.msra.mxu0 %v1077_v11  ;;  %v880_v11 = vld [vmem:[%s1175_s2] ss:$16 sps:$4 sm:$0xff]  }
  0xd1   : > { %v395_v49 = vpop.permute.xlu1 %394  ;;  %796 = vmatprep.subr.bf16.mxu0 %v390_v38  ;;  %v393_v50 = vpop.permute.xlu0 %392 }
  0xd2   : > { %v397_v52 = vsel %vm396_vm14, %v393_v50, %v395_v49 }
  0xd4   : > { %797 = vmatpush3.bf16.msra.mxu0 %v334_v51 }
  0xd5   : > { %v339_v53 = vpop.permute.xlu1 %338  ;;  %v337_v54 = vpop.permute.xlu0 %336  ;;  %798 = vmatprep.subr.bf16.mxu0 %v397_v52 }
  0xd6   : > { %v341_v55 = vsel %vm340_vm15, %v337_v54, %v339_v53 }
  0xd8   : > { %799 = vmatpush3.bf16.msra.mxu0 %v341_v55 }
  0xd9   : > { %v402_v56 = vpop.permute.xlu1 %401  ;;  %v400_v57 = vpop.permute.xlu0 %399 }
  0xda   : > { %v404_v58 = vsel %vm403_vm0, %v400_v57, %v402_v56 }
  0xdb   : > { %800 = vmatprep.subr.bf16.mxu0 %v404_v58 }
  0xdd   : > { %v346_v59 = vpop.permute.xlu1 %345  ;;  %v344_v60 = vpop.permute.xlu0 %343 }
  0xde   : > { %v348_v61 = vsel %vm347_vm1, %v344_v60, %v346_v59 }
  0xdf   : > { %801 = vmatpush3.bf16.msra.mxu0 %v348_v61 }
  0xe1   : > { %v409_v62 = vpop.permute.xlu1 %408  ;;  %v407_v63 = vpop.permute.xlu0 %406 }
  0xe2   : > { %v411_v0 = vsel %vm410_vm2, %v407_v63, %v409_v62 }
  0xe3   : > { %802 = vmatprep.subr.bf16.mxu0 %v411_v0 }
  0xe5   : > { %v353_v1 = vpop.permute.xlu1 %352  ;;  %v351_v2 = vpop.permute.xlu0 %350 }
  0xe6   : > { %v355_v3 = vsel %vm354_vm3, %v351_v2, %v353_v1 }
  0xe7   : > { %803 = vmatpush3.bf16.msra.mxu0 %v355_v3 }
  0xe9   : > { %v416_v4 = vpop.permute.xlu1 %415  ;;  %v414_v5 = vpop.permute.xlu0 %413 }
  0xea   : > { %v418_v7 = vsel %vm417_vm4, %v414_v5, %v416_v4 }
  0xeb   : > { %804 = vmatprep.subr.bf16.mxu0 %v418_v7 }
  0xec   : > { %805 = vmatpush3.bf16.msra.mxu0 %v1083_v15 }
  0xed   : > { %v423_v8 = vpop.permute.xlu1 %422  ;;  %v421_v9 = vpop.permute.xlu0 %420 }
  0xee   : > { %v425_v10 = vsel %vm424_vm5, %v421_v9, %v423_v8 }
  0xef   : > { %806 = vmatprep.subr.bf16.mxu0 %v425_v10 }
  0xf0   : > { %807 = vmatpush3.bf16.msra.mxu0 %v1088_v18 }
  0xf3   : > { %596 = vmatmul.mubr.bf16.vlgmr.msra.gmra.mrb[0].mxu0 %v880_v11 }
 0x114   : > { %v464_v12 = vpop.permute.xlu1 %463 }
 0x115   : > { %v462_v13 = vpop.permute.xlu0 %461 }
 0x116   : > { %v503_v14 = vsel %vm501_vm11, %v462_v13, %v464_v12 }
 0x117   : > { %607 = vmatpush1.bf16.msra.mxu1 %v503_v14 }
 0x118   : > { %v468_v16 = vpop.permute.xlu1 %467  ;;  %608 = vmatprep.subr.bf16.mxu1 %v942_v6 }
 0x119   : > { %v466_v15 = vpop.permute.xlu0 %465 }
 0x11a   : > { %v504_v17 = vsel %vm501_vm11, %v466_v15, %v468_v16 }
 0x11b   : > { %609 = vmatpush1.bf16.msra.mxu1 %v504_v17 }
 0x11c   : > { %v472_v19 = vpop.permute.xlu1 %471  ;;  %610 = vmatprep.subr.bf16.mxu1 %v942_v6 }
 0x11d   : > { %v470_v20 = vpop.permute.xlu0 %469 }
 0x11e   : > { %v505_v21 = vsel %vm501_vm11, %v470_v20, %v472_v19 }
 0x11f   : > { %611 = vmatpush1.bf16.msra.mxu1 %v505_v21 }
 0x120   : > { %v476_v18 = vpop.permute.xlu1 %475  ;;  %612 = vmatprep.subr.bf16.mxu1 %v942_v6 }
 0x121   : > { %v474_v22 = vpop.permute.xlu0 %473 }
 0x122   : > { %v506_v23 = vsel %vm501_vm11, %v474_v22, %v476_v18 }
 0x123   : > { %613 = vmatpush1.bf16.msra.mxu1 %v506_v23 }
 0x124   : > { %v480_v24 = vpop.permute.xlu1 %479  ;;  %614 = vmatprep.subr.bf16.mxu1 %v942_v6 }
 0x125   : > { %v478_v25 = vpop.permute.xlu0 %477 }
 0x126   : > { %v507_v26 = vsel %vm501_vm11, %v478_v25, %v480_v24 }
 0x127   : > { %615 = vmatpush1.bf16.msra.mxu1 %v507_v26 }
 0x128   : > { %v484_v27 = vpop.permute.xlu1 %483  ;;  %616 = vmatprep.subr.bf16.mxu1 %v942_v6 }
 0x129   : > { %v482_v28 = vpop.permute.xlu0 %481 }
 0x12a   : > { %v508_v29 = vsel %vm501_vm11, %v482_v28, %v484_v27 }
 0x12b   : > { %617 = vmatpush1.bf16.msra.mxu1 %v508_v29 }
 0x12c   : > { %v488_v30 = vpop.permute.xlu1 %487  ;;  %618 = vmatprep.subr.bf16.mxu1 %v942_v6 }
 0x12d   : > { %v486_v31 = vpop.permute.xlu0 %485 }
 0x12e   : > { %v509_v32 = vsel %vm501_vm11, %v486_v31, %v488_v30 }
 0x12f   : > { %619 = vmatpush1.bf16.msra.mxu1 %v509_v32 }
 0x130   : > { %v492_v33 = vpop.permute.xlu1 %491  ;;  %620 = vmatprep.subr.bf16.mxu1 %v942_v6 }
 0x131   : > { %v490_v34 = vpop.permute.xlu0 %489 }
 0x132   : > { %v510_v35 = vsel %vm501_vm11, %v490_v34, %v492_v33 }
 0x133   : > { %621 = vmatpush1.bf16.msra.mxu1 %v510_v35 }
 0x134   : > { %v496_v36 = vpop.permute.xlu1 %495  ;;  %622 = vmatprep.subr.bf16.mxu1 %v942_v6 }
 0x135   : > { %v494_v37 = vpop.permute.xlu0 %493 }
 0x136   : > { %v511_v38 = vsel %vm501_vm11, %v494_v37, %v496_v36 }
 0x137   : > { %623 = vmatpush1.bf16.msra.mxu1 %v511_v38 }
 0x138   : > { %v500_v39 = vpop.permute.xlu1 %499  ;;  %624 = vmatprep.subr.bf16.mxu1 %v942_v6 }
 0x139   : > { %v498_v40 = vpop.permute.xlu0 %497 }
 0x13a   : > { %v512_v41 = vsel %vm501_vm11, %v498_v40, %v500_v39 }
 0x13b   : > { %625 = vmatpush1.bf16.msra.mxu1 %v512_v41 }
 0x13e   : > { %637 = vmatmul.mubr.bf16.vlgmr.msra.gmra.mrb[0].mxu1 %v883_v42 }
 0x149   : > { %v538_v6 = vpop.permute.xlu1 %537 }
 0x14a   : > { %v533_v49 = vpop.permute.xlu0 %532 }
 0x1c6   : > { %v808_v43 = vpop.f32.mrb[0].mxu0 }
 0x1c7   : > { %v809_v44 = vpop.f32.mrb[1].mxu0 }
 0x1c8   : > { %v810_v45 = vadd.f32 %v809_v44, %v808_v43  ;;  %v811_v46 = vpop.f32.mrb[2].mxu0 }
 0x1c9   : > { %v812_v47 = vpop.f32.mrb[3].mxu0 }
 0x1ca   : > { %v813_v48 = vadd.f32 %v812_v47, %v811_v46  ;;  %v598_v50 = vadd.f32 %v810_v45, %v533_v49 }
 0x1cc   : > { %v601_v52 = vadd.f32 %v813_v48, %v538_v6 }
 0x210   : > { %653 = sbr.rel (!%p1025_p8) target bundleno = 543 (0x21f), region = 122 }
 0x211   : > { %v638_v51 = vpop.f32.mrb[0].mxu1 }
 0x212   : > { %v639_v53 = vadd.f32 %v638_v51, %v598_v50  ;;  %v640_v54 = vpop.f32.mrb[1].mxu1 }
 0x213   : > { %v641_v55 = vpop.f32.mrb[2].mxu1 }
 0x214   : > { %645 = vst [vmem:[%s304_s11] sm:$0xff] %v639_v53  ;;  %v642_v56 = vadd.f32 %v641_v55, %v601_v52  ;;  %v643_v57 = vpop.f32.mrb[3].mxu1 }
 0x216   : > { %646 = vst [vmem:[%s304_s11 + $0x8] sm:$0xff] %v642_v56 }
 0x21b   : > { %v685_v58 = vld [vmem:[%s304_s11] sm:$0xff] }
 0x21c   : > { %686 = vst [vmem:[%s655_s15] sm:$0xff] %v685_v58 }
 0x21d   : > { %v687_v59 = vld [vmem:[%s304_s11 + $0x8] sm:$0xff] }
 0x21e   : > { %688 = vst [vmem:[%s655_s15 + $0x10] sm:$0xff] %v687_v59 }
 0x21f PF: > { %p11_p13 = scmp.ge.s32.totalorder %s1000_s21, 4   ;;  %s1180_s15 = smov %s912_s16 }
 0x220   : > { %s1181_s16 = smov %s1019_s28  ;;  %s1182_s17 = smov %s920_s18 }
 0x221   : > { %s1183_s18 = smov %s1010_s25  ;;  %s1184_s19 = smov %s1000_s21 }
 0x222   :  { %13 = sbr.rel (!%p11_p13) target bundleno = 3 (0x3), region = 199 }

// kernel: global_net_forward.24
= control target key start
LH: loop header
LB: loop body
LE: loop exit
PB: predicated region body
PF: predicated region fallthrough
CT: control target
= control target key end

     0   :  { %s426_s12 = smov 0   ;;  %s428_s13 = smov 0   ;;  %s486_s0 = inlined_call_operand.vmem [shape: bf16[16,8], index: 0, kind: input, shape index: {}]   ;;  %s487_s1 = inlined_call_operand.vmem [shape: bf16[8,256], index: 1, kind: input, shape index: {}]   ;;  %s488_s2 = inlined_call_operand.vmem [shape: f32[16,1], index: 2, kind: input, shape index: {}]   ;;  %s489_s3 = inlined_call_operand.vmem [shape: f32[16,256], index: 3, kind: output, shape index: {}]  }
   0x1   :  { %s430_s14 = smov 0  }
   0x2 LB: > { %s439_s15 = sadd.s32 4294967295, %s401_s14   ;;  %s441_s16 = sadd.s32 1, %s401_s14   ;;  %s401_s14 = sphi %s430_s14, %s493_s14   ;;  %s397_s13 = sphi %s428_s13, %s492_s13   ;;  %s393_s12 = sphi %s426_s12, %s491_s12  }
   0x3   : > { %s85_s17 = ssub.s32 %s401_s14, %s441_s16  ;;  %s88_s18 = sadd.s32 1, %s397_s13 }
   0x4   : > { %p86_p0 = scmp.eq.s32.totalorder %s85_s17, 0  ;;  %p98_p1 = scmp.ne.s32.totalorder %s397_s13, %s393_s12 }
   0x5   : > { %p99_p2 = scmp.eq.s32.totalorder %s439_s15, 1  ;;  %p333_p3 = scmp.ge.s32.totalorder %s401_s14, 1 }
   0x6   : > { %s449_s19 = scalar_select %p86_p0, %s397_s13, %s88_s18  }
   0x7   : > { %p451_p4 = por %p99_p2, %p98_p1  ;;  %p136_p5 = scmp.lt.s32.totalorder %s401_s14, 3 }
   0x9   : > { %p137_p6 = pnand %p333_p3, %p136_p5 }
   0xa   : > { %p158_p7 = scmp.lt.s32.totalorder (!%p137_p6), %s439_s15, 1  ;;  %v403_v0 = vmov (!%p137_p6), 0.0   ;;  %vm404_vm0 = vmmov (!%p137_p6), 0   ;;  %v166_v1 = vld [vmem:[%s488_s2] sm:$0xff] (!%p137_p6)  ;;  %v405_v2 = vmov (!%p137_p6), 0   ;;  %vm187_vm1 = vcmask (!%p137_p6), 1043456  }
   0xb   : > { %140 = sbr.rel (%p137_p6) target bundleno = 252 (0xfc), region = 32  ;;  %344 = vmatprep.subr.bf16.mxu0 (!%p137_p6), %v403_v0  ;;  %346 = vmatprep.mubr.msk.bf16.mxu0 (!%p137_p6), %vm404_vm0, %v403_v0  ;;  %v167_v3 = vld [vmem:[%s488_s2 + $0x8] sm:$0xff] (!%p137_p6)  ;;  %v378_v6 = vld [vmem:[%s486_s0] sm:$0xff] (!%p137_p6)   ;;  %vm183_vm2 = vcmask (!%p137_p6), 64512   ;;  %s155_s5 = sand.u32 (!%p137_p6), 1, %s393_s12  }
   0xc   : > { %377 = vset.pattern.permute.xlu0 (!%p137_p6), %v405_v2  ;;  %s334_s6 = sshll.u32 (!%p137_p6), %s155_s5, 4 }
   0xd   : > { %170 = vperm.xlu0 (!%p137_p6), %377, %v166_v1   ;;  %s157_s7 = scalar_lea.vmem (!%p137_p6), [#allocation2], %s334_s6 }
  0x11   : > { %175 = vperm.xlu0 (!%p137_p6), %377, %v167_v3  }
  0x12   : > { %s159_s23 = scalar_select %p158_p7, %s439_s15, 1 }
  0x13   : > { %s339_s8 = sshll.u32 (%p451_p4), %s439_s15, 3 }
  0x14   : > { %s335_s24 = sshll.u32 %s159_s23, 2  ;;  %s242_s11 = scalar_lea.vmem (%p451_p4), %s489_s3, %s339_s8 }
  0x15   : > { %s161_s29 = scalar_lea.vmem %s487_s1, %s335_s24 }
  0x16   : > { %v165_v4 = vld [vmem:[%s161_s29] sm:$0xf] }
  0x17   : > { %v189_v5 = vsel %vm187_vm1, %v165_v4, 0 }
  0x18   : > { %345 = vmatpush3.bf16.msra.mxu0 %v189_v5 }
  0x1b   : > { %347 = vmatmul.mubr.msk.bf16.vlgmr.msra.gmra.mrb[0].mxu0 %vm183_vm2, %v378_v6 }
  0x8c   : > { %v171_v7 = vpop.permute.xlu0 %170 }
  0x90   : > { %v176_v11 = vpop.permute.xlu0 %175 }
  0xed   : > { %240 = sbr.rel (!%p451_p4) target bundleno = 252 (0xfc), region = 36 }
  0xee   : > { %v225_v8 = vpop.f32.mrb[0].mxu0 }
  0xef   : > { %v226_v9 = vadd.f32 %v225_v8, %v171_v7  ;;  %v348_v10 = vpop.f32.mrb[1].mxu0 }
  0xf0   : > { %v228_v12 = vpop.f32.mrb[2].mxu0 }
  0xf1   : > { %232 = vst [vmem:[%s157_s7] sm:$0xff] %v226_v9  ;;  %v229_v13 = vadd.f32 %v228_v12, %v176_v11  ;;  %v349_v14 = vpop.f32.mrb[3].mxu0 }
  0xf3   : > { %233 = vst [vmem:[%s157_s7 + $0x8] sm:$0xff] %v229_v13 }
  0xf8   : > { %v272_v15 = vld [vmem:[%s157_s7] sm:$0xff] }
  0xf9   : > { %273 = vst [vmem:[%s242_s11] sm:$0xff] %v272_v15 }
  0xfa   : > { %v274_v16 = vld [vmem:[%s157_s7 + $0x8] sm:$0xff] }
  0xfb   : > { %275 = vst [vmem:[%s242_s11 + $0x10] sm:$0xff] %v274_v16 }
  0xfc PF: > { %p10_p8 = scmp.ge.s32.totalorder %s441_s16, 4   ;;  %s491_s12 = smov %s397_s13 }
  0xfd   : > { %s492_s13 = smov %s449_s19  ;;  %s493_s14 = smov %s441_s16 }
  0xfe   :  { %12 = sbr.rel (!%p10_p8) target bundleno = 2 (0x2), region = 100 }

// kernel: global_net_forward.25
= control target key start
LH: loop header
LB: loop body
LE: loop exit
PB: predicated region body
PF: predicated region fallthrough
CT: control target
= control target key end

     0   :  { %s999_s15 = smov 0   ;;  %s1001_s16 = smov 0   ;;  %s1199_s0 = inlined_call_operand.vmem [shape: bf16[16,384], index: 0, kind: input, shape index: {}, may-alias: {0,1}]   ;;  %s1200_s1 = inlined_call_operand.vmem [shape: bf16[16,384], index: 1, kind: input, shape index: {}, may-alias: {0,1}]   ;;  %s1201_s2 = inlined_call_operand.vmem [shape: bf16[16,432], index: 2, kind: input, shape index: {}]   ;;  %s1202_s3 = inlined_call_operand.vmem [shape: f32[16,1], index: 3, kind: input, shape index: {}]   ;;  %s1203_s4 = inlined_call_operand.vmem [shape: bf16[16,256], index: 4, kind: output, shape index: {}]  }
   0x1   :  { %s1003_s17 = smov 0   ;;  %s1005_s18 = smov 0  }
   0x2   :  { %s1007_s19 = smov 0  }
   0x3 LB: > { %s784_s20 = sadd.s32 4294967295, %s950_s19   ;;  %s1026_s21 = sadd.s32 1, %s950_s19   ;;  %s950_s19 = sphi %s1007_s19, %s1210_s19   ;;  %s946_s18 = sphi %s1005_s18, %s1209_s18   ;;  %s942_s17 = sphi %s1003_s17, %s1208_s17   ;;  %s938_s16 = sphi %s1001_s16, %s1207_s16   ;;  %s934_s15 = sphi %s999_s15, %s1206_s15  }
   0x4   : > { %s18_s22 = ssub.s32 %s950_s19, %s1026_s21  ;;  %s21_s23 = sadd.s32 1, %s946_s18 }
   0x5   : > { %p19_p0 = scmp.eq.s32.totalorder %s18_s22, 0  ;;  %p28_p1 = scmp.ne.s32.totalorder %s946_s18, %s942_s17 }
   0x6   : > { %p29_p2 = scmp.eq.s32.totalorder %s950_s19, 0  ;;  %s45_s24 = sadd.s32 1, %s1026_s21 }
   0x7   : > { %s1036_s25 = scalar_select %p19_p0, %s946_s18, %s21_s23  }
   0x8   : > { %p30_p3 = por %p29_p2, %p28_p1  ;;  %s46_s26 = ssub.s32 %s1026_s21, %s45_s24 }
   0x9   : > { %p47_p4 = scmp.eq.s32.totalorder %s46_s26, 0  ;;  %s49_s27 = sadd.s32 1, %s938_s16 }
   0xa   : > { %p56_p5 = scmp.ne.s32.totalorder %s938_s16, %s934_s15  ;;  %p128_p6 = scmp.eq.s32.totalorder %s784_s20, 1 }
   0xb   : > { %s1045_s28 = scalar_select %p47_p4, %s938_s16, %s49_s27  }
   0xc   : > { %p1047_p7 = por %p56_p5, %p29_p2  ;;  %p1051_p8 = por %p128_p6, %p28_p1 }
   0xd   : > { %p787_p9 = scmp.ge.s32.totalorder %s950_s19, 2 }
   0xf   : > { %156 = sbr.rel (%p787_p9) target bundleno = 36 (0x24), region = 24 }
  0x16   : > { %159 = sbr.rel (!%p30_p3) target bundleno = 29 (0x1d), region = 28  ;;  %s161_s5 = sand.u32 (%p30_p3), 1, %s946_s18  }
  0x17   : > { %s789_s6 = sshll.u32 (%p30_p3), %s950_s19, 2  ;;  %s788_s7 = sshll.u32 (%p30_p3), %s161_s5, 3 }
  0x18   : > { %s165_s10 = scalar_lea.vmem (%p30_p3), %s1199_s0, %s789_s6  ;;  %s163_s11 = scalar_lea.vmem (%p30_p3), [#allocation2], %s788_s7 }
  0x19   : > { %v181_v0 = vld [vmem:[%s165_s10] sm:$0xf] (%p30_p3)  ;;  %v183_v1 = vld [vmem:[%s165_s10 + $0xc] sm:$0xf] (%p30_p3) }
  0x1a   : > { %182 = vst [vmem:[%s163_s11] sm:$0xf] (%p30_p3), %v181_v0  ;;  %184 = vst [vmem:[%s163_s11 + $0x4] sm:$0xf] (%p30_p3), %v183_v1 }
  0x1d PF: > { %211 = sbr.rel (!%p1047_p7) target bundleno = 36 (0x24), region = 69  ;;  %s213_s12 = sand.u32 (%p1047_p7), 1, %s938_s16  }
  0x1e   : > { %s791_s13 = sshll.u32 (%p1047_p7), %s950_s19, 2  ;;  %s790_s14 = sshll.u32 (%p1047_p7), %s213_s12, 3 }
  0x1f   : > { %s728_s24 = scalar_lea.vmem (%p1047_p7), %s1200_s1, %s791_s13  ;;  %s215_s26 = scalar_lea.vmem (%p1047_p7), [#allocation3], %s790_s14 }
  0x20   : > { %v792_v2 = vld [vmem:[%s728_s24 + $0x4] sm:$0xf] (%p1047_p7)  ;;  %v793_v3 = vld [vmem:[%s728_s24 + $0x10] sm:$0xf] (%p1047_p7) }
  0x21   : > { %235 = vst [vmem:[%s215_s26] sm:$0xf] (%p1047_p7), %v792_v2  ;;  %237 = vst [vmem:[%s215_s26 + $0x4] sm:$0xf] (%p1047_p7), %v793_v3 }
  0x24 PF: > { %p794_p10 = scmp.ge.s32.totalorder %s950_s19, 1  ;;  %p263_p11 = scmp.lt.s32.totalorder %s950_s19, 3 }
  0x26   : > { %p264_p12 = pnand %p794_p10, %p263_p11 }
  0x27   : > { %s270_s27 = sand.u32 (!%p264_p12), 1, %s942_s17   ;;  %s277_s5 = sand.u32 (!%p264_p12), 1, %s934_s15   ;;  %v968_v6 = vmov (!%p264_p12), 0   ;;  %vm326_vm0 = vcmask (!%p264_p12), 1039360   ;;  %vm431_vm1 = vcmask (!%p264_p12), 990208   ;;  %vm361_vm2 = vcmask (!%p264_p12), 982016  }
  0x28   : > { %267 = sbr.rel (%p264_p12) target bundleno = 547 (0x223), region = 110  ;;  %s1071_s29 = sshll.u32 (!%p264_p12), %s270_s27, 3  ;;  %604 = vmatprep.subr.bf16.mxu1 (!%p264_p12), %v968_v6  ;;  %903 = vset.pattern.permute.xlu1 (!%p264_p12), %v968_v6  ;;  %vm368_vm3 = vcmask (!%p264_p12), 973824   ;;  %vm437_vm4 = vcmask (!%p264_p12), 957440   ;;  %vm443_vm5 = vcmask (!%p264_p12), 949248   ;;  %vm449_vm6 = vcmask (!%p264_p12), 941056  }
  0x29   : > { %s272_s6 = scalar_lea.vmem (!%p264_p12), [#allocation2], %s1071_s29  ;;  %s796_s7 = sshll.u32 (!%p264_p12), %s277_s5, 3  ;;  %902 = vset.pattern.permute.xlu0 (!%p264_p12), %v968_v6  ;;  %v908_v24 = vld [vmem:[%s1201_s2 + $0x4] ss:$16 sps:$4 sm:$0xff] (!%p264_p12)   ;;  %vm455_vm7 = vcmask (!%p264_p12), 924672   ;;  %vm559_vm8 = vcmask (!%p264_p12), 392192  }
  0x2a   : > { %v1075_v4 = vld [vmem:[%s272_s6] sm:$0xff] (!%p264_p12)   ;;  %s952_s8 = smov (!%p264_p12), 121   ;;  %s953_s9 = smov (!%p264_p12), 127   ;;  %595 = vmatprep.mubr.bf16.mxu0 (!%p264_p12), %v908_v24  ;;  %vm382_vm9 = vcmask (!%p264_p12), 916480   ;;  %vm389_vm10 = vcmask (!%p264_p12), 908288   ;;  %vm501_vm11 = vcmask (!%p264_p12), 842752  }
  0x2b   : > { %427 = vrot.lane.b32.xlu1 (!%p264_p12), %v1075_v4, %s952_s8  ;;  %322 = vrot.lane.b32.xlu0 (!%p264_p12), %v1075_v4, %s953_s9  ;;  %s279_s10 = scalar_lea.vmem (!%p264_p12), [#allocation3], %s796_s7  ;;  %s954_s11 = smov (!%p264_p12), 120   ;;  %v911_v31 = vld [vmem:[%s1201_s2 + $0xc] ss:$16 sps:$4 sm:$0xff] (!%p264_p12)   ;;  %vm375_vm12 = vcmask (!%p264_p12), 965632   ;;  %v528_v43 = vld [vmem:[%s1202_s3] sm:$0xff] (!%p264_p12) }
  0x2c   : > { %v905_v5 = vld [vmem:[%s279_s10] sm:$0xff] (!%p264_p12)   ;;  %s955_s17 = smov (!%p264_p12), 119   ;;  %s956_s15 = smov (!%p264_p12), 117   ;;  %804 = vmatprep.mubr.msk.bf16.mxu1 (!%p264_p12), %vm559_vm8, %v911_v31  ;;  %v529_v42 = vld [vmem:[%s1202_s3 + $0x8] sm:$0xff] (!%p264_p12)  ;;  %vm333_vm13 = vcmask (!%p264_p12), 1031168   ;;  %vm396_vm14 = vcmask (!%p264_p12), 900096  }
  0x2d   : > { %s957_s12 = smov (!%p264_p12), 116   ;;  %s958_s13 = smov (!%p264_p12), 115   ;;  %vm340_vm15 = vcmask (!%p264_p12), 1014784  }
  0x2e   : > { %s959_s14 = smov (!%p264_p12), 113   ;;  %s960_s22 = smov (!%p264_p12), 112  }
  0x2f   : > { %429 = vrot.lane.b32.xlu1 %v905_v5, %s952_s8  ;;  %324 = vrot.lane.b32.xlu0 %v905_v5, %s953_s9  ;;  %s961_s23 = smov 111   ;;  %s962_s24 = smov 103  }
  0x30   : > { %s963_s26 = smov 118   ;;  %s964_s27 = smov 126  }
  0x31   : > { %s965_s5 = smov 110   ;;  %s966_s6 = smov 124  }
  0x32   : > { %s967_s7 = smov 108   ;;  %s969_s8 = smov 123  }
  0x33   : > { %359 = vrot.lane.b32.xlu1 %v905_v5, %s954_s11  ;;  %357 = vrot.lane.b32.xlu0 %v1075_v4, %s954_s11  ;;  %s970_s9 = smov 107   ;;  %s971_s10 = smov 122  }
  0x34   : > { %s972_s11 = smov 106  }
  0x37   : > { %366 = vrot.lane.b32.xlu1 %v905_v5, %s955_s17  ;;  %364 = vrot.lane.b32.xlu0 %v1075_v4, %s955_s17  ;;  %s973_s17 = smov 104  }
  0x3b   : > { %435 = vrot.lane.b32.xlu1 %v905_v5, %s956_s15  ;;  %433 = vrot.lane.b32.xlu0 %v1075_v4, %s956_s15 }
  0x3f   : > { %441 = vrot.lane.b32.xlu1 %v905_v5, %s957_s12  ;;  %439 = vrot.lane.b32.xlu0 %v1075_v4, %s957_s12 }
  0x43   : > { %447 = vrot.lane.b32.xlu1 %v905_v5, %s958_s13  ;;  %445 = vrot.lane.b32.xlu0 %v1075_v4, %s958_s13 }
  0x47   : > { %453 = vrot.lane.b32.xlu1 %v905_v5, %s959_s14  ;;  %451 = vrot.lane.b32.xlu0 %v1075_v4, %s959_s14 }
  0x4b   : > { %380 = vrot.lane.b32.xlu1 %v905_v5, %s960_s22  ;;  %378 = vrot.lane.b32.xlu0 %v1075_v4, %s960_s22 }
  0x4f   : > { %387 = vrot.lane.b32.xlu1 %v905_v5, %s961_s23  ;;  %385 = vrot.lane.b32.xlu0 %v1075_v4, %s961_s23 }
  0x53   : > { %459 = vrot.lane.b32.xlu1 %v905_v5, %s962_s24  ;;  %457 = vrot.lane.b32.xlu0 %v1075_v4, %s962_s24 }
  0x57   : > { %373 = vrot.lane.b32.xlu1 %v905_v5, %s963_s26  ;;  %371 = vrot.lane.b32.xlu0 %v1075_v4, %s963_s26 }
  0x5b   : > { %331 = vrot.lane.b32.xlu1 %v905_v5, %s964_s27  ;;  %329 = vrot.lane.b32.xlu0 %v1075_v4, %s964_s27 }
  0x5f   : > { %394 = vrot.lane.b32.xlu1 %v905_v5, %s965_s5  ;;  %392 = vrot.lane.b32.xlu0 %v1075_v4, %s965_s5 }
  0x63   : > { %338 = vrot.lane.b32.xlu1 %v905_v5, %s966_s6  ;;  %336 = vrot.lane.b32.xlu0 %v1075_v4, %s966_s6 }
  0x67   : > { %401 = vrot.lane.b32.xlu1 %v905_v5, %s967_s7  ;;  %399 = vrot.lane.b32.xlu0 %v1075_v4, %s967_s7 }
  0x6b   : > { %345 = vrot.lane.b32.xlu1 %v905_v5, %s969_s8  ;;  %343 = vrot.lane.b32.xlu0 %v1075_v4, %s969_s8  ;;  %s304_s8 = scalar_lea.vmem [#allocation4], %s1071_s29 }
  0x6f   : > { %408 = vrot.lane.b32.xlu1 %v905_v5, %s970_s9  ;;  %406 = vrot.lane.b32.xlu0 %v1075_v4, %s970_s9  ;;  %s808_s9 = sshll.u32 (%p1051_p8), %s784_s20, 2 }
  0x73   : > { %352 = vrot.lane.b32.xlu1 %v905_v5, %s971_s10  ;;  %350 = vrot.lane.b32.xlu0 %v1075_v4, %s971_s10 }
  0x77   : > { %415 = vrot.lane.b32.xlu1 %v905_v5, %s972_s11  ;;  %413 = vrot.lane.b32.xlu0 %v1075_v4, %s972_s11 }
  0x7b   : > { %422 = vrot.lane.b32.xlu1 %v905_v5, %s973_s17  ;;  %420 = vrot.lane.b32.xlu0 %v1075_v4, %s973_s17  ;;  %s665_s17 = scalar_lea.vmem (%p1051_p8), %s1203_s4, %s808_s9 }
  0x9d   : > { %v428_v7 = vpop.permute.xlu1 %427  ;;  %v323_v8 = vpop.permute.xlu0 %322 }
  0xa1   : > { %v430_v9 = vpop.permute.xlu1 %429  ;;  %v325_v10 = vpop.permute.xlu0 %324 }
  0xa2   : > { %463 = vrot.lane.b32.xlu1 %v325_v10, %s962_s24  ;;  %v1104_v11 = vsel %vm326_vm0, %v323_v8, %v325_v10  ;;  %v432_v14 = vsel %vm431_vm1, %v428_v7, %v430_v9  ;;  %vm403_vm0 = vcmask 883712   ;;  %vm347_vm1 = vcmask 1006592  }
  0xa3   : > { %461 = vrot.lane.b32.xlu0 %v1104_v11, %s962_s24 }
  0xa5   : > { %v360_v12 = vpop.permute.xlu1 %359  ;;  %v358_v13 = vpop.permute.xlu0 %357 }
  0xa6   : > { %467 = vrot.lane.b32.xlu1 %v430_v9, %s962_s24  ;;  %v1110_v15 = vsel %vm361_vm2, %v358_v13, %v360_v12  ;;  %vm410_vm2 = vcmask 875520  }
  0xa7   : > { %465 = vrot.lane.b32.xlu0 %v432_v14, %s962_s24 }
  0xa9   : > { %v367_v16 = vpop.permute.xlu1 %366  ;;  %v365_v17 = vpop.permute.xlu0 %364 }
  0xaa   : > { %471 = vrot.lane.b32.xlu1 %v360_v12, %s962_s24  ;;  %v1115_v18 = vsel %vm368_vm3, %v365_v17, %v367_v16  ;;  %vm354_vm3 = vcmask 998400  }
  0xab   : > { %469 = vrot.lane.b32.xlu0 %v1110_v15, %s962_s24 }
  0xad   : > { %v436_v19 = vpop.permute.xlu1 %435  ;;  %v434_v20 = vpop.permute.xlu0 %433 }
  0xae   : > { %475 = vrot.lane.b32.xlu1 %v367_v16, %s962_s24  ;;  %v438_v21 = vsel %vm437_vm4, %v434_v20, %v436_v19  ;;  %vm417_vm4 = vcmask 867328  }
  0xaf   : > { %473 = vrot.lane.b32.xlu0 %v1115_v18, %s962_s24 }
  0xb1   : > { %v442_v22 = vpop.permute.xlu1 %441  ;;  %v440_v23 = vpop.permute.xlu0 %439 }
  0xb2   : > { %479 = vrot.lane.b32.xlu1 %v436_v19, %s962_s24  ;;  %v444_v25 = vsel %vm443_vm5, %v440_v23, %v442_v22  ;;  %vm424_vm5 = vcmask 850944  }
  0xb3   : > { %477 = vrot.lane.b32.xlu0 %v438_v21, %s962_s24 }
  0xb5   : > { %v448_v26 = vpop.permute.xlu1 %447  ;;  %v446_v27 = vpop.permute.xlu0 %445 }
  0xb6   : > { %483 = vrot.lane.b32.xlu1 %v442_v22, %s962_s24  ;;  %v450_v28 = vsel %vm449_vm6, %v446_v27, %v448_v26 }
  0xb7   : > { %481 = vrot.lane.b32.xlu0 %v444_v25, %s962_s24 }
  0xb9   : > { %v454_v29 = vpop.permute.xlu1 %453  ;;  %v452_v30 = vpop.permute.xlu0 %451 }
  0xba   : > { %487 = vrot.lane.b32.xlu1 %v448_v26, %s962_s24  ;;  %v456_v32 = vsel %vm455_vm7, %v452_v30, %v454_v29 }
  0xbb   : > { %485 = vrot.lane.b32.xlu0 %v450_v28, %s962_s24 }
  0xbd   : > { %v381_v33 = vpop.permute.xlu1 %380  ;;  %v379_v34 = vpop.permute.xlu0 %378 }
  0xbe   : > { %491 = vrot.lane.b32.xlu1 %v454_v29, %s962_s24  ;;  %v383_v35 = vsel %vm382_vm9, %v379_v34, %v381_v33 }
  0xbf   : > { %489 = vrot.lane.b32.xlu0 %v456_v32, %s962_s24 }
  0xc1   : > { %v388_v36 = vpop.permute.xlu1 %387  ;;  %v386_v37 = vpop.permute.xlu0 %385 }
  0xc2   : > { %495 = vrot.lane.b32.xlu1 %v381_v33, %s962_s24  ;;  %v390_v38 = vsel %vm389_vm10, %v386_v37, %v388_v36 }
  0xc3   : > { %493 = vrot.lane.b32.xlu0 %v383_v35, %s962_s24 }
  0xc5   : > { %v460_v39 = vpop.permute.xlu1 %459  ;;  %v458_v40 = vpop.permute.xlu0 %457 }
  0xc6   : > { %499 = vrot.lane.b32.xlu1 %v388_v36, %s962_s24  ;;  %v502_v41 = vsel %vm501_vm11, %v458_v40, %v460_v39 }
  0xc7   : > { %497 = vrot.lane.b32.xlu0 %v390_v38, %s962_s24  ;;  %605 = vmatpush1.bf16.msra.mxu1 %v502_v41 }
  0xc8   : > { %606 = vmatprep.subr.bf16.mxu1 %v968_v6 }
  0xc9   : > { %v374_v44 = vpop.permute.xlu1 %373  ;;  %v372_v45 = vpop.permute.xlu0 %371 }
  0xca   : > { %v376_v46 = vsel %vm375_vm12, %v372_v45, %v374_v44  ;;  %537 = vperm.xlu1 %903, %v529_v42   ;;  %v909_v42 = vld [vmem:[%s1201_s2 + $0x8] ss:$16 sps:$4 sm:$0xff]  }
  0xcb   : > { %818 = vmatprep.subr.bf16.mxu0 %v376_v46  ;;  %532 = vperm.xlu0 %902, %v528_v43  }
  0xcc   : > { %819 = vmatpush3.bf16.msra.mxu0 %v1075_v4 }
  0xcd   : > { %v332_v47 = vpop.permute.xlu1 %331  ;;  %820 = vmatprep.subr.bf16.mxu0 %v383_v35  ;;  %v330_v48 = vpop.permute.xlu0 %329 }
  0xce   : > { %v334_v51 = vsel %vm333_vm13, %v330_v48, %v332_v47 }
  0xd0   : > { %821 = vmatpush3.bf16.msra.mxu0 %v1104_v11  ;;  %v906_v11 = vld [vmem:[%s1201_s2] ss:$16 sps:$4 sm:$0xff]  }
  0xd1   : > { %v395_v49 = vpop.permute.xlu1 %394  ;;  %822 = vmatprep.subr.bf16.mxu0 %v390_v38  ;;  %v393_v50 = vpop.permute.xlu0 %392 }
  0xd2   : > { %v397_v52 = vsel %vm396_vm14, %v393_v50, %v395_v49 }
  0xd4   : > { %823 = vmatpush3.bf16.msra.mxu0 %v334_v51 }
  0xd5   : > { %v339_v53 = vpop.permute.xlu1 %338  ;;  %v337_v54 = vpop.permute.xlu0 %336  ;;  %824 = vmatprep.subr.bf16.mxu0 %v397_v52 }
  0xd6   : > { %v341_v55 = vsel %vm340_vm15, %v337_v54, %v339_v53 }
  0xd8   : > { %825 = vmatpush3.bf16.msra.mxu0 %v341_v55 }
  0xd9   : > { %v402_v56 = vpop.permute.xlu1 %401  ;;  %v400_v57 = vpop.permute.xlu0 %399 }
  0xda   : > { %v404_v58 = vsel %vm403_vm0, %v400_v57, %v402_v56 }
  0xdb   : > { %826 = vmatprep.subr.bf16.mxu0 %v404_v58 }
  0xdd   : > { %v346_v59 = vpop.permute.xlu1 %345  ;;  %v344_v60 = vpop.permute.xlu0 %343 }
  0xde   : > { %v348_v61 = vsel %vm347_vm1, %v344_v60, %v346_v59 }
  0xdf   : > { %827 = vmatpush3.bf16.msra.mxu0 %v348_v61 }
  0xe1   : > { %v409_v62 = vpop.permute.xlu1 %408  ;;  %v407_v63 = vpop.permute.xlu0 %406 }
  0xe2   : > { %v411_v0 = vsel %vm410_vm2, %v407_v63, %v409_v62 }
  0xe3   : > { %828 = vmatprep.subr.bf16.mxu0 %v411_v0 }
  0xe5   : > { %v353_v1 = vpop.permute.xlu1 %352  ;;  %v351_v2 = vpop.permute.xlu0 %350 }
  0xe6   : > { %v355_v3 = vsel %vm354_vm3, %v351_v2, %v353_v1 }
  0xe7   : > { %829 = vmatpush3.bf16.msra.mxu0 %v355_v3 }
  0xe9   : > { %v416_v4 = vpop.permute.xlu1 %415  ;;  %v414_v5 = vpop.permute.xlu0 %413 }
  0xea   : > { %v418_v7 = vsel %vm417_vm4, %v414_v5, %v416_v4 }
  0xeb   : > { %830 = vmatprep.subr.bf16.mxu0 %v418_v7 }
  0xec   : > { %831 = vmatpush3.bf16.msra.mxu0 %v1110_v15 }
  0xed   : > { %v423_v8 = vpop.permute.xlu1 %422  ;;  %v421_v9 = vpop.permute.xlu0 %420 }
  0xee   : > { %v425_v10 = vsel %vm424_vm5, %v421_v9, %v423_v8 }
  0xef   : > { %832 = vmatprep.subr.bf16.mxu0 %v425_v10 }
  0xf0   : > { %833 = vmatpush3.bf16.msra.mxu0 %v1115_v18 }
  0xf3   : > { %596 = vmatmul.mubr.bf16.vlgmr.msra.gmra.mrb[0].mxu0 %v906_v11 }
 0x114   : > { %v464_v12 = vpop.permute.xlu1 %463 }
 0x115   : > { %v462_v13 = vpop.permute.xlu0 %461 }
 0x116   : > { %v503_v14 = vsel %vm501_vm11, %v462_v13, %v464_v12 }
 0x117   : > { %607 = vmatpush1.bf16.msra.mxu1 %v503_v14 }
 0x118   : > { %v468_v16 = vpop.permute.xlu1 %467  ;;  %608 = vmatprep.subr.bf16.mxu1 %v968_v6 }
 0x119   : > { %v466_v15 = vpop.permute.xlu0 %465 }
 0x11a   : > { %v504_v17 = vsel %vm501_vm11, %v466_v15, %v468_v16 }
 0x11b   : > { %609 = vmatpush1.bf16.msra.mxu1 %v504_v17 }
 0x11c   : > { %v472_v19 = vpop.permute.xlu1 %471  ;;  %610 = vmatprep.subr.bf16.mxu1 %v968_v6 }
 0x11d   : > { %v470_v20 = vpop.permute.xlu0 %469 }
 0x11e   : > { %v505_v21 = vsel %vm501_vm11, %v470_v20, %v472_v19 }
 0x11f   : > { %611 = vmatpush1.bf16.msra.mxu1 %v505_v21 }
 0x120   : > { %v476_v18 = vpop.permute.xlu1 %475  ;;  %612 = vmatprep.subr.bf16.mxu1 %v968_v6 }
 0x121   : > { %v474_v22 = vpop.permute.xlu0 %473 }
 0x122   : > { %v506_v23 = vsel %vm501_vm11, %v474_v22, %v476_v18 }
 0x123   : > { %613 = vmatpush1.bf16.msra.mxu1 %v506_v23 }
 0x124   : > { %v480_v24 = vpop.permute.xlu1 %479  ;;  %614 = vmatprep.subr.bf16.mxu1 %v968_v6 }
 0x125   : > { %v478_v25 = vpop.permute.xlu0 %477 }
 0x126   : > { %v507_v26 = vsel %vm501_vm11, %v478_v25, %v480_v24 }
 0x127   : > { %615 = vmatpush1.bf16.msra.mxu1 %v507_v26 }
 0x128   : > { %v484_v27 = vpop.permute.xlu1 %483  ;;  %616 = vmatprep.subr.bf16.mxu1 %v968_v6 }
 0x129   : > { %v482_v28 = vpop.permute.xlu0 %481 }
 0x12a   : > { %v508_v29 = vsel %vm501_vm11, %v482_v28, %v484_v27 }
 0x12b   : > { %617 = vmatpush1.bf16.msra.mxu1 %v508_v29 }
 0x12c   : > { %v488_v30 = vpop.permute.xlu1 %487  ;;  %618 = vmatprep.subr.bf16.mxu1 %v968_v6 }
 0x12d   : > { %v486_v31 = vpop.permute.xlu0 %485 }
 0x12e   : > { %v509_v32 = vsel %vm501_vm11, %v486_v31, %v488_v30 }
 0x12f   : > { %619 = vmatpush1.bf16.msra.mxu1 %v509_v32 }
 0x130   : > { %v492_v33 = vpop.permute.xlu1 %491  ;;  %620 = vmatprep.subr.bf16.mxu1 %v968_v6 }
 0x131   : > { %v490_v34 = vpop.permute.xlu0 %489 }
 0x132   : > { %v510_v35 = vsel %vm501_vm11, %v490_v34, %v492_v33 }
 0x133   : > { %621 = vmatpush1.bf16.msra.mxu1 %v510_v35 }
 0x134   : > { %v496_v36 = vpop.permute.xlu1 %495  ;;  %622 = vmatprep.subr.bf16.mxu1 %v968_v6 }
 0x135   : > { %v494_v37 = vpop.permute.xlu0 %493 }
 0x136   : > { %v511_v38 = vsel %vm501_vm11, %v494_v37, %v496_v36 }
 0x137   : > { %623 = vmatpush1.bf16.msra.mxu1 %v511_v38 }
 0x138   : > { %v500_v39 = vpop.permute.xlu1 %499  ;;  %624 = vmatprep.subr.bf16.mxu1 %v968_v6 }
 0x139   : > { %v498_v40 = vpop.permute.xlu0 %497 }
 0x13a   : > { %v512_v41 = vsel %vm501_vm11, %v498_v40, %v500_v39 }
 0x13b   : > { %625 = vmatpush1.bf16.msra.mxu1 %v512_v41 }
 0x13e   : > { %637 = vmatmul.mubr.bf16.vlgmr.msra.gmra.mrb[0].mxu1 %v909_v42 }
 0x149   : > { %v538_v51 = vpop.permute.xlu1 %537 }
 0x14a   : > { %v533_v49 = vpop.permute.xlu0 %532 }
 0x1c6   : > { %v834_v43 = vpop.f32.mrb[0].mxu0 }
 0x1c7   : > { %v835_v44 = vpop.f32.mrb[1].mxu0 }
 0x1c8   : > { %v836_v45 = vadd.f32 %v835_v44, %v834_v43  ;;  %v837_v46 = vpop.f32.mrb[2].mxu0 }
 0x1c9   : > { %v838_v47 = vpop.f32.mrb[3].mxu0 }
 0x1ca   : > { %v839_v48 = vadd.f32 %v838_v47, %v837_v46  ;;  %v598_v50 = vadd.f32 %v836_v45, %v533_v49 }
 0x1cc   : > { %v601_v52 = vadd.f32 %v839_v48, %v538_v51 }
 0x211   : > { %v638_v6 = vpop.f32.mrb[0].mxu1 }
 0x212   : > { %v639_v53 = vadd.f32 %v638_v6, %v598_v50  ;;  %v640_v54 = vpop.f32.mrb[1].mxu1 }
 0x213   : > { %v641_v55 = vpop.f32.mrb[2].mxu1 }
 0x214   : > { %v642_v56 = vadd.f32 %v641_v55, %v601_v52  ;;  %v643_v57 = vpop.f32.mrb[3].mxu1  ;;  %v645_v58 = vmax.f32 %v639_v53, 0.0  ;;  %663 = sbr.rel (!%p1051_p8) target bundleno = 547 (0x223), region = 122 }
 0x216   : > { %v646_v59 = vmax.f32 %v642_v56, 0.0 }
 0x218   : > { %v816_v60 = vpack.c.bf16 %v646_v59, %v645_v58 }
 0x21a   : > { %817 = vst [vmem:[%s304_s8] sm:$0xff] %v816_v60  }
 0x221   : > { %v681_v61 = vld [vmem:[%s304_s8] sm:$0xf]  ;;  %v683_v62 = vld [vmem:[%s304_s8 + $0x4] sm:$0xf] }
 0x222   : > { %682 = vst [vmem:[%s665_s17] sm:$0xf] %v681_v61  ;;  %684 = vst [vmem:[%s665_s17 + $0x8] sm:$0xf] %v683_v62 }
 0x223 PF: > { %p11_p13 = scmp.ge.s32.totalorder %s1026_s21, 4   ;;  %s1206_s15 = smov %s938_s16 }
 0x224   : > { %s1207_s16 = smov %s1045_s28  ;;  %s1208_s17 = smov %s946_s18 }
 0x225   : > { %s1209_s18 = smov %s1036_s25  ;;  %s1210_s19 = smov %s1026_s21 }
 0x226   :  { %13 = sbr.rel (!%p11_p13) target bundleno = 3 (0x3), region = 202 }

// kernel: global_net_forward.27
= control target key start
LH: loop header
LB: loop body
LE: loop exit
PB: predicated region body
PF: predicated region fallthrough
CT: control target
= control target key end

     0   :  { %s1507_s15 = smov 0   ;;  %s1509_s16 = smov 0   ;;  %s2324_s0 = inlined_call_operand.vmem [shape: bf16[24,768], index: 0, kind: input, shape index: {}, may-alias: {0,1}]   ;;  %s2325_s1 = inlined_call_operand.vmem [shape: bf16[24,768], index: 1, kind: input, shape index: {}, may-alias: {0,1}]   ;;  %s2326_s2 = inlined_call_operand.vmem [shape: bf16[8,648], index: 2, kind: input, shape index: {}]   ;;  %s2327_s3 = inlined_call_operand.vmem [shape: f32[8,1], index: 3, kind: input, shape index: {}]   ;;  %s2328_s4 = inlined_call_operand.vmem [shape: bf16[8,512], index: 4, kind: output, shape index: {}]  }
   0x1   :  { %s1511_s17 = smov 0   ;;  %s1513_s18 = smov 0  }
   0x2   :  { %s1515_s19 = smov 0  }
   0x3 LB: > { %s1295_s20 = sadd.s32 4294967295, %s1456_s19   ;;  %s1534_s21 = sadd.s32 1, %s1456_s19   ;;  %s1456_s19 = sphi %s1515_s19, %s2334_s19   ;;  %s1452_s18 = sphi %s1513_s18, %s2333_s18   ;;  %s1448_s17 = sphi %s1511_s17, %s2332_s17   ;;  %s1444_s16 = sphi %s1509_s16, %s2331_s16   ;;  %s1440_s15 = sphi %s1507_s15, %s2330_s15  }
   0x4   : > { %s18_s22 = ssub.s32 %s1456_s19, %s1534_s21  ;;  %s21_s23 = sadd.s32 1, %s1452_s18 }
   0x5   : > { %p19_p0 = scmp.eq.s32.totalorder %s18_s22, 0  ;;  %p28_p1 = scmp.ne.s32.totalorder %s1452_s18, %s1448_s17 }
   0x6   : > { %p29_p2 = scmp.eq.s32.totalorder %s1456_s19, 0  ;;  %s45_s24 = sadd.s32 1, %s1534_s21 }
   0x7   : > { %s1544_s25 = scalar_select %p19_p0, %s1452_s18, %s21_s23  }
   0x8   : > { %p30_p3 = por %p29_p2, %p28_p1  ;;  %s46_s26 = ssub.s32 %s1534_s21, %s45_s24 }
   0x9   : > { %p47_p4 = scmp.eq.s32.totalorder %s46_s26, 0  ;;  %s49_s27 = sadd.s32 1, %s1444_s16 }
   0xa   : > { %p56_p5 = scmp.ne.s32.totalorder %s1444_s16, %s1440_s15  ;;  %p1298_p7 = scmp.ge.s32.totalorder %s1456_s19, 2 }
   0xb   : > { %s1551_s28 = scalar_select %p47_p4, %s1444_s16, %s49_s27  }
   0xc   : > { %p1553_p6 = por %p56_p5, %p29_p2  ;;  %156 = sbr.rel (%p1298_p7) target bundleno = 33 (0x21), region = 24 }
  0x13   : > { %159 = sbr.rel (!%p30_p3) target bundleno = 26 (0x1a), region = 28  ;;  %s161_s30 = sand.u32 (%p30_p3), 1, %s1452_s18  }
  0x14   : > { %s1325_s5 = sshll.u32 (%p30_p3), %s1456_s19, 3  ;;  %s1335_s6 = smul.u32 (%p30_p3), 24, %s161_s30 }
  0x15   : > { %s166_s9 = scalar_lea.vmem (%p30_p3), %s2324_s0, %s1325_s5 }
  0x16   : > { %v198_v0 = vld [vmem:[%s166_s9] sm:$0xff] (%p30_p3)  ;;  %v200_v1 = vld [vmem:[%s166_s9 + $0x18] sm:$0xff] (%p30_p3)  ;;  %v202_v2 = vld [vmem:[%s166_s9 + $0x30] sm:$0xff] (%p30_p3)  ;;  %s163_s10 = scalar_lea.vmem (%p30_p3), [#allocation2], %s1335_s6 }
  0x17   : > { %199 = vst [vmem:[%s163_s10] sm:$0xff] (%p30_p3), %v198_v0  ;;  %201 = vst [vmem:[%s163_s10 + $0x8] sm:$0xff] (%p30_p3), %v200_v1 }
  0x18   : > { %203 = vst [vmem:[%s163_s10 + $0x10] sm:$0xff] (%p30_p3), %v202_v2 }
  0x1a PF: > { %209 = sbr.rel (!%p1553_p6) target bundleno = 33 (0x21), region = 66  ;;  %s211_s11 = sand.u32 (%p1553_p6), 1, %s1444_s16  }
  0x1b   : > { %s1301_s12 = sshll.u32 (%p1553_p6), %s1456_s19, 3  ;;  %s1336_s13 = smul.u32 (%p1553_p6), 24, %s211_s11 }
  0x1c   : > { %s1243_s23 = scalar_lea.vmem (%p1553_p6), %s2325_s1, %s1301_s12 }
  0x1d   : > { %v1302_v3 = vld [vmem:[%s1243_s23 + $0x8] sm:$0xff] (%p1553_p6)  ;;  %v1303_v4 = vld [vmem:[%s1243_s23 + $0x20] sm:$0xff] (%p1553_p6)  ;;  %v1304_v5 = vld [vmem:[%s1243_s23 + $0x38] sm:$0xff] (%p1553_p6)  ;;  %s213_s24 = scalar_lea.vmem (%p1553_p6), [#allocation3], %s1336_s13 }
  0x1e   : > { %250 = vst [vmem:[%s213_s24] sm:$0xff] (%p1553_p6), %v1302_v3  ;;  %252 = vst [vmem:[%s213_s24 + $0x8] sm:$0xff] (%p1553_p6), %v1303_v4 }
  0x1f   : > { %254 = vst [vmem:[%s213_s24 + $0x10] sm:$0xff] (%p1553_p6), %v1304_v5 }
  0x21 PF: > { %p1305_p8 = scmp.ge.s32.totalorder %s1456_s19, 1  ;;  %p259_p9 = scmp.lt.s32.totalorder %s1456_s19, 3 }
  0x23   : > { %p260_p10 = pnand %p1305_p8, %p259_p9 }
  0x24   : > { %s266_s26 = sand.u32 (!%p260_p10), 1, %s1448_s17   ;;  %s273_s29 = sand.u32 (!%p260_p10), 1, %s1440_s15   ;;  %vm341_vm0 = vcmask (!%p260_p10), 1043456   ;;  %vm363_vm1 = vcmask (!%p260_p10), 1039360   ;;  %vm553_vm2 = vcmask (!%p260_p10), 736256   ;;  %vm534_vm3 = vcmask (!%p260_p10), 744448  }
  0x25   : > { %263 = sbr.rel (%p260_p10) target bundleno = 748 (0x2ec), region = 104  ;;  %s1458_s15 = smov (!%p260_p10), 127   ;;  %vm572_vm4 = vcmask (!%p260_p10), 703488   ;;  %vm713_vm5 = vcmask (!%p260_p10), 859136   ;;  %vm730_vm6 = vcmask (!%p260_p10), 850944   ;;  %vm591_vm7 = vcmask (!%p260_p10), 695296  }
  0x26   : > { %s1337_s27 = smul.u32 (!%p260_p10), 24, %s266_s26  ;;  %s1459_s17 = smov (!%p260_p10), 105   ;;  %vm747_vm8 = vcmask (!%p260_p10), 842752   ;;  %vm610_vm9 = vcmask (!%p260_p10), 687104   ;;  %vm764_vm10 = vcmask (!%p260_p10), 809984   ;;  %vm629_vm11 = vcmask (!%p260_p10), 654336  }
  0x27   : > { %s1338_s30 = smul.u32 (!%p260_p10), 24, %s273_s29  ;;  %s1460_s7 = smov (!%p260_p10), 104   ;;  %vm781_vm12 = vcmask (!%p260_p10), 801792   ;;  %vm798_vm13 = vcmask (!%p260_p10), 793600   ;;  %vm974_vm14 = vcmask (!%p260_p10), 646144   ;;  %vm382_vm15 = vcmask (!%p260_p10), 1031168  }
  0x28   : > { %s268_s5 = scalar_lea.vmem (!%p260_p10), [#allocation2], %s1337_s27  ;;  %s1461_s8 = smov (!%p260_p10), 103  }
  0x29   : > { %v1574_v6 = vld [vmem:[%s268_s5 + $0x4] ss:$8 sps:$4 sm:$0xff] (!%p260_p10)   ;;  %v1576_v7 = vld [vmem:[%s268_s5] ss:$8 sps:$4 sm:$0xff] (!%p260_p10)   ;;  %s275_s6 = scalar_lea.vmem (!%p260_p10), [#allocation3], %s1338_s30  ;;  %v314_v10 = vld [vmem:[%s268_s5 + $0x10] sm:$0xff] (!%p260_p10) }
  0x2a   : > { %v1579_v8 = vrot.slane (!%p260_p10), %v1574_v6, 4  ;;  %v1581_v9 = vld [vmem:[%s275_s6] ss:$8 sps:$4 sm:$0xff] (!%p260_p10)   ;;  %1080 = vmatprep.subr.bf16.mxu1 (!%p260_p10), %v1574_v6  ;;  %v1585_v11 = vrot.slane (!%p260_p10), %v1576_v7, 4  ;;  %v1587_v12 = vcombine.high (!%p260_p10), %v314_v10, %v314_v10  ;;  %v1595_v14 = vld [vmem:[%s275_s6 + $0x10] ss:$0 sps:$4 sm:$0xff] (!%p260_p10)   ;;  %v1602_v16 = vcombine.low (!%p260_p10), %v314_v10, %v314_v10 }
  0x2b   : > { %1081 = vmatpush1.bf16.msra.mxu1 (!%p260_p10), %v1576_v7  ;;  %v1592_v13 = vrot.slane (!%p260_p10), %v1581_v9, 4  ;;  %s1462_s9 = smov (!%p260_p10), 91   ;;  %s1463_s10 = smov (!%p260_p10), 90  }
  0x2c   : > { %353 = vrot.lane.b32.xlu0 %v1579_v8, %s1458_s15  ;;  %351 = vrot.lane.b32.xlu1 %v1585_v11, %s1458_s15  ;;  %v1600_v15 = vsel %vm341_vm0, %v1579_v8, %v1587_v12  ;;  %v1614_v18 = vsel %vm341_vm0, %v1585_v11, %v1602_v16  ;;  %s1464_s11 = smov 99   ;;  %s1465_s12 = smov 86  }
  0x2d   : > { %v1609_v17 = vsel %vm341_vm0, %v1592_v13, %v1595_v14  ;;  %s1466_s13 = smov 98   ;;  %s1467_s14 = smov 85  }
  0x2e   : > { %s1468_s22 = smov 97   ;;  %s1469_s23 = smov 84  }
  0x2f   : > { %s1470_s24 = smov 93   ;;  %s1471_s26 = smov 80  }
  0x30   : > { %355 = vrot.lane.b32.xlu0 %v1592_v13, %s1458_s15  ;;  %359 = vrot.lane.b32.xlu1 %v1600_v15, %s1458_s15  ;;  %s1472_s27 = smov 92   ;;  %s1473_s29 = smov 79  }
  0x31   : > { %s1474_s30 = smov 126   ;;  %s1475_s5 = smov 122  }
  0x32   : > { %s1476_s6 = smov 121  }
  0x34   : > { %361 = vrot.lane.b32.xlu0 %v1609_v17, %s1458_s15  ;;  %357 = vrot.lane.b32.xlu1 %v1614_v18, %s1458_s15 }
  0x38   : > { %703 = vrot.lane.b32.xlu0 %v1574_v6, %s1459_s17  ;;  %705 = vrot.lane.b32.xlu1 %v1581_v9, %s1459_s17 }
  0x3c   : > { %701 = vrot.lane.b32.xlu0 %v1576_v7, %s1459_s17  ;;  %709 = vrot.lane.b32.xlu1 %v1587_v12, %s1459_s17 }
  0x40   : > { %711 = vrot.lane.b32.xlu0 %v1595_v14, %s1459_s17  ;;  %720 = vrot.lane.b32.xlu1 %v1579_v8, %s1460_s7 }
  0x44   : > { %722 = vrot.lane.b32.xlu0 %v1592_v13, %s1460_s7  ;;  %707 = vrot.lane.b32.xlu1 %v1602_v16, %s1459_s17 }
  0x48   : > { %718 = vrot.lane.b32.xlu0 %v1585_v11, %s1460_s7  ;;  %726 = vrot.lane.b32.xlu1 %v1600_v15, %s1460_s7 }
  0x4c   : > { %728 = vrot.lane.b32.xlu0 %v1609_v17, %s1460_s7  ;;  %724 = vrot.lane.b32.xlu1 %v1614_v18, %s1460_s7  ;;  %s1477_s7 = smov 120  }
  0x50   : > { %737 = vrot.lane.b32.xlu0 %v1574_v6, %s1461_s8  ;;  %739 = vrot.lane.b32.xlu1 %v1581_v9, %s1461_s8 }
  0x54   : > { %735 = vrot.lane.b32.xlu0 %v1576_v7, %s1461_s8  ;;  %530 = vrot.lane.b32.xlu1 %v1587_v12, %s1462_s9 }
  0x58   : > { %532 = vrot.lane.b32.xlu0 %v1595_v14, %s1462_s9  ;;  %543 = vrot.lane.b32.xlu1 %v1579_v8, %s1463_s10 }
  0x5c   : > { %545 = vrot.lane.b32.xlu0 %v1592_v13, %s1463_s10  ;;  %528 = vrot.lane.b32.xlu1 %v1602_v16, %s1462_s9 }
  0x60   : > { %541 = vrot.lane.b32.xlu0 %v1585_v11, %s1463_s10  ;;  %743 = vrot.lane.b32.xlu1 %v1587_v12, %s1461_s8 }
  0x64   : > { %745 = vrot.lane.b32.xlu0 %v1595_v14, %s1461_s8  ;;  %754 = vrot.lane.b32.xlu1 %v1579_v8, %s1464_s11 }
  0x68   : > { %756 = vrot.lane.b32.xlu0 %v1592_v13, %s1464_s11  ;;  %741 = vrot.lane.b32.xlu1 %v1602_v16, %s1461_s8  ;;  %s1478_s8 = smov 116  }
  0x6c   : > { %752 = vrot.lane.b32.xlu0 %v1585_v11, %s1464_s11  ;;  %549 = vrot.lane.b32.xlu1 %v1600_v15, %s1463_s10 }
  0x70   : > { %551 = vrot.lane.b32.xlu0 %v1609_v17, %s1463_s10  ;;  %547 = vrot.lane.b32.xlu1 %v1614_v18, %s1463_s10  ;;  %s1480_s10 = smov 114  }
  0x74   : > { %760 = vrot.lane.b32.xlu0 %v1600_v15, %s1464_s11  ;;  %762 = vrot.lane.b32.xlu1 %v1609_v17, %s1464_s11 }
  0x78   : > { %758 = vrot.lane.b32.xlu0 %v1614_v18, %s1464_s11  ;;  %562 = vrot.lane.b32.xlu1 %v1574_v6, %s1465_s12 }
  0x7c   : > { %564 = vrot.lane.b32.xlu0 %v1581_v9, %s1465_s12  ;;  %560 = vrot.lane.b32.xlu1 %v1576_v7, %s1465_s12 }
  0x80   : > { %771 = vrot.lane.b32.xlu0 %v1574_v6, %s1466_s13  ;;  %773 = vrot.lane.b32.xlu1 %v1581_v9, %s1466_s13 }
  0x84   : > { %769 = vrot.lane.b32.xlu0 %v1576_v7, %s1466_s13  ;;  %568 = vrot.lane.b32.xlu1 %v1587_v12, %s1465_s12 }
  0x88   : > { %570 = vrot.lane.b32.xlu0 %v1595_v14, %s1465_s12  ;;  %581 = vrot.lane.b32.xlu1 %v1579_v8, %s1467_s14 }
  0x8c   : > { %583 = vrot.lane.b32.xlu0 %v1592_v13, %s1467_s14  ;;  %566 = vrot.lane.b32.xlu1 %v1602_v16, %s1465_s12 }
  0x90   : > { %579 = vrot.lane.b32.xlu0 %v1585_v11, %s1467_s14  ;;  %777 = vrot.lane.b32.xlu1 %v1587_v12, %s1466_s13 }
  0x94   : > { %779 = vrot.lane.b32.xlu0 %v1595_v14, %s1466_s13  ;;  %788 = vrot.lane.b32.xlu1 %v1579_v8, %s1468_s22 }
  0x98   : > { %790 = vrot.lane.b32.xlu0 %v1592_v13, %s1468_s22  ;;  %775 = vrot.lane.b32.xlu1 %v1602_v16, %s1466_s13 }
  0x9c   : > { %786 = vrot.lane.b32.xlu0 %v1585_v11, %s1468_s22  ;;  %587 = vrot.lane.b32.xlu1 %v1600_v15, %s1467_s14 }
  0x9e   : > { %v354_v19 = vpop.permute.xlu0 %353  ;;  %v352_v20 = vpop.permute.xlu1 %351 }
  0x9f   : > { %v364_v21 = vsel %vm363_vm1, %v352_v20, %v354_v19 }
  0xa0   : > { %589 = vrot.lane.b32.xlu0 %v1609_v17, %s1467_s14  ;;  %585 = vrot.lane.b32.xlu1 %v1614_v18, %s1467_s14  ;;  %v1689_v26 = vsel %vm341_vm0, %v1602_v16, %v364_v21 }
  0xa2   : > { %v1676_v22 = vpop.permute.xlu0 %355  ;;  %v360_v24 = vpop.permute.xlu1 %359 }
  0xa3   : > { %v365_v23 = vsel %vm363_vm1, %v354_v19, %v1676_v22  ;;  %v822_v19 = vsel %vm341_vm0, %v1595_v14, %v1676_v22 }
  0xa4   : > { %794 = vrot.lane.b32.xlu0 %v1600_v15, %s1468_s22  ;;  %v1683_v25 = vsel %vm341_vm0, %v1587_v12, %v365_v23  ;;  %796 = vrot.lane.b32.xlu1 %v1609_v17, %s1468_s22 }
  0xa5   : > { %1082 = vmatprep.subr.bf16.mxu1 %v1683_v25 }
  0xa6   : > { %v1691_v27 = vpop.permute.xlu0 %361  ;;  %1083 = vmatpush1.bf16.msra.mxu1 %v1689_v26  ;;  %v358_v28 = vpop.permute.xlu1 %357 }
  0xa7   : > { %v1696_v29 = vsel %vm363_vm1, %v360_v24, %v1691_v27  ;;  %v1703_v30 = vsel %vm363_vm1, %v358_v28, %v360_v24  ;;  %vm815_vm1 = vcmask 760832  }
  0xa8   : > { %1084 = vmatprep.subr.bf16.mxu1 %v1696_v29  ;;  %792 = vrot.lane.b32.xlu0 %v1614_v18, %s1468_s22 }
  0xa9   : > { %600 = vrot.lane.b32.xlu1 %v1574_v6, %s1469_s23 }
  0xaa   : > { %v1705_v31 = vpop.permute.xlu0 %703  ;;  %1085 = vmatpush1.bf16.msra.mxu1 %v1703_v30  ;;  %v1708_v32 = vpop.permute.xlu1 %705 }
  0xac   : > { %602 = vrot.lane.b32.xlu0 %v1581_v9, %s1469_s23 }
  0xad   : > { %598 = vrot.lane.b32.xlu1 %v1576_v7, %s1469_s23 }
  0xae   : > { %v1714_v33 = vpop.permute.xlu0 %701  ;;  %v1716_v34 = vpop.permute.xlu1 %709 }
  0xb0   : > { %805 = vrot.lane.b32.xlu0 %v1574_v6, %s1470_s24 }
  0xb1   : > { %807 = vrot.lane.b32.xlu1 %v1581_v9, %s1470_s24 }
  0xb2   : > { %v1722_v35 = vpop.permute.xlu0 %711  ;;  %v1724_v36 = vpop.permute.xlu1 %720 }
  0xb4   : > { %803 = vrot.lane.b32.xlu0 %v1576_v7, %s1470_s24 }
  0xb5   : > { %606 = vrot.lane.b32.xlu1 %v1587_v12, %s1469_s23 }
  0xb6   : > { %v1730_v37 = vpop.permute.xlu0 %722  ;;  %v1732_v38 = vpop.permute.xlu1 %707 }
  0xb8   : > { %608 = vrot.lane.b32.xlu0 %v1595_v14, %s1469_s23 }
  0xb9   : > { %619 = vrot.lane.b32.xlu1 %v1579_v8, %s1471_s26 }
  0xba   : > { %v1738_v39 = vpop.permute.xlu0 %718  ;;  %v1740_v40 = vpop.permute.xlu1 %726 }
  0xbc   : > { %621 = vrot.lane.b32.xlu0 %v1592_v13, %s1471_s26 }
  0xbd   : > { %505 = vrot.lane.b32.xlu1 %v1579_v8, %s1472_s27 }
  0xbe   : > { %v1746_v41 = vpop.permute.xlu0 %728  ;;  %v1748_v42 = vpop.permute.xlu1 %724 }
  0xc0   : > { %507 = vrot.lane.b32.xlu0 %v1592_v13, %s1472_s27 }
  0xc1   : > { %604 = vrot.lane.b32.xlu1 %v1602_v16, %s1469_s23 }
  0xc2   : > { %v1754_v43 = vpop.permute.xlu0 %737  ;;  %v1756_v44 = vpop.permute.xlu1 %739 }
  0xc4   : > { %617 = vrot.lane.b32.xlu0 %v1585_v11, %s1471_s26 }
  0xc5   : > { %811 = vrot.lane.b32.xlu1 %v1587_v12, %s1470_s24 }
  0xc6   : > { %v1762_v45 = vpop.permute.xlu0 %735  ;;  %v531_v46 = vpop.permute.xlu1 %530 }
  0xc8   : > { %813 = vrot.lane.b32.xlu0 %v1595_v14, %s1470_s24 }
  0xc9   : > { %503 = vrot.lane.b32.xlu1 %v1585_v11, %s1472_s27 }
  0xca   : > { %v1768_v47 = vpop.permute.xlu0 %532  ;;  %v544_v48 = vpop.permute.xlu1 %543 }
  0xcb   : > { %v1777_v52 = vsel %vm534_vm3, %v531_v46, %v1768_v47 }
  0xcc   : > { %809 = vrot.lane.b32.xlu0 %v1602_v16, %s1470_s24  ;;  %s1306_s24 = sshll.u32 %s1295_s20, 1 }
  0xcd   : > { %625 = vrot.lane.b32.xlu1 %v1600_v15, %s1471_s26  ;;  %p306_p11 = scmp.lt.s32.totalorder %s1306_s24, 3 }
  0xce   : > { %v546_v49 = vpop.permute.xlu0 %545  ;;  %v529_v51 = vpop.permute.xlu1 %528 }
  0xcf   : > { %v555_v50 = vsel %vm553_vm2, %v544_v48, %v546_v49  ;;  %v1786_v55 = vsel %vm534_vm3, %v529_v51, %v531_v46  ;;  %s2336_s24 = smov (!%p306_p11, %s1306_s24), 3 }
  0xd0   : > { %627 = vrot.lane.b32.xlu0 %v1609_v17, %s1471_s26  ;;  %v683_v53 = vsel %vm341_vm0, %v1777_v52, %v555_v50 }
  0xd1   : > { %511 = vrot.lane.b32.xlu1 %v1600_v15, %s1472_s27  ;;  %1121 = vmatprep.subr.bf16.mxu0 %v683_v53 }
  0xd2   : > { %v542_v54 = vpop.permute.xlu0 %541  ;;  %v1789_v57 = vpop.permute.xlu1 %743 }
  0xd3   : > { %v554_v56 = vsel %vm553_vm2, %v542_v54, %v544_v48  ;;  %v732_v48 = vsel %vm730_vm6, %v1724_v36, %v1730_v37 }
  0xd4   : > { %513 = vrot.lane.b32.xlu0 %v1609_v17, %s1472_s27  ;;  %v679_v58 = vsel %vm341_vm0, %v1786_v55, %v554_v56  ;;  %v831_v56 = vsel %vm341_vm0, %v1722_v35, %v1730_v37  ;;  %v731_v37 = vsel %vm730_vm6, %v1738_v39, %v1724_v36 }
  0xd5   : > { %623 = vrot.lane.b32.xlu1 %v1614_v18, %s1471_s26  ;;  %1122 = vmatpush1.bf16.msra.mxu0 %v679_v58  ;;  %s1307_s26 = sshll.u32 %s2336_s24, 2 }
  0xd6   : > { %v1797_v59 = vpop.permute.xlu0 %745  ;;  %v1799_v60 = vpop.permute.xlu1 %754  ;;  %s309_s19 = scalar_lea.vmem %s2328_s4, %s1307_s26 }
  0xd8   : > { %509 = vrot.lane.b32.xlu0 %v1614_v18, %s1472_s27 }
  0xd9   : > { %874 = vrot.lane.b32.xlu1 %v1574_v6, %s1473_s29 }
  0xda   : > { %v1805_v61 = vpop.permute.xlu0 %756  ;;  %v1807_v62 = vpop.permute.xlu1 %741 }
  0xdc   : > { %876 = vrot.lane.b32.xlu0 %v1581_v9, %s1473_s29 }
  0xdd   : > { %524 = vrot.lane.b32.xlu1 %v1574_v6, %s1462_s9 }
  0xde   : > { %v1813_v63 = vpop.permute.xlu0 %752  ;;  %v550_v0 = vpop.permute.xlu1 %549 }
  0xe0   : > { %526 = vrot.lane.b32.xlu0 %v1581_v9, %s1462_s9 }
  0xe1   : > { %872 = vrot.lane.b32.xlu1 %v1576_v7, %s1473_s29 }
  0xe2   : > { %v552_v1 = vpop.permute.xlu0 %551  ;;  %v548_v2 = vpop.permute.xlu1 %547 }
  0xe3   : > { %v557_v3 = vsel %vm553_vm2, %v550_v0, %v552_v1  ;;  %v556_v4 = vsel %vm553_vm2, %v548_v2, %v550_v0  ;;  %vm515_vm2 = vcmask 752640  }
  0xe4   : > { %522 = vrot.lane.b32.xlu0 %v1576_v7, %s1462_s9  ;;  %1123 = vmatprep.subr.bf16.mxu0 %v557_v3  ;;  %s1479_s9 = smov 115  }
  0xe5   : > { %880 = vrot.lane.b32.xlu1 %v1683_v25, %s1473_s29  ;;  %1124 = vmatpush1.bf16.msra.mxu0 %v556_v4  ;;  %v715_v25 = vsel %vm713_vm5, %v1705_v31, %v1708_v32 }
  0xe6   : > { %v1825_v5 = vpop.permute.xlu0 %760  ;;  %v1827_v10 = vpop.permute.xlu1 %762 }
  0xe8   : > { %882 = vrot.lane.b32.xlu0 %v822_v19, %s1473_s29  ;;  %v716_v19 = vsel %vm713_vm5, %v1732_v38, %v1716_v34 }
  0xe9   : > { %878 = vrot.lane.b32.xlu1 %v1689_v26, %s1473_s29 }
  0xea   : > { %v1835_v20 = vpop.permute.xlu0 %758  ;;  %v563_v21 = vpop.permute.xlu1 %562 }
  0xec   : > { %886 = vrot.lane.b32.xlu0 %v1696_v29, %s1473_s29  ;;  %v714_v29 = vsel %vm713_vm5, %v1714_v33, %v1705_v31 }
  0xed   : > { %888 = vrot.lane.b32.xlu1 %v1691_v27, %s1473_s29 }
  0xee   : > { %v565_v23 = vpop.permute.xlu0 %564  ;;  %v561_v24 = vpop.permute.xlu1 %560 }
  0xef   : > { %v574_v22 = vsel %vm572_vm4, %v563_v21, %v565_v23  ;;  %v573_v26 = vsel %vm572_vm4, %v561_v24, %v563_v21  ;;  %v825_v23 = vsel %vm341_vm0, %v716_v19, %v731_v37  ;;  %v734_v24 = vsel %vm730_vm6, %v1740_v40, %v1746_v41  ;;  %v1984_v37 = vld [vmem:[%s2326_s2 + $0x8] sm:$0xff] }
  0xf0   : > { %884 = vrot.lane.b32.xlu0 %v1703_v30, %s1473_s29  ;;  %1125 = vmatprep.subr.bf16.mxu0 %v574_v22 }
  0xf1   : > { %892 = vrot.lane.b32.xlu1 %v715_v25, %s1473_s29  ;;  %1126 = vmatpush1.bf16.msra.mxu0 %v573_v26  ;;  %v733_v25 = vsel %vm730_vm6, %v1748_v42, %v1740_v40  ;;  %vm1070_vm6 = vcmask 64512  }
  0xf2   : > { %v1849_v28 = vpop.permute.xlu0 %771  ;;  %v1851_v27 = vpop.permute.xlu1 %773 }
  0xf4   : > { %894 = vrot.lane.b32.xlu0 %v1708_v32, %s1473_s29  ;;  %v717_v32 = vsel %vm713_vm5, %v1716_v34, %v1722_v35  ;;  %vm439_vm5 = vcmask 982016  }
  0xf5   : > { %890 = vrot.lane.b32.xlu1 %v714_v29, %s1473_s29  ;;  %v828_v49 = vsel %vm341_vm0, %v717_v32, %v732_v48 }
  0xf6   : > { %v1859_v30 = vpop.permute.xlu0 %769  ;;  %v569_v46 = vpop.permute.xlu1 %568 }
  0xf8   : > { %372 = vrot.lane.b32.xlu0 %v1574_v6, %s1474_s30 }
  0xf9   : > { %374 = vrot.lane.b32.xlu1 %v1581_v9, %s1474_s30 }
  0xfa   : > { %v571_v31 = vpop.permute.xlu0 %570  ;;  %v582_v33 = vpop.permute.xlu1 %581 }
  0xfb   : > { %v576_v51 = vsel %vm572_vm4, %v569_v46, %v571_v31  ;;  %v749_v31 = vsel %vm747_vm8, %v1754_v43, %v1756_v44 }
  0xfc   : > { %370 = vrot.lane.b32.xlu0 %v1576_v7, %s1474_s30 }
  0xfd   : > { %898 = vrot.lane.b32.xlu1 %v828_v49, %s1473_s29 }
  0xfe   : > { %v584_v50 = vpop.permute.xlu0 %583  ;;  %v567_v54 = vpop.permute.xlu1 %566 }
  0xff   : > { %v593_v53 = vsel %vm591_vm7, %v582_v33, %v584_v50  ;;  %v575_v1 = vsel %vm572_vm4, %v567_v54, %v569_v46  ;;  %vm401_vm4 = vcmask 998400  }
 0x100   : > { %900 = vrot.lane.b32.xlu0 %v831_v56, %s1473_s29  ;;  %v691_v58 = vsel %vm341_vm0, %v576_v51, %v593_v53 }
 0x101   : > { %378 = vrot.lane.b32.xlu1 %v1587_v12, %s1474_s30  ;;  %1127 = vmatprep.subr.bf16.mxu0 %v691_v58 }
 0x102   : > { %v580_v0 = vpop.permute.xlu0 %579  ;;  %v1886_v3 = vpop.permute.xlu1 %777 }
 0x103   : > { %v592_v2 = vsel %vm591_vm7, %v580_v0, %v582_v33  ;;  %v748_v33 = vsel %vm747_vm8, %v1762_v45, %v1754_v43  ;;  %v766_v43 = vsel %vm764_vm10, %v1799_v60, %v1805_v61  ;;  %v751_v45 = vsel %vm747_vm8, %v1789_v57, %v1797_v59 }
 0x104   : > { %380 = vrot.lane.b32.xlu0 %v1595_v14, %s1474_s30  ;;  %v687_v35 = vsel %vm341_vm0, %v575_v1, %v592_v2  ;;  %v837_v58 = vsel %vm341_vm0, %v751_v45, %v766_v43  ;;  %v840_v0 = vsel %vm341_vm0, %v1797_v59, %v1805_v61 }
 0x105   : > { %391 = vrot.lane.b32.xlu1 %v1579_v8, %s1475_s5  ;;  %1128 = vmatpush1.bf16.msra.mxu0 %v687_v35 }
 0x106   : > { %v1896_v4 = vpop.permute.xlu0 %779  ;;  %v1901_v21 = vpop.permute.xlu1 %788 }
 0x108   : > { %393 = vrot.lane.b32.xlu0 %v1592_v13, %s1475_s5 }
 0x109   : > { %896 = vrot.lane.b32.xlu1 %v825_v23, %s1473_s29  ;;  %v1317_v23 = vcombine.high %v1984_v37, %v1984_v37 }
 0x10a   : > { %v1907_v36 = vpop.permute.xlu0 %790  ;;  %v1909_v39 = vpop.permute.xlu1 %775 }
 0x10b   : > { %1153 = vmatprep.mubr.bf16.mxu0 %v1317_v23 }
 0x10c   : > { %376 = vrot.lane.b32.xlu0 %v1602_v16, %s1474_s30 }
 0x10d   : > { %389 = vrot.lane.b32.xlu1 %v1585_v11, %s1475_s5 }
 0x10e   : > { %v1915_v34 = vpop.permute.xlu0 %786  ;;  %v588_v38 = vpop.permute.xlu1 %587 }
 0x110   : > { %904 = vrot.lane.b32.xlu0 %v734_v24, %s1473_s29 }
 0x111   : > { %906 = vrot.lane.b32.xlu1 %v1746_v41, %s1473_s29 }
 0x112   : > { %v590_v22 = vpop.permute.xlu0 %589  ;;  %v586_v26 = vpop.permute.xlu1 %585 }
 0x113   : > { %v595_v29 = vsel %vm591_vm7, %v588_v38, %v590_v22  ;;  %v594_v46 = vsel %vm591_vm7, %v586_v26, %v588_v38  ;;  %v765_v38 = vsel %vm764_vm10, %v1813_v63, %v1799_v60  ;;  %v750_v22 = vsel %vm747_vm8, %v1807_v62, %v1789_v57 }
 0x114   : > { %902 = vrot.lane.b32.xlu0 %v733_v25, %s1473_s29  ;;  %1129 = vmatprep.subr.bf16.mxu0 %v595_v29  ;;  %v834_v60 = vsel %vm341_vm0, %v750_v22, %v765_v38  ;;  %v768_v57 = vsel %vm764_vm10, %v1825_v5, %v1827_v10  ;;  %v849_v38 = vsel %vm341_vm0, %v1896_v4, %v1907_v36  ;;  %vm458_vm7 = vcmask 949248  }
 0x115   : > { %397 = vrot.lane.b32.xlu1 %v1600_v15, %s1475_s5  ;;  %1130 = vmatpush1.bf16.msra.mxu0 %v594_v46  ;;  %vm477_vm8 = vcmask 941056  }
 0x116   : > { %v1931_v48 = vpop.permute.xlu0 %794  ;;  %v1933_v41 = vpop.permute.xlu1 %796 }
 0x118   : > { %399 = vrot.lane.b32.xlu0 %v1609_v17, %s1475_s5 }
 0x119   : > { %395 = vrot.lane.b32.xlu1 %v1614_v18, %s1475_s5 }
 0x11a   : > { %v1939_v40 = vpop.permute.xlu0 %792 }
 0x11b   : > { %v601_v42 = vpop.permute.xlu1 %600 }
 0x11c   : > { %910 = vrot.lane.b32.xlu0 %v749_v31, %s1473_s29 }
 0x11d   : > { %912 = vrot.lane.b32.xlu1 %v1756_v44, %s1473_s29 }
 0x11e   : > { %v603_v32 = vpop.permute.xlu0 %602 }
 0x11f   : > { %v599_v49 = vpop.permute.xlu1 %598  ;;  %v612_v50 = vsel %vm610_vm9, %v601_v42, %v603_v32 }
 0x120   : > { %908 = vrot.lane.b32.xlu0 %v748_v33, %s1473_s29  ;;  %1131 = vmatprep.subr.bf16.mxu0 %v612_v50  ;;  %v611_v51 = vsel %vm610_vm9, %v599_v49, %v601_v42  ;;  %v767_v33 = vsel %vm764_vm10, %v1835_v20, %v1825_v5 }
 0x121   : > { %410 = vrot.lane.b32.xlu1 %v1574_v6, %s1476_s6  ;;  %1132 = vmatpush1.bf16.msra.mxu0 %v611_v51 }
 0x122   : > { %v1955_v44 = vpop.permute.xlu0 %805 }
 0x123   : > { %v1957_v53 = vpop.permute.xlu1 %807 }
 0x124   : > { %412 = vrot.lane.b32.xlu0 %v1581_v9, %s1476_s6 }
 0x125   : > { %408 = vrot.lane.b32.xlu1 %v1576_v7, %s1476_s6 }
 0x126   : > { %v1969_v54 = vpop.permute.xlu0 %803 }
 0x127   : > { %v607_v56 = vpop.permute.xlu1 %606 }
 0x128   : > { %916 = vrot.lane.b32.xlu0 %v837_v58, %s1473_s29 }
 0x129   : > { %918 = vrot.lane.b32.xlu1 %v840_v0, %s1473_s29 }
 0x12a   : > { %v609_v1 = vpop.permute.xlu0 %608 }
 0x12b   : > { %v620_v2 = vpop.permute.xlu1 %619  ;;  %v614_v19 = vsel %vm610_vm9, %v607_v56, %v609_v1 }
 0x12c   : > { %416 = vrot.lane.b32.xlu0 %v1587_v12, %s1476_s6 }
 0x12d   : > { %418 = vrot.lane.b32.xlu1 %v1595_v14, %s1476_s6 }
 0x12e   : > { %v622_v35 = vpop.permute.xlu0 %621 }
 0x12f   : > { %v631_v59 = vsel %vm629_vm11, %v620_v2, %v622_v35  ;;  %v1988_v61 = vpop.permute.xlu1 %505 }
 0x130   : > { %429 = vrot.lane.b32.xlu0 %v1579_v8, %s1477_s7  ;;  %v699_v24 = vsel %vm341_vm0, %v614_v19, %v631_v59 }
 0x131   : > { %431 = vrot.lane.b32.xlu1 %v1592_v13, %s1477_s7  ;;  %1133 = vmatprep.subr.bf16.mxu0 %v699_v24 }
 0x132   : > { %v2003_v25 = vpop.permute.xlu0 %507 }
 0x133   : > { %v605_v26 = vpop.permute.xlu1 %604 }
 0x134   : > { %914 = vrot.lane.b32.xlu0 %v834_v60, %s1473_s29  ;;  %v613_v29 = vsel %vm610_vm9, %v605_v26, %v607_v56  ;;  %v782_v56 = vsel %vm781_vm12, %v1859_v30, %v1849_v28  ;;  %v785_v30 = vsel %vm781_vm12, %v1886_v3, %v1896_v4  ;;  %v799_v60 = vsel %vm798_vm13, %v1915_v34, %v1901_v21 }
 0x135   : > { %414 = vrot.lane.b32.xlu1 %v1602_v16, %s1476_s6  ;;  %vm496_vm9 = vcmask 932864  }
 0x136   : > { %v618_v63 = vpop.permute.xlu0 %617 }
 0x137   : > { %v630_v46 = vsel %vm629_vm11, %v618_v63, %v620_v2  ;;  %v2011_v42 = vpop.permute.xlu1 %811 }
 0x138   : > { %427 = vrot.lane.b32.xlu0 %v1585_v11, %s1477_s7  ;;  %v695_v62 = vsel %vm341_vm0, %v613_v29, %v630_v46 }
 0x139   : > { %922 = vrot.lane.b32.xlu1 %v768_v57, %s1473_s29  ;;  %1134 = vmatpush1.bf16.msra.mxu0 %v695_v62  ;;  %v802_v57 = vsel %vm798_vm13, %v1931_v48, %v1933_v41 }
 0x13a   : > { %v2020_v31 = vpop.permute.xlu0 %813 }
 0x13b   : > { %v2022_v32 = vpop.permute.xlu1 %503 }
 0x13c   : > { %924 = vrot.lane.b32.xlu0 %v1827_v10, %s1473_s29  ;;  %v783_v10 = vsel %vm781_vm12, %v1849_v28, %v1851_v27  ;;  %v800_v28 = vsel %vm798_vm13, %v1901_v21, %v1907_v36  ;;  %v784_v36 = vsel %vm781_vm12, %v1909_v39, %v1886_v3 }
 0x13d   : > { %920 = vrot.lane.b32.xlu1 %v767_v33, %s1473_s29  ;;  %v846_v19 = vsel %vm341_vm0, %v785_v30, %v800_v28  ;;  %v843_v46 = vsel %vm341_vm0, %v784_v36, %v799_v60 }
 0x13e   : > { %v2030_v49 = vpop.permute.xlu0 %809 }
 0x13f   : > { %v626_v50 = vpop.permute.xlu1 %625  ;;  %v818_v60 = vsel %vm815_vm1, %v2030_v49, %v2011_v42 }
 0x140   : > { %435 = vrot.lane.b32.xlu0 %v1600_v15, %s1477_s7 }
 0x141   : > { %437 = vrot.lane.b32.xlu1 %v1609_v17, %s1477_s7 }
 0x142   : > { %v628_v51 = vpop.permute.xlu0 %627 }
 0x143   : > { %v2036_v43 = vpop.permute.xlu1 %511  ;;  %v633_v5 = vsel %vm629_vm11, %v626_v50, %v628_v51 }
 0x144   : > { %433 = vrot.lane.b32.xlu0 %v1614_v18, %s1477_s7  ;;  %1135 = vmatprep.subr.bf16.mxu0 %v633_v5 }
 0x145   : > { %928 = vrot.lane.b32.xlu1 %v783_v10, %s1473_s29 }
 0x146   : > { %v2045_v20 = vpop.permute.xlu0 %513 }
 0x147   : > { %v624_v45 = vpop.permute.xlu1 %623 }
 0x148   : > { %930 = vrot.lane.b32.xlu0 %v1851_v27, %s1473_s29  ;;  %v632_v58 = vsel %vm629_vm11, %v624_v45, %v626_v50 }
 0x149   : > { %926 = vrot.lane.b32.xlu1 %v782_v56, %s1473_s29  ;;  %1136 = vmatpush1.bf16.msra.mxu0 %v632_v58 }
 0x14a   : > { %v2054_v0 = vpop.permute.xlu0 %509 }
 0x14b   : > { %v875_v1 = vpop.permute.xlu1 %874 }
 0x14c   : > { %448 = vrot.lane.b32.xlu0 %v1574_v6, %s1478_s8 }
 0x14d   : > { %450 = vrot.lane.b32.xlu1 %v1581_v9, %s1478_s8 }
 0x14e   : > { %v877_v27 = vpop.permute.xlu0 %876 }
 0x14f   : > { %v2066_v2 = vpop.permute.xlu1 %524  ;;  %v976_v35 = vsel %vm974_vm14, %v875_v1, %v877_v27 }
 0x150   : > { %446 = vrot.lane.b32.xlu0 %v1576_v7, %s1478_s8  ;;  %1137 = vmatprep.subr.bf16.mxu0 %v976_v35 }
 0x151   : > { %934 = vrot.lane.b32.xlu1 %v846_v19, %s1473_s29 }
 0x152   : > { %v2073_v59 = vpop.permute.xlu0 %526 }
 0x153   : > { %v873_v23 = vpop.permute.xlu1 %872 }
 0x154   : > { %936 = vrot.lane.b32.xlu0 %v849_v38, %s1473_s29  ;;  %v975_v24 = vsel %vm974_vm14, %v873_v23, %v875_v1 }
 0x155   : > { %454 = vrot.lane.b32.xlu1 %v1587_v12, %s1478_s8  ;;  %1138 = vmatpush1.bf16.msra.mxu0 %v975_v24 }
 0x156   : > { %v2082_v22 = vpop.permute.xlu0 %522 }
 0x157   : > { %v881_v26 = vpop.permute.xlu1 %880 }
 0x158   : > { %456 = vrot.lane.b32.xlu0 %v1595_v14, %s1478_s8 }
 0x159   : > { %467 = vrot.lane.b32.xlu1 %v1579_v8, %s1479_s9 }
 0x15a   : > { %v883_v4 = vpop.permute.xlu0 %882 }
 0x15b   : > { %v879_v63 = vpop.permute.xlu1 %878  ;;  %v978_v29 = vsel %vm974_vm14, %v881_v26, %v883_v4  ;;  %v2175_v4 = vsel %vm515_vm2, %v2022_v32, %v1988_v61 }
 0x15c   : > { %469 = vrot.lane.b32.xlu0 %v1592_v13, %s1479_s9  ;;  %1139 = vmatprep.subr.bf16.mxu0 %v978_v29  ;;  %v977_v21 = vsel %vm974_vm14, %v879_v63, %v881_v26  ;;  %v2194_v29 = vld [vmem:[%s2326_s2] sm:$0xff] }
 0x15d   : > { %932 = vrot.lane.b32.xlu1 %v843_v46, %s1473_s29  ;;  %1140 = vmatpush1.bf16.msra.mxu0 %v977_v21  ;;  %v2203_v21 = vsel %vm515_vm2, %v2054_v0, %v2036_v43 }
 0x15e   : > { %v887_v8 = vpop.permute.xlu0 %886 }
 0x15f   : > { %v889_v34 = vpop.permute.xlu1 %888 }
 0x160   : > { %452 = vrot.lane.b32.xlu0 %v1602_v16, %s1478_s8  ;;  %v980_v3 = vsel %vm974_vm14, %v887_v8, %v889_v34 }
 0x161   : > { %465 = vrot.lane.b32.xlu1 %v1585_v11, %s1479_s9  ;;  %1141 = vmatprep.subr.bf16.mxu0 %v980_v3  ;;  %v801_v11 = vsel %vm798_vm13, %v1939_v40, %v1931_v48  ;;  %v2209_v3 = vsel %vm534_vm3, %v2066_v2, %v2073_v59 }
 0x162   : > { %v885_v13 = vpop.permute.xlu0 %884 }
 0x163   : > { %v893_v39 = vpop.permute.xlu1 %892  ;;  %v979_v62 = vsel %vm974_vm14, %v885_v13, %v887_v8  ;;  %v2219_v13 = vsel %vm534_vm3, %v2082_v22, %v2066_v2  ;;  %vm420_vm3 = vcmask 990208  }
 0x164   : > { %940 = vrot.lane.b32.xlu0 %v802_v57, %s1473_s29  ;;  %1142 = vmatpush1.bf16.msra.mxu0 %v979_v62  ;;  %v1481_v62 = vmov 0  }
 0x165   : > { %942 = vrot.lane.b32.xlu1 %v1933_v41, %s1473_s29  ;;  %1404 = vset.pattern.permute.xlu0 %v1481_v62 }
 0x166   : > { %v895_v33 = vpop.permute.xlu0 %894  ;;  %1403 = vset.pattern.permute.xlu1 %v1481_v62 }
 0x167   : > { %v891_v50 = vpop.permute.xlu1 %890  ;;  %v982_v51 = vsel %vm974_vm14, %v893_v39, %v895_v33 }
 0x168   : > { %938 = vrot.lane.b32.xlu0 %v801_v11, %s1473_s29  ;;  %1143 = vmatprep.subr.bf16.mxu0 %v982_v51  ;;  %v981_v5 = vsel %vm974_vm14, %v891_v50, %v893_v39 }
 0x169   : > { %473 = vrot.lane.b32.xlu1 %v1600_v15, %s1479_s9  ;;  %1144 = vmatpush1.bf16.msra.mxu0 %v981_v5  ;;  %v817_v15 = vsel %vm815_vm1, %v1955_v44, %v1957_v53 }
 0x16a   : > { %v373_v10 = vpop.permute.xlu0 %372 }
 0x16b   : > { %v375_v41 = vpop.permute.xlu1 %374 }
 0x16c   : > { %475 = vrot.lane.b32.xlu0 %v1609_v17, %s1479_s9  ;;  %v384_v48 = vsel %vm382_vm15, %v373_v10, %v375_v41 }
 0x16d   : > { %471 = vrot.lane.b32.xlu1 %v1614_v18, %s1479_s9  ;;  %1086 = vmatprep.subr.bf16.mxu1 %v384_v48  ;;  %v816_v18 = vsel %vm815_vm1, %v1969_v54, %v1955_v44  ;;  %v2149_v44 = vsel %vm515_vm2, %v1988_v61, %v2003_v25  ;;  %v2186_v61 = vsel %vm515_vm2, %v2036_v43, %v2045_v20 }
 0x16e   : > { %v371_v40 = vpop.permute.xlu0 %370 }
 0x16f   : > { %v899_v45 = vpop.permute.xlu1 %898  ;;  %v383_v56 = vsel %vm382_vm15, %v371_v40, %v373_v10 }
 0x170   : > { %946 = vrot.lane.b32.xlu0 %v817_v15, %s1473_s29  ;;  %1087 = vmatpush1.bf16.msra.mxu1 %v383_v56  ;;  %v2245_v56 = vld [vmem:[%s2326_s2 + $0x10] sm:$0xff] }
 0x171   : > { %948 = vrot.lane.b32.xlu1 %v1957_v53, %s1473_s29  ;;  %v819_v53 = vsel %vm815_vm1, %v2011_v42, %v2020_v31  ;;  %v851_v42 = vsel %vm341_vm0, %v818_v60, %v2175_v4 }
 0x172   : > { %v901_v17 = vpop.permute.xlu0 %900  ;;  %v853_v19 = vsel %vm341_vm0, %v819_v53, %v2149_v44 }
 0x173   : > { %v379_v58 = vpop.permute.xlu1 %378  ;;  %v984_v1 = vsel %vm974_vm14, %v899_v45, %v901_v17 }
 0x174   : > { %944 = vrot.lane.b32.xlu0 %v816_v18, %s1473_s29  ;;  %1145 = vmatprep.subr.bf16.mxu0 %v984_v1  ;;  %v1316_v1 = vcombine.low %v1984_v37, %v1984_v37 }
 0x175   : > { %486 = vrot.lane.b32.xlu1 %v1574_v6, %s1480_s10 }
 0x176   : > { %v381_v28 = vpop.permute.xlu0 %380 }
 0x177   : > { %v392_v27 = vpop.permute.xlu1 %391  ;;  %v386_v54 = vsel %vm382_vm15, %v379_v58, %v381_v28  ;;  %v1319_v28 = vcombine.high %v2245_v56, %v2245_v56 }
 0x178   : > { %488 = vrot.lane.b32.xlu0 %v1581_v9, %s1480_s10  ;;  %v856_v9 = vsel %vm341_vm0, %v2020_v31, %v2003_v25 }
 0x179   : > { %484 = vrot.lane.b32.xlu1 %v1576_v7, %s1480_s10 }
 0x17a   : > { %v394_v6 = vpop.permute.xlu0 %393 }
 0x17b   : > { %v403_v30 = vsel %vm401_vm4, %v392_v27, %v394_v6  ;;  %v897_v35 = vpop.permute.xlu1 %896 }
 0x17c   : > { %952 = vrot.lane.b32.xlu0 %v853_v19, %s1473_s29  ;;  %v983_v7 = vsel %vm974_vm14, %v897_v35, %v899_v45  ;;  %v651_v23 = vsel %vm341_vm0, %v386_v54, %v403_v30 }
 0x17d   : > { %954 = vrot.lane.b32.xlu1 %v856_v9, %s1473_s29  ;;  %1146 = vmatpush1.bf16.msra.mxu0 %v983_v7 }
 0x17e   : > { %1088 = vmatprep.subr.bf16.mxu1 %v651_v23  ;;  %v377_v38 = vpop.permute.xlu0 %376 }
 0x17f   : > { %v385_v24 = vsel %vm382_vm15, %v377_v38, %v379_v58  ;;  %v390_v26 = vpop.permute.xlu1 %389 }
 0x180   : > { %v402_v25 = vsel %vm401_vm4, %v390_v26, %v392_v27  ;;  %492 = vrot.lane.b32.xlu0 %v1587_v12, %s1480_s10 }
 0x181   : > { %494 = vrot.lane.b32.xlu1 %v1595_v14, %s1480_s10  ;;  %v647_v31 = vsel %vm341_vm0, %v385_v24, %v402_v25 }
 0x182   : > { %1089 = vmatpush1.bf16.msra.mxu1 %v647_v31  ;;  %v905_v36 = vpop.permute.xlu0 %904 }
 0x183   : > { %v907_v63 = vpop.permute.xlu1 %906 }
 0x184   : > { %950 = vrot.lane.b32.xlu0 %v851_v42, %s1473_s29  ;;  %v986_v12 = vsel %vm974_vm14, %v905_v36, %v907_v63 }
 0x185   : > { %490 = vrot.lane.b32.xlu1 %v1602_v16, %s1480_s10  ;;  %1147 = vmatprep.subr.bf16.mxu0 %v986_v12  ;;  %v1315_v16 = vcombine.high %v2194_v29, %v2194_v29 }
 0x186   : > { %v903_v14 = vpop.permute.xlu0 %902 }
 0x187   : > { %v398_v49 = vpop.permute.xlu1 %397  ;;  %v985_v32 = vsel %vm974_vm14, %v903_v14, %v905_v36  ;;  %1112 = vmatprep.mubr.bf16.mxu1 %v1315_v16 }
 0x188   : > { %958 = vrot.lane.b32.xlu0 %v2186_v61, %s1473_s29  ;;  %1148 = vmatpush1.bf16.msra.mxu0 %v985_v32 }
 0x189   : > { %960 = vrot.lane.b32.xlu1 %v2045_v20, %s1473_s29 }
 0x18a   : > { %v400_v46 = vpop.permute.xlu0 %399 }
 0x18b   : > { %v396_v8 = vpop.permute.xlu1 %395  ;;  %v405_v34 = vsel %vm401_vm4, %v398_v49, %v400_v46 }
 0x18c   : > { %956 = vrot.lane.b32.xlu0 %v2203_v21, %s1473_s29  ;;  %1090 = vmatprep.subr.bf16.mxu1 %v405_v34  ;;  %v404_v20 = vsel %vm401_vm4, %v396_v8, %v398_v49 }
 0x18d   : > { %964 = vrot.lane.b32.xlu1 %v2209_v3, %s1473_s29  ;;  %1091 = vmatpush1.bf16.msra.mxu1 %v404_v20 }
 0x18e   : > { %v911_v43 = vpop.permute.xlu0 %910 }
 0x18f   : > { %v913_v0 = vpop.permute.xlu1 %912 }
 0x190   : > { %966 = vrot.lane.b32.xlu0 %v2073_v59, %s1473_s29  ;;  %v988_v39 = vsel %vm974_vm14, %v911_v43, %v913_v0  ;;  %v1044_v59 = vld [vmem:[%s2327_s3] sm:$0xff] }
 0x191   : > { %962 = vrot.lane.b32.xlu1 %v2219_v13, %s1473_s29  ;;  %1149 = vmatprep.subr.bf16.mxu0 %v988_v39 }
 0x192   : > { %v909_v57 = vpop.permute.xlu0 %908 }
 0x193   : > { %v411_v33 = vpop.permute.xlu1 %410  ;;  %v987_v11 = vsel %vm974_vm14, %v909_v57, %v911_v43 }
 0x194   : > { %968 = vrot.lane.b32.xlu0 %v1786_v55, %s1473_s29  ;;  %1150 = vmatpush1.bf16.msra.mxu0 %v987_v11 }
 0x195   : > { %970 = vrot.lane.b32.xlu1 %v1777_v52, %s1473_s29 }
 0x196   : > { %v413_v2 = vpop.permute.xlu0 %412 }
 0x197   : > { %v409_v22 = vpop.permute.xlu1 %408  ;;  %v422_v50 = vsel %vm420_vm3, %v411_v33, %v413_v2 }
 0x198   : > { %972 = vrot.lane.b32.xlu0 %v1768_v47, %s1473_s29  ;;  %1092 = vmatprep.subr.bf16.mxu1 %v422_v50  ;;  %v421_v51 = vsel %vm420_vm3, %v409_v22, %v411_v33 }
 0x199   : > { %1093 = vmatpush1.bf16.msra.mxu1 %v421_v51  ;;  %1047 = vperm.xlu1 %1403, %v1044_v59  }
 0x19a   : > { %v917_v55 = vpop.permute.xlu0 %916 }
 0x19b   : > { %v919_v5 = vpop.permute.xlu1 %918 }
 0x19c   : > { %v990_v52 = vsel %vm974_vm14, %v917_v55, %v919_v5 }
 0x19d   : > { %1151 = vmatprep.subr.bf16.mxu0 %v990_v52 }
 0x19e   : > { %v417_v10 = vpop.permute.xlu0 %416 }
 0x19f   : > { %v419_v41 = vpop.permute.xlu1 %418 }
 0x1a0   : > { %v424_v45 = vsel %vm420_vm3, %v417_v10, %v419_v41 }
 0x1a2   : > { %v430_v48 = vpop.permute.xlu0 %429 }
 0x1a3   : > { %v432_v40 = vpop.permute.xlu1 %431 }
 0x1a4   : > { %v441_v15 = vsel %vm439_vm5, %v430_v48, %v432_v40 }
 0x1a5   : > { %v659_v47 = vsel %vm341_vm0, %v424_v45, %v441_v15 }
 0x1a6   : > { %1094 = vmatprep.subr.bf16.mxu1 %v659_v47  ;;  %v915_v17 = vpop.permute.xlu0 %914 }
 0x1a7   : > { %v415_v18 = vpop.permute.xlu1 %414  ;;  %v989_v58 = vsel %vm974_vm14, %v915_v17, %v917_v55 }
 0x1a8   : > { %1152 = vmatpush1.bf16.msra.mxu0 %v989_v58  ;;  %v423_v53 = vsel %vm420_vm3, %v415_v18, %v417_v10 }
 0x1aa   : > { %v428_v27 = vpop.permute.xlu0 %427 }
 0x1ab   : > { %v440_v6 = vsel %vm439_vm5, %v428_v27, %v430_v48  ;;  %v923_v54 = vpop.permute.xlu1 %922  ;;  %1154 = vmatmul.mubr.bf16.vlgmr.msra.gmra.mrb[0].mxu0 %v1316_v1 }
 0x1ac   : > { %v655_v30 = vsel %vm341_vm0, %v423_v53, %v440_v6  ;;  %1321 = vmatprep.mubr.msk.bf16.mxu0 %vm1070_vm6, %v1319_v28 }
 0x1ad   : > { %1095 = vmatpush1.bf16.msra.mxu1 %v655_v30 }
 0x1ae   : > { %v925_v35 = vpop.permute.xlu0 %924 }
 0x1af   : > { %v921_v19 = vpop.permute.xlu1 %920  ;;  %v992_v37 = vsel %vm974_vm14, %v923_v54, %v925_v35 }
 0x1b0   : > { %v991_v9 = vsel %vm974_vm14, %v921_v19, %v923_v54  ;;  %1162 = vmatprep.subr.bf16.mxu0 %v992_v37 }
 0x1b1   : > { %1163 = vmatpush1.bf16.msra.mxu0 %v991_v9 }
 0x1b2   : > { %v436_v7 = vpop.permute.xlu0 %435 }
 0x1b3   : > { %v438_v23 = vpop.permute.xlu1 %437 }
 0x1b4   : > { %v443_v38 = vsel %vm439_vm5, %v436_v7, %v438_v23 }
 0x1b5   : > { %1096 = vmatprep.subr.bf16.mxu1 %v443_v38 }
 0x1b6   : > { %v434_v24 = vpop.permute.xlu0 %433 }
 0x1b7   : > { %v929_v26 = vpop.permute.xlu1 %928  ;;  %v442_v60 = vsel %vm439_vm5, %v434_v24, %v436_v7 }
 0x1b8   : > { %1097 = vmatpush1.bf16.msra.mxu1 %v442_v60 }
 0x1ba   : > { %v931_v25 = vpop.permute.xlu0 %930 }
 0x1bb   : > { %v927_v31 = vpop.permute.xlu1 %926  ;;  %v994_v36 = vsel %vm974_vm14, %v929_v26, %v931_v25 }
 0x1bc   : > { %v993_v63 = vsel %vm974_vm14, %v927_v31, %v929_v26  ;;  %1164 = vmatprep.subr.bf16.mxu0 %v994_v36 }
 0x1bd   : > { %1165 = vmatpush1.bf16.msra.mxu0 %v993_v63 }
 0x1be   : > { %v449_v42 = vpop.permute.xlu0 %448 }
 0x1bf   : > { %v451_v12 = vpop.permute.xlu1 %450 }
 0x1c0   : > { %v460_v14 = vsel %vm458_vm7, %v449_v42, %v451_v12 }
 0x1c1   : > { %1098 = vmatprep.subr.bf16.mxu1 %v460_v14 }
 0x1c2   : > { %v447_v49 = vpop.permute.xlu0 %446 }
 0x1c3   : > { %v935_v32 = vpop.permute.xlu1 %934  ;;  %v459_v16 = vsel %vm458_vm7, %v447_v49, %v449_v42 }
 0x1c4   : > { %1099 = vmatpush1.bf16.msra.mxu1 %v459_v16 }
 0x1c6   : > { %v937_v46 = vpop.permute.xlu0 %936 }
 0x1c7   : > { %v455_v8 = vpop.permute.xlu1 %454  ;;  %v996_v34 = vsel %vm974_vm14, %v935_v32, %v937_v46 }
 0x1c8   : > { %1166 = vmatprep.subr.bf16.mxu0 %v996_v34 }
 0x1ca   : > { %v457_v20 = vpop.permute.xlu0 %456 }
 0x1cb   : > { %v468_v43 = vpop.permute.xlu1 %467  ;;  %v462_v39 = vsel %vm458_vm7, %v455_v8, %v457_v20 }
 0x1ce   : > { %v470_v0 = vpop.permute.xlu0 %469 }
 0x1cf   : > { %v479_v57 = vsel %vm477_vm8, %v468_v43, %v470_v0  ;;  %v933_v62 = vpop.permute.xlu1 %932 }
 0x1d0   : > { %v995_v33 = vsel %vm974_vm14, %v933_v62, %v935_v32  ;;  %v667_v11 = vsel %vm341_vm0, %v462_v39, %v479_v57 }
 0x1d1   : > { %1167 = vmatpush1.bf16.msra.mxu0 %v995_v33  ;;  %1100 = vmatprep.subr.bf16.mxu1 %v667_v11 }
 0x1d2   : > { %v453_v2 = vpop.permute.xlu0 %452 }
 0x1d3   : > { %v461_v59 = vsel %vm458_vm7, %v453_v2, %v455_v8  ;;  %v466_v22 = vpop.permute.xlu1 %465 }
 0x1d4   : > { %v478_v50 = vsel %vm477_vm8, %v466_v22, %v468_v43 }
 0x1d5   : > { %v663_v51 = vsel %vm341_vm0, %v461_v59, %v478_v50 }
 0x1d6   : > { %1101 = vmatpush1.bf16.msra.mxu1 %v663_v51  ;;  %v941_v55 = vpop.permute.xlu0 %940 }
 0x1d7   : > { %v943_v5 = vpop.permute.xlu1 %942 }
 0x1d8   : > { %v998_v52 = vsel %vm974_vm14, %v941_v55, %v943_v5 }
 0x1d9   : > { %1168 = vmatprep.subr.bf16.mxu0 %v998_v52 }
 0x1da   : > { %v939_v10 = vpop.permute.xlu0 %938 }
 0x1db   : > { %v997_v41 = vsel %vm974_vm14, %v939_v10, %v941_v55  ;;  %v474_v48 = vpop.permute.xlu1 %473 }
 0x1dc   : > { %1169 = vmatpush1.bf16.msra.mxu0 %v997_v41 }
 0x1de   : > { %v476_v40 = vpop.permute.xlu0 %475 }
 0x1df   : > { %v472_v45 = vpop.permute.xlu1 %471  ;;  %v481_v15 = vsel %vm477_vm8, %v474_v48, %v476_v40 }
 0x1e0   : > { %1102 = vmatprep.subr.bf16.mxu1 %v481_v15  ;;  %v480_v47 = vsel %vm477_vm8, %v472_v45, %v474_v48 }
 0x1e1   : > { %1103 = vmatpush1.bf16.msra.mxu1 %v480_v47 }
 0x1e2   : > { %v947_v17 = vpop.permute.xlu0 %946 }
 0x1e3   : > { %v949_v18 = vpop.permute.xlu1 %948 }
 0x1e4   : > { %v1000_v58 = vsel %vm974_vm14, %v947_v17, %v949_v18 }
 0x1e5   : > { %1170 = vmatprep.subr.bf16.mxu0 %v1000_v58 }
 0x1e6   : > { %v945_v1 = vpop.permute.xlu0 %944 }
 0x1e7   : > { %v999_v28 = vsel %vm974_vm14, %v945_v1, %v947_v17  ;;  %v487_v27 = vpop.permute.xlu1 %486 }
 0x1e8   : > { %1171 = vmatpush1.bf16.msra.mxu0 %v999_v28 }
 0x1ea   : > { %v489_v53 = vpop.permute.xlu0 %488 }
 0x1eb   : > { %v485_v6 = vpop.permute.xlu1 %484  ;;  %v498_v54 = vsel %vm496_vm9, %v487_v27, %v489_v53 }
 0x1ec   : > { %1104 = vmatprep.subr.bf16.mxu1 %v498_v54  ;;  %v497_v30 = vsel %vm496_vm9, %v485_v6, %v487_v27 }
 0x1ed   : > { %1105 = vmatpush1.bf16.msra.mxu1 %v497_v30 }
 0x1ee   : > { %v953_v35 = vpop.permute.xlu0 %952 }
 0x1ef   : > { %v955_v19 = vpop.permute.xlu1 %954 }
 0x1f0   : > { %v1002_v37 = vsel %vm974_vm14, %v953_v35, %v955_v19 }
 0x1f1   : > { %1172 = vmatprep.subr.bf16.mxu0 %v1002_v37 }
 0x1f2   : > { %v493_v9 = vpop.permute.xlu0 %492 }
 0x1f3   : > { %v495_v7 = vpop.permute.xlu1 %494 }
 0x1f4   : > { %v500_v23 = vsel %vm496_vm9, %v493_v9, %v495_v7 }
 0x1f5   : > { %v675_v38 = vsel %vm341_vm0, %v500_v23, %v2149_v44 }
 0x1f6   : > { %1106 = vmatprep.subr.bf16.mxu1 %v675_v38  ;;  %v951_v24 = vpop.permute.xlu0 %950 }
 0x1f7   : > { %v1001_v26 = vsel %vm974_vm14, %v951_v24, %v953_v35  ;;  %v491_v60 = vpop.permute.xlu1 %490 }
 0x1f8   : > { %v499_v25 = vsel %vm496_vm9, %v491_v60, %v493_v9  ;;  %1173 = vmatpush1.bf16.msra.mxu0 %v1001_v26 }
 0x1f9   : > { %v671_v31 = vsel %vm341_vm0, %v499_v25, %v2175_v4  ;;  %v1314_v4 = vcombine.low %v2194_v29, %v2194_v29 }
 0x1fa   : > { %1107 = vmatpush1.bf16.msra.mxu1 %v671_v31  ;;  %v959_v36 = vpop.permute.xlu0 %958 }
 0x1fb   : > { %1108 = vmatprep.subr.bf16.mxu1 %v2186_v61  ;;  %v961_v63 = vpop.permute.xlu1 %960 }
 0x1fc   : > { %v1004_v42 = vsel %vm974_vm14, %v959_v36, %v961_v63 }
 0x1fd   : > { %1174 = vmatprep.subr.bf16.mxu0 %v1004_v42 }
 0x1fe   : > { %1109 = vmatpush1.bf16.msra.mxu1 %v2203_v21  ;;  %v957_v44 = vpop.permute.xlu0 %956 }
 0x1ff   : > { %v1003_v12 = vsel %vm974_vm14, %v957_v44, %v959_v36  ;;  %1110 = vmatprep.subr.bf16.mxu1 %v2209_v3  ;;  %v965_v14 = vpop.permute.xlu1 %964 }
 0x200   : > { %1175 = vmatpush1.bf16.msra.mxu0 %v1003_v12 }
 0x202   : > { %1111 = vmatpush1.bf16.msra.mxu1 %v2219_v13  ;;  %v967_v49 = vpop.permute.xlu0 %966  ;;  %v1318_v13 = vcombine.low %v2245_v56, %v2245_v56 }
 0x203   : > { %v963_v61 = vpop.permute.xlu1 %962  ;;  %v1006_v32 = vsel %vm974_vm14, %v965_v14, %v967_v49 }
 0x204   : > { %v1005_v16 = vsel %vm974_vm14, %v963_v61, %v965_v14  ;;  %1176 = vmatprep.subr.bf16.mxu0 %v1006_v32 }
 0x205   : > { %1177 = vmatpush1.bf16.msra.mxu0 %v1005_v16  ;;  %1113 = vmatmul.mubr.bf16.vlgmr.msra.gmra.mrb[0].mxu1 %v1314_v4 }
 0x206   : > { %v969_v21 = vpop.permute.xlu0 %968 }
 0x207   : > { %v971_v46 = vpop.permute.xlu1 %970 }
 0x208   : > { %v1007_v3 = vsel %vm974_vm14, %v969_v21, %v971_v46 }
 0x209   : > { %v1075_v29 = vsel %vm341_vm0, %v1007_v3, 0 }
 0x20a   : > { %v973_v8 = vpop.permute.xlu0 %972 }
 0x20b   : > { %v1008_v34 = vsel %vm974_vm14, %v971_v46, %v973_v8 }
 0x20c   : > { %1320 = vmatprep.subr.msk.bf16.mxu0 %vm341_vm0, %v1008_v34 }
 0x20d   : > { %1179 = vmatpush1.bf16.msra.mxu0 %v1075_v29 }
 0x210   : > { %1195 = vmatmul.mubr.bf16.vlgmr.msra.gmra.mrb[0].mxu0 %v1318_v13 }
 0x218   : > { %v1048_v57 = vpop.permute.xlu1 %1047 }
 0x2d8   : > { %v1114_v20 = vpop.f32.mrb[0].mxu1 }
 0x2d9   : > { %v1116_v43 = vpop.f32.mrb[1].mxu1  ;;  %v1115_v62 = vadd.f32 %v1114_v20, %v1048_v57 }
 0x2da   : > { %v1118_v0 = vpop.f32.mrb[2].mxu1  ;;  %v1117_v33 = vadd.f32 %v1116_v43, %v1048_v57 }
 0x2db   : > { %v1119_v39 = vpop.f32.mrb[3].mxu1 }
 0x2e3   : > { %v1196_v11 = vpop.f32.mrb[0].mxu0 }
 0x2e4   : > { %v1328_v2 = vadd.f32 %v1196_v11, %v1115_v62  ;;  %v1198_v59 = vpop.f32.mrb[1].mxu0 }
 0x2e5   : > { %v1330_v22 = vadd.f32 %v1198_v59, %v1117_v33  ;;  %v1200_v50 = vpop.f32.mrb[2].mxu0 }
 0x2e6   : > { %v1203_v56 = vmax.f32 %v1328_v2, 0.0  ;;  %v1201_v51 = vpop.f32.mrb[3].mxu0 }
 0x2e7   : > { %v1204_v55 = vmax.f32 %v1330_v22, 0.0 }
 0x2e9   : > { %v1326_v5 = vpack.c.bf16 %v1204_v55, %v1203_v56 }
 0x2eb   : > { %1213 = vst [vmem:[%s309_s19] sm:$0xff] %v1326_v5 }
 0x2ec PF: > { %p11_p12 = scmp.ge.s32.totalorder %s1534_s21, 4   ;;  %s2330_s15 = smov %s1444_s16 }
 0x2ed   : > { %s2331_s16 = smov %s1551_s28  ;;  %s2332_s17 = smov %s1452_s18 }
 0x2ee   : > { %s2333_s18 = smov %s1544_s25  ;;  %s2334_s19 = smov %s1534_s21 }
 0x2ef   :  { %13 = sbr.rel (!%p11_p12) target bundleno = 3 (0x3), region = 155 }

// kernel: global_net_forward.29
= control target key start
LH: loop header
LB: loop body
LE: loop exit
PB: predicated region body
PF: predicated region fallthrough
CT: control target
= control target key end

     0   :  { %s2161_s15 = smov 0   ;;  %s2163_s16 = smov 0   ;;  %s3515_s0 = inlined_call_operand.vmem [shape: bf16[16,3072], index: 0, kind: input, shape index: {}, may-alias: {0,1}]   ;;  %s3516_s1 = inlined_call_operand.vmem [shape: bf16[16,3072], index: 1, kind: input, shape index: {}, may-alias: {0,1}]   ;;  %s3517_s2 = inlined_call_operand.vmem [shape: bf16[8,432], index: 2, kind: input, shape index: {}]   ;;  %s3518_s3 = inlined_call_operand.vmem [shape: f32[8,1], index: 3, kind: input, shape index: {}]   ;;  %s3519_s4 = inlined_call_operand.vmem [shape: bf16[8,2048], index: 4, kind: output, shape index: {}]  }
   0x1   :  { %s2165_s17 = smov 0   ;;  %s2167_s18 = smov 0  }
   0x2   :  { %s2169_s19 = smov 0  }
   0x3 LB: > { %s2188_s21 = sadd.s32 1, %s2110_s19   ;;  %s21_s23 = sadd.s32 1, %s2106_s18  ;;  %s2110_s19 = sphi %s2169_s19, %s3605_s19   ;;  %s2106_s18 = sphi %s2167_s18, %s3604_s18   ;;  %s2102_s17 = sphi %s2165_s17, %s3603_s17   ;;  %s2098_s16 = sphi %s2163_s16, %s3602_s16   ;;  %s2094_s15 = sphi %s2161_s15, %s3601_s15  }
   0x4   : > { %s18_s22 = ssub.s32 %s2110_s19, %s2188_s21  ;;  %p28_p1 = scmp.ne.s32.totalorder %s2106_s18, %s2102_s17 }
   0x5   : > { %p19_p0 = scmp.eq.s32.totalorder %s18_s22, 0  ;;  %p29_p2 = scmp.eq.s32.totalorder %s2110_s19, 0 }
   0x6   : > { %s45_s24 = sadd.s32 1, %s2188_s21  ;;  %s49_s27 = sadd.s32 1, %s2098_s16 }
   0x7   : > { %s2198_s25 = scalar_select %p19_p0, %s2106_s18, %s21_s23  }
   0x8   : > { %p30_p3 = por %p29_p2, %p28_p1  ;;  %s46_s26 = ssub.s32 %s2188_s21, %s45_s24 }
   0x9   : > { %p47_p4 = scmp.eq.s32.totalorder %s46_s26, 0  ;;  %p56_p5 = scmp.ne.s32.totalorder %s2098_s16, %s2094_s15 }
   0xa   : > { %p1928_p7 = scmp.ge.s32.totalorder %s2110_s19, 2 }
   0xb   : > { %s2205_s28 = scalar_select %p47_p4, %s2098_s16, %s49_s27  }
   0xc   : > { %p2207_p6 = por %p56_p5, %p29_p2  ;;  %156 = sbr.rel (%p1928_p7) target bundleno = 35 (0x23), region = 24 }
  0x13   : > { %159 = sbr.rel (!%p30_p3) target bundleno = 27 (0x1b), region = 28  ;;  %s161_s30 = sand.u32 (%p30_p3), 1, %s2106_s18  }
  0x14   : > { %s1971_s5 = sshll.u32 (%p30_p3), %s2110_s19, 5  ;;  %s1929_s6 = sshll.u32 (%p30_p3), %s161_s30, 6 }
  0x15   : > { %s166_s9 = scalar_lea.vmem (%p30_p3), %s3515_s0, %s1971_s5  ;;  %s163_s10 = scalar_lea.vmem (%p30_p3), [#allocation2], %s1929_s6 }
  0x16   : > { %v179_v0 = vld [vmem:[%s166_s9] sm:$0xff] (%p30_p3)  ;;  %v181_v1 = vld [vmem:[%s166_s9 + $0x8] sm:$0xff] (%p30_p3)  ;;  %v183_v2 = vld [vmem:[%s166_s9 + $0x10] sm:$0xff] (%p30_p3) }
  0x17   : > { %180 = vst [vmem:[%s163_s10] sm:$0xff] (%p30_p3), %v179_v0  ;;  %182 = vst [vmem:[%s163_s10 + $0x8] sm:$0xff] (%p30_p3), %v181_v1  ;;  %v185_v3 = vld [vmem:[%s166_s9 + $0x18] sm:$0xff] (%p30_p3)  ;;  %v187_v4 = vld [vmem:[%s166_s9 + $0x60] sm:$0xff] (%p30_p3) }
  0x18   : > { %184 = vst [vmem:[%s163_s10 + $0x10] sm:$0xff] (%p30_p3), %v183_v2  ;;  %v189_v5 = vld [vmem:[%s166_s9 + $0x68] sm:$0xff] (%p30_p3)  ;;  %186 = vst [vmem:[%s163_s10 + $0x18] sm:$0xff] (%p30_p3), %v185_v3  ;;  %v191_v6 = vld [vmem:[%s166_s9 + $0x70] sm:$0xff] (%p30_p3) }
  0x19   : > { %188 = vst [vmem:[%s163_s10 + $0x20] sm:$0xff] (%p30_p3), %v187_v4  ;;  %190 = vst [vmem:[%s163_s10 + $0x28] sm:$0xff] (%p30_p3), %v189_v5  ;;  %v193_v7 = vld [vmem:[%s166_s9 + $0x78] sm:$0xff] (%p30_p3) }
  0x1a   : > { %192 = vst [vmem:[%s163_s10 + $0x30] sm:$0xff] %v191_v6  ;;  %194 = vst [vmem:[%s163_s10 + $0x38] sm:$0xff] %v193_v7 }
  0x1b PF: > { %200 = sbr.rel (!%p2207_p6) target bundleno = 35 (0x23), region = 51  ;;  %s202_s11 = sand.u32 (%p2207_p6), 1, %s2098_s16  }
  0x1c   : > { %s1933_s12 = sshll.u32 (%p2207_p6), %s2110_s19, 5  ;;  %s1932_s13 = sshll.u32 (%p2207_p6), %s202_s11, 6 }
  0x1d   : > { %s1873_s23 = scalar_lea.vmem (%p2207_p6), %s3516_s1, %s1933_s12  ;;  %s204_s24 = scalar_lea.vmem (%p2207_p6), [#allocation3], %s1932_s13 }
  0x1e   : > { %v1934_v8 = vld [vmem:[%s1873_s23 + $0x20] sm:$0xff] (%p2207_p6)  ;;  %v1935_v9 = vld [vmem:[%s1873_s23 + $0x28] sm:$0xff] (%p2207_p6)  ;;  %v1936_v10 = vld [vmem:[%s1873_s23 + $0x30] sm:$0xff] (%p2207_p6) }
  0x1f   : > { %222 = vst [vmem:[%s204_s24] sm:$0xff] (%p2207_p6), %v1934_v8  ;;  %224 = vst [vmem:[%s204_s24 + $0x8] sm:$0xff] (%p2207_p6), %v1935_v9  ;;  %v1937_v11 = vld [vmem:[%s1873_s23 + $0x38] sm:$0xff] (%p2207_p6)  ;;  %v1938_v12 = vld [vmem:[%s1873_s23 + $0x80] sm:$0xff] (%p2207_p6) }
  0x20   : > { %226 = vst [vmem:[%s204_s24 + $0x10] sm:$0xff] (%p2207_p6), %v1936_v10  ;;  %v1939_v13 = vld [vmem:[%s1873_s23 + $0x88] sm:$0xff] (%p2207_p6)  ;;  %228 = vst [vmem:[%s204_s24 + $0x18] sm:$0xff] (%p2207_p6), %v1937_v11  ;;  %v1940_v14 = vld [vmem:[%s1873_s23 + $0x90] sm:$0xff] (%p2207_p6) }
  0x21   : > { %230 = vst [vmem:[%s204_s24 + $0x20] sm:$0xff] (%p2207_p6), %v1938_v12  ;;  %232 = vst [vmem:[%s204_s24 + $0x28] sm:$0xff] (%p2207_p6), %v1939_v13  ;;  %v1941_v15 = vld [vmem:[%s1873_s23 + $0x98] sm:$0xff] (%p2207_p6) }
  0x22   : > { %234 = vst [vmem:[%s204_s24 + $0x30] sm:$0xff] %v1940_v14  ;;  %236 = vst [vmem:[%s204_s24 + $0x38] sm:$0xff] %v1941_v15 }
  0x23 PF: > { %p1942_p8 = scmp.ge.s32.totalorder %s2110_s19, 1  ;;  %p241_p9 = scmp.lt.s32.totalorder %s2110_s19, 3 }
  0x25   : > { %p242_p10 = pnand %p1942_p8, %p241_p9 }
  0x27   : > { %245 = sbr.rel (%p242_p10) target bundleno = 990 (0x3de), region = 74 }
  0x2e   : > { %s248_s26 = sand.u32 1, %s2102_s17   ;;  %s2112_s30 = smov 127   ;;  %vm370_vm0 = vcmask 1039360   ;;  %vm405_vm1 = vcmask 1031168   ;;  %vm440_vm2 = vcmask 965632   ;;  %vm475_vm3 = vcmask 957440  }
  0x2f   : > { %s1943_s27 = sshll.u32 %s248_s26, 6  ;;  %s255_s17 = sand.u32 1, %s2094_s15   ;;  %vm510_vm4 = vcmask 949248   ;;  %vm545_vm5 = vcmask 883712   ;;  %vm580_vm6 = vcmask 875520   ;;  %vm3533_vm7 = vcmask 867328  }
  0x30   : > { %s250_s29 = scalar_lea.vmem [#allocation2], %s1943_s27  ;;  %s1944_s5 = sshll.u32 %s255_s17, 6  ;;  %vm895_vm8 = vcmask 400384   ;;  %vm922_vm9 = vcmask 392192   ;;  %vm650_vm10 = vcmask 228352   ;;  %vm949_vm11 = vcmask 384000  }
  0x31   : > { %v295_v16 = vld [vmem:[%s250_s29 + $0x8] sm:$0xff]  ;;  %v294_v18 = vld [vmem:[%s250_s29] sm:$0xff]  ;;  %v296_v24 = vld [vmem:[%s250_s29 + $0x10] sm:$0xff]  ;;  %s2254_s15 = scalar_lea.vmem [#allocation3], %s1944_s5  ;;  %s2113_s6 = smov 126   ;;  %vm976_vm12 = vcmask 318464  }
  0x32   : > { %v299_v17 = vld [vmem:[%s250_s29 + $0x28] sm:$0xff]  ;;  %v298_v20 = vld [vmem:[%s250_s29 + $0x20] sm:$0xff]  ;;  %v300_v25 = vld [vmem:[%s250_s29 + $0x30] sm:$0xff]  ;;  %s2114_s7 = smov 118   ;;  %s2115_s8 = smov 117   ;;  %vm685_vm13 = vcmask 220160  }
  0x33   : > { %v2227_v19 = vcombine.low %v295_v16, %v299_v17  ;;  %v2229_v21 = vcombine.high %v295_v16, %v299_v17  ;;  %v2231_v22 = vcombine.low %v294_v18, %v298_v20  ;;  %v2233_v23 = vcombine.high %v294_v18, %v298_v20  ;;  %v297_v28 = vld [vmem:[%s250_s29 + $0x18] sm:$0xff]  ;;  %v302_v32 = vld [vmem:[%s2254_s15] sm:$0xff]  ;;  %s2116_s9 = smov 116   ;;  %s2117_s10 = smov 108  }
  0x34   : > { %v2243_v26 = vcombine.high %v296_v24, %v300_v25  ;;  %v2246_v27 = vcombine.low %v296_v24, %v300_v25  ;;  %v301_v29 = vld [vmem:[%s250_s29 + $0x38] sm:$0xff]  ;;  %v303_v33 = vld [vmem:[%s2254_s15 + $0x20] sm:$0xff]  ;;  %s2118_s11 = smov 107   ;;  %s2119_s12 = smov 49   ;;  %vm3535_vm14 = vcmask 310272   ;;  %vm3536_vm15 = vcmask 211968  }
  0x35   : > { %356 = vrot.lane.b32.xlu1 %v2227_v19, %s2112_s30  ;;  %1554 = vmatprep.subr.bf16.mxu1 %v2229_v21  ;;  %v2249_v30 = vcombine.high %v297_v28, %v301_v29  ;;  %v2252_v31 = vcombine.low %v297_v28, %v301_v29  ;;  %v2260_v34 = vcombine.low %v302_v32, %v303_v33  ;;  %s2120_s13 = smov 48   ;;  %s2121_s14 = smov 47  }
  0x36   : > { %352 = vrot.lane.b32.xlu0 %v2231_v22, %s2112_s30  ;;  %1472 = vmatprep.subr.bf16.mxu0 %v2233_v23  ;;  %s2122_s22 = smov 39   ;;  %s2123_s23 = smov 38  }
  0x37   : > { %1473 = vmatpush1.bf16.msra.mxu0 %v2231_v22  ;;  %1555 = vmatpush1.bf16.msra.mxu1 %v2227_v19  ;;  %s2124_s24 = smov 106   ;;  %s2125_s26 = smov 37  }
  0x38   : > { %s2126_s27 = smov 28   ;;  %s2127_s29 = smov 29  }
  0x39   : > { %358 = vrot.lane.b32.xlu1 %v2229_v21, %s2112_s30  ;;  %s2129_s17 = smov 26   ;;  %s2130_s5 = smov 18  }
  0x3a   : > { %354 = vrot.lane.b32.xlu0 %v2233_v23, %s2112_s30 }
  0x3d   : > { %362 = vrot.lane.b32.xlu1 %v2243_v26, %s2112_s30 }
  0x3e   : > { %360 = vrot.lane.b32.xlu0 %v2246_v27, %s2112_s30 }
  0x41   : > { %366 = vrot.lane.b32.xlu1 %v2249_v30, %s2112_s30 }
  0x42   : > { %364 = vrot.lane.b32.xlu0 %v2252_v31, %s2112_s30 }
  0x45   : > { %387 = vrot.lane.b32.xlu1 %v2231_v22, %s2113_s6 }
  0x46   : > { %368 = vrot.lane.b32.xlu0 %v2260_v34, %s2112_s30  ;;  %s2128_s30 = smov 27  }
  0x49   : > { %391 = vrot.lane.b32.xlu1 %v2227_v19, %s2113_s6 }
  0x4a   : > { %389 = vrot.lane.b32.xlu0 %v2233_v23, %s2113_s6 }
  0x4d   : > { %395 = vrot.lane.b32.xlu1 %v2246_v27, %s2113_s6 }
  0x4e   : > { %393 = vrot.lane.b32.xlu0 %v2229_v21, %s2113_s6 }
  0x51   : > { %399 = vrot.lane.b32.xlu1 %v2252_v31, %s2113_s6 }
  0x52   : > { %397 = vrot.lane.b32.xlu0 %v2243_v26, %s2113_s6 }
  0x55   : > { %403 = vrot.lane.b32.xlu1 %v2260_v34, %s2113_s6 }
  0x56   : > { %401 = vrot.lane.b32.xlu0 %v2249_v30, %s2113_s6  ;;  %s2131_s6 = smov 17  }
  0x59   : > { %424 = vrot.lane.b32.xlu1 %v2233_v23, %s2114_s7 }
  0x5a   : > { %422 = vrot.lane.b32.xlu0 %v2231_v22, %s2114_s7 }
  0x5d   : > { %428 = vrot.lane.b32.xlu1 %v2229_v21, %s2114_s7 }
  0x5e   : > { %426 = vrot.lane.b32.xlu0 %v2227_v19, %s2114_s7 }
  0x61   : > { %432 = vrot.lane.b32.xlu1 %v2243_v26, %s2114_s7 }
  0x62   : > { %430 = vrot.lane.b32.xlu0 %v2246_v27, %s2114_s7 }
  0x65   : > { %436 = vrot.lane.b32.xlu1 %v2249_v30, %s2114_s7 }
  0x66   : > { %434 = vrot.lane.b32.xlu0 %v2252_v31, %s2114_s7 }
  0x69   : > { %457 = vrot.lane.b32.xlu1 %v2231_v22, %s2115_s8 }
  0x6a   : > { %438 = vrot.lane.b32.xlu0 %v2260_v34, %s2114_s7  ;;  %s2132_s7 = smov 16  }
  0x6d   : > { %461 = vrot.lane.b32.xlu1 %v2227_v19, %s2115_s8 }
  0x6e   : > { %459 = vrot.lane.b32.xlu0 %v2233_v23, %s2115_s8 }
  0x71   : > { %465 = vrot.lane.b32.xlu1 %v2246_v27, %s2115_s8 }
  0x72   : > { %463 = vrot.lane.b32.xlu0 %v2229_v21, %s2115_s8 }
  0x75   : > { %469 = vrot.lane.b32.xlu1 %v2252_v31, %s2115_s8 }
  0x76   : > { %467 = vrot.lane.b32.xlu0 %v2243_v26, %s2115_s8 }
  0x79   : > { %473 = vrot.lane.b32.xlu1 %v2260_v34, %s2115_s8 }
  0x7a   : > { %471 = vrot.lane.b32.xlu0 %v2249_v30, %s2115_s8  ;;  %s2133_s8 = smov 8  }
  0x7d   : > { %494 = vrot.lane.b32.xlu1 %v2233_v23, %s2116_s9 }
  0x7e   : > { %492 = vrot.lane.b32.xlu0 %v2231_v22, %s2116_s9 }
  0x81   : > { %498 = vrot.lane.b32.xlu1 %v2229_v21, %s2116_s9 }
  0x82   : > { %496 = vrot.lane.b32.xlu0 %v2227_v19, %s2116_s9 }
  0x85   : > { %502 = vrot.lane.b32.xlu1 %v2243_v26, %s2116_s9 }
  0x86   : > { %500 = vrot.lane.b32.xlu0 %v2246_v27, %s2116_s9 }
  0x89   : > { %506 = vrot.lane.b32.xlu1 %v2249_v30, %s2116_s9 }
  0x8a   : > { %504 = vrot.lane.b32.xlu0 %v2252_v31, %s2116_s9 }
  0x8d   : > { %527 = vrot.lane.b32.xlu1 %v2231_v22, %s2117_s10 }
  0x8e   : > { %508 = vrot.lane.b32.xlu0 %v2260_v34, %s2116_s9  ;;  %s2134_s9 = smov 7  }
  0x91   : > { %531 = vrot.lane.b32.xlu1 %v2227_v19, %s2117_s10 }
  0x92   : > { %529 = vrot.lane.b32.xlu0 %v2233_v23, %s2117_s10 }
  0x95   : > { %535 = vrot.lane.b32.xlu1 %v2246_v27, %s2117_s10 }
  0x96   : > { %533 = vrot.lane.b32.xlu0 %v2229_v21, %s2117_s10 }
  0x99   : > { %539 = vrot.lane.b32.xlu1 %v2252_v31, %s2117_s10 }
  0x9a   : > { %537 = vrot.lane.b32.xlu0 %v2243_v26, %s2117_s10 }
  0x9d   : > { %543 = vrot.lane.b32.xlu1 %v2260_v34, %s2117_s10 }
  0x9e   : > { %541 = vrot.lane.b32.xlu0 %v2249_v30, %s2117_s10 }
  0xa1   : > { %564 = vrot.lane.b32.xlu1 %v2233_v23, %s2118_s11 }
  0xa2   : > { %562 = vrot.lane.b32.xlu0 %v2231_v22, %s2118_s11 }
  0xa5   : > { %568 = vrot.lane.b32.xlu1 %v2229_v21, %s2118_s11 }
  0xa6   : > { %566 = vrot.lane.b32.xlu0 %v2227_v19, %s2118_s11 }
  0xa7   : > { %v357_v35 = vpop.permute.xlu1 %356 }
  0xa8   : > { %v353_v36 = vpop.permute.xlu0 %352 }
  0xa9   : > { %572 = vrot.lane.b32.xlu1 %v2243_v26, %s2118_s11 }
  0xaa   : > { %570 = vrot.lane.b32.xlu0 %v2246_v27, %s2118_s11 }
  0xab   : > { %v359_v37 = vpop.permute.xlu1 %358 }
  0xac   : > { %v355_v38 = vpop.permute.xlu0 %354  ;;  %v2346_v44 = vsel %vm370_vm0, %v357_v35, %v359_v37 }
  0xad   : > { %877 = vrot.lane.b32.xlu1 %v2233_v23, %s2119_s12  ;;  %v2323_v39 = vsel %vm370_vm0, %v355_v38, %v357_v35  ;;  %v2326_v40 = vsel %vm370_vm0, %v353_v36, %v355_v38 }
  0xae   : > { %574 = vrot.lane.b32.xlu0 %v2252_v31, %s2118_s11  ;;  %1474 = vmatprep.subr.bf16.mxu0 %v2323_v39 }
  0xaf   : > { %1475 = vmatpush1.bf16.msra.mxu0 %v2326_v40  ;;  %v2332_v41 = vpop.permute.xlu1 %362 }
  0xb0   : > { %v2334_v42 = vpop.permute.xlu0 %360 }
  0xb1   : > { %881 = vrot.lane.b32.xlu1 %v2229_v21, %s2119_s12  ;;  %v2340_v43 = vsel %vm370_vm0, %v359_v37, %v2334_v42 }
  0xb2   : > { %879 = vrot.lane.b32.xlu0 %v2227_v19, %s2119_s12  ;;  %1556 = vmatprep.subr.bf16.mxu1 %v2340_v43 }
  0xb3   : > { %1557 = vmatpush1.bf16.msra.mxu1 %v2346_v44  ;;  %v2349_v45 = vpop.permute.xlu1 %366 }
  0xb4   : > { %v2351_v46 = vpop.permute.xlu0 %364 }
  0xb5   : > { %885 = vrot.lane.b32.xlu1 %v2243_v26, %s2119_s12 }
  0xb6   : > { %883 = vrot.lane.b32.xlu0 %v2246_v27, %s2119_s12 }
  0xb7   : > { %v388_v47 = vpop.permute.xlu1 %387 }
  0xb8   : > { %v2357_v48 = vpop.permute.xlu0 %368 }
  0xb9   : > { %906 = vrot.lane.b32.xlu1 %v2227_v19, %s2120_s13 }
  0xba   : > { %904 = vrot.lane.b32.xlu0 %v2233_v23, %s2120_s13 }
  0xbb   : > { %v392_v49 = vpop.permute.xlu1 %391 }
  0xbc   : > { %v390_v50 = vpop.permute.xlu0 %389 }
  0xbd   : > { %910 = vrot.lane.b32.xlu1 %v2246_v27, %s2120_s13  ;;  %v407_v51 = vsel %vm405_vm1, %v390_v50, %v392_v49  ;;  %v406_v52 = vsel %vm405_vm1, %v388_v47, %v390_v50 }
  0xbe   : > { %908 = vrot.lane.b32.xlu0 %v2229_v21, %s2120_s13  ;;  %1476 = vmatprep.subr.bf16.mxu0 %v407_v51 }
  0xbf   : > { %1477 = vmatpush1.bf16.msra.mxu0 %v406_v52  ;;  %v2369_v53 = vpop.permute.xlu1 %395 }
  0xc0   : > { %v394_v54 = vpop.permute.xlu0 %393 }
  0xc1   : > { %931 = vrot.lane.b32.xlu1 %v2233_v23, %s2121_s14  ;;  %v409_v55 = vsel %vm405_vm1, %v394_v54, %v2369_v53  ;;  %v408_v56 = vsel %vm405_vm1, %v392_v49, %v394_v54 }
  0xc2   : > { %912 = vrot.lane.b32.xlu0 %v2243_v26, %s2120_s13  ;;  %1558 = vmatprep.subr.bf16.mxu1 %v409_v55 }
  0xc3   : > { %1559 = vmatpush1.bf16.msra.mxu1 %v408_v56  ;;  %v2378_v57 = vpop.permute.xlu1 %399 }
  0xc4   : > { %v2380_v58 = vpop.permute.xlu0 %397 }
  0xc5   : > { %935 = vrot.lane.b32.xlu1 %v2229_v21, %s2121_s14 }
  0xc6   : > { %933 = vrot.lane.b32.xlu0 %v2227_v19, %s2121_s14 }
  0xc7   : > { %v2386_v59 = vpop.permute.xlu1 %403 }
  0xc8   : > { %v2388_v60 = vpop.permute.xlu0 %401 }
  0xc9   : > { %939 = vrot.lane.b32.xlu1 %v2243_v26, %s2121_s14 }
  0xca   : > { %937 = vrot.lane.b32.xlu0 %v2246_v27, %s2121_s14 }
  0xcb   : > { %v425_v61 = vpop.permute.xlu1 %424 }
  0xcc   : > { %v423_v62 = vpop.permute.xlu0 %422 }
  0xcd   : > { %960 = vrot.lane.b32.xlu1 %v2227_v19, %s2122_s22  ;;  %v441_v2 = vsel %vm440_vm2, %v423_v62, %v425_v61 }
  0xce   : > { %958 = vrot.lane.b32.xlu0 %v2233_v23, %s2122_s22 }
  0xcf   : > { %v429_v63 = vpop.permute.xlu1 %428 }
  0xd0   : > { %v427_v0 = vpop.permute.xlu0 %426 }
  0xd1   : > { %964 = vrot.lane.b32.xlu1 %v2246_v27, %s2122_s22  ;;  %v442_v1 = vsel %vm440_vm2, %v425_v61, %v427_v0  ;;  %v443_v6 = vsel %vm440_vm2, %v427_v0, %v429_v63 }
  0xd2   : > { %962 = vrot.lane.b32.xlu0 %v2229_v21, %s2122_s22  ;;  %1478 = vmatprep.subr.bf16.mxu0 %v442_v1 }
  0xd3   : > { %1479 = vmatpush1.bf16.msra.mxu0 %v441_v2  ;;  %v2404_v3 = vpop.permute.xlu1 %432 }
  0xd4   : > { %v2406_v4 = vpop.permute.xlu0 %430 }
  0xd5   : > { %985 = vrot.lane.b32.xlu1 %v2233_v23, %s2123_s23  ;;  %v444_v5 = vsel %vm440_vm2, %v429_v63, %v2406_v4 }
  0xd6   : > { %966 = vrot.lane.b32.xlu0 %v2243_v26, %s2122_s22  ;;  %1560 = vmatprep.subr.bf16.mxu1 %v444_v5 }
  0xd7   : > { %1561 = vmatpush1.bf16.msra.mxu1 %v443_v6  ;;  %v2415_v7 = vpop.permute.xlu1 %436 }
  0xd8   : > { %v2417_v8 = vpop.permute.xlu0 %434 }
  0xd9   : > { %989 = vrot.lane.b32.xlu1 %v2229_v21, %s2123_s23 }
  0xda   : > { %987 = vrot.lane.b32.xlu0 %v2227_v19, %s2123_s23 }
  0xdb   : > { %v458_v9 = vpop.permute.xlu1 %457 }
  0xdc   : > { %v2423_v10 = vpop.permute.xlu0 %438 }
  0xdd   : > { %993 = vrot.lane.b32.xlu1 %v2243_v26, %s2123_s23 }
  0xde   : > { %991 = vrot.lane.b32.xlu0 %v2246_v27, %s2123_s23 }
  0xdf   : > { %v462_v11 = vpop.permute.xlu1 %461 }
  0xe0   : > { %v460_v12 = vpop.permute.xlu0 %459 }
  0xe1   : > { %601 = vrot.lane.b32.xlu1 %v2227_v19, %s2124_s24  ;;  %v477_v13 = vsel %vm475_vm3, %v460_v12, %v462_v11  ;;  %v476_v14 = vsel %vm475_vm3, %v458_v9, %v460_v12 }
  0xe2   : > { %599 = vrot.lane.b32.xlu0 %v2233_v23, %s2124_s24  ;;  %1480 = vmatprep.subr.bf16.mxu0 %v477_v13 }
  0xe3   : > { %1481 = vmatpush1.bf16.msra.mxu0 %v476_v14  ;;  %v2435_v15 = vpop.permute.xlu1 %465 }
  0xe4   : > { %v464_v16 = vpop.permute.xlu0 %463 }
  0xe5   : > { %605 = vrot.lane.b32.xlu1 %v2246_v27, %s2124_s24  ;;  %v479_v17 = vsel %vm475_vm3, %v464_v16, %v2435_v15  ;;  %v478_v18 = vsel %vm475_vm3, %v462_v11, %v464_v16 }
  0xe6   : > { %603 = vrot.lane.b32.xlu0 %v2229_v21, %s2124_s24  ;;  %1562 = vmatprep.subr.bf16.mxu1 %v479_v17 }
  0xe7   : > { %1563 = vmatpush1.bf16.msra.mxu1 %v478_v18  ;;  %v2444_v20 = vpop.permute.xlu1 %469 }
  0xe8   : > { %v2446_v24 = vpop.permute.xlu0 %467 }
  0xe9   : > { %1012 = vrot.lane.b32.xlu1 %v2233_v23, %s2125_s26 }
  0xea   : > { %597 = vrot.lane.b32.xlu0 %v2231_v22, %s2124_s24 }
  0xeb   : > { %v2452_v25 = vpop.permute.xlu1 %473 }
  0xec   : > { %v2454_v28 = vpop.permute.xlu0 %471 }
  0xed   : > { %1016 = vrot.lane.b32.xlu1 %v2229_v21, %s2125_s26 }
  0xee   : > { %1014 = vrot.lane.b32.xlu0 %v2227_v19, %s2125_s26 }
  0xef   : > { %v495_v29 = vpop.permute.xlu1 %494 }
  0xf0   : > { %v493_v32 = vpop.permute.xlu0 %492 }
  0xf1   : > { %1020 = vrot.lane.b32.xlu1 %v2243_v26, %s2125_s26  ;;  %v511_v37 = vsel %vm510_vm4, %v493_v32, %v495_v29 }
  0xf2   : > { %1018 = vrot.lane.b32.xlu0 %v2246_v27, %s2125_s26 }
  0xf3   : > { %v499_v33 = vpop.permute.xlu1 %498 }
  0xf4   : > { %v497_v35 = vpop.permute.xlu0 %496 }
  0xf5   : > { %636 = vrot.lane.b32.xlu1 %v2227_v19, %s2126_s27  ;;  %v512_v36 = vsel %vm510_vm4, %v495_v29, %v497_v35  ;;  %v513_v50 = vsel %vm510_vm4, %v497_v35, %v499_v33 }
  0xf6   : > { %634 = vrot.lane.b32.xlu0 %v2233_v23, %s2126_s27  ;;  %1482 = vmatprep.subr.bf16.mxu0 %v512_v36 }
  0xf7   : > { %1483 = vmatpush1.bf16.msra.mxu0 %v511_v37  ;;  %v2470_v38 = vpop.permute.xlu1 %502 }
  0xf8   : > { %3542 = vst [vmem:[#allocation4_spill] sm:$0xff] %v2470_v38  ;;  %v2472_v47 = vpop.permute.xlu0 %500 }
  0xf9   : > { %3543 = vst [vmem:[#allocation5_spill] sm:$0xff] %v2472_v47  ;;  %640 = vrot.lane.b32.xlu1 %v2246_v27, %s2126_s27  ;;  %v514_v49 = vsel %vm510_vm4, %v499_v33, %v2472_v47 }
  0xfa   : > { %638 = vrot.lane.b32.xlu0 %v2229_v21, %s2126_s27  ;;  %1564 = vmatprep.subr.bf16.mxu1 %v514_v49 }
  0xfb   : > { %1565 = vmatpush1.bf16.msra.mxu1 %v513_v50  ;;  %v2481_v51 = vpop.permute.xlu1 %506 }
  0xfc   : > { %v2483_v52 = vpop.permute.xlu0 %504 }
  0xfd   : > { %3544 = vst [vmem:[#allocation6_spill] sm:$0xff] %v2483_v52  ;;  %1039 = vrot.lane.b32.xlu1 %v2233_v23, %s2127_s29 }
  0xfe   : > { %632 = vrot.lane.b32.xlu0 %v2231_v22, %s2126_s27 }
  0xff   : > { %v528_v54 = vpop.permute.xlu1 %527 }
 0x100   : > { %v2489_v55 = vpop.permute.xlu0 %508 }
 0x101   : > { %1043 = vrot.lane.b32.xlu1 %v2229_v21, %s2127_s29 }
 0x102   : > { %1041 = vrot.lane.b32.xlu0 %v2227_v19, %s2127_s29 }
 0x103   : > { %v532_v56 = vpop.permute.xlu1 %531 }
 0x104   : > { %v530_v61 = vpop.permute.xlu0 %529 }
 0x105   : > { %1047 = vrot.lane.b32.xlu1 %v2243_v26, %s2127_s29  ;;  %v547_v62 = vsel %vm545_vm5, %v530_v61, %v532_v56  ;;  %v546_v63 = vsel %vm545_vm5, %v528_v54, %v530_v61 }
 0x106   : > { %1045 = vrot.lane.b32.xlu0 %v2246_v27, %s2127_s29  ;;  %1484 = vmatprep.subr.bf16.mxu0 %v547_v62 }
 0x107   : > { %1485 = vmatpush1.bf16.msra.mxu0 %v546_v63  ;;  %v2501_v0 = vpop.permute.xlu1 %535 }
 0x108   : > { %3545 = vst [vmem:[#allocation7_spill] sm:$0xff] %v2501_v0  ;;  %v534_v1 = vpop.permute.xlu0 %533 }
 0x109   : > { %671 = vrot.lane.b32.xlu1 %v2227_v19, %s2128_s30  ;;  %v549_v2 = vsel %vm545_vm5, %v534_v1, %v2501_v0  ;;  %v548_v5 = vsel %vm545_vm5, %v532_v56, %v534_v1 }
 0x10a   : > { %669 = vrot.lane.b32.xlu0 %v2233_v23, %s2128_s30  ;;  %1566 = vmatprep.subr.bf16.mxu1 %v549_v2 }
 0x10b   : > { %1567 = vmatpush1.bf16.msra.mxu1 %v548_v5  ;;  %v2510_v6 = vpop.permute.xlu1 %539 }
 0x10c   : > { %3546 = vst [vmem:[#allocation8_spill] sm:$0xff] %v2510_v6  ;;  %v2512_v9 = vpop.permute.xlu0 %537 }
 0x10d   : > { %3547 = vst [vmem:[#allocation9_spill] sm:$0xff] %v2512_v9  ;;  %675 = vrot.lane.b32.xlu1 %v2246_v27, %s2128_s30 }
 0x10e   : > { %673 = vrot.lane.b32.xlu0 %v2229_v21, %s2128_s30 }
 0x10f   : > { %v2518_v11 = vpop.permute.xlu1 %543 }
 0x110   : > { %3548 = vst [vmem:[#allocation10_spill] sm:$0xff] %v2518_v11  ;;  %v2520_v12 = vpop.permute.xlu0 %541 }
 0x111   : > { %3549 = vst [vmem:[#allocation11_spill] sm:$0xff] %v2520_v12  ;;  %667 = vrot.lane.b32.xlu1 %v2231_v22, %s2128_s30 }
 0x112   : > { %642 = vrot.lane.b32.xlu0 %v2243_v26, %s2126_s27 }
 0x113   : > { %v565_v13 = vpop.permute.xlu1 %564 }
 0x114   : > { %v563_v14 = vpop.permute.xlu0 %562 }
 0x115   : > { %706 = vrot.lane.b32.xlu1 %v2227_v19, %s2129_s17  ;;  %v581_v29 = vsel %vm580_vm6, %v563_v14, %v565_v13 }
 0x116   : > { %704 = vrot.lane.b32.xlu0 %v2233_v23, %s2129_s17 }
 0x117   : > { %v569_v16 = vpop.permute.xlu1 %568 }
 0x118   : > { %v567_v17 = vpop.permute.xlu0 %566 }
 0x119   : > { %710 = vrot.lane.b32.xlu1 %v2246_v27, %s2129_s17  ;;  %v582_v18 = vsel %vm580_vm6, %v565_v13, %v567_v17  ;;  %v583_v36 = vsel %vm580_vm6, %v567_v17, %v569_v16 }
 0x11a   : > { %708 = vrot.lane.b32.xlu0 %v2229_v21, %s2129_s17  ;;  %1486 = vmatprep.subr.bf16.mxu0 %v582_v18 }
 0x11b   : > { %1487 = vmatpush1.bf16.msra.mxu0 %v581_v29  ;;  %v2536_v32 = vpop.permute.xlu1 %572 }
 0x11c   : > { %3550 = vst [vmem:[#allocation12_spill] sm:$0xff] %v2536_v32  ;;  %v2538_v33 = vpop.permute.xlu0 %570 }
 0x11d   : > { %3551 = vst [vmem:[#allocation13_spill] sm:$0xff] %v2538_v33  ;;  %702 = vrot.lane.b32.xlu1 %v2231_v22, %s2129_s17  ;;  %v584_v35 = vsel %vm580_vm6, %v569_v16, %v2538_v33 }
 0x11e   : > { %677 = vrot.lane.b32.xlu0 %v2243_v26, %s2128_s30  ;;  %1568 = vmatprep.subr.bf16.mxu1 %v584_v35  ;;  %v2616_v35 = vld [vmem:[%s3517_s2] sm:$0xff] }
 0x11f   : > { %1569 = vmatpush1.bf16.msra.mxu1 %v583_v36  ;;  %v2547_v37 = vpop.permute.xlu1 %877  ;;  %v2622_v33 = vcombine.high %v2616_v35, %v2616_v35 }
 0x120   : > { %v2549_v49 = vpop.permute.xlu0 %574 }
 0x121   : > { %3552 = vst [vmem:[#allocation14_spill] sm:$0xff] %v2549_v49  ;;  %741 = vrot.lane.b32.xlu1 %v2227_v19, %s2130_s5  ;;  %1586 = vmatprep.mubr.bf16.mxu1 %v2622_v33 }
 0x122   : > { %739 = vrot.lane.b32.xlu0 %v2233_v23, %s2130_s5  ;;  %1504 = vmatprep.mubr.bf16.mxu0 %v2622_v33 }
 0x123   : > { %v2555_v50 = vpop.permute.xlu1 %881 }
 0x124   : > { %v2557_v54 = vpop.permute.xlu0 %879 }
 0x125   : > { %745 = vrot.lane.b32.xlu1 %v2246_v27, %s2130_s5 }
 0x126   : > { %743 = vrot.lane.b32.xlu0 %v2229_v21, %s2130_s5 }
 0x127   : > { %v2563_v56 = vpop.permute.xlu1 %885 }
 0x128   : > { %v2565_v61 = vpop.permute.xlu0 %883 }
 0x129   : > { %774 = vrot.lane.b32.xlu1 %v2233_v23, %s2131_s6 }
 0x12a   : > { %737 = vrot.lane.b32.xlu0 %v2231_v22, %s2130_s5 }
 0x12b   : > { %v2571_v62 = vpop.permute.xlu1 %906 }
 0x12c   : > { %v2573_v63 = vpop.permute.xlu0 %904 }
 0x12d   : > { %778 = vrot.lane.b32.xlu1 %v2229_v21, %s2131_s6 }
 0x12e   : > { %776 = vrot.lane.b32.xlu0 %v2227_v19, %s2131_s6 }
 0x12f   : > { %v2579_v1 = vpop.permute.xlu1 %910 }
 0x130   : > { %v2581_v2 = vpop.permute.xlu0 %908 }
 0x131   : > { %772 = vrot.lane.b32.xlu1 %v2231_v22, %s2131_s6 }
 0x132   : > { %780 = vrot.lane.b32.xlu0 %v2246_v27, %s2131_s6 }
 0x133   : > { %v2587_v5 = vpop.permute.xlu1 %931 }
 0x134   : > { %v2589_v13 = vpop.permute.xlu0 %912 }
 0x135   : > { %811 = vrot.lane.b32.xlu1 %v2227_v19, %s2132_s7 }
 0x136   : > { %809 = vrot.lane.b32.xlu0 %v2233_v23, %s2132_s7 }
 0x137   : > { %v2595_v14 = vpop.permute.xlu1 %935 }
 0x138   : > { %v2597_v16 = vpop.permute.xlu0 %933 }
 0x139   : > { %815 = vrot.lane.b32.xlu1 %v2246_v27, %s2132_s7 }
 0x13a   : > { %813 = vrot.lane.b32.xlu0 %v2229_v21, %s2132_s7 }
 0x13b   : > { %v2603_v17 = vpop.permute.xlu1 %939 }
 0x13c   : > { %3553 = vst [vmem:[#allocation15_spill] sm:$0xff] %v2603_v17  ;;  %v2605_v18 = vpop.permute.xlu0 %937 }
 0x13d   : > { %844 = vrot.lane.b32.xlu1 %v2233_v23, %s2133_s8 }
 0x13e   : > { %807 = vrot.lane.b32.xlu0 %v2231_v22, %s2132_s7 }
 0x13f   : > { %v2611_v29 = vpop.permute.xlu1 %960 }
 0x140   : > { %v2618_v36 = vpop.permute.xlu0 %958 }
 0x141   : > { %848 = vrot.lane.b32.xlu1 %v2229_v21, %s2133_s8 }
 0x142   : > { %846 = vrot.lane.b32.xlu0 %v2227_v19, %s2133_s8 }
 0x143   : > { %v2629_v32 = vpop.permute.xlu1 %964 }
 0x144   : > { %v2632_v49 = vpop.permute.xlu0 %962 }
 0x145   : > { %842 = vrot.lane.b32.xlu1 %v2231_v22, %s2133_s8 }
 0x146   : > { %850 = vrot.lane.b32.xlu0 %v2246_v27, %s2133_s8 }
 0x147   : > { %v2638_v0 = vpop.permute.xlu1 %985 }
 0x148   : > { %v2640_v9 = vpop.permute.xlu0 %966 }
 0x149   : > { %3554 = vst [vmem:[#allocation16_spill] sm:$0xff] %v2640_v9  ;;  %1076 = vrot.lane.b32.xlu1 %v2227_v19, %s2134_s9 }
 0x14a   : > { %1074 = vrot.lane.b32.xlu0 %v2233_v23, %s2134_s9 }
 0x14b   : > { %v2646_v6 = vpop.permute.xlu1 %989 }
 0x14c   : > { %v2648_v47 = vpop.permute.xlu0 %987 }
 0x14d   : > { %1080 = vrot.lane.b32.xlu1 %v2246_v27, %s2134_s9 }
 0x14e   : > { %1078 = vrot.lane.b32.xlu0 %v2229_v21, %s2134_s9 }
 0x14f   : > { %v2654_v12 = vpop.permute.xlu1 %993 }
 0x150   : > { %3555 = vst [vmem:[#allocation17_spill] sm:$0xff] %v2654_v12  ;;  %v2656_v11 = vpop.permute.xlu0 %991 }
 0x151   : > { %1092 = vrot.lane.b32.xlu1 %v2323_v39, %s2134_s9 }
 0x152   : > { %1072 = vrot.lane.b32.xlu0 %v2231_v22, %s2134_s9  ;;  %v2674_v22 = vsel %vm370_vm0, %v2334_v42, %v2332_v41  ;;  %v896_v42 = vsel %vm895_vm8, %v2547_v37, %v2557_v54 }
 0x153   : > { %v602_v19 = vpop.permute.xlu1 %601 }
 0x154   : > { %v600_v23 = vpop.permute.xlu0 %599 }
 0x155   : > { %1096 = vrot.lane.b32.xlu1 %v2340_v43, %s2134_s9  ;;  %v617_v38 = vsel %vm3533_vm7, %v600_v23, %v602_v19 }
 0x156   : > { %1094 = vrot.lane.b32.xlu0 %v2346_v44, %s2134_s9  ;;  %1488 = vmatprep.subr.bf16.mxu0 %v617_v38 }
 0x157   : > { %v2667_v21 = vpop.permute.xlu1 %605 }
 0x158   : > { %3556 = vst [vmem:[#allocation18_spill] sm:$0xff] %v2667_v21  ;;  %v604_v52 = vpop.permute.xlu0 %603 }
 0x159   : > { %1090 = vrot.lane.b32.xlu1 %v2326_v40, %s2134_s9  ;;  %v619_v39 = vsel %vm3533_vm7, %v604_v52, %v2667_v21  ;;  %v618_v43 = vsel %vm3533_vm7, %v602_v19, %v604_v52  ;;  %v897_v40 = vsel %vm895_vm8, %v2557_v54, %v2555_v50  ;;  %v953_v21 = vsel %vm949_vm11, %v2605_v18, %v2603_v17 }
 0x15a   : > { %1098 = vrot.lane.b32.xlu0 %v2674_v22, %s2134_s9  ;;  %1570 = vmatprep.subr.bf16.mxu1 %v619_v39  ;;  %v1007_v17 = vsel %vm3535_vm14, %v2656_v11, %v2654_v12 }
 0x15b   : > { %1571 = vmatpush1.bf16.msra.mxu1 %v618_v43  ;;  %v2681_v44 = vpop.permute.xlu1 %1012  ;;  %v899_v43 = vsel %vm895_vm8, %v2565_v61, %v2563_v56 }
 0x15c   : > { %v598_v38 = vpop.permute.xlu0 %597 }
 0x15d   : > { %1112 = vrot.lane.b32.xlu1 %v897_v40, %s2134_s9  ;;  %v616_v52 = vsel %vm3533_vm7, %v598_v38, %v600_v23  ;;  %v898_v40 = vsel %vm895_vm8, %v2555_v50, %v2565_v61  ;;  %v923_v38 = vsel %vm922_vm9, %v2573_v63, %v2571_v62  ;;  %v925_v50 = vsel %vm922_vm9, %v2581_v2, %v2579_v1 }
 0x15e   : > { %1110 = vrot.lane.b32.xlu0 %v896_v42, %s2134_s9  ;;  %1489 = vmatpush1.bf16.msra.mxu0 %v616_v52  ;;  %v924_v61 = vsel %vm922_vm9, %v2571_v62, %v2581_v2  ;;  %vm3537_vm7 = vcmask 302080  }
 0x15f   : > { %v2692_v19 = vpop.permute.xlu1 %1016 }
 0x160   : > { %v2694_v39 = vpop.permute.xlu0 %1014 }
 0x161   : > { %1116 = vrot.lane.b32.xlu1 %v899_v43, %s2134_s9 }
 0x162   : > { %1114 = vrot.lane.b32.xlu0 %v898_v40, %s2134_s9 }
 0x163   : > { %v2704_v54 = vpop.permute.xlu1 %1020 }
 0x164   : > { %v2706_v23 = vpop.permute.xlu0 %1018 }
 0x165   : > { %1128 = vrot.lane.b32.xlu1 %v923_v38, %s2134_s9  ;;  %v926_v38 = vsel %vm922_vm9, %v2579_v1, %v2589_v13  ;;  %v951_v1 = vsel %vm949_vm11, %v2597_v16, %v2595_v14 }
 0x166   : > { %1108 = vrot.lane.b32.xlu0 %v2547_v37, %s2134_s9 }
 0x167   : > { %v637_v42 = vpop.permute.xlu1 %636 }
 0x168   : > { %v2714_v52 = vpop.permute.xlu0 %634 }
 0x169   : > { %1132 = vrot.lane.b32.xlu1 %v925_v50, %s2134_s9  ;;  %v2725_v43 = vsel %vm650_vm10, %v2714_v52, %v637_v42 }
 0x16a   : > { %1130 = vrot.lane.b32.xlu0 %v924_v61, %s2134_s9  ;;  %1490 = vmatprep.subr.bf16.mxu0 %v2725_v43 }
 0x16b   : > { %v2729_v37 = vpop.permute.xlu1 %640 }
 0x16c   : > { %v639_v40 = vpop.permute.xlu0 %638 }
 0x16d   : > { %1126 = vrot.lane.b32.xlu1 %v2573_v63, %s2134_s9  ;;  %v2738_v62 = vsel %vm650_vm10, %v639_v40, %v2729_v37  ;;  %v2741_v2 = vsel %vm650_vm10, %v637_v42, %v639_v40  ;;  %v950_v42 = vsel %vm949_vm11, %v2587_v5, %v2597_v16  ;;  %v952_v16 = vsel %vm949_vm11, %v2595_v14, %v2605_v18 }
 0x16e   : > { %1134 = vrot.lane.b32.xlu0 %v926_v38, %s2134_s9  ;;  %1572 = vmatprep.subr.bf16.mxu1 %v2738_v62  ;;  %v979_v14 = vsel %vm976_vm12, %v2632_v49, %v2629_v32  ;;  %v978_v18 = vsel %vm976_vm12, %v2611_v29, %v2632_v49 }
 0x16f   : > { %1573 = vmatpush1.bf16.msra.mxu1 %v2741_v2  ;;  %v2746_v50 = vpop.permute.xlu1 %1039 }
 0x170   : > { %v633_v63 = vpop.permute.xlu0 %632 }
 0x171   : > { %1148 = vrot.lane.b32.xlu1 %v951_v1, %s2134_s9  ;;  %v651_v61 = vsel %vm650_vm10, %v633_v63, %v2714_v52 }
 0x172   : > { %1146 = vrot.lane.b32.xlu0 %v950_v42, %s2134_s9  ;;  %1491 = vmatpush1.bf16.msra.mxu0 %v651_v61  ;;  %v977_v42 = vsel %vm976_vm12, %v2618_v36, %v2611_v29 }
 0x173   : > { %v2758_v40 = vpop.permute.xlu1 %1043 }
 0x174   : > { %v2760_v38 = vpop.permute.xlu0 %1041 }
 0x175   : > { %1152 = vrot.lane.b32.xlu1 %v953_v21, %s2134_s9 }
 0x176   : > { %1150 = vrot.lane.b32.xlu0 %v952_v16, %s2134_s9 }
 0x177   : > { %v2770_v63 = vpop.permute.xlu1 %1047 }
 0x178   : > { %v2772_v1 = vpop.permute.xlu0 %1045 }
 0x179   : > { %1164 = vrot.lane.b32.xlu1 %v977_v42, %s2134_s9 }
 0x17a   : > { %1144 = vrot.lane.b32.xlu0 %v2587_v5, %s2134_s9 }
 0x17b   : > { %v672_v21 = vpop.permute.xlu1 %671 }
 0x17c   : > { %v2780_v61 = vpop.permute.xlu0 %669 }
 0x17d   : > { %1168 = vrot.lane.b32.xlu1 %v979_v14, %s2134_s9  ;;  %v2791_v16 = vsel %vm685_vm13, %v2780_v61, %v672_v21  ;;  %v980_v14 = vsel %vm976_vm12, %v2629_v32, %v2640_v9  ;;  %v1005_v32 = vsel %vm3535_vm14, %v2648_v47, %v2646_v6 }
 0x17e   : > { %1166 = vrot.lane.b32.xlu0 %v978_v18, %s2134_s9  ;;  %1492 = vmatprep.subr.bf16.mxu0 %v2791_v16 }
 0x17f   : > { %v2795_v5 = vpop.permute.xlu1 %675 }
 0x180   : > { %v674_v42 = vpop.permute.xlu0 %673 }
 0x181   : > { %1162 = vrot.lane.b32.xlu1 %v2618_v36, %s2134_s9  ;;  %v2804_v49 = vsel %vm685_vm13, %v674_v42, %v2795_v5  ;;  %v2807_v29 = vsel %vm685_vm13, %v672_v21, %v674_v42  ;;  %v1004_v21 = vsel %vm3535_vm14, %v2638_v0, %v2648_v47 }
 0x182   : > { %1170 = vrot.lane.b32.xlu0 %v980_v14, %s2134_s9  ;;  %1574 = vmatprep.subr.bf16.mxu1 %v2804_v49 }
 0x183   : > { %1575 = vmatpush1.bf16.msra.mxu1 %v2807_v29  ;;  %v668_v18 = vpop.permute.xlu1 %667 }
 0x184   : > { %v2812_v36 = vpop.permute.xlu0 %642  ;;  %v686_v9 = vsel %vm685_vm13, %v668_v18, %v2780_v61  ;;  %v1006_v18 = vsel %vm3535_vm14, %v2646_v6, %v2656_v11  ;;  %vm3538_vm14 = vcmask 146432  }
 0x185   : > { %1184 = vrot.lane.b32.xlu1 %v1005_v32, %s2134_s9  ;;  %1493 = vmatpush1.bf16.msra.mxu0 %v686_v9 }
 0x186   : > { %1182 = vrot.lane.b32.xlu0 %v1004_v21, %s2134_s9  ;;  %v1031_v21 = vsel %vm3537_vm7, %v2681_v44, %v2694_v39 }
 0x187   : > { %v707_v42 = vpop.permute.xlu1 %706 }
 0x188   : > { %v705_v14 = vpop.permute.xlu0 %704 }
 0x189   : > { %1188 = vrot.lane.b32.xlu1 %v1007_v17, %s2134_s9  ;;  %v722_v32 = vsel %vm3536_vm15, %v705_v14, %v707_v42 }
 0x18a   : > { %1186 = vrot.lane.b32.xlu0 %v1006_v18, %s2134_s9  ;;  %1494 = vmatprep.subr.bf16.mxu0 %v722_v32  ;;  %v1033_v32 = vsel %vm3537_vm7, %v2692_v19, %v2706_v23 }
 0x18b   : > { %v2833_v47 = vpop.permute.xlu1 %710 }
 0x18c   : > { %v709_v9 = vpop.permute.xlu0 %708 }
 0x18d   : > { %1200 = vrot.lane.b32.xlu1 %v1031_v21, %s2134_s9  ;;  %v724_v17 = vsel %vm3536_vm15, %v709_v9, %v2833_v47  ;;  %v723_v6 = vsel %vm3536_vm15, %v707_v42, %v709_v9  ;;  %v1032_v21 = vsel %vm3537_vm7, %v2694_v39, %v2692_v19  ;;  %v1034_v9 = vsel %vm3537_vm7, %v2706_v23, %v2704_v54 }
 0x18e   : > { %1180 = vrot.lane.b32.xlu0 %v2638_v0, %s2134_s9  ;;  %1576 = vmatprep.subr.bf16.mxu1 %v724_v17  ;;  %vm3539_vm7 = vcmask 138240  }
 0x18f   : > { %1577 = vmatpush1.bf16.msra.mxu1 %v723_v6  ;;  %v703_v11 = vpop.permute.xlu1 %702 }
 0x190   : > { %v2844_v18 = vpop.permute.xlu0 %677  ;;  %v721_v12 = vsel %vm3536_vm15, %v703_v11, %v705_v14  ;;  %vm1057_vm15 = vcmask 236544  }
 0x191   : > { %1204 = vrot.lane.b32.xlu1 %v1033_v32, %s2134_s9  ;;  %1495 = vmatpush1.bf16.msra.mxu0 %v721_v12  ;;  %v1059_v39 = vsel %vm1057_vm15, %v2760_v38, %v2758_v40  ;;  %v1058_v23 = vsel %vm1057_vm15, %v2746_v50, %v2760_v38  ;;  %v1061_v32 = vsel %vm1057_vm15, %v2772_v1, %v2770_v63 }
 0x192   : > { %1202 = vrot.lane.b32.xlu0 %v1032_v21, %s2134_s9  ;;  %v1060_v38 = vsel %vm1057_vm15, %v2758_v40, %v2772_v1 }
 0x193   : > { %v742_v0 = vpop.permute.xlu1 %741 }
 0x194   : > { %v740_v42 = vpop.permute.xlu0 %739 }
 0x195   : > { %1198 = vrot.lane.b32.xlu1 %v2681_v44, %s2134_s9  ;;  %v757_v14 = vsel %vm3538_vm14, %v740_v42, %v742_v0 }
 0x196   : > { %1206 = vrot.lane.b32.xlu0 %v1034_v9, %s2134_s9  ;;  %1496 = vmatprep.subr.bf16.mxu0 %v757_v14 }
 0x197   : > { %v2862_v19 = vpop.permute.xlu1 %745 }
 0x198   : > { %v744_v12 = vpop.permute.xlu0 %743 }
 0x199   : > { %1220 = vrot.lane.b32.xlu1 %v1059_v39, %s2134_s9  ;;  %v759_v44 = vsel %vm3538_vm14, %v744_v12, %v2862_v19  ;;  %v758_v17 = vsel %vm3538_vm14, %v742_v0, %v744_v12 }
 0x19a   : > { %1218 = vrot.lane.b32.xlu0 %v1058_v23, %s2134_s9  ;;  %1578 = vmatprep.subr.bf16.mxu1 %v759_v44 }
 0x19b   : > { %1579 = vmatpush1.bf16.msra.mxu1 %v758_v17  ;;  %v775_v6 = vpop.permute.xlu1 %774 }
 0x19c   : > { %v738_v11 = vpop.permute.xlu0 %737 }
 0x19d   : > { %1224 = vrot.lane.b32.xlu1 %v1061_v32, %s2134_s9  ;;  %v756_v21 = vsel %vm3538_vm14, %v738_v11, %v740_v42  ;;  %vm3540_vm14 = vcmask 130048   ;;  %v2921_v11 = vsel %vm685_vm13, %v2795_v5, %v2844_v18 }
 0x19e   : > { %1222 = vrot.lane.b32.xlu0 %v1060_v38, %s2134_s9  ;;  %1497 = vmatpush1.bf16.msra.mxu0 %v756_v21 }
 0x19f   : > { %v779_v0 = vpop.permute.xlu1 %778 }
 0x1a0   : > { %v777_v9 = vpop.permute.xlu0 %776 }
 0x1a1   : > { %1236 = vrot.lane.b32.xlu1 %v2725_v43, %s2134_s9  ;;  %v792_v14 = vsel %vm3539_vm7, %v775_v6, %v777_v9  ;;  %v793_v43 = vsel %vm3539_vm7, %v777_v9, %v779_v0 }
 0x1a2   : > { %1216 = vrot.lane.b32.xlu0 %v2746_v50, %s2134_s9  ;;  %1498 = vmatprep.subr.bf16.mxu0 %v792_v14  ;;  %v2070_v14 = vld [vmem:[%s2254_s15] sm:$0xff] }
 0x1a3   : > { %v773_v12 = vpop.permute.xlu1 %772 }
 0x1a4   : > { %v2889_v39 = vpop.permute.xlu0 %780  ;;  %v791_v40 = vsel %vm3539_vm7, %v773_v12, %v775_v6  ;;  %v2071_v12 = vld [vmem:[%s2254_s15 + $0x20] sm:$0xff] }
 0x1a5   : > { %1240 = vrot.lane.b32.xlu1 %v2738_v62, %s2134_s9  ;;  %1499 = vmatpush1.bf16.msra.mxu0 %v791_v40  ;;  %v794_v1 = vsel %vm3539_vm7, %v779_v0, %v2889_v39  ;;  %v2904_v62 = vsel %vm650_vm10, %v2729_v37, %v2812_v36  ;;  %vm860_vm7 = vcmask 64512   ;;  %v2939_v0 = vld [vmem:[%s3517_s2 + $0x8] sm:$0xff]  ;;  %v2950_v40 = vcombine.high %v2070_v14, %v2071_v12 }
 0x1a6   : > { %1238 = vrot.lane.b32.xlu0 %v2741_v2, %s2134_s9  ;;  %1580 = vmatprep.subr.bf16.mxu1 %v794_v1  ;;  %v2954_v1 = vcombine.low %v2616_v35, %v2616_v35 }
 0x1a7   : > { %1581 = vmatpush1.bf16.msra.mxu1 %v793_v43  ;;  %v812_v50 = vpop.permute.xlu1 %811 }
 0x1a8   : > { %v810_v42 = vpop.permute.xlu0 %809 }
 0x1a9   : > { %1234 = vrot.lane.b32.xlu1 %v2714_v52, %s2134_s9  ;;  %v827_v23 = vsel %vm3540_vm14, %v810_v42, %v812_v50 }
 0x1aa   : > { %1242 = vrot.lane.b32.xlu0 %v2904_v62, %s2134_s9  ;;  %1500 = vmatprep.subr.bf16.mxu0 %v827_v23 }
 0x1ab   : > { %v2909_v2 = vpop.permute.xlu1 %815 }
 0x1ac   : > { %v814_v44 = vpop.permute.xlu0 %813 }
 0x1ad   : > { %1256 = vrot.lane.b32.xlu1 %v2807_v29, %s2134_s9  ;;  %v829_v52 = vsel %vm3540_vm14, %v814_v44, %v2909_v2  ;;  %v828_v17 = vsel %vm3540_vm14, %v812_v50, %v814_v44  ;;  %v2958_v50 = vcombine.high %v2939_v0, %v2939_v0 }
 0x1ae   : > { %1254 = vrot.lane.b32.xlu0 %v2791_v16, %s2134_s9  ;;  %1582 = vmatprep.subr.bf16.mxu1 %v829_v52 }
 0x1af   : > { %1583 = vmatpush1.bf16.msra.mxu1 %v828_v17  ;;  %v845_v37 = vpop.permute.xlu1 %844 }
 0x1b0   : > { %v808_v6 = vpop.permute.xlu0 %807 }
 0x1b1   : > { %1260 = vrot.lane.b32.xlu1 %v2921_v11, %s2134_s9  ;;  %v826_v29 = vsel %vm3540_vm14, %v808_v6, %v810_v42  ;;  %vm1270_vm14 = vcmask 56320  }
 0x1b2   : > { %1258 = vrot.lane.b32.xlu0 %v2804_v49, %s2134_s9  ;;  %1501 = vmatpush1.bf16.msra.mxu0 %v826_v29 }
 0x1b3   : > { %v849_v16 = vpop.permute.xlu1 %848 }
 0x1b4   : > { %v847_v32 = vpop.permute.xlu0 %846 }
 0x1b5   : > { %887 = vrot.lane.b32.xlu1 %v2252_v31, %s2119_s12  ;;  %v862_v5 = vsel %vm860_vm7, %v845_v37, %v847_v32 }
 0x1b6   : > { %1252 = vrot.lane.b32.xlu0 %v2780_v61, %s2134_s9  ;;  %1502 = vmatprep.subr.bf16.mxu0 %v862_v5  ;;  %v863_v61 = vsel %vm860_vm7, %v847_v32, %v849_v16 }
 0x1b7   : > { %v843_v38 = vpop.permute.xlu1 %842 }
 0x1b8   : > { %v2933_v21 = vpop.permute.xlu0 %850  ;;  %v861_v49 = vsel %vm860_vm7, %v843_v38, %v845_v37 }
 0x1b9   : > { %891 = vrot.lane.b32.xlu1 %v2260_v34, %s2119_s12  ;;  %1503 = vmatpush1.bf16.msra.mxu0 %v861_v49  ;;  %v864_v9 = vsel %vm860_vm7, %v849_v16, %v2933_v21 }
 0x1ba   : > { %889 = vrot.lane.b32.xlu0 %v2249_v30, %s2119_s12  ;;  %1584 = vmatprep.subr.bf16.mxu1 %v864_v9 }
 0x1bb   : > { %1585 = vmatpush1.bf16.msra.mxu1 %v863_v61  ;;  %v1077_v43 = vpop.permute.xlu1 %1076 }
 0x1bc   : > { %v1075_v42 = vpop.permute.xlu0 %1074  ;;  %1505 = vmatmul.mubr.bf16.vlgmr.msra.gmra.mrb[0].mxu0 %v2954_v1 }
 0x1bd   : > { %914 = vrot.lane.b32.xlu1 %v2252_v31, %s2120_s13  ;;  %v1272_v23 = vsel %vm1270_vm14, %v1075_v42, %v1077_v43  ;;  %1961 = vmatprep.mubr.msk.bf16.mxu0 %vm922_vm9, %v2958_v50 }
 0x1be   : > { %893 = vrot.lane.b32.xlu0 %v2950_v40, %s2119_s12  ;;  %1513 = vmatprep.subr.bf16.mxu0 %v1272_v23 }
 0x1bf   : > { %v2968_v35 = vpop.permute.xlu1 %1080  ;;  %1587 = vmatmul.mubr.bf16.vlgmr.msra.gmra.mrb[0].mxu1 %v2954_v1 }
 0x1c0   : > { %v1079_v44 = vpop.permute.xlu0 %1078  ;;  %1962 = vmatprep.mubr.msk.bf16.mxu1 %vm922_vm9, %v2958_v50 }
 0x1c1   : > { %918 = vrot.lane.b32.xlu1 %v2260_v34, %s2120_s13  ;;  %v1274_v52 = vsel %vm1270_vm14, %v1079_v44, %v2968_v35  ;;  %v1273_v17 = vsel %vm1270_vm14, %v1077_v43, %v1079_v44 }
 0x1c2   : > { %916 = vrot.lane.b32.xlu0 %v2249_v30, %s2120_s13  ;;  %1595 = vmatprep.subr.bf16.mxu1 %v1274_v52 }
 0x1c3   : > { %1596 = vmatpush1.bf16.msra.mxu1 %v1273_v17  ;;  %v1093_v37 = vpop.permute.xlu1 %1092 }
 0x1c4   : > { %v1073_v6 = vpop.permute.xlu0 %1072 }
 0x1c5   : > { %v1271_v29 = vsel %vm1270_vm14, %v1073_v6, %v1075_v42  ;;  %941 = vrot.lane.b32.xlu1 %v2252_v31, %s2121_s14 }
 0x1c6   : > { %920 = vrot.lane.b32.xlu0 %v2950_v40, %s2120_s13  ;;  %1514 = vmatpush1.bf16.msra.mxu0 %v1271_v29 }
 0x1c7   : > { %v1097_v16 = vpop.permute.xlu1 %1096 }
 0x1c8   : > { %v1095_v32 = vpop.permute.xlu0 %1094 }
 0x1c9   : > { %945 = vrot.lane.b32.xlu1 %v2260_v34, %s2121_s14  ;;  %v1280_v5 = vsel %vm1270_vm14, %v1093_v37, %v1095_v32  ;;  %v1281_v14 = vsel %vm1270_vm14, %v1095_v32, %v1097_v16 }
 0x1ca   : > { %943 = vrot.lane.b32.xlu0 %v2249_v30, %s2121_s14  ;;  %1515 = vmatprep.subr.bf16.mxu0 %v1280_v5 }
 0x1cb   : > { %v1091_v38 = vpop.permute.xlu1 %1090 }
 0x1cc   : > { %v1279_v49 = vsel %vm1270_vm14, %v1091_v38, %v1093_v37  ;;  %v2991_v9 = vpop.permute.xlu0 %1098 }
 0x1cd   : > { %968 = vrot.lane.b32.xlu1 %v2252_v31, %s2122_s22  ;;  %1516 = vmatpush1.bf16.msra.mxu0 %v1279_v49  ;;  %v1282_v61 = vsel %vm1270_vm14, %v1097_v16, %v2991_v9 }
 0x1ce   : > { %947 = vrot.lane.b32.xlu0 %v2950_v40, %s2121_s14  ;;  %1597 = vmatprep.subr.bf16.mxu1 %v1282_v61 }
 0x1cf   : > { %1598 = vmatpush1.bf16.msra.mxu1 %v1281_v14  ;;  %v1113_v12 = vpop.permute.xlu1 %1112 }
 0x1d0   : > { %v1111_v43 = vpop.permute.xlu0 %1110 }
 0x1d1   : > { %972 = vrot.lane.b32.xlu1 %v2260_v34, %s2122_s22  ;;  %v1288_v42 = vsel %vm1270_vm14, %v1111_v43, %v1113_v12 }
 0x1d2   : > { %970 = vrot.lane.b32.xlu0 %v2249_v30, %s2122_s22  ;;  %1517 = vmatprep.subr.bf16.mxu0 %v1288_v42 }
 0x1d3   : > { %v3005_v23 = vpop.permute.xlu1 %1116 }
 0x1d4   : > { %v1115_v44 = vpop.permute.xlu0 %1114 }
 0x1d5   : > { %576 = vrot.lane.b32.xlu1 %v2249_v30, %s2118_s11  ;;  %v1290_v52 = vsel %vm1270_vm14, %v1115_v44, %v3005_v23  ;;  %v1289_v17 = vsel %vm1270_vm14, %v1113_v12, %v1115_v44 }
 0x1d6   : > { %974 = vrot.lane.b32.xlu0 %v2950_v40, %s2122_s22  ;;  %1599 = vmatprep.subr.bf16.mxu1 %v1290_v52 }
 0x1d7   : > { %1600 = vmatpush1.bf16.msra.mxu1 %v1289_v17  ;;  %v1129_v37 = vpop.permute.xlu1 %1128 }
 0x1d8   : > { %v1109_v6 = vpop.permute.xlu0 %1108 }
 0x1d9   : > { %v1287_v29 = vsel %vm1270_vm14, %v1109_v6, %v1111_v43  ;;  %995 = vrot.lane.b32.xlu1 %v2252_v31, %s2123_s23 }
 0x1da   : > { %578 = vrot.lane.b32.xlu0 %v2260_v34, %s2118_s11  ;;  %1518 = vmatpush1.bf16.msra.mxu0 %v1287_v29  ;;  %s3600_s11 = sadd.s32 4294967295, %s2110_s19  }
 0x1db   : > { %v1133_v16 = vpop.permute.xlu1 %1132  ;;  %s1945_s12 = sshll.u32 %s3600_s11, 3 }
 0x1dc   : > { %v1131_v32 = vpop.permute.xlu0 %1130  ;;  %p288_p11 = scmp.lt.s32.totalorder %s1945_s12, 15 }
 0x1dd   : > { %999 = vrot.lane.b32.xlu1 %v2260_v34, %s2123_s23  ;;  %v1296_v5 = vsel %vm1270_vm14, %v1129_v37, %v1131_v32  ;;  %v1297_v12 = vsel %vm1270_vm14, %v1131_v32, %v1133_v16 }
 0x1de   : > { %997 = vrot.lane.b32.xlu0 %v2249_v30, %s2123_s23  ;;  %1519 = vmatprep.subr.bf16.mxu0 %v1296_v5  ;;  %s3607_s12 = smov (!%p288_p11, %s1945_s12), 15 }
 0x1df   : > { %v1127_v38 = vpop.permute.xlu1 %1126  ;;  %s1946_s13 = sshll.u32 %s3607_s12, 2 }
 0x1e0   : > { %v1295_v49 = vsel %vm1270_vm14, %v1127_v38, %v1129_v37  ;;  %v3025_v61 = vpop.permute.xlu0 %1134  ;;  %s291_s22 = scalar_lea.vmem %s3519_s4, %s1946_s13 }
 0x1e1   : > { %607 = vrot.lane.b32.xlu1 %v2243_v26, %s2124_s24  ;;  %1520 = vmatpush1.bf16.msra.mxu0 %v1295_v49  ;;  %v1298_v14 = vsel %vm1270_vm14, %v1133_v16, %v3025_v61 }
 0x1e2   : > { %1001 = vrot.lane.b32.xlu0 %v2950_v40, %s2123_s23  ;;  %1601 = vmatprep.subr.bf16.mxu1 %v1298_v14 }
 0x1e3   : > { %1602 = vmatpush1.bf16.msra.mxu1 %v1297_v12  ;;  %v1149_v43 = vpop.permute.xlu1 %1148 }
 0x1e4   : > { %v1147_v42 = vpop.permute.xlu0 %1146 }
 0x1e5   : > { %611 = vrot.lane.b32.xlu1 %v2249_v30, %s2124_s24  ;;  %v1304_v44 = vsel %vm1270_vm14, %v1147_v42, %v1149_v43 }
 0x1e6   : > { %609 = vrot.lane.b32.xlu0 %v2252_v31, %s2124_s24  ;;  %1521 = vmatprep.subr.bf16.mxu0 %v1304_v44 }
 0x1e7   : > { %v3039_v52 = vpop.permute.xlu1 %1152 }
 0x1e8   : > { %v1151_v17 = vpop.permute.xlu0 %1150 }
 0x1e9   : > { %1022 = vrot.lane.b32.xlu1 %v2252_v31, %s2125_s26  ;;  %v1306_v37 = vsel %vm1270_vm14, %v1151_v17, %v3039_v52  ;;  %v1305_v6 = vsel %vm1270_vm14, %v1149_v43, %v1151_v17 }
 0x1ea   : > { %613 = vrot.lane.b32.xlu0 %v2260_v34, %s2124_s24  ;;  %1603 = vmatprep.subr.bf16.mxu1 %v1306_v37 }
 0x1eb   : > { %1604 = vmatpush1.bf16.msra.mxu1 %v1305_v6  ;;  %v1165_v29 = vpop.permute.xlu1 %1164 }
 0x1ec   : > { %v1145_v16 = vpop.permute.xlu0 %1144 }
 0x1ed   : > { %v1303_v32 = vsel %vm1270_vm14, %v1145_v16, %v1147_v42  ;;  %1026 = vrot.lane.b32.xlu1 %v2260_v34, %s2125_s26 }
 0x1ee   : > { %1024 = vrot.lane.b32.xlu0 %v2249_v30, %s2125_s26  ;;  %1522 = vmatpush1.bf16.msra.mxu0 %v1303_v32 }
 0x1ef   : > { %v1169_v5 = vpop.permute.xlu1 %1168 }
 0x1f0   : > { %v1167_v38 = vpop.permute.xlu0 %1166 }
 0x1f1   : > { %644 = vrot.lane.b32.xlu1 %v2252_v31, %s2126_s27  ;;  %v1312_v49 = vsel %vm1270_vm14, %v1165_v29, %v1167_v38  ;;  %v1313_v44 = vsel %vm1270_vm14, %v1167_v38, %v1169_v5 }
 0x1f2   : > { %1028 = vrot.lane.b32.xlu0 %v2950_v40, %s2125_s26  ;;  %1523 = vmatprep.subr.bf16.mxu0 %v1312_v49 }
 0x1f3   : > { %v1163_v14 = vpop.permute.xlu1 %1162 }
 0x1f4   : > { %v1311_v12 = vsel %vm1270_vm14, %v1163_v14, %v1165_v29  ;;  %v3059_v43 = vpop.permute.xlu0 %1170 }
 0x1f5   : > { %648 = vrot.lane.b32.xlu1 %v2260_v34, %s2126_s27  ;;  %1524 = vmatpush1.bf16.msra.mxu0 %v1311_v12  ;;  %v1314_v42 = vsel %vm1270_vm14, %v1169_v5, %v3059_v43 }
 0x1f6   : > { %646 = vrot.lane.b32.xlu0 %v2249_v30, %s2126_s27  ;;  %1605 = vmatprep.subr.bf16.mxu1 %v1314_v42 }
 0x1f7   : > { %1606 = vmatpush1.bf16.msra.mxu1 %v1313_v44  ;;  %v1185_v17 = vpop.permute.xlu1 %1184 }
 0x1f8   : > { %v1183_v37 = vpop.permute.xlu0 %1182 }
 0x1f9   : > { %1051 = vrot.lane.b32.xlu1 %v2249_v30, %s2127_s29  ;;  %v1320_v6 = vsel %vm1270_vm14, %v1183_v37, %v1185_v17 }
 0x1fa   : > { %1049 = vrot.lane.b32.xlu0 %v2252_v31, %s2127_s29  ;;  %1525 = vmatprep.subr.bf16.mxu0 %v1320_v6 }
 0x1fb   : > { %v3073_v29 = vpop.permute.xlu1 %1188 }
 0x1fc   : > { %v1187_v16 = vpop.permute.xlu0 %1186 }
 0x1fd   : > { %1055 = vrot.lane.b32.xlu1 %v2950_v40, %s2127_s29  ;;  %v1322_v32 = vsel %vm1270_vm14, %v1187_v16, %v3073_v29  ;;  %v1321_v5 = vsel %vm1270_vm14, %v1185_v17, %v1187_v16 }
 0x1fe   : > { %1053 = vrot.lane.b32.xlu0 %v2260_v34, %s2127_s29  ;;  %1607 = vmatprep.subr.bf16.mxu1 %v1322_v32 }
 0x1ff   : > { %1608 = vmatpush1.bf16.msra.mxu1 %v1321_v5  ;;  %v1201_v38 = vpop.permute.xlu1 %1200 }
 0x200   : > { %v1181_v49 = vpop.permute.xlu0 %1180 }
 0x201   : > { %v1319_v14 = vsel %vm1270_vm14, %v1181_v49, %v1183_v37  ;;  %681 = vrot.lane.b32.xlu1 %v2249_v30, %s2128_s30 }
 0x202   : > { %679 = vrot.lane.b32.xlu0 %v2252_v31, %s2128_s30  ;;  %1526 = vmatpush1.bf16.msra.mxu0 %v1319_v14 }
 0x203   : > { %v1205_v12 = vpop.permute.xlu1 %1204 }
 0x204   : > { %v1203_v42 = vpop.permute.xlu0 %1202 }
 0x205   : > { %1066 = vrot.lane.b32.xlu1 %v2950_v40, %s2126_s27  ;;  %v1328_v44 = vsel %vm1270_vm14, %v1201_v38, %v1203_v42  ;;  %v1329_v32 = vsel %vm1270_vm14, %v1203_v42, %v1205_v12 }
 0x206   : > { %683 = vrot.lane.b32.xlu0 %v2260_v34, %s2128_s30  ;;  %1527 = vmatprep.subr.bf16.mxu0 %v1328_v44 }
 0x207   : > { %v1199_v17 = vpop.permute.xlu1 %1198 }
 0x208   : > { %v1327_v37 = vsel %vm1270_vm14, %v1199_v17, %v1201_v38  ;;  %v3093_v6 = vpop.permute.xlu0 %1206 }
 0x209   : > { %714 = vrot.lane.b32.xlu1 %v2252_v31, %s2129_s17  ;;  %1528 = vmatpush1.bf16.msra.mxu0 %v1327_v37  ;;  %v1330_v16 = vsel %vm1270_vm14, %v1205_v12, %v3093_v6 }
 0x20a   : > { %712 = vrot.lane.b32.xlu0 %v2243_v26, %s2129_s17  ;;  %1609 = vmatprep.subr.bf16.mxu1 %v1330_v16 }
 0x20b   : > { %1610 = vmatpush1.bf16.msra.mxu1 %v1329_v32  ;;  %v1221_v5 = vpop.permute.xlu1 %1220 }
 0x20c   : > { %v1219_v49 = vpop.permute.xlu0 %1218 }
 0x20d   : > { %718 = vrot.lane.b32.xlu1 %v2260_v34, %s2129_s17  ;;  %v1336_v38 = vsel %vm1270_vm14, %v1219_v49, %v1221_v5 }
 0x20e   : > { %716 = vrot.lane.b32.xlu0 %v2249_v30, %s2129_s17  ;;  %1529 = vmatprep.subr.bf16.mxu0 %v1336_v38 }
 0x20f   : > { %v3107_v14 = vpop.permute.xlu1 %1224 }
 0x210   : > { %v1223_v44 = vpop.permute.xlu0 %1222 }
 0x211   : > { %747 = vrot.lane.b32.xlu1 %v2243_v26, %s2130_s5  ;;  %v1338_v12 = vsel %vm1270_vm14, %v1223_v44, %v3107_v14  ;;  %v1337_v42 = vsel %vm1270_vm14, %v1221_v5, %v1223_v44 }
 0x212   : > { %1069 = vrot.lane.b32.xlu0 %v2950_v40, %s2128_s30  ;;  %1611 = vmatprep.subr.bf16.mxu1 %v1338_v12 }
 0x213   : > { %1612 = vmatpush1.bf16.msra.mxu1 %v1337_v42  ;;  %v1237_v17 = vpop.permute.xlu1 %1236 }
 0x214   : > { %v1217_v37 = vpop.permute.xlu0 %1216 }
 0x215   : > { %v1335_v16 = vsel %vm1270_vm14, %v1217_v37, %v1219_v49  ;;  %751 = vrot.lane.b32.xlu1 %v2249_v30, %s2130_s5 }
 0x216   : > { %749 = vrot.lane.b32.xlu0 %v2252_v31, %s2130_s5  ;;  %1530 = vmatpush1.bf16.msra.mxu0 %v1335_v16 }
 0x217   : > { %v1241_v32 = vpop.permute.xlu1 %1240 }
 0x218   : > { %v1239_v38 = vpop.permute.xlu0 %1238 }
 0x219   : > { %782 = vrot.lane.b32.xlu1 %v2243_v26, %s2131_s6  ;;  %v1344_v40 = vsel %vm1270_vm14, %v1237_v17, %v1239_v38  ;;  %v1345_v42 = vsel %vm1270_vm14, %v1239_v38, %v1241_v32 }
 0x21a   : > { %753 = vrot.lane.b32.xlu0 %v2260_v34, %s2130_s5  ;;  %1531 = vmatprep.subr.bf16.mxu0 %v1344_v40 }
 0x21b   : > { %v1235_v5 = vpop.permute.xlu1 %1234 }
 0x21c   : > { %v1343_v49 = vsel %vm1270_vm14, %v1235_v5, %v1237_v17  ;;  %v3127_v44 = vpop.permute.xlu0 %1242 }
 0x21d   : > { %786 = vrot.lane.b32.xlu1 %v2249_v30, %s2131_s6  ;;  %1532 = vmatpush1.bf16.msra.mxu0 %v1343_v49  ;;  %v1346_v12 = vsel %vm1270_vm14, %v1241_v32, %v3127_v44 }
 0x21e   : > { %784 = vrot.lane.b32.xlu0 %v2252_v31, %s2131_s6  ;;  %1613 = vmatprep.subr.bf16.mxu1 %v1346_v12  ;;  %v3154_v12 = vcombine.low %v2939_v0, %v2939_v0  ;;  %v378_v0 = vsel %vm370_vm0, %v2349_v45, %v2357_v48 }
 0x21f   : > { %1614 = vmatpush1.bf16.msra.mxu1 %v1345_v42  ;;  %v1257_v37 = vpop.permute.xlu1 %1256 }
 0x220   : > { %v1255_v16 = vpop.permute.xlu0 %1254 }
 0x221   : > { %817 = vrot.lane.b32.xlu1 %v2243_v26, %s2132_s7  ;;  %v1352_v17 = vsel %vm1270_vm14, %v1255_v16, %v1257_v37 }
 0x222   : > { %788 = vrot.lane.b32.xlu0 %v2260_v34, %s2131_s6  ;;  %1533 = vmatprep.subr.bf16.mxu0 %v1352_v17 }
 0x223   : > { %v3141_v40 = vpop.permute.xlu1 %1260 }
 0x224   : > { %v1259_v5 = vpop.permute.xlu0 %1258 }
 0x225   : > { %821 = vrot.lane.b32.xlu1 %v2249_v30, %s2132_s7  ;;  %v1354_v32 = vsel %vm1270_vm14, %v1259_v5, %v3141_v40  ;;  %v1353_v38 = vsel %vm1270_vm14, %v1257_v37, %v1259_v5  ;;  %v376_v5 = vsel %vm370_vm0, %v2332_v41, %v2351_v46  ;;  %v412_v41 = vsel %vm405_vm1, %v2378_v57, %v2388_v60 }
 0x226   : > { %819 = vrot.lane.b32.xlu0 %v2252_v31, %s2132_s7  ;;  %1615 = vmatprep.subr.bf16.mxu1 %v1354_v32  ;;  %v377_v32 = vsel %vm370_vm0, %v2351_v46, %v2349_v45  ;;  %vm3570_vm0 = vcmask 867328  }
 0x227   : > { %1616 = vmatpush1.bf16.msra.mxu1 %v1353_v38  ;;  %v3150_v49 = vpop.permute.xlu1 %887 }
 0x228   : > { %v1253_v42 = vpop.permute.xlu0 %1252  ;;  %1718 = vmatprep.subr.bf16.mxu1 %v2249_v30 }
 0x229   : > { %v1351_v17 = vsel %vm1270_vm14, %v1253_v42, %v1255_v16  ;;  %852 = vrot.lane.b32.xlu1 %v2243_v26, %s2133_s8  ;;  %v413_v42 = vsel %vm405_vm1, %v2388_v60, %v2386_v59  ;;  %v446_v59 = vsel %vm440_vm2, %v2404_v3, %v2417_v8  ;;  %v447_v60 = vsel %vm440_vm2, %v2417_v8, %v2415_v7 }
 0x22a   : > { %823 = vrot.lane.b32.xlu0 %v2260_v34, %s2132_s7  ;;  %1534 = vmatpush1.bf16.msra.mxu0 %v1351_v17 }
 0x22b   : > { %1628 = vmatmul.mubr.bf16.vlgmr.msra.gmra.mrb[0].mxu1 %v3154_v12  ;;  %v3163_v37 = vpop.permute.xlu1 %891  ;;  %1636 = vmatprep.subr.bf16.mxu0 %v2243_v26 }
 0x22c   : > { %1719 = vmatpush1.bf16.msra.mxu1 %v2252_v31  ;;  %v3170_v16 = vpop.permute.xlu0 %889  ;;  %1750 = vmatprep.mubr.bf16.mxu1 %v2622_v33 }
 0x22d   : > { %1720 = vmatprep.subr.bf16.mxu1 %v378_v0  ;;  %856 = vrot.lane.b32.xlu1 %v2249_v30, %s2133_s8 }
 0x22e   : > { %854 = vrot.lane.b32.xlu0 %v2252_v31, %s2133_s8  ;;  %1546 = vmatmul.mubr.bf16.vlgmr.msra.gmra.mrb[0].mxu0 %v3154_v12 }
 0x22f   : > { %1637 = vmatpush1.bf16.msra.mxu0 %v2246_v27  ;;  %v3185_v38 = vpop.permute.xlu1 %914  ;;  %1668 = vmatprep.mubr.bf16.mxu0 %v2622_v33  ;;  %v411_v27 = vsel %vm405_vm1, %v2380_v58, %v2378_v57  ;;  %v410_v57 = vsel %vm405_vm1, %v2369_v53, %v2380_v58  ;;  %v445_v53 = vsel %vm440_vm2, %v2406_v4, %v2404_v3  ;;  %v2135_v4 = vmov 0   ;;  %vm3572_vm1 = vmmov %vm3570_vm0 }
 0x230   : > { %1638 = vmatprep.subr.bf16.mxu0 %v376_v5  ;;  %1721 = vmatpush1.bf16.msra.mxu1 %v377_v32  ;;  %v3191_v17 = vpop.permute.xlu0 %893  ;;  %v481_v58 = vsel %vm475_vm3, %v2446_v24, %v2444_v20  ;;  %v480_v3 = vsel %vm475_vm3, %v2435_v15, %v2446_v24 }
 0x231   : > { %1722 = vmatprep.subr.bf16.mxu1 %v413_v42  ;;  %1082 = vrot.lane.b32.xlu1 %v2243_v26, %s2134_s9  ;;  %v448_v26 = vsel %vm440_vm2, %v2415_v7, %v2423_v10  ;;  %v482_v7 = vsel %vm475_vm3, %v2444_v20, %v2454_v28  ;;  %v3557_v20 = vld [vmem:[#allocation6_spill] sm:$0xff]  ;;  %vm3573_vm2 = vmmov %vm3570_vm0 }
 0x232   : > { %858 = vrot.lane.b32.xlu0 %v2260_v34, %s2133_s8  ;;  %2064 = vset.pattern.permute.xlu1 %v2135_v4 }
 0x233   : > { %1639 = vmatpush1.bf16.msra.mxu0 %v2674_v22  ;;  %v3204_v45 = vpop.permute.xlu1 %918  ;;  %2065 = vset.pattern.permute.xlu0 %v2135_v4 }
 0x234   : > { %1640 = vmatprep.subr.bf16.mxu0 %v411_v27  ;;  %1723 = vmatpush1.bf16.msra.mxu1 %v412_v41  ;;  %v3209_v46 = vpop.permute.xlu0 %916  ;;  %v3562_v27 = vld [vmem:[#allocation8_spill] sm:$0xff]  ;;  %v3563_v41 = vld [vmem:[#allocation9_spill] sm:$0xff] }
 0x235   : > { %1724 = vmatprep.subr.bf16.mxu1 %v448_v26  ;;  %1086 = vrot.lane.b32.xlu1 %v2249_v30, %s2134_s9  ;;  %v483_v30 = vsel %vm475_vm3, %v2454_v28, %v2452_v25  ;;  %v3558_v28 = vld [vmem:[#allocation4_spill] sm:$0xff]  ;;  %v551_v26 = vsel %vm545_vm5, %v3563_v41, %v3562_v27  ;;  %vm3574_vm3 = vmmov %vm3570_vm0 }
 0x236   : > { %1084 = vrot.lane.b32.xlu0 %v2252_v31, %s2134_s9  ;;  %v516_v33 = vsel %vm510_vm4, %v3558_v28, %v3557_v20 }
 0x237   : > { %1641 = vmatpush1.bf16.msra.mxu0 %v410_v57  ;;  %v3224_v10 = vpop.permute.xlu1 %941 }
 0x238   : > { %1642 = vmatprep.subr.bf16.mxu0 %v446_v59  ;;  %1725 = vmatpush1.bf16.msra.mxu1 %v447_v60  ;;  %v3229_v31 = vpop.permute.xlu0 %920  ;;  %v901_v60 = vsel %vm895_vm8, %v3150_v49, %v3170_v16 }
 0x239   : > { %1726 = vmatprep.subr.bf16.mxu1 %v483_v30  ;;  %1100 = vrot.lane.b32.xlu1 %v376_v5, %s2134_s9  ;;  %v3560_v5 = vld [vmem:[#allocation11_spill] sm:$0xff] }
 0x23a   : > { %1088 = vrot.lane.b32.xlu0 %v2260_v34, %s2134_s9  ;;  %v518_v34 = vsel %vm510_vm4, %v2481_v51, %v2489_v55  ;;  %v517_v55 = vsel %vm510_vm4, %v3557_v20, %v2481_v51  ;;  %v3561_v51 = vld [vmem:[#allocation5_spill] sm:$0xff]  ;;  %v552_v57 = vsel %vm545_vm5, %v3562_v27, %v3560_v5  ;;  %v3564_v30 = vld [vmem:[#allocation7_spill] sm:$0xff]  ;;  %v927_v20 = vsel %vm922_vm9, %v2589_v13, %v3185_v38 }
 0x23b   : > { %1643 = vmatpush1.bf16.msra.mxu0 %v445_v53  ;;  %v3243_v8 = vpop.permute.xlu1 %945  ;;  %v515_v42 = vsel %vm510_vm4, %v3561_v51, %v3558_v28  ;;  %v550_v53 = vsel %vm545_vm5, %v3564_v30, %v3563_v41  ;;  %v928_v13 = vsel %vm922_vm9, %v3185_v38, %v3209_v46  ;;  %v3571_v30 = vld [vmem:[#allocation18_spill] sm:$0xff]  ;;  %vm3576_vm4 = vcmask 310272  }
 0x23c   : > { %1644 = vmatprep.subr.bf16.mxu0 %v481_v58  ;;  %1727 = vmatpush1.bf16.msra.mxu1 %v482_v7  ;;  %v3248_v25 = vpop.permute.xlu0 %943  ;;  %v3565_v58 = vld [vmem:[#allocation14_spill] sm:$0xff]  ;;  %v3566_v7 = vld [vmem:[#allocation12_spill] sm:$0xff] }
 0x23d   : > { %1728 = vmatprep.subr.bf16.mxu1 %v518_v34  ;;  %1104 = vrot.lane.b32.xlu1 %v378_v0, %s2134_s9  ;;  %v3559_v0 = vld [vmem:[#allocation10_spill] sm:$0xff]  ;;  %v586_v34 = vsel %vm580_vm6, %v3566_v7, %v3565_v58  ;;  %v955_v41 = vsel %vm949_vm11, %v3224_v10, %v3248_v25 }
 0x23e   : > { %1102 = vrot.lane.b32.xlu0 %v377_v32, %s2134_s9  ;;  %v553_v15 = vsel %vm545_vm5, %v3560_v5, %v3559_v0  ;;  %v900_v32 = vsel %vm895_vm8, %v2563_v56, %v3150_v49  ;;  %v903_v49 = vsel %vm895_vm8, %v3163_v37, %v3191_v17  ;;  %v929_v0 = vsel %vm922_vm9, %v3209_v46, %v3204_v45  ;;  %vm3577_vm5 = vmmov %vm3576_vm4 }
 0x23f   : > { %1645 = vmatpush1.bf16.msra.mxu0 %v480_v3  ;;  %v3261_v22 = vpop.permute.xlu1 %968  ;;  %v956_v46 = vsel %vm949_vm11, %v3248_v25, %v3243_v8 }
 0x240   : > { %1646 = vmatprep.subr.bf16.mxu0 %v516_v33  ;;  %1729 = vmatpush1.bf16.msra.mxu1 %v517_v55  ;;  %v948_v24 = vpop.permute.xlu0 %947 }
 0x241   : > { %1730 = vmatprep.subr.bf16.mxu1 %v553_v15  ;;  %1118 = vrot.lane.b32.xlu1 %v900_v32, %s2134_s9  ;;  %v3568_v32 = vld [vmem:[#allocation15_spill] sm:$0xff] }
 0x242   : > { %1106 = vrot.lane.b32.xlu0 %v2357_v48, %s2134_s9  ;;  %v902_v48 = vsel %vm895_vm8, %v3170_v16, %v3163_v37  ;;  %v3567_v16 = vld [vmem:[#allocation13_spill] sm:$0xff]  ;;  %v954_v51 = vsel %vm949_vm11, %v3568_v32, %v3224_v10  ;;  %vm3579_vm8 = vcmask 302080  }
 0x243   : > { %1647 = vmatpush1.bf16.msra.mxu0 %v515_v42  ;;  %v3281_v56 = vpop.permute.xlu1 %972  ;;  %v585_v28 = vsel %vm580_vm6, %v3567_v16, %v3566_v7  ;;  %v930_v42 = vsel %vm922_vm9, %v3204_v45, %v3229_v31  ;;  %v3569_v45 = vld [vmem:[#allocation16_spill] sm:$0xff] }
 0x244   : > { %1648 = vmatprep.subr.bf16.mxu0 %v551_v26  ;;  %1731 = vmatpush1.bf16.msra.mxu1 %v552_v57  ;;  %v971_v59 = vpop.permute.xlu0 %970  ;;  %v981_v31 = vsel %vm976_vm12, %v3569_v45, %v3261_v22 }
 0x245   : > { %1122 = vrot.lane.b32.xlu1 %v902_v48, %s2134_s9  ;;  %v957_v48 = vsel %vm949_vm11, %v3243_v8, %v948_v24  ;;  %v982_v7 = vsel %vm976_vm12, %v3261_v22, %v971_v59  ;;  %vm3580_vm11 = vmmov %vm3576_vm4 }
 0x246   : > { %1120 = vrot.lane.b32.xlu0 %v901_v60, %s2134_s9 }
 0x247   : > { %1649 = vmatpush1.bf16.msra.mxu0 %v550_v53  ;;  %v577_v3 = vpop.permute.xlu1 %576  ;;  %v983_v53 = vsel %vm976_vm12, %v971_v59, %v3281_v56 }
 0x248   : > { %1650 = vmatprep.subr.bf16.mxu0 %v586_v34  ;;  %v975_v4 = vpop.permute.xlu0 %974  ;;  %v587_v17 = vsel %vm580_vm6, %v3565_v58, %v577_v3 }
 0x249   : > { %1136 = vrot.lane.b32.xlu1 %v927_v20, %s2134_s9  ;;  %v984_v16 = vsel %vm976_vm12, %v3281_v56, %v975_v4  ;;  %vm3581_vm12 = vmmov %vm3579_vm8 }
 0x24a   : > { %1124 = vrot.lane.b32.xlu0 %v903_v49, %s2134_s9 }
 0x24b   : > { %1651 = vmatpush1.bf16.msra.mxu0 %v585_v28  ;;  %v996_v33 = vpop.permute.xlu1 %995 }
 0x24c   : > { %v579_v55 = vpop.permute.xlu0 %578 }
 0x24d   : > { %1140 = vrot.lane.b32.xlu1 %v929_v0, %s2134_s9  ;;  %v588_v37 = vsel %vm580_vm6, %v577_v3, %v579_v55  ;;  %v3575_v3 = vld [vmem:[#allocation17_spill] sm:$0xff]  ;;  %vm3578_vm6 = vmmov %vm3576_vm4 }
 0x24e   : > { %1138 = vrot.lane.b32.xlu0 %v928_v13, %s2134_s9  ;;  %1732 = vmatprep.subr.bf16.mxu1 %v588_v37  ;;  %v1008_v20 = vsel %vm3576_vm4, %v3575_v3, %v996_v33 }
 0x24f   : > { %1733 = vmatpush1.bf16.msra.mxu1 %v587_v17  ;;  %v1000_v5 = vpop.permute.xlu1 %999 }
 0x250   : > { %v998_v15 = vpop.permute.xlu0 %997 }
 0x251   : > { %1154 = vrot.lane.b32.xlu1 %v954_v51, %s2134_s9  ;;  %v1010_v59 = vsel %vm3577_vm5, %v998_v15, %v1000_v5  ;;  %v1009_v0 = vsel %vm3578_vm6, %v996_v33, %v998_v15 }
 0x252   : > { %1142 = vrot.lane.b32.xlu0 %v930_v42, %s2134_s9 }
 0x253   : > { %v608_v38 = vpop.permute.xlu1 %607 }
 0x254   : > { %v1002_v27 = vpop.permute.xlu0 %1001  ;;  %v620_v10 = vsel %vm3572_vm1, %v3571_v30, %v608_v38 }
 0x255   : > { %1158 = vrot.lane.b32.xlu1 %v956_v46, %s2134_s9  ;;  %v1011_v37 = vsel %vm3580_vm11, %v1000_v5, %v1002_v27 }
 0x256   : > { %1156 = vrot.lane.b32.xlu0 %v955_v41, %s2134_s9 }
 0x257   : > { %v612_v26 = vpop.permute.xlu1 %611 }
 0x258   : > { %v610_v57 = vpop.permute.xlu0 %609 }
 0x259   : > { %1172 = vrot.lane.b32.xlu1 %v981_v31, %s2134_s9  ;;  %v621_v60 = vsel %vm3570_vm0, %v608_v38, %v610_v57  ;;  %v622_v24 = vsel %vm3574_vm3, %v610_v57, %v612_v26  ;;  %vm3582_vm0 = vmmov %vm3579_vm8 }
 0x25a   : > { %1160 = vrot.lane.b32.xlu0 %v957_v48, %s2134_s9  ;;  %1652 = vmatprep.subr.bf16.mxu0 %v621_v60  ;;  %vm3583_vm1 = vmmov %vm3582_vm0 }
 0x25b   : > { %1653 = vmatpush1.bf16.msra.mxu0 %v620_v10  ;;  %v1023_v25 = vpop.permute.xlu1 %1022 }
 0x25c   : > { %v614_v58 = vpop.permute.xlu0 %613  ;;  %v1035_v4 = vsel %vm3579_vm8, %v2704_v54, %v1023_v25 }
 0x25d   : > { %1176 = vrot.lane.b32.xlu1 %v983_v53, %s2134_s9  ;;  %v623_v8 = vsel %vm3573_vm2, %v612_v26, %v614_v58  ;;  %vm3584_vm2 = vcmask 211968  }
 0x25e   : > { %1174 = vrot.lane.b32.xlu0 %v982_v7, %s2134_s9  ;;  %1734 = vmatprep.subr.bf16.mxu1 %v623_v8  ;;  %vm3585_vm3 = vmmov %vm3584_vm2 }
 0x25f   : > { %1735 = vmatpush1.bf16.msra.mxu1 %v622_v24  ;;  %v1027_v34 = vpop.permute.xlu1 %1026  ;;  %vm3587_vm4 = vmmov %vm3584_vm2  ;;  %v1449_v24 = vld [vmem:[%s3518_s3] sm:$0xff] }
 0x260   : > { %v1025_v49 = vpop.permute.xlu0 %1024 }
 0x261   : > { %1190 = vrot.lane.b32.xlu1 %v1008_v20, %s2134_s9  ;;  %v1036_v32 = vsel %vm3582_vm0, %v1023_v25, %v1025_v49 }
 0x262   : > { %1178 = vrot.lane.b32.xlu0 %v984_v16, %s2134_s9 }
 0x263   : > { %v645_v22 = vpop.permute.xlu1 %644 }
 0x264   : > { %v1029_v28 = vpop.permute.xlu0 %1028  ;;  %v656_v55 = vsel %vm650_vm10, %v2812_v36, %v645_v22 }
 0x265   : > { %1194 = vrot.lane.b32.xlu1 %v1010_v59, %s2134_s9  ;;  %1654 = vmatprep.subr.bf16.mxu0 %v656_v55  ;;  %v1038_v42 = vsel %vm3583_vm1, %v1027_v34, %v1029_v28  ;;  %vm3596_vm1 = vcmask 130048  }
 0x266   : > { %1192 = vrot.lane.b32.xlu0 %v1009_v0, %s2134_s9  ;;  %1655 = vmatpush1.bf16.msra.mxu0 %v2904_v62  ;;  %v1037_v62 = vsel %vm3581_vm12, %v1025_v49, %v1027_v34 }
 0x267   : > { %v649_v56 = vpop.permute.xlu1 %648 }
 0x268   : > { %v647_v13 = vpop.permute.xlu0 %646 }
 0x269   : > { %v657_v17 = vsel %vm650_vm10, %v645_v22, %v647_v13  ;;  %1208 = vrot.lane.b32.xlu1 %v1035_v4, %s2134_s9  ;;  %v658_v36 = vsel %vm650_vm10, %v647_v13, %v649_v56 }
 0x26a   : > { %1196 = vrot.lane.b32.xlu0 %v1011_v37, %s2134_s9  ;;  %1736 = vmatprep.subr.bf16.mxu1 %v658_v36 }
 0x26b   : > { %1737 = vmatpush1.bf16.msra.mxu1 %v657_v17  ;;  %v1052_v33 = vpop.permute.xlu1 %1051 }
 0x26c   : > { %v1050_v15 = vpop.permute.xlu0 %1049 }
 0x26d   : > { %1212 = vrot.lane.b32.xlu1 %v1037_v62, %s2134_s9  ;;  %v1062_v5 = vsel %vm1057_vm15, %v2770_v63, %v1050_v15  ;;  %v1063_v41 = vsel %vm1057_vm15, %v1050_v15, %v1052_v33 }
 0x26e   : > { %1210 = vrot.lane.b32.xlu0 %v1036_v32, %s2134_s9 }
 0x26f   : > { %v1056_v54 = vpop.permute.xlu1 %1055 }
 0x270   : > { %v1054_v51 = vpop.permute.xlu0 %1053 }
 0x271   : > { %1226 = vrot.lane.b32.xlu1 %v1062_v5, %s2134_s9  ;;  %v1064_v46 = vsel %vm1057_vm15, %v1052_v33, %v1054_v51  ;;  %v1065_v31 = vsel %vm1057_vm15, %v1054_v51, %v1056_v54  ;;  %vm3586_vm15 = vmmov %vm3584_vm2 }
 0x272   : > { %1214 = vrot.lane.b32.xlu0 %v1038_v42, %s2134_s9 }
 0x273   : > { %v682_v38 = vpop.permute.xlu1 %681 }
 0x274   : > { %v680_v27 = vpop.permute.xlu0 %679 }
 0x275   : > { %1230 = vrot.lane.b32.xlu1 %v1064_v46, %s2134_s9  ;;  %v691_v26 = vsel %vm685_vm13, %v2844_v18, %v680_v27  ;;  %v692_v48 = vsel %vm685_vm13, %v680_v27, %v682_v38 }
 0x276   : > { %1228 = vrot.lane.b32.xlu0 %v1063_v41, %s2134_s9  ;;  %1656 = vmatprep.subr.bf16.mxu0 %v691_v26 }
 0x277   : > { %1657 = vmatpush1.bf16.msra.mxu0 %v2921_v11  ;;  %v1067_v63 = vpop.permute.xlu1 %1066 }
 0x278   : > { %v684_v45 = vpop.permute.xlu0 %683  ;;  %v1068_v53 = vsel %vm650_vm10, %v649_v56, %v1067_v63  ;;  %vm3588_vm10 = vcmask 146432  }
 0x279   : > { %1244 = vrot.lane.b32.xlu1 %v656_v55, %s2134_s9  ;;  %v693_v57 = vsel %vm685_vm13, %v682_v38, %v684_v45  ;;  %vm3589_vm5 = vmmov %vm3588_vm10 }
 0x27a   : > { %1232 = vrot.lane.b32.xlu0 %v1065_v31, %s2134_s9  ;;  %1738 = vmatprep.subr.bf16.mxu1 %v693_v57  ;;  %vm3590_vm6 = vmmov %vm3589_vm5 }
 0x27b   : > { %1739 = vmatpush1.bf16.msra.mxu1 %v692_v48  ;;  %v715_v18 = vpop.permute.xlu1 %714  ;;  %vm3591_vm8 = vmmov %vm3589_vm5 }
 0x27c   : > { %v713_v60 = vpop.permute.xlu0 %712 }
 0x27d   : > { %v725_v30 = vsel %vm3584_vm2, %v2833_v47, %v713_v60  ;;  %1248 = vrot.lane.b32.xlu1 %v658_v36, %s2134_s9  ;;  %v726_v11 = vsel %vm3585_vm3, %v713_v60, %v715_v18  ;;  %vm3597_vm2 = vmmov %vm3596_vm1 }
 0x27e   : > { %1246 = vrot.lane.b32.xlu0 %v657_v17, %s2134_s9  ;;  %1658 = vmatprep.subr.bf16.mxu0 %v726_v11  ;;  %vm3598_vm3 = vmmov %vm3596_vm1 }
 0x27f   : > { %1659 = vmatpush1.bf16.msra.mxu0 %v725_v30  ;;  %v719_v10 = vpop.permute.xlu1 %718 }
 0x280   : > { %v717_v25 = vpop.permute.xlu0 %716 }
 0x281   : > { %v727_v58 = vsel %vm3586_vm15, %v715_v18, %v717_v25  ;;  %1262 = vrot.lane.b32.xlu1 %v691_v26, %s2134_s9  ;;  %v728_v7 = vsel %vm3587_vm4, %v717_v25, %v719_v10  ;;  %vm3599_vm15 = vmmov %vm3596_vm1 }
 0x282   : > { %1250 = vrot.lane.b32.xlu0 %v1068_v53, %s2134_s9  ;;  %1740 = vmatprep.subr.bf16.mxu1 %v728_v7 }
 0x283   : > { %1741 = vmatpush1.bf16.msra.mxu1 %v727_v58  ;;  %v748_v47 = vpop.permute.xlu1 %747 }
 0x284   : > { %v1070_v8 = vpop.permute.xlu0 %1069  ;;  %v760_v16 = vsel %vm3589_vm5, %v2862_v19, %v748_v47 }
 0x285   : > { %1266 = vrot.lane.b32.xlu1 %v693_v57, %s2134_s9  ;;  %v1071_v20 = vsel %vm685_vm13, %v684_v45, %v1070_v8  ;;  %vm3592_vm13 = vcmask 138240  }
 0x286   : > { %1264 = vrot.lane.b32.xlu0 %v692_v48, %s2134_s9  ;;  %vm3593_vm11 = vmmov %vm3592_vm13 }
 0x287   : > { %v752_v34 = vpop.permute.xlu1 %751  ;;  %vm3594_vm12 = vmmov %vm3593_vm11 }
 0x288   : > { %v750_v3 = vpop.permute.xlu0 %749  ;;  %vm3595_vm0 = vmmov %vm3593_vm11 }
 0x289   : > { %v761_v49 = vsel %vm3588_vm10, %v748_v47, %v750_v3  ;;  %1452 = vperm.xlu1 %2064, %v1449_v24   ;;  %v762_v55 = vsel %vm3591_vm8, %v750_v3, %v752_v34 }
 0x28a   : > { %1268 = vrot.lane.b32.xlu0 %v1071_v20, %s2134_s9  ;;  %1660 = vmatprep.subr.bf16.mxu0 %v761_v49 }
 0x28b   : > { %1661 = vmatpush1.bf16.msra.mxu0 %v760_v16  ;;  %v783_v22 = vpop.permute.xlu1 %782 }
 0x28c   : > { %v754_v59 = vpop.permute.xlu0 %753  ;;  %v795_v13 = vsel %vm3593_vm11, %v2889_v39, %v783_v22 }
 0x28d   : > { %v763_v28 = vsel %vm3590_vm6, %v752_v34, %v754_v59 }
 0x28e   : > { %1742 = vmatprep.subr.bf16.mxu1 %v763_v28 }
 0x28f   : > { %1743 = vmatpush1.bf16.msra.mxu1 %v762_v55  ;;  %v787_v0 = vpop.permute.xlu1 %786 }
 0x290   : > { %v785_v56 = vpop.permute.xlu0 %784 }
 0x291   : > { %v796_v4 = vsel %vm3592_vm13, %v783_v22, %v785_v56  ;;  %v797_v36 = vsel %vm3595_vm0, %v785_v56, %v787_v0 }
 0x292   : > { %1662 = vmatprep.subr.bf16.mxu0 %v796_v4 }
 0x293   : > { %1663 = vmatpush1.bf16.msra.mxu0 %v795_v13  ;;  %v818_v19 = vpop.permute.xlu1 %817 }
 0x294   : > { %v789_v37 = vpop.permute.xlu0 %788  ;;  %v830_v32 = vsel %vm3597_vm2, %v2909_v2, %v818_v19 }
 0x295   : > { %v798_v17 = vsel %vm3594_vm12, %v787_v0, %v789_v37 }
 0x296   : > { %1744 = vmatprep.subr.bf16.mxu1 %v798_v17 }
 0x297   : > { %1745 = vmatpush1.bf16.msra.mxu1 %v797_v36  ;;  %v822_v33 = vpop.permute.xlu1 %821 }
 0x298   : > { %v820_v62 = vpop.permute.xlu0 %819 }
 0x299   : > { %v831_v15 = vsel %vm3596_vm1, %v818_v19, %v820_v62  ;;  %v832_v51 = vsel %vm3599_vm15, %v820_v62, %v822_v33 }
 0x29a   : > { %1664 = vmatprep.subr.bf16.mxu0 %v831_v15 }
 0x29b   : > { %1665 = vmatpush1.bf16.msra.mxu0 %v830_v32  ;;  %v853_v39 = vpop.permute.xlu1 %852 }
 0x29c   : > { %v824_v54 = vpop.permute.xlu0 %823  ;;  %v865_v27 = vsel %vm860_vm7, %v2933_v21, %v853_v39 }
 0x29d   : > { %v833_v5 = vsel %vm3598_vm3, %v822_v33, %v824_v54 }
 0x29e   : > { %1746 = vmatprep.subr.bf16.mxu1 %v833_v5 }
 0x29f   : > { %1747 = vmatpush1.bf16.msra.mxu1 %v832_v51  ;;  %v857_v42 = vpop.permute.xlu1 %856 }
 0x2a0   : > { %v855_v38 = vpop.permute.xlu0 %854 }
 0x2a1   : > { %v866_v46 = vsel %vm860_vm7, %v853_v39, %v855_v38  ;;  %v867_v63 = vsel %vm860_vm7, %v855_v38, %v857_v42 }
 0x2a2   : > { %1666 = vmatprep.subr.bf16.mxu0 %v866_v46 }
 0x2a3   : > { %1667 = vmatpush1.bf16.msra.mxu0 %v865_v27  ;;  %v1083_v2 = vpop.permute.xlu1 %1082 }
 0x2a4   : > { %v859_v41 = vpop.permute.xlu0 %858  ;;  %v1275_v21 = vsel %vm1270_vm14, %v2968_v35, %v1083_v2 }
 0x2a5   : > { %v868_v26 = vsel %vm860_vm7, %v857_v42, %v859_v41 }
 0x2a6   : > { %1748 = vmatprep.subr.bf16.mxu1 %v868_v26  ;;  %1669 = vmatmul.mubr.bf16.vlgmr.msra.gmra.mrb[4].mxu0 %v2954_v1 }
 0x2a7   : > { %1749 = vmatpush1.bf16.msra.mxu1 %v867_v63  ;;  %v1087_v45 = vpop.permute.xlu1 %1086  ;;  %1963 = vmatprep.mubr.msk.bf16.mxu0 %vm922_vm9, %v2958_v50 }
 0x2a8   : > { %v1085_v31 = vpop.permute.xlu0 %1084 }
 0x2a9   : > { %v1276_v57 = vsel %vm1270_vm14, %v1083_v2, %v1085_v31  ;;  %v1277_v30 = vsel %vm1270_vm14, %v1085_v31, %v1087_v45 }
 0x2aa   : > { %1677 = vmatprep.subr.bf16.mxu0 %v1276_v57  ;;  %1751 = vmatmul.mubr.bf16.vlgmr.msra.gmra.mrb[4].mxu1 %v2954_v1 }
 0x2ab   : > { %1678 = vmatpush1.bf16.msra.mxu0 %v1275_v21  ;;  %v1101_v48 = vpop.permute.xlu1 %1100  ;;  %1964 = vmatprep.mubr.msk.bf16.mxu1 %vm922_vm9, %v2958_v50 }
 0x2ac   : > { %v1089_v18 = vpop.permute.xlu0 %1088  ;;  %v1283_v35 = vsel %vm1270_vm14, %v2991_v9, %v1101_v48 }
 0x2ad   : > { %v1278_v60 = vsel %vm1270_vm14, %v1087_v45, %v1089_v18 }
 0x2ae   : > { %1759 = vmatprep.subr.bf16.mxu1 %v1278_v60 }
 0x2af   : > { %1760 = vmatpush1.bf16.msra.mxu1 %v1277_v30  ;;  %v1105_v11 = vpop.permute.xlu1 %1104 }
 0x2b0   : > { %v1103_v10 = vpop.permute.xlu0 %1102 }
 0x2b1   : > { %v1284_v25 = vsel %vm1270_vm14, %v1101_v48, %v1103_v10  ;;  %v1285_v58 = vsel %vm1270_vm14, %v1103_v10, %v1105_v11 }
 0x2b2   : > { %1679 = vmatprep.subr.bf16.mxu0 %v1284_v25 }
 0x2b3   : > { %1680 = vmatpush1.bf16.msra.mxu0 %v1283_v35  ;;  %v1119_v1 = vpop.permute.xlu1 %1118 }
 0x2b4   : > { %v1107_v53 = vpop.permute.xlu0 %1106  ;;  %v1291_v24 = vsel %vm1270_vm14, %v3005_v23, %v1119_v1 }
 0x2b5   : > { %v1286_v50 = vsel %vm1270_vm14, %v1105_v11, %v1107_v53 }
 0x2b6   : > { %1761 = vmatprep.subr.bf16.mxu1 %v1286_v50 }
 0x2b7   : > { %1762 = vmatpush1.bf16.msra.mxu1 %v1285_v58  ;;  %v1123_v7 = vpop.permute.xlu1 %1122 }
 0x2b8   : > { %v1121_v47 = vpop.permute.xlu0 %1120 }
 0x2b9   : > { %v1292_v8 = vsel %vm1270_vm14, %v1119_v1, %v1121_v47  ;;  %v1293_v20 = vsel %vm1270_vm14, %v1121_v47, %v1123_v7 }
 0x2ba   : > { %1681 = vmatprep.subr.bf16.mxu0 %v1292_v8 }
 0x2bb   : > { %1682 = vmatpush1.bf16.msra.mxu0 %v1291_v24  ;;  %v1137_v9 = vpop.permute.xlu1 %1136 }
 0x2bc   : > { %v1125_v34 = vpop.permute.xlu0 %1124  ;;  %v1299_v59 = vsel %vm1270_vm14, %v3025_v61, %v1137_v9 }
 0x2bd   : > { %v1294_v3 = vsel %vm1270_vm14, %v1123_v7, %v1125_v34 }
 0x2be   : > { %1763 = vmatprep.subr.bf16.mxu1 %v1294_v3 }
 0x2bf   : > { %1764 = vmatpush1.bf16.msra.mxu1 %v1293_v20  ;;  %v1141_v49 = vpop.permute.xlu1 %1140 }
 0x2c0   : > { %v1139_v16 = vpop.permute.xlu0 %1138 }
 0x2c1   : > { %v1300_v22 = vsel %vm1270_vm14, %v1137_v9, %v1139_v16  ;;  %v1301_v0 = vsel %vm1270_vm14, %v1139_v16, %v1141_v49 }
 0x2c2   : > { %1683 = vmatprep.subr.bf16.mxu0 %v1300_v22 }
 0x2c3   : > { %1684 = vmatpush1.bf16.msra.mxu0 %v1299_v59  ;;  %v1155_v23 = vpop.permute.xlu1 %1154 }
 0x2c4   : > { %v1143_v28 = vpop.permute.xlu0 %1142  ;;  %v1307_v19 = vsel %vm1270_vm14, %v3039_v52, %v1155_v23 }
 0x2c5   : > { %v1302_v55 = vsel %vm1270_vm14, %v1141_v49, %v1143_v28 }
 0x2c6   : > { %1765 = vmatprep.subr.bf16.mxu1 %v1302_v55 }
 0x2c7   : > { %1766 = vmatpush1.bf16.msra.mxu1 %v1301_v0  ;;  %v1159_v56 = vpop.permute.xlu1 %1158 }
 0x2c8   : > { %v1157_v4 = vpop.permute.xlu0 %1156 }
 0x2c9   : > { %v1308_v13 = vsel %vm1270_vm14, %v1155_v23, %v1157_v4  ;;  %v1309_v36 = vsel %vm1270_vm14, %v1157_v4, %v1159_v56 }
 0x2ca   : > { %1685 = vmatprep.subr.bf16.mxu0 %v1308_v13 }
 0x2cb   : > { %1686 = vmatpush1.bf16.msra.mxu0 %v1307_v19  ;;  %v1173_v61 = vpop.permute.xlu1 %1172 }
 0x2cc   : > { %v1161_v37 = vpop.permute.xlu0 %1160  ;;  %v1315_v32 = vsel %vm1270_vm14, %v3059_v43, %v1173_v61 }
 0x2cd   : > { %v1310_v17 = vsel %vm1270_vm14, %v1159_v56, %v1161_v37 }
 0x2ce   : > { %1767 = vmatprep.subr.bf16.mxu1 %v1310_v17 }
 0x2cf   : > { %1768 = vmatpush1.bf16.msra.mxu1 %v1309_v36  ;;  %v1177_v33 = vpop.permute.xlu1 %1176 }
 0x2d0   : > { %v1175_v62 = vpop.permute.xlu0 %1174 }
 0x2d1   : > { %v1316_v15 = vsel %vm1270_vm14, %v1173_v61, %v1175_v62  ;;  %v1317_v5 = vsel %vm1270_vm14, %v1175_v62, %v1177_v33 }
 0x2d2   : > { %1687 = vmatprep.subr.bf16.mxu0 %v1316_v15 }
 0x2d3   : > { %1688 = vmatpush1.bf16.msra.mxu0 %v1315_v32  ;;  %v1191_v52 = vpop.permute.xlu1 %1190 }
 0x2d4   : > { %v1179_v39 = vpop.permute.xlu0 %1178  ;;  %v1323_v46 = vsel %vm1270_vm14, %v3073_v29, %v1191_v52 }
 0x2d5   : > { %v1318_v54 = vsel %vm1270_vm14, %v1177_v33, %v1179_v39 }
 0x2d6   : > { %1769 = vmatprep.subr.bf16.mxu1 %v1318_v54 }
 0x2d7   : > { %1770 = vmatpush1.bf16.msra.mxu1 %v1317_v5  ;;  %v1195_v51 = vpop.permute.xlu1 %1194 }
 0x2d8   : > { %v1193_v42 = vpop.permute.xlu0 %1192 }
 0x2d9   : > { %v1324_v38 = vsel %vm1270_vm14, %v1191_v52, %v1193_v42  ;;  %v1325_v41 = vsel %vm1270_vm14, %v1193_v42, %v1195_v51 }
 0x2da   : > { %1689 = vmatprep.subr.bf16.mxu0 %v1324_v38 }
 0x2db   : > { %1690 = vmatpush1.bf16.msra.mxu0 %v1323_v46  ;;  %v1209_v43 = vpop.permute.xlu1 %1208 }
 0x2dc   : > { %v1197_v27 = vpop.permute.xlu0 %1196  ;;  %v1331_v31 = vsel %vm1270_vm14, %v3093_v6, %v1209_v43 }
 0x2dd   : > { %v1326_v2 = vsel %vm1270_vm14, %v1195_v51, %v1197_v27 }
 0x2de   : > { %1771 = vmatprep.subr.bf16.mxu1 %v1326_v2 }
 0x2df   : > { %1772 = vmatpush1.bf16.msra.mxu1 %v1325_v41  ;;  %v1213_v26 = vpop.permute.xlu1 %1212 }
 0x2e0   : > { %v1211_v63 = vpop.permute.xlu0 %1210 }
 0x2e1   : > { %v1332_v45 = vsel %vm1270_vm14, %v1209_v43, %v1211_v63  ;;  %v1333_v48 = vsel %vm1270_vm14, %v1211_v63, %v1213_v26 }
 0x2e2   : > { %1691 = vmatprep.subr.bf16.mxu0 %v1332_v45 }
 0x2e3   : > { %1692 = vmatpush1.bf16.msra.mxu0 %v1331_v31  ;;  %v1227_v29 = vpop.permute.xlu1 %1226 }
 0x2e4   : > { %v1215_v57 = vpop.permute.xlu0 %1214  ;;  %v1339_v11 = vsel %vm1270_vm14, %v3107_v14, %v1227_v29 }
 0x2e5   : > { %v1334_v21 = vsel %vm1270_vm14, %v1213_v26, %v1215_v57 }
 0x2e6   : > { %1773 = vmatprep.subr.bf16.mxu1 %v1334_v21 }
 0x2e7   : > { %1774 = vmatpush1.bf16.msra.mxu1 %v1333_v48  ;;  %v1231_v18 = vpop.permute.xlu1 %1230 }
 0x2e8   : > { %v1229_v60 = vpop.permute.xlu0 %1228 }
 0x2e9   : > { %v1340_v30 = vsel %vm1270_vm14, %v1227_v29, %v1229_v60  ;;  %v1341_v35 = vsel %vm1270_vm14, %v1229_v60, %v1231_v18 }
 0x2ea   : > { %1693 = vmatprep.subr.bf16.mxu0 %v1340_v30 }
 0x2eb   : > { %1694 = vmatpush1.bf16.msra.mxu0 %v1339_v11  ;;  %v1245_v6 = vpop.permute.xlu1 %1244 }
 0x2ec   : > { %v1233_v10 = vpop.permute.xlu0 %1232  ;;  %v1347_v58 = vsel %vm1270_vm14, %v3127_v44, %v1245_v6 }
 0x2ed   : > { %v1342_v25 = vsel %vm1270_vm14, %v1231_v18, %v1233_v10 }
 0x2ee   : > { %1775 = vmatprep.subr.bf16.mxu1 %v1342_v25 }
 0x2ef   : > { %1776 = vmatpush1.bf16.msra.mxu1 %v1341_v35  ;;  %v1249_v1 = vpop.permute.xlu1 %1248 }
 0x2f0   : > { %v1247_v53 = vpop.permute.xlu0 %1246 }
 0x2f1   : > { %v1348_v50 = vsel %vm1270_vm14, %v1245_v6, %v1247_v53  ;;  %v1349_v8 = vsel %vm1270_vm14, %v1247_v53, %v1249_v1 }
 0x2f2   : > { %1695 = vmatprep.subr.bf16.mxu0 %v1348_v50 }
 0x2f3   : > { %1696 = vmatpush1.bf16.msra.mxu0 %v1347_v58  ;;  %v1263_v7 = vpop.permute.xlu1 %1262 }
 0x2f4   : > { %v1251_v14 = vpop.permute.xlu0 %1250  ;;  %v1355_v34 = vsel %vm1270_vm14, %v3141_v40, %v1263_v7 }
 0x2f5   : > { %v1350_v47 = vsel %vm1270_vm14, %v1249_v1, %v1251_v14 }
 0x2f6   : > { %1777 = vmatprep.subr.bf16.mxu1 %v1350_v47 }
 0x2f7   : > { %1778 = vmatpush1.bf16.msra.mxu1 %v1349_v8  ;;  %v1267_v3 = vpop.permute.xlu1 %1266 }
 0x2f8   : > { %v1265_v24 = vpop.permute.xlu0 %1264 }
 0x2f9   : > { %v1356_v9 = vsel %vm1270_vm14, %v1263_v7, %v1265_v24  ;;  %v1357_v49 = vsel %vm1270_vm14, %v1265_v24, %v1267_v3 }
 0x2fa   : > { %1697 = vmatprep.subr.bf16.mxu0 %v1356_v9 }
 0x2fb   : > { %1698 = vmatpush1.bf16.msra.mxu0 %v1355_v34 }
 0x2fc   : > { %v1269_v44 = vpop.permute.xlu0 %1268 }
 0x2fd   : > { %v1358_v20 = vsel %vm1270_vm14, %v1267_v3, %v1269_v44 }
 0x2fe   : > { %1710 = vmatmul.mubr.bf16.vlgmr.msra.gmra.mrb[4].mxu0 %v3154_v12  ;;  %1779 = vmatprep.subr.bf16.mxu1 %v1358_v20  ;;  %v1629_v16 = vpop.f32.mrb[0].mxu1 }
 0x2ff   : > { %1780 = vmatpush1.bf16.msra.mxu1 %v1357_v49  ;;  %v1631_v22 = vpop.f32.mrb[1].mxu1 }
 0x300   : > { %v1633_v59 = vpop.f32.mrb[2].mxu1 }
 0x301   : > { %v1547_v23 = vpop.f32.mrb[0].mxu0  ;;  %v1634_v28 = vpop.f32.mrb[3].mxu1 }
 0x302   : > { %1792 = vmatmul.mubr.bf16.vlgmr.msra.gmra.mrb[4].mxu1 %v3154_v12  ;;  %v1549_v40 = vpop.f32.mrb[1].mxu0 }
 0x303   : > { %v1551_v55 = vpop.f32.mrb[2].mxu0 }
 0x304   : > { %v1552_v0 = vpop.f32.mrb[3].mxu0 }
 0x308   : > { %v1453_v56 = vpop.permute.xlu1 %1452 }
 0x309   : > { %v1976_v4 = vadd.f32 %v1547_v23, %v1453_v56  ;;  %v1977_v13 = vadd.f32 %v1549_v40, %v1453_v56  ;;  %v1978_v19 = vadd.f32 %v1629_v16, %v1453_v56  ;;  %v1979_v61 = vadd.f32 %v1631_v22, %v1453_v56 }
 0x30b   : > { %v1800_v37 = vmax.f32 %v1976_v4, 0.0  ;;  %v1801_v17 = vmax.f32 %v1977_v13, 0.0  ;;  %v1802_v36 = vmax.f32 %v1978_v19, 0.0  ;;  %v1803_v33 = vmax.f32 %v1979_v61, 0.0 }
 0x30d   : > { %v1972_v62 = vpack.c.bf16 %v1801_v17, %v1800_v37  ;;  %v1973_v12 = vpack.c.bf16 %v1803_v33, %v1802_v36 }
 0x30f   : > { %1840 = vst [vmem:[%s291_s22] sm:$0xff] %v1972_v62  ;;  %1841 = vst [vmem:[%s291_s22 + $0x8] sm:$0xff] %v1973_v12 }
 0x3d1   : > { %v1711_v15 = vpop.f32.mrb[4].mxu0 }
 0x3d2   : > { %v1980_v32 = vadd.f32 %v1711_v15, %v1453_v56  ;;  %v1713_v52 = vpop.f32.mrb[5].mxu0 }
 0x3d3   : > { %v1981_v39 = vadd.f32 %v1713_v52, %v1453_v56  ;;  %v1715_v54 = vpop.f32.mrb[6].mxu0 }
 0x3d4   : > { %v1804_v5 = vmax.f32 %v1980_v32, 0.0  ;;  %v1716_v51 = vpop.f32.mrb[7].mxu0 }
 0x3d5   : > { %v1805_v42 = vmax.f32 %v1981_v39, 0.0  ;;  %v1793_v38 = vpop.f32.mrb[4].mxu1 }
 0x3d6   : > { %v1982_v46 = vadd.f32 %v1793_v38, %v1453_v56  ;;  %v1795_v43 = vpop.f32.mrb[5].mxu1 }
 0x3d7   : > { %v1974_v27 = vpack.c.bf16 %v1805_v42, %v1804_v5  ;;  %v1983_v2 = vadd.f32 %v1795_v43, %v1453_v56  ;;  %v1797_v41 = vpop.f32.mrb[6].mxu1 }
 0x3d8   : > { %v1806_v26 = vmax.f32 %v1982_v46, 0.0  ;;  %v1798_v63 = vpop.f32.mrb[7].mxu1 }
 0x3d9   : > { %1842 = vst [vmem:[%s291_s22 + $0x10] sm:$0xff] %v1974_v27  ;;  %v1807_v45 = vmax.f32 %v1983_v2, 0.0 }
 0x3db   : > { %v1975_v31 = vpack.c.bf16 %v1807_v45, %v1806_v26 }
 0x3dd   : > { %1843 = vst [vmem:[%s291_s22 + $0x18] sm:$0xff] %v1975_v31 }
 0x3de PF: > { %p11_p12 = scmp.ge.s32.totalorder %s2188_s21, 4   ;;  %s3601_s15 = smov %s2098_s16 }
 0x3df   : > { %s3602_s16 = smov %s2205_s28  ;;  %s3603_s17 = smov %s2106_s18 }
 0x3e0   : > { %s3604_s18 = smov %s2198_s25  ;;  %s3605_s19 = smov %s2188_s21 }
 0x3e1   :  { %13 = sbr.rel (!%p11_p12) target bundleno = 3 (0x3), region = 125 }

// kernel: global_net_forward.30
= control target key start
LH: loop header
LB: loop body
LE: loop exit
PB: predicated region body
PF: predicated region fallthrough
CT: control target
= control target key end

     0   :  { %s1936_s15 = smov 0   ;;  %s3275_s0 = inlined_call_operand.vmem [shape: bf16[8,3072], index: 0, kind: input, shape index: {}, may-alias: {0,1}]   ;;  %s3276_s1 = inlined_call_operand.vmem [shape: bf16[8,3072], index: 1, kind: input, shape index: {}, may-alias: {0,1}]   ;;  %s3277_s2 = inlined_call_operand.vmem [shape: bf16[8,216], index: 2, kind: input, shape index: {}]   ;;  %s3278_s3 = inlined_call_operand.vmem [shape: f32[8,1], index: 3, kind: input, shape index: {}]   ;;  %s3279_s4 = inlined_call_operand.vmem [shape: bf16[8,2048], index: 4, kind: output, shape index: {}]  }
   0x1 LB: > { %s1791_s16 = sadd.s32 4294967295, %s1885_s15   ;;  %p1795_p0 = scmp.ge.s32.totalorder %s1885_s15, 1  ;;  %s1885_s15 = sphi %s1936_s15, %s14_s15  }
   0x2   : > { %p178_p1 = scmp.lt.s32.totalorder %s1885_s15, 3 }
   0x4   : > { %p179_p2 = pnand %p1795_p0, %p178_p1 }
   0x6   : > { %182 = sbr.rel (%p179_p2) target bundleno = 867 (0x363), region = 36 }
   0xd   : > { %s1944_s17 = sshll.u32 %s1791_s16, 3  ;;  %s1887_s24 = smov 127   ;;  %vm288_vm0 = vcmask 1039360   ;;  %vm675_vm1 = vcmask 1043456   ;;  %vm342_vm2 = vcmask 965632   ;;  %vm315_vm3 = vcmask 1031168  }
   0xe   : > { %p211_p3 = scmp.lt.s32.totalorder %s1944_s17, 23  ;;  %s1829_s18 = sadd.s32 8, %s1944_s17  ;;  %vm396_vm4 = vcmask 949248   ;;  %vm369_vm5 = vcmask 957440   ;;  %vm978_vm6 = vcmask 392192   ;;  %vm950_vm7 = vcmask 400384  }
   0xf   : > { %p218_p4 = scmp.lt.s32.totalorder %s1829_s18, 23  ;;  %s1888_s29 = smov 126   ;;  %vm423_vm8 = vcmask 883712   ;;  %vm450_vm9 = vcmask 875520   ;;  %vm504_vm10 = vcmask 228352   ;;  %vm477_vm11 = vcmask 867328  }
  0x10   : > { %s212_s19 = scalar_select %p211_p3, %s1944_s17, 23  ;;  %vm1032_vm12 = vcmask 318464   ;;  %vm531_vm13 = vcmask 220160   ;;  %vm3289_vm14 = vcmask 211968   ;;  %vm1005_vm15 = vcmask 384000  }
  0x11   : > { %s3341_s18 = smov (!%p218_p4, %s1829_s18), 23  ;;  %s1889_s30 = smov 118  }
  0x12   : > { %s1797_s20 = sshll.u32 %s212_s19, 2  ;;  %s1799_s25 = sshll.u32 %s3341_s18, 2 }
  0x13   : > { %s214_s23 = scalar_lea.vmem %s3275_s0, %s1797_s20  ;;  %s221_s28 = scalar_lea.vmem %s3276_s1, %s1799_s25 }
  0x14   : > { %v232_v0 = vld [vmem:[%s214_s23 + $0x8] sm:$0xff]  ;;  %v231_v1 = vld [vmem:[%s214_s23] sm:$0xff]  ;;  %v233_v6 = vld [vmem:[%s214_s23 + $0x10] sm:$0xff]  ;;  %s1890_s5 = smov 117   ;;  %s1891_s6 = smov 116  }
  0x15   : > { %v1952_v2 = vcombine.low %v232_v0, %v232_v0  ;;  %v1954_v3 = vcombine.low %v231_v1, %v231_v1  ;;  %v1957_v4 = vcombine.high %v231_v1, %v231_v1  ;;  %v1960_v5 = vcombine.high %v232_v0, %v232_v0  ;;  %v234_v9 = vld [vmem:[%s214_s23 + $0x18] sm:$0xff]  ;;  %v1977_v12 = vld [vmem:[%s221_s28] sm:$0xff]  ;;  %s1892_s7 = smov 108   ;;  %s1893_s8 = smov 49  }
  0x16   : > { %v1964_v7 = vcombine.high %v233_v6, %v233_v6  ;;  %v1966_v8 = vcombine.low %v233_v6, %v233_v6  ;;  %v1973_v10 = vcombine.high %v234_v9, %v234_v9  ;;  %v1975_v11 = vcombine.low %v234_v9, %v234_v9  ;;  %s1894_s9 = smov 48   ;;  %s1895_s10 = smov 47  }
  0x17   : > { %274 = vrot.lane.b32.xlu1 %v1952_v2, %s1887_s24  ;;  %270 = vrot.lane.b32.xlu0 %v1954_v3, %s1887_s24  ;;  %v1983_v13 = vcombine.low %v1977_v12, %v1977_v12  ;;  %s1896_s11 = smov 39   ;;  %s1897_s12 = smov 38  }
  0x18   : > { %3292 = vst [vmem:[#allocation2_spill] sm:$0xff] %v1964_v7  ;;  %s1898_s13 = smov 37   ;;  %s1899_s14 = smov 28  }
  0x19   : > { %s1900_s16 = smov 29   ;;  %s1901_s18 = smov 27  }
  0x1a   : > { %s1902_s19 = smov 107   ;;  %s1903_s20 = smov 106  }
  0x1b   : > { %276 = vrot.lane.b32.xlu1 %v1960_v5, %s1887_s24  ;;  %272 = vrot.lane.b32.xlu0 %v1957_v4, %s1887_s24  ;;  %s1904_s21 = smov 26   ;;  %s1905_s22 = smov 18  }
  0x1c   : > { %s1906_s23 = smov 17   ;;  %s1908_s25 = smov 8  }
  0x1d   : > { %s1909_s26 = smov 7   ;;  %p225_p5 = scmp.lt.s32.totalorder %s1944_s17, 15 }
  0x1f   : > { %280 = vrot.lane.b32.xlu1 %v1964_v7, %s1887_s24  ;;  %278 = vrot.lane.b32.xlu0 %v1966_v8, %s1887_s24  ;;  %s3343_s17 = smov (!%p225_p5, %s1944_s17), 15 }
  0x23   : > { %284 = vrot.lane.b32.xlu1 %v1973_v10, %s1887_s24  ;;  %282 = vrot.lane.b32.xlu0 %v1975_v11, %s1887_s24 }
  0x27   : > { %297 = vrot.lane.b32.xlu1 %v1954_v3, %s1888_s29  ;;  %286 = vrot.lane.b32.xlu0 %v1983_v13, %s1887_s24  ;;  %s1907_s24 = smov 16  }
  0x2b   : > { %301 = vrot.lane.b32.xlu1 %v1952_v2, %s1888_s29  ;;  %299 = vrot.lane.b32.xlu0 %v1957_v4, %s1888_s29 }
  0x2f   : > { %305 = vrot.lane.b32.xlu1 %v1966_v8, %s1888_s29  ;;  %303 = vrot.lane.b32.xlu0 %v1960_v5, %s1888_s29 }
  0x33   : > { %309 = vrot.lane.b32.xlu1 %v1975_v11, %s1888_s29  ;;  %307 = vrot.lane.b32.xlu0 %v1964_v7, %s1888_s29 }
  0x37   : > { %313 = vrot.lane.b32.xlu1 %v1983_v13, %s1888_s29  ;;  %311 = vrot.lane.b32.xlu0 %v1973_v10, %s1888_s29 }
  0x3b   : > { %326 = vrot.lane.b32.xlu1 %v1957_v4, %s1889_s30  ;;  %324 = vrot.lane.b32.xlu0 %v1954_v3, %s1889_s30 }
  0x3f   : > { %330 = vrot.lane.b32.xlu1 %v1960_v5, %s1889_s30  ;;  %328 = vrot.lane.b32.xlu0 %v1952_v2, %s1889_s30 }
  0x43   : > { %334 = vrot.lane.b32.xlu1 %v1964_v7, %s1889_s30  ;;  %332 = vrot.lane.b32.xlu0 %v1966_v8, %s1889_s30 }
  0x47   : > { %338 = vrot.lane.b32.xlu1 %v1973_v10, %s1889_s30  ;;  %336 = vrot.lane.b32.xlu0 %v1975_v11, %s1889_s30 }
  0x4b   : > { %351 = vrot.lane.b32.xlu1 %v1954_v3, %s1890_s5  ;;  %340 = vrot.lane.b32.xlu0 %v1983_v13, %s1889_s30 }
  0x4f   : > { %355 = vrot.lane.b32.xlu1 %v1952_v2, %s1890_s5  ;;  %353 = vrot.lane.b32.xlu0 %v1957_v4, %s1890_s5 }
  0x53   : > { %359 = vrot.lane.b32.xlu1 %v1966_v8, %s1890_s5  ;;  %357 = vrot.lane.b32.xlu0 %v1960_v5, %s1890_s5 }
  0x57   : > { %363 = vrot.lane.b32.xlu1 %v1975_v11, %s1890_s5  ;;  %361 = vrot.lane.b32.xlu0 %v1964_v7, %s1890_s5 }
  0x5b   : > { %367 = vrot.lane.b32.xlu1 %v1983_v13, %s1890_s5  ;;  %365 = vrot.lane.b32.xlu0 %v1973_v10, %s1890_s5  ;;  %s1801_s5 = sshll.u32 %s3343_s17, 2 }
  0x5f   : > { %380 = vrot.lane.b32.xlu1 %v1957_v4, %s1891_s6  ;;  %378 = vrot.lane.b32.xlu0 %v1954_v3, %s1891_s6 }
  0x63   : > { %384 = vrot.lane.b32.xlu1 %v1960_v5, %s1891_s6  ;;  %382 = vrot.lane.b32.xlu0 %v1952_v2, %s1891_s6 }
  0x67   : > { %388 = vrot.lane.b32.xlu1 %v1964_v7, %s1891_s6  ;;  %386 = vrot.lane.b32.xlu0 %v1966_v8, %s1891_s6 }
  0x6b   : > { %392 = vrot.lane.b32.xlu1 %v1973_v10, %s1891_s6  ;;  %390 = vrot.lane.b32.xlu0 %v1975_v11, %s1891_s6 }
  0x6f   : > { %405 = vrot.lane.b32.xlu1 %v1954_v3, %s1892_s7  ;;  %394 = vrot.lane.b32.xlu0 %v1983_v13, %s1891_s6 }
  0x73   : > { %409 = vrot.lane.b32.xlu1 %v1952_v2, %s1892_s7  ;;  %407 = vrot.lane.b32.xlu0 %v1957_v4, %s1892_s7 }
  0x77   : > { %932 = vrot.lane.b32.xlu1 %v1957_v4, %s1893_s8  ;;  %411 = vrot.lane.b32.xlu0 %v1960_v5, %s1892_s7 }
  0x7b   : > { %936 = vrot.lane.b32.xlu1 %v1960_v5, %s1893_s8  ;;  %934 = vrot.lane.b32.xlu0 %v1952_v2, %s1893_s8 }
  0x7f   : > { %940 = vrot.lane.b32.xlu1 %v1964_v7, %s1893_s8  ;;  %938 = vrot.lane.b32.xlu0 %v1966_v8, %s1893_s8 }
  0x83   : > { %962 = vrot.lane.b32.xlu1 %v1952_v2, %s1894_s9  ;;  %960 = vrot.lane.b32.xlu0 %v1957_v4, %s1894_s9 }
  0x87   : > { %966 = vrot.lane.b32.xlu1 %v1966_v8, %s1894_s9  ;;  %964 = vrot.lane.b32.xlu0 %v1960_v5, %s1894_s9 }
  0x89   : > { %v275_v14 = vpop.permute.xlu1 %274  ;;  %v271_v15 = vpop.permute.xlu0 %270 }
  0x8b   : > { %987 = vrot.lane.b32.xlu1 %v1957_v4, %s1895_s10  ;;  %968 = vrot.lane.b32.xlu0 %v1964_v7, %s1894_s9 }
  0x8d   : > { %v277_v16 = vpop.permute.xlu1 %276  ;;  %v273_v17 = vpop.permute.xlu0 %272 }
  0x8e   : > { %v290_v18 = vsel %vm288_vm0, %v273_v17, %v275_v14  ;;  %v289_v19 = vsel %vm288_vm0, %v271_v15, %v273_v17  ;;  %v291_v24 = vsel %vm288_vm0, %v275_v14, %v277_v16 }
  0x8f   : > { %991 = vrot.lane.b32.xlu1 %v1960_v5, %s1895_s10  ;;  %989 = vrot.lane.b32.xlu0 %v1952_v2, %s1895_s10  ;;  %v2060_v20 = vsel %vm675_vm1, %v1957_v4, %v290_v18  ;;  %v2064_v21 = vsel %vm675_vm1, %v1954_v3, %v289_v19  ;;  %v2086_v27 = vsel %vm675_vm1, %v1952_v2, %v291_v24 }
  0x90   : > { %1515 = vmatprep.subr.bf16.mxu0 %v2060_v20 }
  0x91   : > { %v2067_v22 = vpop.permute.xlu1 %280  ;;  %1516 = vmatpush1.bf16.msra.mxu0 %v2064_v21  ;;  %v2070_v23 = vpop.permute.xlu0 %278 }
  0x92   : > { %3293 = vst [vmem:[#allocation3_spill] sm:$0xff] %v2067_v22  ;;  %v292_v25 = vsel %vm288_vm0, %v277_v16, %v2070_v23 }
  0x93   : > { %995 = vrot.lane.b32.xlu1 %v1964_v7, %s1895_s10  ;;  %993 = vrot.lane.b32.xlu0 %v1966_v8, %s1895_s10  ;;  %v2081_v26 = vsel %vm675_vm1, %v1960_v5, %v292_v25 }
  0x94   : > { %1556 = vmatprep.subr.bf16.mxu1 %v2081_v26 }
  0x95   : > { %v2088_v28 = vpop.permute.xlu1 %284  ;;  %1557 = vmatpush1.bf16.msra.mxu1 %v2086_v27  ;;  %v2091_v29 = vpop.permute.xlu0 %282 }
  0x96   : > { %3294 = vst [vmem:[#allocation4_spill] sm:$0xff] %v2088_v28  ;;  %3295 = vst [vmem:[#allocation5_spill] sm:$0xff] %v2091_v29 }
  0x97   : > { %1016 = vrot.lane.b32.xlu1 %v1952_v2, %s1896_s11  ;;  %1014 = vrot.lane.b32.xlu0 %v1957_v4, %s1896_s11 }
  0x99   : > { %v298_v30 = vpop.permute.xlu1 %297  ;;  %v2097_v31 = vpop.permute.xlu0 %286 }
  0x9a   : > { %3296 = vst [vmem:[#allocation6_spill] sm:$0xff] %v2097_v31 }
  0x9b   : > { %1020 = vrot.lane.b32.xlu1 %v1966_v8, %s1896_s11  ;;  %1018 = vrot.lane.b32.xlu0 %v1960_v5, %s1896_s11 }
  0x9d   : > { %v302_v32 = vpop.permute.xlu1 %301  ;;  %v300_v33 = vpop.permute.xlu0 %299 }
  0x9e   : > { %v317_v45 = vsel %vm315_vm3, %v300_v33, %v302_v32  ;;  %v316_v47 = vsel %vm315_vm3, %v298_v30, %v300_v33 }
  0x9f   : > { %1041 = vrot.lane.b32.xlu1 %v1957_v4, %s1897_s12  ;;  %1022 = vrot.lane.b32.xlu0 %v1964_v7, %s1896_s11 }
  0xa1   : > { %v306_v34 = vpop.permute.xlu1 %305  ;;  %v304_v35 = vpop.permute.xlu0 %303 }
  0xa2   : > { %v319_v53 = vsel %vm315_vm3, %v304_v35, %v306_v34  ;;  %v318_v57 = vsel %vm315_vm3, %v302_v32, %v304_v35 }
  0xa3   : > { %1045 = vrot.lane.b32.xlu1 %v1960_v5, %s1897_s12  ;;  %1043 = vrot.lane.b32.xlu0 %v1952_v2, %s1897_s12 }
  0xa5   : > { %v310_v36 = vpop.permute.xlu1 %309  ;;  %v308_v37 = vpop.permute.xlu0 %307 }
  0xa6   : > { %v320_v54 = vsel %vm315_vm3, %v306_v34, %v308_v37  ;;  %v321_v63 = vsel %vm315_vm3, %v308_v37, %v310_v36 }
  0xa7   : > { %1049 = vrot.lane.b32.xlu1 %v1964_v7, %s1897_s12  ;;  %1047 = vrot.lane.b32.xlu0 %v1966_v8, %s1897_s12 }
  0xa9   : > { %v314_v38 = vpop.permute.xlu1 %313  ;;  %v312_v39 = vpop.permute.xlu0 %311 }
  0xaa   : > { %v322_v0 = vsel %vm315_vm3, %v310_v36, %v312_v39  ;;  %v323_v17 = vsel %vm315_vm3, %v312_v39, %v314_v38  ;;  %vm3287_vm3 = vcmask 138240  }
  0xab   : > { %1070 = vrot.lane.b32.xlu1 %v1952_v2, %s1898_s13  ;;  %1068 = vrot.lane.b32.xlu0 %v1957_v4, %s1898_s13 }
  0xad   : > { %v327_v40 = vpop.permute.xlu1 %326  ;;  %v325_v41 = vpop.permute.xlu0 %324 }
  0xae   : > { %v343_v42 = vsel %vm342_vm2, %v325_v41, %v327_v40 }
  0xaf   : > { %1074 = vrot.lane.b32.xlu1 %v1966_v8, %s1898_s13  ;;  %1072 = vrot.lane.b32.xlu0 %v1960_v5, %s1898_s13  ;;  %v710_v49 = vsel %vm675_vm1, %v316_v47, %v343_v42 }
  0xb1   : > { %v331_v43 = vpop.permute.xlu1 %330  ;;  %v329_v44 = vpop.permute.xlu0 %328 }
  0xb2   : > { %v344_v46 = vsel %vm342_vm2, %v327_v40, %v329_v44  ;;  %v345_v50 = vsel %vm342_vm2, %v329_v44, %v331_v43 }
  0xb3   : > { %488 = vrot.lane.b32.xlu1 %v1957_v4, %s1899_s14  ;;  %1076 = vrot.lane.b32.xlu0 %v1964_v7, %s1898_s13  ;;  %v714_v48 = vsel %vm675_vm1, %v317_v45, %v344_v46  ;;  %v718_v60 = vsel %vm675_vm1, %v318_v57, %v345_v50 }
  0xb4   : > { %1517 = vmatprep.subr.bf16.mxu0 %v714_v48 }
  0xb5   : > { %v335_v51 = vpop.permute.xlu1 %334  ;;  %1518 = vmatpush1.bf16.msra.mxu0 %v710_v49  ;;  %v333_v52 = vpop.permute.xlu0 %332 }
  0xb6   : > { %v346_v55 = vsel %vm342_vm2, %v331_v43, %v333_v52  ;;  %v347_v56 = vsel %vm342_vm2, %v333_v52, %v335_v51 }
  0xb7   : > { %492 = vrot.lane.b32.xlu1 %v1960_v5, %s1899_s14  ;;  %490 = vrot.lane.b32.xlu0 %v1952_v2, %s1899_s14  ;;  %v722_v58 = vsel %vm675_vm1, %v319_v53, %v346_v55  ;;  %v2145_v59 = vsel %vm675_vm1, %v320_v54, %v347_v56 }
  0xb8   : > { %3297 = vst [vmem:[#allocation7_spill] sm:$0xff] %v2145_v59  ;;  %1558 = vmatprep.subr.bf16.mxu1 %v722_v58 }
  0xb9   : > { %v339_v61 = vpop.permute.xlu1 %338  ;;  %1559 = vmatpush1.bf16.msra.mxu1 %v718_v60  ;;  %v337_v62 = vpop.permute.xlu0 %336 }
  0xba   : > { %v348_v1 = vsel %vm342_vm2, %v335_v51, %v337_v62  ;;  %v349_v6 = vsel %vm342_vm2, %v337_v62, %v339_v61 }
  0xbb   : > { %496 = vrot.lane.b32.xlu1 %v1964_v7, %s1899_s14  ;;  %494 = vrot.lane.b32.xlu0 %v1966_v8, %s1899_s14  ;;  %v2157_v9 = vsel %vm675_vm1, %v321_v63, %v348_v1  ;;  %v2160_v14 = vsel %vm675_vm1, %v322_v0, %v349_v6 }
  0xbc   : > { %3298 = vst [vmem:[#allocation8_spill] sm:$0xff] %v2157_v9  ;;  %3299 = vst [vmem:[#allocation9_spill] sm:$0xff] %v2160_v14 }
  0xbd   : > { %v352_v15 = vpop.permute.xlu1 %351  ;;  %v341_v16 = vpop.permute.xlu0 %340 }
  0xbe   : > { %v350_v18 = vsel %vm342_vm2, %v339_v61, %v341_v16  ;;  %vm3288_vm2 = vcmask 146432  }
  0xbf   : > { %1097 = vrot.lane.b32.xlu1 %v1952_v2, %s1900_s16  ;;  %1095 = vrot.lane.b32.xlu0 %v1957_v4, %s1900_s16  ;;  %v2169_v19 = vsel %vm675_vm1, %v323_v17, %v350_v18 }
  0xc0   : > { %3300 = vst [vmem:[#allocation10_spill] sm:$0xff] %v2169_v19 }
  0xc1   : > { %v356_v24 = vpop.permute.xlu1 %355  ;;  %v354_v25 = vpop.permute.xlu0 %353 }
  0xc2   : > { %v371_v42 = vsel %vm369_vm5, %v354_v25, %v356_v24  ;;  %v370_v44 = vsel %vm369_vm5, %v352_v15, %v354_v25 }
  0xc3   : > { %1101 = vrot.lane.b32.xlu1 %v1966_v8, %s1900_s16  ;;  %1099 = vrot.lane.b32.xlu0 %v1960_v5, %s1900_s16 }
  0xc5   : > { %v360_v30 = vpop.permute.xlu1 %359  ;;  %v358_v32 = vpop.permute.xlu0 %357 }
  0xc6   : > { %v373_v50 = vsel %vm369_vm5, %v358_v32, %v360_v30  ;;  %v372_v54 = vsel %vm369_vm5, %v356_v24, %v358_v32 }
  0xc7   : > { %515 = vrot.lane.b32.xlu1 %v1957_v4, %s1901_s18  ;;  %1103 = vrot.lane.b32.xlu0 %v1964_v7, %s1900_s16 }
  0xc9   : > { %v364_v33 = vpop.permute.xlu1 %363  ;;  %v362_v34 = vpop.permute.xlu0 %361 }
  0xca   : > { %v374_v51 = vsel %vm369_vm5, %v360_v30, %v362_v34  ;;  %v375_v61 = vsel %vm369_vm5, %v362_v34, %v364_v33 }
  0xcb   : > { %519 = vrot.lane.b32.xlu1 %v1960_v5, %s1901_s18  ;;  %517 = vrot.lane.b32.xlu0 %v1952_v2, %s1901_s18 }
  0xcd   : > { %v368_v35 = vpop.permute.xlu1 %367  ;;  %v366_v36 = vpop.permute.xlu0 %365 }
  0xce   : > { %v376_v62 = vsel %vm369_vm5, %v364_v33, %v366_v36  ;;  %v377_v17 = vsel %vm369_vm5, %v366_v36, %v368_v35  ;;  %vm1059_vm5 = vcmask 310272  }
  0xcf   : > { %523 = vrot.lane.b32.xlu1 %v1964_v7, %s1901_s18  ;;  %521 = vrot.lane.b32.xlu0 %v1966_v8, %s1901_s18 }
  0xd1   : > { %v381_v37 = vpop.permute.xlu1 %380  ;;  %v379_v38 = vpop.permute.xlu0 %378 }
  0xd2   : > { %v397_v39 = vsel %vm396_vm4, %v379_v38, %v381_v37 }
  0xd3   : > { %434 = vrot.lane.b32.xlu1 %v1957_v4, %s1902_s19  ;;  %413 = vrot.lane.b32.xlu0 %v1966_v8, %s1892_s7  ;;  %v742_v46 = vsel %vm675_vm1, %v370_v44, %v397_v39 }
  0xd5   : > { %v385_v40 = vpop.permute.xlu1 %384  ;;  %v383_v41 = vpop.permute.xlu0 %382 }
  0xd6   : > { %v398_v43 = vsel %vm396_vm4, %v381_v37, %v383_v41  ;;  %v399_v47 = vsel %vm396_vm4, %v383_v41, %v385_v40 }
  0xd7   : > { %438 = vrot.lane.b32.xlu1 %v1960_v5, %s1902_s19  ;;  %436 = vrot.lane.b32.xlu0 %v1952_v2, %s1902_s19  ;;  %v746_v45 = vsel %vm675_vm1, %v371_v42, %v398_v43  ;;  %v750_v57 = vsel %vm675_vm1, %v372_v54, %v399_v47 }
  0xd8   : > { %1519 = vmatprep.subr.bf16.mxu0 %v746_v45 }
  0xd9   : > { %v389_v48 = vpop.permute.xlu1 %388  ;;  %1520 = vmatpush1.bf16.msra.mxu0 %v742_v46  ;;  %v387_v49 = vpop.permute.xlu0 %386 }
  0xda   : > { %v400_v52 = vsel %vm396_vm4, %v385_v40, %v387_v49  ;;  %v401_v53 = vsel %vm396_vm4, %v387_v49, %v389_v48 }
  0xdb   : > { %432 = vrot.lane.b32.xlu1 %v1954_v3, %s1902_s19  ;;  %440 = vrot.lane.b32.xlu0 %v1966_v8, %s1902_s19  ;;  %v754_v55 = vsel %vm675_vm1, %v373_v50, %v400_v52  ;;  %v2213_v56 = vsel %vm675_vm1, %v374_v51, %v401_v53 }
  0xdc   : > { %3301 = vst [vmem:[#allocation11_spill] sm:$0xff] %v2213_v56  ;;  %1560 = vmatprep.subr.bf16.mxu1 %v754_v55 }
  0xdd   : > { %v393_v58 = vpop.permute.xlu1 %392  ;;  %1561 = vmatpush1.bf16.msra.mxu1 %v750_v57  ;;  %v391_v60 = vpop.permute.xlu0 %390 }
  0xde   : > { %v402_v63 = vsel %vm396_vm4, %v389_v48, %v391_v60  ;;  %v403_v0 = vsel %vm396_vm4, %v391_v60, %v393_v58 }
  0xdf   : > { %463 = vrot.lane.b32.xlu1 %v1952_v2, %s1903_s20  ;;  %461 = vrot.lane.b32.xlu0 %v1957_v4, %s1903_s20  ;;  %v2225_v1 = vsel %vm675_vm1, %v375_v61, %v402_v63  ;;  %v2228_v6 = vsel %vm675_vm1, %v376_v62, %v403_v0 }
  0xe0   : > { %3302 = vst [vmem:[#allocation12_spill] sm:$0xff] %v2225_v1  ;;  %3303 = vst [vmem:[#allocation13_spill] sm:$0xff] %v2228_v6 }
  0xe1   : > { %v2230_v15 = vpop.permute.xlu1 %405  ;;  %v395_v16 = vpop.permute.xlu0 %394 }
  0xe2   : > { %v404_v18 = vsel %vm396_vm4, %v393_v58, %v395_v16  ;;  %vm1086_vm4 = vcmask 302080  }
  0xe3   : > { %467 = vrot.lane.b32.xlu1 %v1966_v8, %s1903_s20  ;;  %465 = vrot.lane.b32.xlu0 %v1960_v5, %s1903_s20  ;;  %v2239_v24 = vsel %vm675_vm1, %v377_v17, %v404_v18  ;;  %v293_v17 = vsel %vm288_vm0, %v2070_v23, %v2067_v22 }
  0xe4   : > { %3304 = vst [vmem:[#allocation14_spill] sm:$0xff] %v2239_v24  ;;  %v2406_v24 = vsel %vm675_vm1, %v1966_v8, %v293_v17 }
  0xe5   : > { %v2241_v25 = vpop.permute.xlu1 %409  ;;  %v2243_v30 = vpop.permute.xlu0 %407  ;;  %3305 = vst [vmem:[#allocation15_spill] sm:$0xff] %v2406_v24 }
  0xe6   : > { %v424_v7 = vsel %vm423_vm8, %v2230_v15, %v2243_v30 }
  0xe7   : > { %486 = vrot.lane.b32.xlu1 %v1954_v3, %s1899_s14  ;;  %459 = vrot.lane.b32.xlu0 %v1954_v3, %s1903_s20 }
  0xe9   : > { %v2249_v32 = vpop.permute.xlu1 %932  ;;  %v2251_v33 = vpop.permute.xlu0 %411 }
  0xeb   : > { %544 = vrot.lane.b32.xlu1 %v1952_v2, %s1904_s21  ;;  %542 = vrot.lane.b32.xlu0 %v1957_v4, %s1904_s21 }
  0xed   : > { %v2257_v34 = vpop.permute.xlu1 %936  ;;  %v2259_v35 = vpop.permute.xlu0 %934 }
  0xee   : > { %v951_v1 = vsel %vm950_vm7, %v2249_v32, %v2259_v35  ;;  %v952_v28 = vsel %vm950_vm7, %v2259_v35, %v2257_v34 }
  0xef   : > { %548 = vrot.lane.b32.xlu1 %v1966_v8, %s1904_s21  ;;  %546 = vrot.lane.b32.xlu0 %v1960_v5, %s1904_s21 }
  0xf1   : > { %v2265_v36 = vpop.permute.xlu1 %940  ;;  %v2267_v37 = vpop.permute.xlu0 %938 }
  0xf3   : > { %540 = vrot.lane.b32.xlu1 %v1954_v3, %s1904_s21  ;;  %513 = vrot.lane.b32.xlu0 %v1954_v3, %s1901_s18 }
  0xf5   : > { %v2273_v38 = vpop.permute.xlu1 %962  ;;  %v2275_v39 = vpop.permute.xlu0 %960 }
  0xf6   : > { %v979_v14 = vsel %vm978_vm6, %v2275_v39, %v2273_v38 }
  0xf7   : > { %571 = vrot.lane.b32.xlu1 %v1952_v2, %s1905_s22  ;;  %569 = vrot.lane.b32.xlu0 %v1957_v4, %s1905_s22  ;;  %v1136_v9 = vsel %vm675_vm1, %v951_v1, %v979_v14  ;;  %v953_v14 = vsel %vm950_vm7, %v2257_v34, %v2267_v37 }
  0xf9   : > { %v2281_v40 = vpop.permute.xlu1 %966  ;;  %v2283_v41 = vpop.permute.xlu0 %964 }
  0xfa   : > { %v981_v31 = vsel %vm978_vm6, %v2283_v41, %v2281_v40 }
  0xfb   : > { %575 = vrot.lane.b32.xlu1 %v1966_v8, %s1905_s22  ;;  %573 = vrot.lane.b32.xlu0 %v1960_v5, %s1905_s22  ;;  %v1142_v22 = vsel %vm675_vm1, %v953_v14, %v981_v31 }
  0xfd   : > { %v2289_v42 = vpop.permute.xlu1 %987  ;;  %v2291_v43 = vpop.permute.xlu0 %968 }
  0xfe   : > { %v982_v35 = vsel %vm978_vm6, %v2281_v40, %v2291_v43 }
  0xff   : > { %598 = vrot.lane.b32.xlu1 %v1952_v2, %s1906_s23  ;;  %596 = vrot.lane.b32.xlu0 %v1957_v4, %s1906_s23 }
 0x101   : > { %v2297_v44 = vpop.permute.xlu1 %991  ;;  %v2299_v45 = vpop.permute.xlu0 %989 }
 0x103   : > { %602 = vrot.lane.b32.xlu1 %v1966_v8, %s1906_s23  ;;  %600 = vrot.lane.b32.xlu0 %v1960_v5, %s1906_s23 }
 0x105   : > { %v2305_v46 = vpop.permute.xlu1 %995  ;;  %v2307_v47 = vpop.permute.xlu0 %993 }
 0x107   : > { %594 = vrot.lane.b32.xlu1 %v1954_v3, %s1906_s23  ;;  %567 = vrot.lane.b32.xlu0 %v1954_v3, %s1905_s22 }
 0x109   : > { %v2313_v48 = vpop.permute.xlu1 %1016  ;;  %v2315_v49 = vpop.permute.xlu0 %1014 }
 0x10b   : > { %625 = vrot.lane.b32.xlu1 %v1952_v2, %s1907_s24  ;;  %623 = vrot.lane.b32.xlu0 %v1957_v4, %s1907_s24 }
 0x10d   : > { %v2321_v50 = vpop.permute.xlu1 %1020  ;;  %v2323_v51 = vpop.permute.xlu0 %1018 }
 0x10f   : > { %629 = vrot.lane.b32.xlu1 %v1966_v8, %s1907_s24  ;;  %627 = vrot.lane.b32.xlu0 %v1960_v5, %s1907_s24 }
 0x111   : > { %v2329_v52 = vpop.permute.xlu1 %1041  ;;  %v2331_v53 = vpop.permute.xlu0 %1022 }
 0x113   : > { %652 = vrot.lane.b32.xlu1 %v1952_v2, %s1908_s25  ;;  %650 = vrot.lane.b32.xlu0 %v1957_v4, %s1908_s25 }
 0x115   : > { %v2337_v54 = vpop.permute.xlu1 %1045  ;;  %v2339_v55 = vpop.permute.xlu0 %1043 }
 0x117   : > { %656 = vrot.lane.b32.xlu1 %v1966_v8, %s1908_s25  ;;  %654 = vrot.lane.b32.xlu0 %v1960_v5, %s1908_s25  ;;  %v2363_v5 = vcombine.high %v1977_v12, %v1977_v12 }
 0x119   : > { %v2345_v57 = vpop.permute.xlu1 %1049  ;;  %v2347_v58 = vpop.permute.xlu0 %1047 }
 0x11b   : > { %648 = vrot.lane.b32.xlu1 %v1954_v3, %s1908_s25  ;;  %621 = vrot.lane.b32.xlu0 %v1954_v3, %s1907_s24 }
 0x11d   : > { %v2353_v2 = vpop.permute.xlu1 %1070  ;;  %v2355_v4 = vpop.permute.xlu0 %1068 }
 0x11f   : > { %944 = vrot.lane.b32.xlu1 %v1973_v10, %s1893_s8  ;;  %942 = vrot.lane.b32.xlu0 %v1975_v11, %s1893_s8 }
 0x121   : > { %v2365_v60 = vpop.permute.xlu1 %1074  ;;  %v2367_v61 = vpop.permute.xlu0 %1072 }
 0x123   : > { %948 = vrot.lane.b32.xlu1 %v2363_v5, %s1893_s8  ;;  %946 = vrot.lane.b32.xlu0 %v1983_v13, %s1893_s8  ;;  %s228_s8 = scalar_lea.vmem %s3279_s4, %s1801_s5 }
 0x125   : > { %v2373_v3 = vpop.permute.xlu1 %488  ;;  %v2375_v62 = vpop.permute.xlu0 %1076 }
 0x127   : > { %972 = vrot.lane.b32.xlu1 %v1973_v10, %s1894_s9  ;;  %970 = vrot.lane.b32.xlu0 %v1975_v11, %s1894_s9 }
 0x129   : > { %v2381_v12 = vpop.permute.xlu1 %492  ;;  %v2383_v63 = vpop.permute.xlu0 %490 }
 0x12b   : > { %976 = vrot.lane.b32.xlu1 %v2363_v5, %s1894_s9  ;;  %974 = vrot.lane.b32.xlu0 %v1983_v13, %s1894_s9 }
 0x12d   : > { %v2389_v0 = vpop.permute.xlu1 %496  ;;  %v2391_v16 = vpop.permute.xlu0 %494 }
 0x12f   : > { %1281 = vrot.lane.b32.xlu1 %v2086_v27, %s1909_s26  ;;  %1279 = vrot.lane.b32.xlu0 %v2060_v20, %s1909_s26 }
 0x131   : > { %v2400_v18 = vpop.permute.xlu1 %1097  ;;  %v2402_v6 = vpop.permute.xlu0 %1095 }
 0x133   : > { %1285 = vrot.lane.b32.xlu1 %v2406_v24, %s1909_s26  ;;  %1283 = vrot.lane.b32.xlu0 %v2081_v26, %s1909_s26  ;;  %v980_v24 = vsel %vm978_vm6, %v2273_v38, %v2283_v41  ;;  %v425_v41 = vsel %vm423_vm8, %v2243_v30, %v2241_v25 }
 0x134   : > { %v1139_v29 = vsel %vm675_vm1, %v952_v28, %v980_v24  ;;  %v954_v28 = vsel %vm950_vm7, %v2267_v37, %v2265_v36  ;;  %v426_v37 = vsel %vm423_vm8, %v2241_v25, %v2251_v33  ;;  %v2510_v25 = vsel %vm504_vm10, %v2373_v3, %v2383_v63 }
 0x135   : > { %v2412_v23 = vpop.permute.xlu1 %1101  ;;  %v2414_v27 = vpop.permute.xlu0 %1099  ;;  %v1145_v30 = vsel %vm675_vm1, %v954_v28, %v982_v35  ;;  %v2524_v35 = vsel %vm504_vm10, %v2383_v63, %v2381_v12 }
 0x137   : > { %997 = vrot.lane.b32.xlu1 %v1975_v11, %s1895_s10  ;;  %1277 = vrot.lane.b32.xlu0 %v2064_v21, %s1909_s26 }
 0x139   : > { %v2420_v20 = vpop.permute.xlu1 %515  ;;  %v2422_v8 = vpop.permute.xlu0 %1103 }
 0x13b   : > { %1001 = vrot.lane.b32.xlu1 %v1983_v13, %s1895_s10  ;;  %999 = vrot.lane.b32.xlu0 %v1973_v10, %s1895_s10 }
 0x13d   : > { %v2428_v26 = vpop.permute.xlu1 %519  ;;  %v2430_v17 = vpop.permute.xlu0 %517 }
 0x13f   : > { %1024 = vrot.lane.b32.xlu1 %v1975_v11, %s1896_s11  ;;  %1003 = vrot.lane.b32.xlu0 %v2363_v5, %s1895_s10 }
 0x141   : > { %v2436_v21 = vpop.permute.xlu1 %523  ;;  %v2438_v56 = vpop.permute.xlu0 %521 }
 0x143   : > { %1028 = vrot.lane.b32.xlu1 %v1983_v13, %s1896_s11  ;;  %1026 = vrot.lane.b32.xlu0 %v1973_v10, %s1896_s11 }
 0x145   : > { %v435_v19 = vpop.permute.xlu1 %434  ;;  %v2450_v59 = vpop.permute.xlu0 %413 }
 0x147   : > { %1297 = vrot.lane.b32.xlu1 %v1136_v9, %s1909_s26  ;;  %1030 = vrot.lane.b32.xlu0 %v2363_v5, %s1896_s11 }
 0x149   : > { %v439_v1 = vpop.permute.xlu1 %438  ;;  %v437_v38 = vpop.permute.xlu0 %436 }
 0x14a   : > { %v452_v9 = vsel %vm450_vm9, %v435_v19, %v437_v38  ;;  %v453_v31 = vsel %vm450_vm9, %v437_v38, %v439_v1 }
 0x14b   : > { %1301 = vrot.lane.b32.xlu1 %v1142_v22, %s1909_s26  ;;  %1299 = vrot.lane.b32.xlu0 %v1139_v29, %s1909_s26  ;;  %v778_v34 = vsel %vm675_vm1, %v425_v41, %v452_v9  ;;  %v1133_v22 = vsel %vm675_vm1, %v2249_v32, %v2275_v39  ;;  %v427_v29 = vsel %vm423_vm8, %v2251_v33, %v2450_v59 }
 0x14c   : > { %1521 = vmatprep.subr.bf16.mxu0 %v778_v34  ;;  %v2529_v34 = vsel %vm504_vm10, %v2381_v12, %v2391_v16 }
 0x14d   : > { %v433_v24 = vpop.permute.xlu1 %432  ;;  %v2487_v40 = vpop.permute.xlu0 %440 }
 0x14e   : > { %v451_v14 = vsel %vm450_vm9, %v433_v24, %v435_v19  ;;  %v454_v15 = vsel %vm450_vm9, %v439_v1, %v2487_v40  ;;  %v782_v19 = vsel %vm675_vm1, %v426_v37, %v453_v31 }
 0x14f   : > { %1295 = vrot.lane.b32.xlu1 %v1133_v22, %s1909_s26  ;;  %1303 = vrot.lane.b32.xlu0 %v1145_v30, %s1909_s26  ;;  %v774_v32 = vsel %vm675_vm1, %v424_v7, %v451_v14  ;;  %v786_v39 = vsel %vm675_vm1, %v427_v29, %v454_v15 }
 0x150   : > { %1522 = vmatpush1.bf16.msra.mxu0 %v774_v32  ;;  %1562 = vmatprep.subr.bf16.mxu1 %v786_v39  ;;  %v1033_v32 = vsel %vm1032_vm12, %v2315_v49, %v2313_v48  ;;  %v1034_v39 = vsel %vm1032_vm12, %v2313_v48, %v2323_v51  ;;  %v1006_v48 = vsel %vm1005_vm15, %v2289_v42, %v2299_v45 }
 0x151   : > { %v464_v1 = vpop.permute.xlu1 %463  ;;  %1563 = vmatpush1.bf16.msra.mxu1 %v782_v19  ;;  %v462_v38 = vpop.permute.xlu0 %461  ;;  %v2559_v19 = vsel %vm531_vm13, %v2420_v20, %v2430_v17 }
 0x152   : > { %v479_v33 = vsel %vm477_vm11, %v462_v38, %v464_v1 }
 0x153   : > { %1053 = vrot.lane.b32.xlu1 %v1973_v10, %s1897_s12  ;;  %1051 = vrot.lane.b32.xlu0 %v1975_v11, %s1897_s12  ;;  %v810_v7 = vsel %vm675_vm1, %v479_v33, %v2510_v25  ;;  %v1007_v33 = vsel %vm1005_vm15, %v2299_v45, %v2297_v44  ;;  %v2589_v45 = vsel %vm531_vm13, %v2428_v26, %v2438_v56 }
 0x154   : > { %1523 = vmatprep.subr.bf16.mxu0 %v810_v7  ;;  %v1035_v7 = vsel %vm1032_vm12, %v2323_v51, %v2321_v50 }
 0x155   : > { %v2519_v41 = vpop.permute.xlu1 %467  ;;  %v466_v9 = vpop.permute.xlu0 %465 }
 0x156   : > { %v480_v28 = vsel %vm477_vm11, %v464_v1, %v466_v9  ;;  %v481_v31 = vsel %vm477_vm11, %v466_v9, %v2519_v41 }
 0x157   : > { %1057 = vrot.lane.b32.xlu1 %v2363_v5, %s1897_s12  ;;  %1055 = vrot.lane.b32.xlu0 %v1983_v13, %s1897_s12  ;;  %v818_v63 = vsel %vm675_vm1, %v481_v31, %v2529_v34  ;;  %v814_v24 = vsel %vm675_vm1, %v480_v28, %v2524_v35  ;;  %v1166_v31 = vsel %vm675_vm1, %v1007_v33, %v1034_v39 }
 0x158   : > { %1564 = vmatprep.subr.bf16.mxu1 %v818_v63  ;;  %v1163_v63 = vsel %vm675_vm1, %v1006_v48, %v1033_v32 }
 0x159   : > { %v487_v12 = vpop.permute.xlu1 %486  ;;  %1565 = vmatpush1.bf16.msra.mxu1 %v814_v24  ;;  %v460_v22 = vpop.permute.xlu0 %459  ;;  %v2584_v24 = vsel %vm531_vm13, %v2430_v17, %v2428_v26 }
 0x15a   : > { %v505_v29 = vsel %vm504_vm10, %v487_v12, %v2373_v3  ;;  %v478_v14 = vsel %vm477_vm11, %v460_v22, %v462_v38  ;;  %v1036_v22 = vsel %vm1032_vm12, %v2321_v50, %v2331_v53 }
 0x15b   : > { %1080 = vrot.lane.b32.xlu1 %v1973_v10, %s1898_s13  ;;  %1078 = vrot.lane.b32.xlu0 %v1975_v11, %s1898_s13  ;;  %v806_v15 = vsel %vm675_vm1, %v478_v14, %v505_v29  ;;  %v1008_v29 = vsel %vm1005_vm15, %v2297_v44, %v2307_v47  ;;  %v1009_v14 = vsel %vm1005_vm15, %v2307_v47, %v2305_v46 }
 0x15c   : > { %1524 = vmatpush1.bf16.msra.mxu0 %v806_v15  ;;  %v1172_v39 = vsel %vm675_vm1, %v1009_v14, %v1036_v22 }
 0x15d   : > { %v545_v30 = vpop.permute.xlu1 %544  ;;  %v543_v37 = vpop.permute.xlu0 %542 }
 0x15e   : > { %v560_v1 = vsel %vm3289_vm14, %v543_v37, %v545_v30 }
 0x15f   : > { %1084 = vrot.lane.b32.xlu1 %v2363_v5, %s1898_s13  ;;  %1082 = vrot.lane.b32.xlu0 %v1983_v13, %s1898_s13  ;;  %v842_v38 = vsel %vm675_vm1, %v2559_v19, %v560_v1  ;;  %v1169_v1 = vsel %vm675_vm1, %v1008_v29, %v1035_v7  ;;  %v1087_v29 = vsel %vm1086_vm4, %v2355_v4, %v2353_v2 }
 0x160   : > { %1525 = vmatprep.subr.bf16.mxu0 %v842_v38 }
 0x161   : > { %v2577_v9 = vpop.permute.xlu1 %548  ;;  %v547_v28 = vpop.permute.xlu0 %546 }
 0x162   : > { %v561_v12 = vsel %vm3289_vm14, %v545_v30, %v547_v28  ;;  %v562_v51 = vsel %vm3289_vm14, %v547_v28, %v2577_v9 }
 0x163   : > { %1317 = vrot.lane.b32.xlu1 %v1166_v31, %s1909_s26  ;;  %1315 = vrot.lane.b32.xlu0 %v1163_v63, %s1909_s26  ;;  %v850_v17 = vsel %vm675_vm1, %v2589_v45, %v562_v51  ;;  %v846_v26 = vsel %vm675_vm1, %v2584_v24, %v561_v12 }
 0x164   : > { %1566 = vmatprep.subr.bf16.mxu1 %v850_v17 }
 0x165   : > { %v541_v50 = vpop.permute.xlu1 %540  ;;  %1567 = vmatpush1.bf16.msra.mxu1 %v846_v26  ;;  %v514_v15 = vpop.permute.xlu0 %513 }
 0x166   : > { %v559_v30 = vsel %vm3289_vm14, %v541_v50, %v543_v37  ;;  %v532_v32 = vsel %vm531_vm13, %v514_v15, %v2420_v20  ;;  %v1160_v37 = vsel %vm675_vm1, %v2289_v42, %v2315_v49  ;;  %v1060_v15 = vsel %vm1059_vm5, %v2329_v52, %v2339_v55 }
 0x167   : > { %1321 = vrot.lane.b32.xlu1 %v1172_v39, %s1909_s26  ;;  %1319 = vrot.lane.b32.xlu0 %v1169_v1, %s1909_s26  ;;  %v838_v44 = vsel %vm675_vm1, %v532_v32, %v559_v30  ;;  %vm3290_vm14 = vcmask 64512  }
 0x168   : > { %1526 = vmatpush1.bf16.msra.mxu0 %v838_v44  ;;  %v1190_v44 = vsel %vm675_vm1, %v1060_v15, %v1087_v29 }
 0x169   : > { %v572_v47 = vpop.permute.xlu1 %571  ;;  %v570_v38 = vpop.permute.xlu0 %569 }
 0x16a   : > { %v587_v42 = vsel %vm3288_vm2, %v570_v38, %v572_v47 }
 0x16b   : > { %498 = vrot.lane.b32.xlu1 %v1975_v11, %s1899_s14  ;;  %1313 = vrot.lane.b32.xlu0 %v1160_v37, %s1909_s26  ;;  %v1089_v37 = vsel %vm1086_vm4, %v2367_v61, %v2365_v60 }
 0x16d   : > { %v2623_v48 = vpop.permute.xlu1 %575  ;;  %v574_v33 = vpop.permute.xlu0 %573 }
 0x16e   : > { %v588_v51 = vsel %vm3288_vm2, %v572_v47, %v574_v33  ;;  %v589_v22 = vsel %vm3288_vm2, %v574_v33, %v2623_v48  ;;  %v1088_v47 = vsel %vm1086_vm4, %v2353_v2, %v2367_v61  ;;  %v1062_v2 = vsel %vm1059_vm5, %v2337_v54, %v2347_v58 }
 0x16f   : > { %502 = vrot.lane.b32.xlu1 %v1983_v13, %s1899_s14  ;;  %500 = vrot.lane.b32.xlu0 %v1973_v10, %s1899_s14  ;;  %v1196_v61 = vsel %vm675_vm1, %v1062_v2, %v1089_v37 }
 0x171   : > { %v599_v7 = vpop.permute.xlu1 %598  ;;  %v597_v28 = vpop.permute.xlu0 %596 }
 0x172   : > { %v614_v49 = vsel %vm3287_vm3, %v597_v28, %v599_v7 }
 0x173   : > { %1107 = vrot.lane.b32.xlu1 %v1973_v10, %s1900_s16  ;;  %1105 = vrot.lane.b32.xlu0 %v1975_v11, %s1900_s16  ;;  %v874_v31 = vsel %vm675_vm1, %v587_v42, %v614_v49  ;;  %v1090_v49 = vsel %vm1086_vm4, %v2365_v60, %v2375_v62  ;;  %v1187_v60 = vsel %vm675_vm1, %v2329_v52, %v2355_v4 }
 0x174   : > { %1527 = vmatprep.subr.bf16.mxu0 %v874_v31 }
 0x175   : > { %v2636_v63 = vpop.permute.xlu1 %602  ;;  %v601_v12 = vpop.permute.xlu0 %600 }
 0x176   : > { %v615_v17 = vsel %vm3287_vm3, %v599_v7, %v601_v12  ;;  %v616_v26 = vsel %vm3287_vm3, %v601_v12, %v2636_v63 }
 0x177   : > { %1111 = vrot.lane.b32.xlu1 %v2363_v5, %s1900_s16  ;;  %1109 = vrot.lane.b32.xlu0 %v1983_v13, %s1900_s16  ;;  %v882_v14 = vsel %vm675_vm1, %v589_v22, %v616_v26  ;;  %v878_v50 = vsel %vm675_vm1, %v588_v51, %v615_v17 }
 0x178   : > { %1568 = vmatprep.subr.bf16.mxu1 %v882_v14 }
 0x179   : > { %v595_v30 = vpop.permute.xlu1 %594  ;;  %1569 = vmatpush1.bf16.msra.mxu1 %v878_v50  ;;  %v568_v32 = vpop.permute.xlu0 %567 }
 0x17a   : > { %v613_v39 = vsel %vm3287_vm3, %v595_v30, %v597_v28  ;;  %v586_v1 = vsel %vm3288_vm2, %v568_v32, %v570_v38  ;;  %v1061_v38 = vsel %vm1059_vm5, %v2339_v55, %v2337_v54  ;;  %vm1113_vm3 = vcmask 236544  }
 0x17b   : > { %1333 = vrot.lane.b32.xlu1 %v1190_v44, %s1909_s26  ;;  %1122 = vrot.lane.b32.xlu0 %v2363_v5, %s1899_s14  ;;  %v870_v33 = vsel %vm675_vm1, %v586_v1, %v613_v39  ;;  %v1193_v42 = vsel %vm675_vm1, %v1061_v38, %v1088_v47  ;;  %v1063_v55 = vsel %vm1059_vm5, %v2347_v58, %v2345_v57  ;;  %vm3291_vm2 = vcmask 130048  }
 0x17c   : > { %1528 = vmatpush1.bf16.msra.mxu0 %v870_v33  ;;  %v1114_v12 = vsel %vm1113_vm3, %v2402_v6, %v2400_v18  ;;  %v1199_v51 = vsel %vm675_vm1, %v1063_v55, %v1090_v49  ;;  %v1115_v22 = vsel %vm1113_vm3, %v2400_v18, %v2414_v27  ;;  %v1116_v58 = vsel %vm1113_vm3, %v2414_v27, %v2412_v23 }
 0x17d   : > { %v626_v7 = vpop.permute.xlu1 %625  ;;  %v624_v28 = vpop.permute.xlu0 %623  ;;  %v1216_v52 = vsel %vm675_vm1, %v1114_v12, %v2510_v25  ;;  %v1117_v4 = vsel %vm1113_vm3, %v2412_v23, %v2422_v8  ;;  %v1218_v14 = vsel %vm675_vm1, %v1115_v22, %v2524_v35  ;;  %v2717_v25 = vsel %vm504_vm10, %v2391_v16, %v2389_v0 }
 0x17e   : > { %v641_v18 = vsel %vm3291_vm2, %v624_v28, %v626_v7  ;;  %v1222_v15 = vsel %vm675_vm1, %v1117_v4, %v2717_v25  ;;  %v1220_v35 = vsel %vm675_vm1, %v1116_v58, %v2529_v34  ;;  %v1214_v55 = vsel %vm675_vm1, %v2402_v6, %v2373_v3 }
 0x17f   : > { %1337 = vrot.lane.b32.xlu1 %v1196_v61, %s1909_s26  ;;  %1335 = vrot.lane.b32.xlu0 %v1193_v42, %s1909_s26  ;;  %v2749_v61 = vld [vmem:[%s3277_s2] sm:$0xff]  ;;  %v2788_v6 = vsel %vm531_vm13, %v2438_v56, %v2436_v21 }
 0x181   : > { %v2685_v54 = vpop.permute.xlu1 %629  ;;  %v628_v31 = vpop.permute.xlu0 %627 }
 0x182   : > { %v642_v30 = vsel %vm3291_vm2, %v626_v7, %v628_v31  ;;  %v643_v32 = vsel %vm3291_vm2, %v628_v31, %v2685_v54 }
 0x183   : > { %1331 = vrot.lane.b32.xlu1 %v1187_v60, %s1909_s26  ;;  %1339 = vrot.lane.b32.xlu0 %v1199_v51, %s1909_s26 }
 0x185   : > { %v653_v17 = vpop.permute.xlu1 %652  ;;  %v651_v26 = vpop.permute.xlu0 %650 }
 0x186   : > { %v668_v29 = vsel %vm3290_vm14, %v651_v26, %v653_v17 }
 0x187   : > { %1353 = vrot.lane.b32.xlu1 %v1218_v14, %s1909_s26  ;;  %1351 = vrot.lane.b32.xlu0 %v1216_v52, %s1909_s26  ;;  %v906_v27 = vsel %vm675_vm1, %v641_v18, %v668_v29 }
 0x188   : > { %1529 = vmatprep.subr.bf16.mxu0 %v906_v27 }
 0x189   : > { %v2719_v23 = vpop.permute.xlu1 %656  ;;  %v655_v50 = vpop.permute.xlu0 %654 }
 0x18a   : > { %v669_v39 = vsel %vm3290_vm14, %v653_v17, %v655_v50  ;;  %v670_v16 = vsel %vm3290_vm14, %v655_v50, %v2719_v23 }
 0x18b   : > { %1357 = vrot.lane.b32.xlu1 %v1222_v15, %s1909_s26  ;;  %1355 = vrot.lane.b32.xlu0 %v1220_v35, %s1909_s26  ;;  %v914_v1 = vsel %vm675_vm1, %v643_v32, %v670_v16  ;;  %v910_v44 = vsel %vm675_vm1, %v642_v30, %v669_v39 }
 0x18c   : > { %1570 = vmatprep.subr.bf16.mxu1 %v914_v1 }
 0x18d   : > { %v649_v34 = vpop.permute.xlu1 %648  ;;  %1571 = vmatpush1.bf16.msra.mxu1 %v910_v44  ;;  %v622_v47 = vpop.permute.xlu0 %621 }
 0x18e   : > { %v667_v37 = vsel %vm3290_vm14, %v649_v34, %v651_v26  ;;  %v640_v33 = vsel %vm3291_vm2, %v622_v47, %v624_v28  ;;  %v2753_v28 = vcombine.high %v2749_v61, %v2749_v61  ;;  %vm1487_vm14 = vcmask 719872  }
 0x18f   : > { %527 = vrot.lane.b32.xlu1 %v1973_v10, %s1901_s18  ;;  %525 = vrot.lane.b32.xlu0 %v1975_v11, %s1901_s18  ;;  %v902_v38 = vsel %vm675_vm1, %v640_v33, %v667_v37  ;;  %vm1385_vm2 = vcmask 56320  }
 0x190   : > { %1530 = vmatpush1.bf16.msra.mxu0 %v902_v38  ;;  %1815 = vmatprep.mubr.msk.bf16.mxu0 %vm1487_vm14, %v2753_v28 }
 0x191   : > { %v2742_v2 = vpop.permute.xlu1 %944  ;;  %v2744_v7 = vpop.permute.xlu0 %942  ;;  %1817 = vmatprep.mubr.msk.bf16.mxu1 %vm1487_vm14, %v2753_v28 }
 0x193   : > { %1125 = vrot.lane.b32.xlu1 %v2363_v5, %s1901_s18  ;;  %529 = vrot.lane.b32.xlu0 %v1983_v13, %s1901_s18 }
 0x195   : > { %v2763_v42 = vpop.permute.xlu1 %948  ;;  %v2765_v49 = vpop.permute.xlu0 %946 }
 0x197   : > { %1367 = vrot.lane.b32.xlu1 %v2420_v20, %s1909_s26  ;;  %1349 = vrot.lane.b32.xlu0 %v1214_v55, %s1909_s26 }
 0x199   : > { %v2773_v5 = vpop.permute.xlu1 %972  ;;  %v2775_v31 = vpop.permute.xlu0 %970 }
 0x19b   : > { %1371 = vrot.lane.b32.xlu1 %v2584_v24, %s1909_s26  ;;  %1369 = vrot.lane.b32.xlu0 %v2559_v19, %s1909_s26  ;;  %v3306_v24 = vld [vmem:[#allocation2_spill] sm:$0xff] }
 0x19d   : > { %v2781_v12 = vpop.permute.xlu1 %976  ;;  %v2783_v60 = vpop.permute.xlu0 %974 }
 0x19f   : > { %1375 = vrot.lane.b32.xlu1 %v2788_v6, %s1909_s26  ;;  %1373 = vrot.lane.b32.xlu0 %v2589_v45, %s1909_s26 }
 0x1a1   : > { %v1282_v3 = vpop.permute.xlu1 %1281  ;;  %v1280_v20 = vpop.permute.xlu0 %1279 }
 0x1a2   : > { %v1387_v19 = vsel %vm1385_vm2, %v1280_v20, %v1282_v3 }
 0x1a3   : > { %417 = vrot.lane.b32.xlu1 %v1975_v11, %s1892_s7  ;;  %415 = vrot.lane.b32.xlu0 %v3306_v24, %s1892_s7 }
 0x1a4   : > { %1531 = vmatprep.subr.bf16.mxu0 %v1387_v19 }
 0x1a5   : > { %v2799_v56 = vpop.permute.xlu1 %1285  ;;  %v1284_v51 = vpop.permute.xlu0 %1283 }
 0x1a6   : > { %v1389_v22 = vsel %vm1385_vm2, %v1284_v51, %v2799_v56  ;;  %v1388_v45 = vsel %vm1385_vm2, %v1282_v3, %v1284_v51 }
 0x1a7   : > { %421 = vrot.lane.b32.xlu1 %v1983_v13, %s1892_s7  ;;  %419 = vrot.lane.b32.xlu0 %v1973_v10, %s1892_s7 }
 0x1a8   : > { %1572 = vmatprep.subr.bf16.mxu1 %v1389_v22 }
 0x1a9   : > { %1573 = vmatpush1.bf16.msra.mxu1 %v1388_v45  ;;  %v2808_v58 = vpop.permute.xlu1 %997  ;;  %v1278_v17 = vpop.permute.xlu0 %1277 }
 0x1aa   : > { %v1386_v26 = vsel %vm1385_vm2, %v1278_v17, %v1280_v20 }
 0x1ab   : > { %444 = vrot.lane.b32.xlu1 %v1975_v11, %s1902_s19  ;;  %442 = vrot.lane.b32.xlu0 %v3306_v24, %s1902_s19 }
 0x1ac   : > { %1532 = vmatpush1.bf16.msra.mxu0 %v1386_v26 }
 0x1ad   : > { %v2815_v52 = vpop.permute.xlu1 %1001  ;;  %v2817_v4 = vpop.permute.xlu0 %999 }
 0x1af   : > { %448 = vrot.lane.b32.xlu1 %v1983_v13, %s1902_s19  ;;  %446 = vrot.lane.b32.xlu0 %v1973_v10, %s1902_s19 }
 0x1b1   : > { %v2823_v18 = vpop.permute.xlu1 %1024  ;;  %v2825_v29 = vpop.permute.xlu0 %1003 }
 0x1b3   : > { %471 = vrot.lane.b32.xlu1 %v1975_v11, %s1903_s20  ;;  %469 = vrot.lane.b32.xlu0 %v3306_v24, %s1903_s20 }
 0x1b5   : > { %v2831_v14 = vpop.permute.xlu1 %1028  ;;  %v2833_v27 = vpop.permute.xlu0 %1026 }
 0x1b7   : > { %475 = vrot.lane.b32.xlu1 %v1983_v13, %s1903_s20  ;;  %473 = vrot.lane.b32.xlu0 %v1973_v10, %s1903_s20 }
 0x1b9   : > { %v1298_v50 = vpop.permute.xlu1 %1297  ;;  %v2839_v15 = vpop.permute.xlu0 %1030 }
 0x1bb   : > { %552 = vrot.lane.b32.xlu1 %v1975_v11, %s1904_s21  ;;  %550 = vrot.lane.b32.xlu0 %v3306_v24, %s1904_s21 }
 0x1bd   : > { %v1302_v35 = vpop.permute.xlu1 %1301  ;;  %v1300_v30 = vpop.permute.xlu0 %1299 }
 0x1be   : > { %v1395_v32 = vsel %vm1385_vm2, %v1298_v50, %v1300_v30  ;;  %v1396_v34 = vsel %vm1385_vm2, %v1300_v30, %v1302_v35 }
 0x1bf   : > { %556 = vrot.lane.b32.xlu1 %v1983_v13, %s1904_s21  ;;  %554 = vrot.lane.b32.xlu0 %v1973_v10, %s1904_s21 }
 0x1c0   : > { %1533 = vmatprep.subr.bf16.mxu0 %v1395_v32 }
 0x1c1   : > { %v1296_v39 = vpop.permute.xlu1 %1295  ;;  %v2850_v16 = vpop.permute.xlu0 %1303 }
 0x1c2   : > { %v1394_v1 = vsel %vm1385_vm2, %v1296_v39, %v1298_v50  ;;  %v1397_v44 = vsel %vm1385_vm2, %v1302_v35, %v2850_v16 }
 0x1c3   : > { %579 = vrot.lane.b32.xlu1 %v1975_v11, %s1905_s22  ;;  %577 = vrot.lane.b32.xlu0 %v3306_v24, %s1905_s22 }
 0x1c4   : > { %1534 = vmatpush1.bf16.msra.mxu0 %v1394_v1  ;;  %1574 = vmatprep.subr.bf16.mxu1 %v1397_v44  ;;  %v3307_v1 = vld [vmem:[#allocation5_spill] sm:$0xff]  ;;  %v3308_v44 = vld [vmem:[#allocation3_spill] sm:$0xff] }
 0x1c5   : > { %1575 = vmatpush1.bf16.msra.mxu1 %v1396_v34  ;;  %v2860_v47 = vpop.permute.xlu1 %1053  ;;  %v2862_v37 = vpop.permute.xlu0 %1051  ;;  %v294_v34 = vsel %vm288_vm0, %v3308_v44, %v3307_v1 }
 0x1c7   : > { %583 = vrot.lane.b32.xlu1 %v1983_v13, %s1905_s22  ;;  %581 = vrot.lane.b32.xlu0 %v1973_v10, %s1905_s22 }
 0x1c9   : > { %v2868_v33 = vpop.permute.xlu1 %1057  ;;  %v2870_v38 = vpop.permute.xlu0 %1055 }
 0x1cb   : > { %606 = vrot.lane.b32.xlu1 %v1975_v11, %s1906_s23  ;;  %604 = vrot.lane.b32.xlu0 %v3306_v24, %s1906_s23 }
 0x1cd   : > { %v2876_v55 = vpop.permute.xlu1 %1080  ;;  %v2878_v3 = vpop.permute.xlu0 %1078 }
 0x1cf   : > { %610 = vrot.lane.b32.xlu1 %v1983_v13, %s1906_s23  ;;  %608 = vrot.lane.b32.xlu0 %v1973_v10, %s1906_s23 }
 0x1d1   : > { %v2884_v20 = vpop.permute.xlu1 %1084  ;;  %v2886_v19 = vpop.permute.xlu0 %1082 }
 0x1d3   : > { %633 = vrot.lane.b32.xlu1 %v1975_v11, %s1907_s24  ;;  %631 = vrot.lane.b32.xlu0 %v3306_v24, %s1907_s24 }
 0x1d5   : > { %v1318_v51 = vpop.permute.xlu1 %1317  ;;  %v1316_v22 = vpop.permute.xlu0 %1315 }
 0x1d6   : > { %v1403_v45 = vsel %vm1385_vm2, %v1316_v22, %v1318_v51 }
 0x1d7   : > { %637 = vrot.lane.b32.xlu1 %v1983_v13, %s1907_s24  ;;  %635 = vrot.lane.b32.xlu0 %v1973_v10, %s1907_s24 }
 0x1d8   : > { %1535 = vmatprep.subr.bf16.mxu0 %v1403_v45  ;;  %v3309_v45 = vld [vmem:[#allocation4_spill] sm:$0xff] }
 0x1d9   : > { %v2897_v17 = vpop.permute.xlu1 %1321  ;;  %v1320_v26 = vpop.permute.xlu0 %1319 }
 0x1da   : > { %v1405_v50 = vsel %vm1385_vm2, %v1320_v26, %v2897_v17  ;;  %v1404_v35 = vsel %vm1385_vm2, %v1318_v51, %v1320_v26  ;;  %v295_v51 = vsel %vm288_vm0, %v3307_v1, %v3309_v45 }
 0x1db   : > { %660 = vrot.lane.b32.xlu1 %v1975_v11, %s1908_s25  ;;  %658 = vrot.lane.b32.xlu0 %v3306_v24, %s1908_s25 }
 0x1dc   : > { %1576 = vmatprep.subr.bf16.mxu1 %v1405_v50 }
 0x1dd   : > { %1577 = vmatpush1.bf16.msra.mxu1 %v1404_v35  ;;  %v2906_v30 = vpop.permute.xlu1 %498  ;;  %v1314_v32 = vpop.permute.xlu0 %1313  ;;  %v2929_v35 = vsel %vm675_vm1, %v3306_v24, %v294_v34  ;;  %v983_v34 = vsel %vm978_vm6, %v2291_v43, %v2775_v31 }
 0x1de   : > { %v1402_v39 = vsel %vm1385_vm2, %v1314_v32, %v1316_v22  ;;  %v2925_v22 = vsel %vm675_vm1, %v1975_v11, %v295_v51  ;;  %v3310_v32 = vld [vmem:[#allocation6_spill] sm:$0xff] }
 0x1df   : > { %664 = vrot.lane.b32.xlu1 %v1983_v13, %s1908_s25  ;;  %662 = vrot.lane.b32.xlu0 %v1973_v10, %s1908_s25  ;;  %v296_v1 = vsel %vm288_vm0, %v3309_v45, %v3310_v32  ;;  %v1130_v11 = vsel %vm675_vm1, %v1983_v13, %v3310_v32  ;;  %v984_v45 = vsel %vm978_vm6, %v2775_v31, %v2773_v5  ;;  %vm3320_vm0 = vcmask 211968  }
 0x1e0   : > { %1536 = vmatpush1.bf16.msra.mxu0 %v1402_v39  ;;  %v2947_v24 = vsel %vm675_vm1, %v1973_v10, %v296_v1  ;;  %v955_v13 = vsel %vm950_vm7, %v2265_v36, %v2744_v7  ;;  %v956_v10 = vsel %vm950_vm7, %v2744_v7, %v2742_v2  ;;  %v985_v1 = vsel %vm978_vm6, %v2773_v5, %v2783_v60 }
 0x1e1   : > { %v2919_v26 = vpop.permute.xlu1 %502  ;;  %v2921_v50 = vpop.permute.xlu0 %500  ;;  %v1151_v32 = vsel %vm675_vm1, %v956_v10, %v984_v45  ;;  %v1148_v31 = vsel %vm675_vm1, %v955_v13, %v983_v34  ;;  %v986_v36 = vsel %vm978_vm6, %v2783_v60, %v2781_v12  ;;  %v957_v7 = vsel %vm950_vm7, %v2742_v2, %v2765_v49  ;;  %vm3321_vm6 = vmmov %vm3320_vm0 }
 0x1e2   : > { %v1154_v13 = vsel %vm675_vm1, %v957_v7, %v985_v1  ;;  %v1037_v12 = vsel %vm1032_vm12, %v2331_v53, %v2823_v18  ;;  %v1038_v60 = vsel %vm1032_vm12, %v2823_v18, %v2833_v27  ;;  %v1010_v2 = vsel %vm1005_vm15, %v2305_v46, %v2808_v58 }
 0x1e3   : > { %1289 = vrot.lane.b32.xlu1 %v2925_v22, %s1909_s26  ;;  %1287 = vrot.lane.b32.xlu0 %v2929_v35, %s1909_s26  ;;  %v1175_v53 = vsel %vm675_vm1, %v1010_v2, %v1037_v12  ;;  %v1040_v46 = vsel %vm1032_vm12, %v2831_v14, %v2839_v15  ;;  %v1013_v1 = vsel %vm1005_vm15, %v2815_v52, %v2825_v29 }
 0x1e4   : > { %v1093_v2 = vsel %vm1086_vm4, %v2876_v55, %v2886_v19 }
 0x1e5   : > { %v2938_v39 = vpop.permute.xlu1 %1107  ;;  %v2940_v44 = vpop.permute.xlu0 %1105 }
 0x1e7   : > { %1293 = vrot.lane.b32.xlu1 %v1130_v11, %s1909_s26  ;;  %1291 = vrot.lane.b32.xlu0 %v2947_v24, %s1909_s26  ;;  %v958_v11 = vsel %vm950_vm7, %v2765_v49, %v2763_v42  ;;  %v1011_v42 = vsel %vm1005_vm15, %v2808_v58, %v2817_v4  ;;  %v1012_v58 = vsel %vm1005_vm15, %v2817_v4, %v2815_v52  ;;  %vm3322_vm7 = vmmov %vm3320_vm0 }
 0x1e8   : > { %v1157_v5 = vsel %vm675_vm1, %v958_v11, %v986_v36  ;;  %v1091_v4 = vsel %vm1086_vm4, %v2375_v62, %v2878_v3  ;;  %v1092_v52 = vsel %vm1086_vm4, %v2878_v3, %v2876_v55  ;;  %v1065_v62 = vsel %vm1059_vm5, %v2862_v37, %v2860_v47 }
 0x1e9   : > { %v2964_v51 = vpop.permute.xlu1 %1111  ;;  %v2966_v43 = vpop.permute.xlu0 %1109  ;;  %v1205_v3 = vsel %vm675_vm1, %v1065_v62, %v1092_v52  ;;  %v3133_v62 = vcombine.low %v2749_v61, %v2749_v61 }
 0x1eb   : > { %1307 = vrot.lane.b32.xlu1 %v1151_v32, %s1909_s26  ;;  %1305 = vrot.lane.b32.xlu0 %v1148_v31, %s1909_s26  ;;  %v1178_v32 = vsel %vm675_vm1, %v1011_v42, %v1038_v60  ;;  %v1039_v31 = vsel %vm1032_vm12, %v2833_v27, %v2831_v14  ;;  %v1184_v14 = vsel %vm675_vm1, %v1013_v1, %v1040_v46 }
 0x1ec   : > { %v1181_v27 = vsel %vm675_vm1, %v1012_v58, %v1039_v31  ;;  %v1067_v42 = vsel %vm1059_vm5, %v2870_v38, %v2868_v33  ;;  %v1119_v33 = vsel %vm1113_vm3, %v2940_v44, %v2938_v39  ;;  %v1120_v46 = vsel %vm1113_vm3, %v2938_v39, %v2966_v43 }
 0x1ed   : > { %v1334_v34 = vpop.permute.xlu1 %1333  ;;  %v2984_v45 = vpop.permute.xlu0 %1122  ;;  %v1121_v58 = vsel %vm1113_vm3, %v2966_v43, %v2964_v51 }
 0x1ef   : > { %1311 = vrot.lane.b32.xlu1 %v1157_v5, %s1909_s26  ;;  %1309 = vrot.lane.b32.xlu0 %v1154_v13, %s1909_s26 }
 0x1f1   : > { %v1338_v49 = vpop.permute.xlu1 %1337  ;;  %v1336_v10 = vpop.permute.xlu0 %1335 }
 0x1f2   : > { %v1411_v18 = vsel %vm1385_vm2, %v1334_v34, %v1336_v10  ;;  %v1412_v29 = vsel %vm1385_vm2, %v1336_v10, %v1338_v49 }
 0x1f3   : > { %1323 = vrot.lane.b32.xlu0 %v1175_v53, %s1909_s26  ;;  %1325 = vrot.lane.b32.xlu1 %v1178_v32, %s1909_s26  ;;  %v3081_v32 = vsel %vm504_vm10, %v2906_v30, %v2921_v50 }
 0x1f4   : > { %1537 = vmatprep.subr.bf16.mxu0 %v1411_v18 }
 0x1f5   : > { %v1332_v36 = vpop.permute.xlu1 %1331  ;;  %v3019_v7 = vpop.permute.xlu0 %1339 }
 0x1f6   : > { %v1410_v15 = vsel %vm1385_vm2, %v1332_v36, %v1334_v34  ;;  %v1413_v11 = vsel %vm1385_vm2, %v1338_v49, %v3019_v7  ;;  %v1064_v34 = vsel %vm1059_vm5, %v2345_v57, %v2862_v37  ;;  %v1094_v57 = vsel %vm1086_vm4, %v2886_v19, %v2884_v20 }
 0x1f7   : > { %1327 = vrot.lane.b32.xlu0 %v1181_v27, %s1909_s26  ;;  %1329 = vrot.lane.b32.xlu1 %v1184_v14, %s1909_s26  ;;  %v1202_v12 = vsel %vm675_vm1, %v1064_v34, %v1091_v4  ;;  %v1066_v37 = vsel %vm1059_vm5, %v2860_v47, %v2870_v38  ;;  %v1211_v10 = vsel %vm675_vm1, %v1067_v42, %v1094_v57  ;;  %v1910_v27 = vmov 0   ;;  %v3313_v42 = vld [vmem:[#allocation7_spill] sm:$0xff] }
 0x1f8   : > { %1538 = vmatpush1.bf16.msra.mxu0 %v1410_v15  ;;  %1578 = vmatprep.subr.bf16.mxu1 %v1413_v11  ;;  %v1208_v20 = vsel %vm675_vm1, %v1066_v37, %v1093_v2  ;;  %v1118_v47 = vsel %vm1113_vm3, %v2422_v8, %v2940_v44  ;;  %v3076_v38 = vsel %vm504_vm10, %v2389_v0, %v2906_v30  ;;  %v3311_v2 = vld [vmem:[#allocation15_spill] sm:$0xff]  ;;  %vm3332_vm4 = vcmask 130048  }
 0x1f9   : > { %1579 = vmatpush1.bf16.msra.mxu1 %v1412_v29  ;;  %v1354_v5 = vpop.permute.xlu1 %1353  ;;  %v1352_v13 = vpop.permute.xlu0 %1351  ;;  %v1226_v44 = vsel %vm675_vm1, %v1119_v33, %v3081_v32  ;;  %v1224_v31 = vsel %vm675_vm1, %v1118_v47, %v3076_v38  ;;  %v1124_v0 = vsel %vm504_vm10, %v2919_v26, %v2984_v45  ;;  %v3098_v30 = vsel %vm504_vm10, %v2921_v50, %v2919_v26  ;;  %v3318_v33 = vld [vmem:[#allocation14_spill] sm:$0xff]  ;;  %vm3333_vm5 = vmmov %vm3332_vm4 }
 0x1fa   : > { %v1419_v60 = vsel %vm1385_vm2, %v1352_v13, %v1354_v5  ;;  %v1228_v39 = vsel %vm675_vm1, %v1120_v46, %v3098_v30  ;;  %v1231_v45 = vsel %vm675_vm1, %v1121_v58, %v1124_v0  ;;  %1866 = vset.pattern.permute.xlu0 %v1910_v27  ;;  %v3319_v0 = vld [vmem:[#allocation13_spill] sm:$0xff] }
 0x1fb   : > { %1343 = vrot.lane.b32.xlu1 %v1205_v3, %s1909_s26  ;;  %1341 = vrot.lane.b32.xlu0 %v1202_v12, %s1909_s26 }
 0x1fc   : > { %1539 = vmatprep.subr.bf16.mxu0 %v1419_v60 }
 0x1fd   : > { %v3058_v49 = vpop.permute.xlu1 %1357  ;;  %v1356_v55 = vpop.permute.xlu0 %1355 }
 0x1fe   : > { %v1421_v19 = vsel %vm1385_vm2, %v1356_v55, %v3058_v49  ;;  %v1420_v53 = vsel %vm1385_vm2, %v1354_v5, %v1356_v55  ;;  %v1475_v5 = vld [vmem:[%s3278_s3] sm:$0xff] }
 0x1ff   : > { %1347 = vrot.lane.b32.xlu1 %v1211_v10, %s1909_s26  ;;  %1345 = vrot.lane.b32.xlu0 %v1208_v20, %s1909_s26  ;;  %v3314_v10 = vld [vmem:[#allocation10_spill] sm:$0xff] }
 0x200   : > { %1580 = vmatprep.subr.bf16.mxu1 %v1421_v19  ;;  %v3316_v19 = vld [vmem:[#allocation9_spill] sm:$0xff] }
 0x201   : > { %1581 = vmatpush1.bf16.msra.mxu1 %v1420_v53  ;;  %v528_v8 = vpop.permute.xlu1 %527  ;;  %v526_v18 = vpop.permute.xlu0 %525  ;;  %v3317_v53 = vld [vmem:[#allocation11_spill] sm:$0xff] }
 0x202   : > { %v3110_v50 = vsel %vm531_vm13, %v2436_v21, %v526_v18  ;;  %v3113_v51 = vsel %vm531_vm13, %v526_v18, %v528_v8 }
 0x203   : > { %1361 = vrot.lane.b32.xlu1 %v1226_v44, %s1909_s26  ;;  %1359 = vrot.lane.b32.xlu0 %v1224_v31, %s1909_s26 }
 0x205   : > { %v1126_v1 = vpop.permute.xlu1 %1125  ;;  %v530_v36 = vpop.permute.xlu0 %529 }
 0x206   : > { %v3121_v4 = vsel %vm531_vm13, %v528_v8, %v530_v36  ;;  %v1127_v21 = vsel %vm531_vm13, %v530_v36, %v1126_v1 }
 0x207   : > { %1363 = vrot.lane.b32.xlu0 %v1228_v39, %s1909_s26  ;;  %1365 = vrot.lane.b32.xlu1 %v1231_v45, %s1909_s26 }
 0x209   : > { %v1368_v14 = vpop.permute.xlu1 %1367  ;;  %v1350_v26 = vpop.permute.xlu0 %1349 }
 0x20a   : > { %v1418_v43 = vsel %vm1385_vm2, %v1350_v26, %v1352_v13 }
 0x20b   : > { %1379 = vrot.lane.b32.xlu1 %v3113_v51, %s1909_s26  ;;  %1377 = vrot.lane.b32.xlu0 %v3110_v50, %s1909_s26 }
 0x20c   : > { %1540 = vmatpush1.bf16.msra.mxu0 %v1418_v43 }
 0x20d   : > { %v1372_v15 = vpop.permute.xlu1 %1371  ;;  %v1370_v11 = vpop.permute.xlu0 %1369 }
 0x20e   : > { %v1426_v52 = vsel %vm1385_vm2, %v1368_v14, %v1370_v11  ;;  %v1427_v29 = vsel %vm1385_vm2, %v1370_v11, %v1372_v15 }
 0x20f   : > { %1383 = vrot.lane.b32.xlu1 %v1127_v21, %s1909_s26  ;;  %1381 = vrot.lane.b32.xlu0 %v3121_v4, %s1909_s26  ;;  %v1492_v34 = vsel %vm675_vm1, %v1426_v52, 0 }
 0x210   : > { %1814 = vmatprep.subr.msk.bf16.mxu0 %vm675_vm1, %v1427_v29 }
 0x211   : > { %1542 = vmatpush1.bf16.msra.mxu0 %v1492_v34  ;;  %v3138_v13 = vpop.permute.xlu1 %1375  ;;  %v1374_v3 = vpop.permute.xlu0 %1373 }
 0x212   : > { %1597 = vmatprep.subr.bf16.mxu0 %v2929_v35  ;;  %v1428_v12 = vsel %vm1385_vm2, %v1372_v15, %v1374_v3  ;;  %v1429_v60 = vsel %vm1385_vm2, %v1374_v3, %v3138_v13  ;;  %v3312_v35 = vld [vmem:[#allocation8_spill] sm:$0xff] }
 0x213   : > { %1816 = vmatprep.subr.msk.bf16.mxu1 %vm675_vm1, %v1429_v60  ;;  %v1498_v61 = vsel %vm675_vm1, %v1428_v12, 0  ;;  %1478 = vperm.xlu0 %1866, %v1475_v5  }
 0x214   : > { %1548 = vmatmul.mubr.bf16.vlgmr.msra.gmra.mrb[0].mxu0 %v3133_v62  ;;  %1583 = vmatpush1.bf16.msra.mxu1 %v1498_v61 }
 0x215   : > { %1598 = vmatpush1.bf16.msra.mxu0 %v3311_v2  ;;  %v418_v57 = vpop.permute.xlu1 %417  ;;  %1638 = vmatprep.subr.bf16.mxu1 %v2947_v24  ;;  %v416_v37 = vpop.permute.xlu0 %415  ;;  %v3315_v24 = vld [vmem:[#allocation12_spill] sm:$0xff] }
 0x216   : > { %1599 = vmatprep.subr.bf16.mxu0 %v3312_v35  ;;  %1819 = vmatprep.mubr.msk.bf16.mxu0 %vm1487_vm14, %v2753_v28 }
 0x217   : > { %1589 = vmatmul.mubr.bf16.vlgmr.msra.gmra.mrb[0].mxu1 %v3133_v62 }
 0x218   : > { %1639 = vmatpush1.bf16.msra.mxu1 %v2925_v22  ;;  %1821 = vmatprep.mubr.msk.bf16.mxu1 %vm1487_vm14, %v2753_v28  ;;  %v428_v22 = vsel %vm423_vm8, %v2450_v59, %v416_v37  ;;  %v429_v28 = vsel %vm423_vm8, %v416_v37, %v418_v57 }
 0x219   : > { %1600 = vmatpush1.bf16.msra.mxu0 %v3313_v42  ;;  %v422_v55 = vpop.permute.xlu1 %421  ;;  %1640 = vmatprep.subr.bf16.mxu1 %v3314_v10  ;;  %v420_v20 = vpop.permute.xlu0 %419 }
 0x21a   : > { %1601 = vmatprep.subr.bf16.mxu0 %v3315_v24  ;;  %v430_v36 = vsel %vm423_vm8, %v418_v57, %v420_v20  ;;  %v431_v59 = vsel %vm423_vm8, %v420_v20, %v422_v55  ;;  %vm3323_vm8 = vmmov %vm3320_vm0 }
 0x21c   : > { %1641 = vmatpush1.bf16.msra.mxu1 %v3316_v19 }
 0x21d   : > { %1602 = vmatpush1.bf16.msra.mxu0 %v3317_v53  ;;  %v445_v47 = vpop.permute.xlu1 %444  ;;  %1642 = vmatprep.subr.bf16.mxu1 %v3318_v33  ;;  %v443_v8 = vpop.permute.xlu0 %442 }
 0x21e   : > { %v455_v18 = vsel %vm450_vm9, %v2487_v40, %v443_v8  ;;  %v456_v44 = vsel %vm450_vm9, %v443_v8, %v445_v47 }
 0x21f   : > { %v794_v31 = vsel %vm675_vm1, %v429_v28, %v456_v44  ;;  %v790_v46 = vsel %vm675_vm1, %v428_v22, %v455_v18 }
 0x220   : > { %1603 = vmatprep.subr.bf16.mxu0 %v794_v31  ;;  %1643 = vmatpush1.bf16.msra.mxu1 %v3319_v0 }
 0x221   : > { %v449_v58 = vpop.permute.xlu1 %448  ;;  %1604 = vmatpush1.bf16.msra.mxu0 %v790_v46  ;;  %v447_v1 = vpop.permute.xlu0 %446 }
 0x222   : > { %v457_v39 = vsel %vm450_vm9, %v445_v47, %v447_v1  ;;  %v458_v40 = vsel %vm450_vm9, %v447_v1, %v449_v58  ;;  %vm3324_vm9 = vcmask 146432  }
 0x223   : > { %v802_v45 = vsel %vm675_vm1, %v431_v59, %v458_v40  ;;  %v798_v27 = vsel %vm675_vm1, %v430_v36, %v457_v39  ;;  %vm3325_vm10 = vmmov %vm3324_vm9 }
 0x224   : > { %1644 = vmatprep.subr.bf16.mxu1 %v802_v45  ;;  %vm3328_vm13 = vmmov %vm3324_vm9 }
 0x225   : > { %v472_v14 = vpop.permute.xlu1 %471  ;;  %1645 = vmatpush1.bf16.msra.mxu1 %v798_v27  ;;  %v470_v26 = vpop.permute.xlu0 %469  ;;  %vm3329_vm14 = vmmov %vm3324_vm9 }
 0x226   : > { %v482_v43 = vsel %vm477_vm11, %v2519_v41, %v470_v26  ;;  %v483_v15 = vsel %vm477_vm11, %v470_v26, %v472_v14 }
 0x227   : > { %v826_v11 = vsel %vm675_vm1, %v483_v15, %v3076_v38  ;;  %v822_v21 = vsel %vm675_vm1, %v482_v43, %v2717_v25 }
 0x228   : > { %1605 = vmatprep.subr.bf16.mxu0 %v826_v11 }
 0x229   : > { %v476_v52 = vpop.permute.xlu1 %475  ;;  %1606 = vmatpush1.bf16.msra.mxu0 %v822_v21  ;;  %v474_v29 = vpop.permute.xlu0 %473 }
 0x22a   : > { %v484_v34 = vsel %vm477_vm11, %v472_v14, %v474_v29  ;;  %v485_v5 = vsel %vm477_vm11, %v474_v29, %v476_v52  ;;  %vm3326_vm11 = vcmask 138240  }
 0x22b   : > { %v834_v3 = vsel %vm675_vm1, %v485_v5, %v3098_v30  ;;  %v830_v41 = vsel %vm675_vm1, %v484_v34, %v3081_v32  ;;  %vm3327_vm12 = vmmov %vm3326_vm11 }
 0x22c   : > { %1646 = vmatprep.subr.bf16.mxu1 %v834_v3  ;;  %vm3330_vm15 = vmmov %vm3326_vm11 }
 0x22d   : > { %v553_v12 = vpop.permute.xlu1 %552  ;;  %1647 = vmatpush1.bf16.msra.mxu1 %v830_v41  ;;  %v551_v38 = vpop.permute.xlu0 %550  ;;  %vm3331_vm3 = vmmov %vm3326_vm11 }
 0x22e   : > { %v563_v25 = vsel %vm3320_vm0, %v2577_v9, %v551_v38  ;;  %v564_v60 = vsel %vm3321_vm6, %v551_v38, %v553_v12  ;;  %vm3334_vm0 = vcmask 64512  }
 0x22f   : > { %v858_v61 = vsel %vm675_vm1, %v3110_v50, %v564_v60  ;;  %v854_v2 = vsel %vm675_vm1, %v2788_v6, %v563_v25  ;;  %vm3335_vm6 = vmmov %vm3334_vm0 }
 0x230   : > { %1607 = vmatprep.subr.bf16.mxu0 %v858_v61 }
 0x231   : > { %v557_v30 = vpop.permute.xlu1 %556  ;;  %1608 = vmatpush1.bf16.msra.mxu0 %v854_v2  ;;  %v555_v57 = vpop.permute.xlu0 %554 }
 0x232   : > { %v565_v32 = vsel %vm3322_vm7, %v553_v12, %v555_v57  ;;  %v566_v37 = vsel %vm3323_vm8, %v555_v57, %v557_v30  ;;  %vm3336_vm7 = vmmov %vm3332_vm4 }
 0x233   : > { %v866_v35 = vsel %vm675_vm1, %v3121_v4, %v566_v37  ;;  %v862_v9 = vsel %vm675_vm1, %v3113_v51, %v565_v32  ;;  %vm3337_vm8 = vmmov %vm3332_vm4 }
 0x234   : > { %1648 = vmatprep.subr.bf16.mxu1 %v866_v35 }
 0x235   : > { %v580_v42 = vpop.permute.xlu1 %579  ;;  %1649 = vmatpush1.bf16.msra.mxu1 %v862_v9  ;;  %v578_v50 = vpop.permute.xlu0 %577 }
 0x236   : > { %v590_v24 = vsel %vm3324_vm9, %v2623_v48, %v578_v50  ;;  %v591_v19 = vsel %vm3325_vm10, %v578_v50, %v580_v42  ;;  %vm3338_vm9 = vmmov %vm3334_vm0 }
 0x237   : > { %vm3339_vm10 = vmmov %vm3334_vm0 }
 0x239   : > { %v584_v55 = vpop.permute.xlu1 %583  ;;  %v582_v6 = vpop.permute.xlu0 %581 }
 0x23a   : > { %v592_v22 = vsel %vm3328_vm13, %v580_v42, %v582_v6  ;;  %v593_v28 = vsel %vm3329_vm14, %v582_v6, %v584_v55 }
 0x23d   : > { %v607_v10 = vpop.permute.xlu1 %606  ;;  %v605_v20 = vpop.permute.xlu0 %604 }
 0x23e   : > { %v617_v53 = vsel %vm3326_vm11, %v2636_v63, %v605_v20  ;;  %v618_v4 = vsel %vm3327_vm12, %v605_v20, %v607_v10 }
 0x23f   : > { %v890_v51 = vsel %vm675_vm1, %v591_v19, %v618_v4  ;;  %v886_v47 = vsel %vm675_vm1, %v590_v24, %v617_v53 }
 0x240   : > { %1609 = vmatprep.subr.bf16.mxu0 %v890_v51 }
 0x241   : > { %v611_v33 = vpop.permute.xlu1 %610  ;;  %1610 = vmatpush1.bf16.msra.mxu0 %v886_v47  ;;  %v609_v8 = vpop.permute.xlu0 %608 }
 0x242   : > { %v619_v48 = vsel %vm3330_vm15, %v607_v10, %v609_v8  ;;  %v620_v18 = vsel %vm3331_vm3, %v609_v8, %v611_v33 }
 0x243   : > { %v898_v63 = vsel %vm675_vm1, %v593_v28, %v620_v18  ;;  %v894_v44 = vsel %vm675_vm1, %v592_v22, %v619_v48 }
 0x244   : > { %1650 = vmatprep.subr.bf16.mxu1 %v898_v63 }
 0x245   : > { %v634_v31 = vpop.permute.xlu1 %633  ;;  %1651 = vmatpush1.bf16.msra.mxu1 %v894_v44  ;;  %v632_v46 = vpop.permute.xlu0 %631 }
 0x246   : > { %v644_v59 = vsel %vm3332_vm4, %v2685_v54, %v632_v46  ;;  %v645_v39 = vsel %vm3333_vm5, %v632_v46, %v634_v31 }
 0x249   : > { %v638_v0 = vpop.permute.xlu1 %637  ;;  %v636_v58 = vpop.permute.xlu0 %635 }
 0x24a   : > { %v646_v15 = vsel %vm3336_vm7, %v634_v31, %v636_v58  ;;  %v647_v11 = vsel %vm3337_vm8, %v636_v58, %v638_v0 }
 0x24d   : > { %v661_v1 = vpop.permute.xlu1 %660  ;;  %v659_v36 = vpop.permute.xlu0 %658 }
 0x24e   : > { %v671_v40 = vsel %vm3334_vm0, %v2719_v23, %v659_v36  ;;  %v672_v45 = vsel %vm3335_vm6, %v659_v36, %v661_v1 }
 0x24f   : > { %v922_v27 = vsel %vm675_vm1, %v645_v39, %v672_v45  ;;  %v918_v14 = vsel %vm675_vm1, %v644_v59, %v671_v40 }
 0x250   : > { %1611 = vmatprep.subr.bf16.mxu0 %v922_v27 }
 0x251   : > { %v665_v26 = vpop.permute.xlu1 %664  ;;  %1612 = vmatpush1.bf16.msra.mxu0 %v918_v14  ;;  %v663_v43 = vpop.permute.xlu0 %662 }
 0x252   : > { %v673_v54 = vsel %vm3338_vm9, %v661_v1, %v663_v43  ;;  %v674_v21 = vsel %vm3339_vm10, %v663_v43, %v665_v26 }
 0x253   : > { %v930_v23 = vsel %vm675_vm1, %v647_v11, %v674_v21  ;;  %v926_v52 = vsel %vm675_vm1, %v646_v15, %v673_v54 }
 0x254   : > { %1652 = vmatprep.subr.bf16.mxu1 %v930_v23 }
 0x255   : > { %v1290_v29 = vpop.permute.xlu1 %1289  ;;  %1653 = vmatpush1.bf16.msra.mxu1 %v926_v52  ;;  %v1288_v34 = vpop.permute.xlu0 %1287 }
 0x256   : > { %v1390_v5 = vsel %vm1385_vm2, %v2799_v56, %v1288_v34  ;;  %v1391_v3 = vsel %vm1385_vm2, %v1288_v34, %v1290_v29 }
 0x257   : > { %1613 = vmatprep.subr.bf16.mxu0 %v1391_v3 }
 0x258   : > { %1614 = vmatpush1.bf16.msra.mxu0 %v1390_v5 }
 0x259   : > { %v1294_v41 = vpop.permute.xlu1 %1293  ;;  %v1292_v12 = vpop.permute.xlu0 %1291 }
 0x25a   : > { %v1392_v38 = vsel %vm1385_vm2, %v1290_v29, %v1292_v12  ;;  %v1393_v25 = vsel %vm1385_vm2, %v1292_v12, %v1294_v41 }
 0x25b   : > { %1654 = vmatprep.subr.bf16.mxu1 %v1393_v25 }
 0x25c   : > { %1655 = vmatpush1.bf16.msra.mxu1 %v1392_v38 }
 0x25d   : > { %v1308_v60 = vpop.permute.xlu1 %1307  ;;  %v1306_v61 = vpop.permute.xlu0 %1305 }
 0x25e   : > { %v1398_v2 = vsel %vm1385_vm2, %v2850_v16, %v1306_v61  ;;  %v1399_v30 = vsel %vm1385_vm2, %v1306_v61, %v1308_v60 }
 0x25f   : > { %1615 = vmatprep.subr.bf16.mxu0 %v1399_v30 }
 0x260   : > { %1616 = vmatpush1.bf16.msra.mxu0 %v1398_v2 }
 0x261   : > { %v1312_v56 = vpop.permute.xlu1 %1311  ;;  %v1310_v57 = vpop.permute.xlu0 %1309 }
 0x262   : > { %v1400_v32 = vsel %vm1385_vm2, %v1308_v60, %v1310_v57  ;;  %v1401_v37 = vsel %vm1385_vm2, %v1310_v57, %v1312_v56 }
 0x263   : > { %1656 = vmatprep.subr.bf16.mxu1 %v1401_v37 }
 0x264   : > { %1657 = vmatpush1.bf16.msra.mxu1 %v1400_v32 }
 0x265   : > { %v1326_v35 = vpop.permute.xlu1 %1325  ;;  %v1324_v9 = vpop.permute.xlu0 %1323 }
 0x266   : > { %v1406_v42 = vsel %vm1385_vm2, %v2897_v17, %v1324_v9  ;;  %v1407_v50 = vsel %vm1385_vm2, %v1324_v9, %v1326_v35 }
 0x267   : > { %1617 = vmatprep.subr.bf16.mxu0 %v1407_v50 }
 0x268   : > { %1618 = vmatpush1.bf16.msra.mxu0 %v1406_v42 }
 0x269   : > { %v1330_v16 = vpop.permute.xlu1 %1329  ;;  %v1328_v55 = vpop.permute.xlu0 %1327 }
 0x26a   : > { %v1408_v6 = vsel %vm1385_vm2, %v1326_v35, %v1328_v55  ;;  %v1409_v10 = vsel %vm1385_vm2, %v1328_v55, %v1330_v16 }
 0x26b   : > { %1658 = vmatprep.subr.bf16.mxu1 %v1409_v10 }
 0x26c   : > { %1659 = vmatpush1.bf16.msra.mxu1 %v1408_v6 }
 0x26d   : > { %v1344_v20 = vpop.permute.xlu1 %1343  ;;  %v1342_v24 = vpop.permute.xlu0 %1341 }
 0x26e   : > { %v1414_v19 = vsel %vm1385_vm2, %v3019_v7, %v1342_v24  ;;  %v1415_v53 = vsel %vm1385_vm2, %v1342_v24, %v1344_v20 }
 0x26f   : > { %1619 = vmatprep.subr.bf16.mxu0 %v1415_v53 }
 0x270   : > { %1620 = vmatpush1.bf16.msra.mxu0 %v1414_v19 }
 0x271   : > { %v1348_v17 = vpop.permute.xlu1 %1347  ;;  %v1346_v4 = vpop.permute.xlu0 %1345 }
 0x272   : > { %v1416_v51 = vsel %vm1385_vm2, %v1344_v20, %v1346_v4  ;;  %v1417_v47 = vsel %vm1385_vm2, %v1346_v4, %v1348_v17 }
 0x273   : > { %1660 = vmatprep.subr.bf16.mxu1 %v1417_v47 }
 0x274   : > { %1661 = vmatpush1.bf16.msra.mxu1 %v1416_v51 }
 0x275   : > { %v1362_v33 = vpop.permute.xlu1 %1361  ;;  %v1360_v8 = vpop.permute.xlu0 %1359 }
 0x276   : > { %v1422_v22 = vsel %vm1385_vm2, %v3058_v49, %v1360_v8  ;;  %v1423_v28 = vsel %vm1385_vm2, %v1360_v8, %v1362_v33 }
 0x277   : > { %1621 = vmatprep.subr.bf16.mxu0 %v1423_v28 }
 0x278   : > { %1622 = vmatpush1.bf16.msra.mxu0 %v1422_v22 }
 0x279   : > { %v1366_v7 = vpop.permute.xlu1 %1365  ;;  %v1364_v48 = vpop.permute.xlu0 %1363 }
 0x27a   : > { %v1424_v18 = vsel %vm1385_vm2, %v1362_v33, %v1364_v48  ;;  %v1425_v63 = vsel %vm1385_vm2, %v1364_v48, %v1366_v7 }
 0x27b   : > { %1662 = vmatprep.subr.bf16.mxu1 %v1425_v63 }
 0x27c   : > { %1663 = vmatpush1.bf16.msra.mxu1 %v1424_v18 }
 0x27d   : > { %v1380_v44 = vpop.permute.xlu1 %1379  ;;  %v1378_v31 = vpop.permute.xlu0 %1377 }
 0x27e   : > { %v1430_v46 = vsel %vm1385_vm2, %v3138_v13, %v1378_v31  ;;  %v1431_v49 = vsel %vm1385_vm2, %v1378_v31, %v1380_v44 }
 0x27f   : > { %v1504_v0 = vsel %vm675_vm1, %v1430_v46, 0  ;;  %1818 = vmatprep.subr.msk.bf16.mxu0 %vm675_vm1, %v1431_v49 }
 0x280   : > { %1624 = vmatpush1.bf16.msra.mxu0 %v1504_v0 }
 0x281   : > { %v1384_v58 = vpop.permute.xlu1 %1383  ;;  %v1382_v1 = vpop.permute.xlu0 %1381 }
 0x282   : > { %v1432_v36 = vsel %vm1385_vm2, %v1380_v44, %v1382_v1  ;;  %v1433_v59 = vsel %vm1385_vm2, %v1382_v1, %v1384_v58 }
 0x283   : > { %v1510_v39 = vsel %vm675_vm1, %v1432_v36, 0  ;;  %1820 = vmatprep.subr.msk.bf16.mxu1 %vm675_vm1, %v1433_v59  ;;  %1630 = vmatmul.mubr.bf16.vlgmr.msra.gmra.mrb[4].mxu0 %v3133_v62 }
 0x284   : > { %1665 = vmatpush1.bf16.msra.mxu1 %v1510_v39 }
 0x287   : > { %1671 = vmatmul.mubr.bf16.vlgmr.msra.gmra.mrb[4].mxu1 %v3133_v62 }
 0x292   : > { %v1479_v13 = vpop.permute.xlu0 %1478 }
 0x2e7   : > { %v1549_v40 = vpop.f32.mrb[0].mxu0 }
 0x2e8   : > { %v1551_v45 = vpop.f32.mrb[1].mxu0  ;;  %v1550_v27 = vadd.f32 %v1549_v40, %v1479_v13 }
 0x2e9   : > { %v1553_v14 = vpop.f32.mrb[2].mxu0  ;;  %v1552_v26 = vadd.f32 %v1551_v45, %v1479_v13 }
 0x2ea   : > { %v1590_v43 = vpop.f32.mrb[0].mxu1  ;;  %v1554_v15 = vpop.f32.mrb[3].mxu0  ;;  %v1679_v11 = vmax.f32 %v1550_v27, 0.0 }
 0x2eb   : > { %v1592_v54 = vpop.f32.mrb[1].mxu1  ;;  %v1591_v21 = vadd.f32 %v1590_v43, %v1479_v13  ;;  %v1680_v23 = vmax.f32 %v1552_v26, 0.0 }
 0x2ec   : > { %v1594_v52 = vpop.f32.mrb[2].mxu1  ;;  %v1593_v29 = vadd.f32 %v1592_v54, %v1479_v13 }
 0x2ed   : > { %v1595_v62 = vpop.f32.mrb[3].mxu1  ;;  %v1681_v34 = vmax.f32 %v1591_v21, 0.0  ;;  %v1830_v5 = vpack.c.bf16 %v1680_v23, %v1679_v11 }
 0x2ee   : > { %v1682_v3 = vmax.f32 %v1593_v29, 0.0 }
 0x2ef   : > { %1719 = vst [vmem:[%s228_s8] sm:$0xff] %v1830_v5 }
 0x2f0   : > { %v1831_v41 = vpack.c.bf16 %v1682_v3, %v1681_v34 }
 0x2f2   : > { %1720 = vst [vmem:[%s228_s8 + $0x8] sm:$0xff] %v1831_v41 }
 0x356   : > { %v1631_v12 = vpop.f32.mrb[4].mxu0 }
 0x357   : > { %v1632_v38 = vadd.f32 %v1631_v12, %v1479_v13  ;;  %v1633_v25 = vpop.f32.mrb[5].mxu0 }
 0x358   : > { %v1634_v60 = vadd.f32 %v1633_v25, %v1479_v13  ;;  %v1635_v61 = vpop.f32.mrb[6].mxu0 }
 0x359   : > { %v1683_v2 = vmax.f32 %v1632_v38, 0.0  ;;  %v1636_v30 = vpop.f32.mrb[7].mxu0 }
 0x35a   : > { %v1684_v56 = vmax.f32 %v1634_v60, 0.0  ;;  %v1672_v57 = vpop.f32.mrb[4].mxu1 }
 0x35b   : > { %v1673_v32 = vadd.f32 %v1672_v57, %v1479_v13  ;;  %v1674_v37 = vpop.f32.mrb[5].mxu1 }
 0x35c   : > { %v1832_v35 = vpack.c.bf16 %v1684_v56, %v1683_v2  ;;  %v1675_v9 = vadd.f32 %v1674_v37, %v1479_v13  ;;  %v1676_v42 = vpop.f32.mrb[6].mxu1 }
 0x35d   : > { %v1685_v50 = vmax.f32 %v1673_v32, 0.0  ;;  %v1677_v16 = vpop.f32.mrb[7].mxu1 }
 0x35e   : > { %1721 = vst [vmem:[%s228_s8 + $0x10] sm:$0xff] %v1832_v35  ;;  %v1686_v55 = vmax.f32 %v1675_v9, 0.0 }
 0x360   : > { %v1833_v6 = vpack.c.bf16 %v1686_v55, %v1685_v50 }
 0x362   : > { %1722 = vst [vmem:[%s228_s8 + $0x18] sm:$0xff] %v1833_v6 }
 0x363 PF: > { %s14_s15 = sadd.s32 1, %s1885_s15  }
 0x364   : > { %p11_p6 = scmp.ge.s32.totalorder %s14_s15, 4  }
 0x366   :  { %13 = sbr.rel (!%p11_p6) target bundleno = 1 (0x1), region = 69 }

// kernel: global_net_forward.31
= control target key start
LH: loop header
LB: loop body
LE: loop exit
PB: predicated region body
PF: predicated region fallthrough
CT: control target
= control target key end

     0   :  { %s436_s12 = smov 0   ;;  %s463_s0 = inlined_call_operand.vmem [shape: bf16[2,8], index: 0, kind: input, shape index: {}]   ;;  %s464_s1 = inlined_call_operand.vmem [shape: bf16[8,1024], index: 1, kind: input, shape index: {}]   ;;  %s465_s2 = inlined_call_operand.vmem [shape: f32[2,1], index: 2, kind: input, shape index: {}]   ;;  %s466_s3 = inlined_call_operand.vmem [shape: f32[2,1024], index: 3, kind: output, shape index: {}]  }
   0x1 LB: > { %s372_s13 = sadd.s32 4294967295, %s412_s12   ;;  %p376_p0 = scmp.ge.s32.totalorder %s412_s12, 1  ;;  %s412_s12 = sphi %s436_s12, %s13_s12  }
   0x2   : > { %p138_p1 = scmp.lt.s32.totalorder %s412_s12, 3 }
   0x4   : > { %p139_p2 = pnand %p376_p0, %p138_p1 }
   0x5   : > { %s377_s14 = sshll.u32 (!%p139_p2), %s372_s13, 2  ;;  %v414_v0 = vmov (!%p139_p2), 0   ;;  %v178_v1 = vld [vmem:[%s465_s2] sm:$0x3] (!%p139_p2)  ;;  %vm198_vm0 = vcmask (!%p139_p2), 1043456   ;;  %vm194_vm1 = vcmask (!%p139_p2), 64512   ;;  %v302_v13 = vlaneseq (!%p139_p2) }
   0x6   : > { %142 = sbr.rel (%p139_p2) target bundleno = 245 (0xf5), region = 32  ;;  %p163_p3 = scmp.lt.s32.totalorder (!%p139_p2), %s377_s14, 7  ;;  %243 = vmatprep.mubr.bf16.mxu0 (!%p139_p2), %v414_v0  ;;  %284 = vmatprep.mubr.bf16.mxu1 (!%p139_p2), %v414_v0  ;;  %v175_v10 = vld [vmem:[%s463_s0] sm:$0x1] (!%p139_p2)  ;;  %v415_v11 = vmov (!%p139_p2), 1983009808  }
   0x7   : > { %401 = vset.pattern.permute.xlu0 (!%p139_p2), %v414_v0  ;;  %v300_v12 = vunpack.c.l.s4 (!%p139_p2), %v415_v11  ;;  %v303_v16 = vshrl.u32 (!%p139_p2), %v302_v13, 7 }
   0x8   : > { %181 = vperm.xlu0 (!%p139_p2), %401, %v178_v1  }
   0x9   : > { %v301_v15 = vunpack.c.0.s8 (!%p139_p2), %v300_v12 }
   0xb   : > { %v304_v24 = vsub.s32 (!%p139_p2), %v301_v15, %v303_v16 }
   0xd   : > { %s468_s14 = smov (!%p163_p3, %s377_s14), 7 }
   0xe   : > { %s378_s17 = sshll.u32 %s468_s14, 2  ;;  %s380_s23 = sshll.u32 %s468_s14, 1 }
   0xf   : > { %s166_s20 = scalar_lea.vmem %s464_s1, %s378_s17  ;;  %s172_s26 = scalar_lea.vmem %s466_s3, %s380_s23 }
  0x10   : > { %v176_v2 = vld [vmem:[%s166_s20] sm:$0xff]  ;;  %v177_v3 = vld [vmem:[%s166_s20 + $0x8] sm:$0xff] }
  0x11   : > { %v382_v4 = vcombine.high %v176_v2, %v176_v2  ;;  %v384_v5 = vcombine.high %v177_v3, %v177_v3  ;;  %v381_v6 = vcombine.low %v176_v2, %v176_v2  ;;  %v383_v7 = vcombine.low %v177_v3, %v177_v3 }
  0x13   : > { %385 = vmatprep.subr.msk.bf16.mxu0 %vm198_vm0, %v382_v4  ;;  %387 = vmatprep.subr.msk.bf16.mxu1 %vm198_vm0, %v384_v5  ;;  %v200_v8 = vsel %vm198_vm0, %v381_v6, 0  ;;  %v206_v9 = vsel %vm198_vm0, %v383_v7, 0 }
  0x14   : > { %212 = vmatpush1.bf16.msra.mxu0 %v200_v8  ;;  %253 = vmatpush1.bf16.msra.mxu1 %v206_v9 }
  0x17   : > { %386 = vmatmul.mubr.msk.bf16.vlgmr.msra.gmra.mrb[0].mxu0 %vm194_vm1, %v175_v10  ;;  %388 = vmatmul.mubr.msk.bf16.vlgmr.msra.gmra.mrb[0].mxu1 %vm194_vm1, %v175_v10 }
  0x87   : > { %v182_v14 = vpop.permute.xlu0 %181 }
  0xea   : > { %v245_v17 = vpop.f32.mrb[0].mxu0  ;;  %v286_v18 = vpop.f32.mrb[0].mxu1 }
  0xeb   : > { %v246_v19 = vadd.f32 %v245_v17, %v182_v14  ;;  %v287_v20 = vadd.f32 %v286_v18, %v182_v14  ;;  %v247_v21 = vpop.f32.mrb[1].mxu0  ;;  %v288_v22 = vpop.f32.mrb[1].mxu1 }
  0xec   : > { %v248_v23 = vadd.f32 %v247_v21, %v182_v14  ;;  %v289_v25 = vadd.f32 %v288_v22, %v182_v14  ;;  %v249_v26 = vpop.f32.mrb[2].mxu0  ;;  %v290_v27 = vpop.f32.mrb[2].mxu1 }
  0xed   : > { %v250_v28 = vpop.f32.mrb[3].mxu0  ;;  %v291_v29 = vpop.f32.mrb[3].mxu1 }
  0xee   : > { %v297_v30 = vcombine.low %v246_v19, %v248_v23  ;;  %v298_v31 = vcombine.low %v287_v20, %v289_v25 }
  0xf0   : > { %v305_v32 = vrot.slane %v297_v30, %v304_v24  ;;  %v312_v33 = vrot.slane %v298_v31, %v304_v24 }
  0xf2   : > { %v313_v34 = vcombine.low %v305_v32, %v312_v33 }
  0xf4   : > { %315 = vst [vmem:[%s172_s26] sm:$0xff] %v313_v34 }
  0xf5 PF: > { %s13_s12 = sadd.s32 1, %s412_s12  }
  0xf6   : > { %p10_p4 = scmp.ge.s32.totalorder %s13_s12, 4  }
  0xf8   :  { %12 = sbr.rel (!%p10_p4) target bundleno = 1 (0x1), region = 62 }

</bundles_post_ra>
